<compile_context>
chip_gen: v5e
topology: v5e:2x2
jax: 0.10.0
libtpu: 0.0.40
codegen_flags: <defaults>
</compile_context>

<pallas_src>
import functools
import numpy as np

import jax
import jax.numpy as jnp
from jax.experimental import pallas as pl
from jax.experimental.pallas import tpu as pltpu


def _round_up(n: int, m: int) -> int:
    return ((n + m - 1) // m) * m


def _posenc_kernel(x_ref, o_ref, *, max_freq: int):
    """Lane-dense NeRF positional encoding on a flat block of coordinates.

    x_ref: (TR, TC)            -- TC is a multiple of 128 (lane-dense)
    o_ref: (1 + 2*F, TR, TC)   -- feature-major:
                                  o[0]     = x
                                  o[1+f]   = sin(x * 2**f)
                                  o[1+F+f] = sin(x * 2**f + pi/2)
    """
    half_pi = float(np.pi / 2)

    # Exact pass-through of the raw coordinates (no dtype round trip).
    o_ref[0, :, :] = x_ref[...]

    # f32 math: free on v5e (no bf16 VPU/EUP) and keeps sin accurate for
    # bf16 inputs once arguments are scaled by 2**(F-1).
    x = x_ref[...].astype(jnp.float32)

    # F is tiny (e.g. 6): fully unrolled Python loop; Python-scalar scales
    # keep the traced body free of captured array constants.
    for f in range(max_freq):
        xb = x * float(2.0 ** f)
        o_ref[1 + f, :, :] = jnp.sin(xb).astype(o_ref.dtype)
        o_ref[1 + max_freq + f, :, :] = jnp.sin(xb + half_pi).astype(o_ref.dtype)


def nerf_pos_enc(x, max_freq: int, *, block_rows: int = 128, lane_width: int = 512):
    """Pallas implementation of NeRFPosEnc.forward.

    The coordinate axis is flattened with the batch axes so compute and
    stores are fully lane-dense; the kernel writes a feature-major
    (1+2F, N*D) slab and one XLA transpose/reshape in the wrapper recovers
    the module's public (..., D*(1+2F)) layout.
    """
    D = x.shape[-1]
    lead = x.shape[:-1]
    N = int(np.prod(lead)) if lead else 1
    F = int(max_freq)
    C = 1 + 2 * F
    out_dim = D * C

    M = N * D                       # total flat coordinate elements
    TC = int(lane_width)
    assert TC % 128 == 0

    rows = -(-M // TC)              # ceil-div: rows of TC lanes needed
    tr = min(int(block_rows), _round_up(rows, 8))
    if rows >= 16:
        # Guarantee >=2 grid steps so the v7x megacore can split the grid.
        tr = min(tr, _round_up((rows + 1) // 2, 8))
    tr = max(_round_up(tr, 8), 8)
    rows_pad = _round_up(rows, tr)
    M_pad = rows_pad * TC

    x_flat = x.reshape(M)
    if M_pad != M:
        x_flat = jnp.pad(x_flat, (0, M_pad - M))
    x2 = x_flat.reshape(rows_pad, TC)

    kernel = functools.partial(_posenc_kernel, max_freq=F)

    itemsize = int(np.dtype(x.dtype).itemsize)
    cost = pl.CostEstimate(
        flops=2 * F * M,                       # scale-mul + pi/2-add
        transcendentals=2 * F * M,             # sin ops
        bytes_accessed=itemsize * M * (1 + C), # read x, write (1+2F) features
    )

    out_fm = pl.pallas_call(
        kernel,
        out_shape=jax.ShapeDtypeStruct((C, rows_pad, TC), x.dtype),
        grid_spec=pltpu.PrefetchScalarGridSpec(
            num_scalar_prefetch=0,
            grid=(rows_pad // tr,),
            in_specs=[pl.BlockSpec((tr, TC), lambda i: (i, 0))],
            out_specs=pl.BlockSpec((C, tr, TC), lambda i: (0, i, 0)),
        ),
        compiler_params=pltpu.CompilerParams(
            dimension_semantics=("parallel",)),
        cost_estimate=cost,
    )(x2)

    # Single XLA re-layout back to the module's public (..., D*(1+2F)) layout.
    out_flat = out_fm.reshape(C, M_pad)
    if M_pad != M:
        out_flat = out_flat[:, :M]
    out = out_flat.reshape(C, N, D).transpose(1, 0, 2)   # (N, C, D)
    return out.reshape(*lead, out_dim)


def nerf_pos_enc_ref(x, max_freq: int):
    """Pure-JAX reference mirroring the PyTorch module exactly."""
    scales = (2.0 ** jnp.arange(max_freq)).astype(x.dtype)     # (F,)
    xb = x[..., None, :] * scales[:, None]                     # (..., F, D)
    xb = xb.reshape(*x.shape[:-1], -1)                         # (..., F*D)
    emb = jnp.sin(jnp.concatenate([xb, xb + jnp.pi / 2], axis=-1))
    return jnp.concatenate([x, emb], axis=-1)


if __name__ == "__main__":
    max_freq = 6
    # small point-like input: (batch=2, n_points=128, coord_dim=4)
    key = jax.random.PRNGKey(0)
    x = jax.random.normal(key, (2, 128, 4), dtype=jnp.float32)

    out = nerf_pos_enc(x, max_freq)
    out = jax.block_until_ready(out)

    ref = nerf_pos_enc_ref(x, max_freq)
    np.testing.assert_allclose(np.asarray(out), np.asarray(ref),
                               rtol=1e-5, atol=1e-5)
    assert out.shape == (2, 128, 4 * (1 + 2 * max_freq))

    print("KERNEL_OK")
</pallas_src>

<mosaic_0001>
module attributes {stable_mosaic.version = 11 : i64} {
  func.func @_posenc_kernel(%arg0: i32, %arg1: memref<8x512xf32, #tpu.memory_space<vmem>>, %arg2: memref<13x8x512xf32, #tpu.memory_space<vmem>>) attributes {dimension_semantics = [#tpu.dimension_semantics<parallel>], iteration_bounds = array<i64: 1>, scalar_prefetch = 0 : i64, scratch_operands = 0 : i64, tpu.core_type = #tpu.core_type<tc>, window_params = [{transform_indices = @transform_0, window_bounds = array<i64: 8, 512>}, {transform_indices = @transform_1, window_bounds = array<i64: 13, 8, 512>}]} {
    %c0 = arith.constant 0 : index
    %c0_0 = arith.constant 0 : index
    %0 = vector.load %arg1[%c0, %c0_0] : memref<8x512xf32, #tpu.memory_space<vmem>>, vector<8x512xf32>
    %c0_1 = arith.constant 0 : index
    %c0_2 = arith.constant 0 : index
    %c0_3 = arith.constant 0 : index
    %1 = vector.load %arg2[%c0_1, %c0_2, %c0_3] : memref<13x8x512xf32, #tpu.memory_space<vmem>>, vector<1x8x512xf32>
    %2 = vector.shape_cast %1 : vector<1x8x512xf32> to vector<8x512xf32>
    %3 = vector.shape_cast %0 : vector<8x512xf32> to vector<1x8x512xf32>
    tpu.vector_store %arg2[%c0_1, %c0_2, %c0_3], %3 {strides = array<i32>} : memref<13x8x512xf32, #tpu.memory_space<vmem>>, vector<1x8x512xf32>,
    %c0_4 = arith.constant 0 : index
    %c0_5 = arith.constant 0 : index
    %4 = vector.load %arg1[%c0_4, %c0_5] : memref<8x512xf32, #tpu.memory_space<vmem>>, vector<8x512xf32>
    %cst = arith.constant 1.000000e+00 : f32
    %5 = vector.broadcast %cst : f32 to vector<8x512xf32>
    %6 = arith.mulf %4, %5 : vector<8x512xf32>
    %7 = math.sin %6 : vector<8x512xf32>
    %c1 = arith.constant 1 : index
    %c0_6 = arith.constant 0 : index
    %c0_7 = arith.constant 0 : index
    %8 = vector.load %arg2[%c1, %c0_6, %c0_7] : memref<13x8x512xf32, #tpu.memory_space<vmem>>, vector<1x8x512xf32>
    %9 = vector.shape_cast %8 : vector<1x8x512xf32> to vector<8x512xf32>
    %10 = vector.shape_cast %7 : vector<8x512xf32> to vector<1x8x512xf32>
    tpu.vector_store %arg2[%c1, %c0_6, %c0_7], %10 {strides = array<i32>} : memref<13x8x512xf32, #tpu.memory_space<vmem>>, vector<1x8x512xf32>,
    %cst_8 = arith.constant 1.57079637 : f32
    %11 = vector.broadcast %cst_8 : f32 to vector<8x512xf32>
    %12 = arith.addf %6, %11 : vector<8x512xf32>
    %13 = math.sin %12 : vector<8x512xf32>
    %c7 = arith.constant 7 : index
    %c0_9 = arith.constant 0 : index
    %c0_10 = arith.constant 0 : index
    %14 = vector.load %arg2[%c7, %c0_9, %c0_10] : memref<13x8x512xf32, #tpu.memory_space<vmem>>, vector<1x8x512xf32>
    %15 = vector.shape_cast %14 : vector<1x8x512xf32> to vector<8x512xf32>
    %16 = vector.shape_cast %13 : vector<8x512xf32> to vector<1x8x512xf32>
    tpu.vector_store %arg2[%c7, %c0_9, %c0_10], %16 {strides = array<i32>} : memref<13x8x512xf32, #tpu.memory_space<vmem>>, vector<1x8x512xf32>,
    %cst_11 = arith.constant 2.000000e+00 : f32
    %17 = vector.broadcast %cst_11 : f32 to vector<8x512xf32>
    %18 = arith.mulf %4, %17 : vector<8x512xf32>
    %19 = math.sin %18 : vector<8x512xf32>
    %c2 = arith.constant 2 : index
    %c0_12 = arith.constant 0 : index
    %c0_13 = arith.constant 0 : index
    %20 = vector.load %arg2[%c2, %c0_12, %c0_13] : memref<13x8x512xf32, #tpu.memory_space<vmem>>, vector<1x8x512xf32>
    %21 = vector.shape_cast %20 : vector<1x8x512xf32> to vector<8x512xf32>
    %22 = vector.shape_cast %19 : vector<8x512xf32> to vector<1x8x512xf32>
    tpu.vector_store %arg2[%c2, %c0_12, %c0_13], %22 {strides = array<i32>} : memref<13x8x512xf32, #tpu.memory_space<vmem>>, vector<1x8x512xf32>,
    %cst_14 = arith.constant 1.57079637 : f32
    %23 = vector.broadcast %cst_14 : f32 to vector<8x512xf32>
    %24 = arith.addf %18, %23 : vector<8x512xf32>
    %25 = math.sin %24 : vector<8x512xf32>
    %c8 = arith.constant 8 : index
    %c0_15 = arith.constant 0 : index
    %c0_16 = arith.constant 0 : index
    %26 = vector.load %arg2[%c8, %c0_15, %c0_16] : memref<13x8x512xf32, #tpu.memory_space<vmem>>, vector<1x8x512xf32>
    %27 = vector.shape_cast %26 : vector<1x8x512xf32> to vector<8x512xf32>
    %28 = vector.shape_cast %25 : vector<8x512xf32> to vector<1x8x512xf32>
    tpu.vector_store %arg2[%c8, %c0_15, %c0_16], %28 {strides = array<i32>} : memref<13x8x512xf32, #tpu.memory_space<vmem>>, vector<1x8x512xf32>,
    %cst_17 = arith.constant 4.000000e+00 : f32
    %29 = vector.broadcast %cst_17 : f32 to vector<8x512xf32>
    %30 = arith.mulf %4, %29 : vector<8x512xf32>
    %31 = math.sin %30 : vector<8x512xf32>
    %c3 = arith.constant 3 : index
    %c0_18 = arith.constant 0 : index
    %c0_19 = arith.constant 0 : index
    %32 = vector.load %arg2[%c3, %c0_18, %c0_19] : memref<13x8x512xf32, #tpu.memory_space<vmem>>, vector<1x8x512xf32>
    %33 = vector.shape_cast %32 : vector<1x8x512xf32> to vector<8x512xf32>
    %34 = vector.shape_cast %31 : vector<8x512xf32> to vector<1x8x512xf32>
    tpu.vector_store %arg2[%c3, %c0_18, %c0_19], %34 {strides = array<i32>} : memref<13x8x512xf32, #tpu.memory_space<vmem>>, vector<1x8x512xf32>,
    %cst_20 = arith.constant 1.57079637 : f32
    %35 = vector.broadcast %cst_20 : f32 to vector<8x512xf32>
    %36 = arith.addf %30, %35 : vector<8x512xf32>
    %37 = math.sin %36 : vector<8x512xf32>
    %c9 = arith.constant 9 : index
    %c0_21 = arith.constant 0 : index
    %c0_22 = arith.constant 0 : index
    %38 = vector.load %arg2[%c9, %c0_21, %c0_22] : memref<13x8x512xf32, #tpu.memory_space<vmem>>, vector<1x8x512xf32>
    %39 = vector.shape_cast %38 : vector<1x8x512xf32> to vector<8x512xf32>
    %40 = vector.shape_cast %37 : vector<8x512xf32> to vector<1x8x512xf32>
    tpu.vector_store %arg2[%c9, %c0_21, %c0_22], %40 {strides = array<i32>} : memref<13x8x512xf32, #tpu.memory_space<vmem>>, vector<1x8x512xf32>,
    %cst_23 = arith.constant 8.000000e+00 : f32
    %41 = vector.broadcast %cst_23 : f32 to vector<8x512xf32>
    %42 = arith.mulf %4, %41 : vector<8x512xf32>
    %43 = math.sin %42 : vector<8x512xf32>
    %c4 = arith.constant 4 : index
    %c0_24 = arith.constant 0 : index
    %c0_25 = arith.constant 0 : index
    %44 = vector.load %arg2[%c4, %c0_24, %c0_25] : memref<13x8x512xf32, #tpu.memory_space<vmem>>, vector<1x8x512xf32>
    %45 = vector.shape_cast %44 : vector<1x8x512xf32> to vector<8x512xf32>
    %46 = vector.shape_cast %43 : vector<8x512xf32> to vector<1x8x512xf32>
    tpu.vector_store %arg2[%c4, %c0_24, %c0_25], %46 {strides = array<i32>} : memref<13x8x512xf32, #tpu.memory_space<vmem>>, vector<1x8x512xf32>,
    %cst_26 = arith.constant 1.57079637 : f32
    %47 = vector.broadcast %cst_26 : f32 to vector<8x512xf32>
    %48 = arith.addf %42, %47 : vector<8x512xf32>
    %49 = math.sin %48 : vector<8x512xf32>
    %c10 = arith.constant 10 : index
    %c0_27 = arith.constant 0 : index
    %c0_28 = arith.constant 0 : index
    %50 = vector.load %arg2[%c10, %c0_27, %c0_28] : memref<13x8x512xf32, #tpu.memory_space<vmem>>, vector<1x8x512xf32>
    %51 = vector.shape_cast %50 : vector<1x8x512xf32> to vector<8x512xf32>
    %52 = vector.shape_cast %49 : vector<8x512xf32> to vector<1x8x512xf32>
    tpu.vector_store %arg2[%c10, %c0_27, %c0_28], %52 {strides = array<i32>} : memref<13x8x512xf32, #tpu.memory_space<vmem>>, vector<1x8x512xf32>,
    %cst_29 = arith.constant 1.600000e+01 : f32
    %53 = vector.broadcast %cst_29 : f32 to vector<8x512xf32>
    %54 = arith.mulf %4, %53 : vector<8x512xf32>
    %55 = math.sin %54 : vector<8x512xf32>
    %c5 = arith.constant 5 : index
    %c0_30 = arith.constant 0 : index
    %c0_31 = arith.constant 0 : index
    %56 = vector.load %arg2[%c5, %c0_30, %c0_31] : memref<13x8x512xf32, #tpu.memory_space<vmem>>, vector<1x8x512xf32>
    %57 = vector.shape_cast %56 : vector<1x8x512xf32> to vector<8x512xf32>
    %58 = vector.shape_cast %55 : vector<8x512xf32> to vector<1x8x512xf32>
    tpu.vector_store %arg2[%c5, %c0_30, %c0_31], %58 {strides = array<i32>} : memref<13x8x512xf32, #tpu.memory_space<vmem>>, vector<1x8x512xf32>,
    %cst_32 = arith.constant 1.57079637 : f32
    %59 = vector.broadcast %cst_32 : f32 to vector<8x512xf32>
    %60 = arith.addf %54, %59 : vector<8x512xf32>
    %61 = math.sin %60 : vector<8x512xf32>
    %c11 = arith.constant 11 : index
    %c0_33 = arith.constant 0 : index
    %c0_34 = arith.constant 0 : index
    %62 = vector.load %arg2[%c11, %c0_33, %c0_34] : memref<13x8x512xf32, #tpu.memory_space<vmem>>, vector<1x8x512xf32>
    %63 = vector.shape_cast %62 : vector<1x8x512xf32> to vector<8x512xf32>
    %64 = vector.shape_cast %61 : vector<8x512xf32> to vector<1x8x512xf32>
    tpu.vector_store %arg2[%c11, %c0_33, %c0_34], %64 {strides = array<i32>} : memref<13x8x512xf32, #tpu.memory_space<vmem>>, vector<1x8x512xf32>,
    %cst_35 = arith.constant 3.200000e+01 : f32
    %65 = vector.broadcast %cst_35 : f32 to vector<8x512xf32>
    %66 = arith.mulf %4, %65 : vector<8x512xf32>
    %67 = math.sin %66 : vector<8x512xf32>
    %c6 = arith.constant 6 : index
    %c0_36 = arith.constant 0 : index
    %c0_37 = arith.constant 0 : index
    %68 = vector.load %arg2[%c6, %c0_36, %c0_37] : memref<13x8x512xf32, #tpu.memory_space<vmem>>, vector<1x8x512xf32>
    %69 = vector.shape_cast %68 : vector<1x8x512xf32> to vector<8x512xf32>
    %70 = vector.shape_cast %67 : vector<8x512xf32> to vector<1x8x512xf32>
    tpu.vector_store %arg2[%c6, %c0_36, %c0_37], %70 {strides = array<i32>} : memref<13x8x512xf32, #tpu.memory_space<vmem>>, vector<1x8x512xf32>,
    %cst_38 = arith.constant 1.57079637 : f32
    %71 = vector.broadcast %cst_38 : f32 to vector<8x512xf32>
    %72 = arith.addf %66, %71 : vector<8x512xf32>
    %73 = math.sin %72 : vector<8x512xf32>
    %c12 = arith.constant 12 : index
    %c0_39 = arith.constant 0 : index
    %c0_40 = arith.constant 0 : index
    %74 = vector.load %arg2[%c12, %c0_39, %c0_40] : memref<13x8x512xf32, #tpu.memory_space<vmem>>, vector<1x8x512xf32>
    %75 = vector.shape_cast %74 : vector<1x8x512xf32> to vector<8x512xf32>
    %76 = vector.shape_cast %73 : vector<8x512xf32> to vector<1x8x512xf32>
    tpu.vector_store %arg2[%c12, %c0_39, %c0_40], %76 {strides = array<i32>} : memref<13x8x512xf32, #tpu.memory_space<vmem>>, vector<1x8x512xf32>,
    return
  }
  func.func @transform_0(%arg0: i32) -> (i32, i32) {
    %c0_i32 = arith.constant 0 : i32
    %c0_i32_0 = arith.constant 0 : i32
    return %arg0, %c0_i32 : i32, i32
  }
  func.func @transform_1(%arg0: i32) -> (i32, i32, i32) {
    %c0_i32 = arith.constant 0 : i32
    %c0_i32_0 = arith.constant 0 : i32
    %c0_i32_1 = arith.constant 0 : i32
    return %c0_i32, %arg0, %c0_i32_0 : i32, i32, i32
  }
}

</mosaic_0001>

<bundles_post_ra>
// kernel: tpu_custom_call.1
= control target key start
LH: loop header
LB: loop body
LE: loop exit
PB: predicated region body
PF: predicated region fallthrough
CT: control target
= control target key end

     0   :  { %6 = vsyncpa [#allocation3], 0  ;;  %s13441_s0 = inlined_call_operand.hbm [shape: f32[8,512], index: 0, kind: input, shape index: {}]   ;;  %s13442_s1 = inlined_call_operand.hbm [shape: f32[13,8,512], index: 1, kind: output, shape index: {}]  }
   0x1   :  { %7 = vsyncpa [#allocation4], 0  ;;  %s13_s8 = sshll.u32 %s13441_s0, 4  ;;  %s7828_s9 = smov [#allocation2]   ;;  %s14_s8 = int_to_ptr.hbm [resolvable:$true] %s13_s8 }
   0x2   :  { %s15_s10 = sshll.u32 %s7828_s9, 4  ;;  %s16_s10 = int_to_ptr.vmem [resolvable:$true] %s15_s10 }
   0x3   :  { %18 = dma.hbm_to_vmem [thread:$0]  %s14_s8, 512, %s16_s10, [#allocation3]  }
   0x4   :  { %7824 = dma.done.wait [#allocation3], 512  }
   0x5   :  { %7825 = vsyncadd [#allocation3], 4294966784  ;;  %v7852_v0 = vld [vmem:[#allocation2] sm:$0xff]  ;;  %v7854_v1 = vld [vmem:[#allocation2 + $0x8] sm:$0xff]  ;;  %v7829_v29 = vmov 683565275  }
   0x6   :  { %27 = vst [vmem:[#allocation5] sm:$0xff] %v7852_v0  ;;  %v35_v2 = vand.u32 2147483647, %v7852_v0  ;;  %v38_v3 = vand.u32 2139095040, %v7852_v0  ;;  %v7859_v4 = vld [vmem:[#allocation2 + $0x10] sm:$0xff]  ;;  %v193_v6 = vand.u32 2139095040, %v7854_v1 }
   0x7   :  { %28 = vst [vmem:[#allocation5 + $0x8] sm:$0xff] %v7854_v1  ;;  %v190_v5 = vand.u32 2147483647, %v7854_v1  ;;  %v7864_v7 = vld [vmem:[#allocation2 + $0x18] sm:$0xff]  ;;  %v348_v10 = vand.u32 2139095040, %v7859_v4  ;;  %s7836_s0 = smov [#allocation5]  }
   0x8   :  { %29 = vst [vmem:[#allocation5 + $0x10] sm:$0xff] %v7859_v4  ;;  %v39_v8 = vshrl.u32 %v38_v3, 23  ;;  %v42_v9 = vand.u32 8388607, %v35_v2  ;;  %v194_v11 = vshrl.u32 %v193_v6, 23  ;;  %s7583_s11 = sshll.u32 %s7836_s0, 4  ;;  %s7584_s11 = int_to_ptr.vmem [resolvable:$true] %s7583_s11 }
   0x9   :  { %30 = vst [vmem:[#allocation5 + $0x18] sm:$0xff] %v7864_v7  ;;  %v197_v12 = vand.u32 8388607, %v190_v5  ;;  %v349_v17 = vshrl.u32 %v348_v10, 23  ;;  %v7830_v31 = vmov 2475754826  }
   0xa   :  { %v7598_v13 = vadd.s32 4294967169, %v39_v8  ;;  %v43_v14 = vor.u32 8388608, %v42_v9  ;;  %v7601_v15 = vadd.s32 4294967169, %v194_v11  ;;  %v7831_v33 = vmov 2131351028   ;;  %s7585_s14 = sshll.u32 %s13442_s1, 4  ;;  %s7586_s14 = int_to_ptr.hbm [resolvable:$true] %s7585_s14 }
   0xb   :  { %v198_v18 = vor.u32 8388608, %v197_v12  ;;  %v7604_v24 = vadd.s32 4294967169, %v349_v17  ;;  %v7832_v35 = vmov 2102212464   ;;  %v7833_v37 = vmov 920167782  }
   0xc   :  { %v45_v16 = vadd.s32 1, %v7598_v13  ;;  %v200_v19 = vadd.s32 1, %v7601_v15  ;;  %v7873_v21 = vshll.u32 %v43_v14, 8  ;;  %v7834_v46 = vmov 1326507024   ;;  %s7837_s15 = smov 512  }
   0xd   :  { %v7879_v27 = vshll.u32 %v198_v18, 8  ;;  %v7891_v44 = vadd.s32 1, %v7604_v24  ;;  %s7838_s16 = smov 32  }
   0xe   :  { %vm46_vm0 = vcmp.gt.s32.totalorder %v45_v16, 0  ;;  %vm201_vm1 = vcmp.gt.s32.totalorder %v200_v19, 0  ;;  %v84_v39 = vand.u32 65535, %v7873_v21  ;;  %v85_v40 = vshrl.u32 %v7873_v21, 16 }
   0xf   :  { %v47_v20 = vsel %vm46_vm0, %v45_v16, 0  ;;  %v202_v23 = vsel %vm201_vm1, %v200_v19, 0  ;;  %vm356_vm15 = vcmp.gt.s32.totalorder %v7891_v44, 0 }
  0x10   :  { %v49_v22 = vand.u32 31, %v47_v20  ;;  %v7875_v25 = vshrl.u32 %v47_v20, 5  ;;  %v7877_v26 = vand.u32 31, %v202_v23  ;;  %v7907_v57 = vshrl.u32 %v202_v23, 5 }
  0x12   :  { %v50_v28 = vsub.s32 32, %v49_v22  ;;  %v52_v30 = vshll.u32 %v7829_v29, %v49_v22  ;;  %v55_v32 = vshll.u32 %v7830_v31, %v49_v22  ;;  %v58_v34 = vshll.u32 %v7831_v33, %v49_v22 }
  0x13   :  { %v61_v36 = vshll.u32 %v7832_v35, %v49_v22  ;;  %v64_v38 = vshll.u32 %v7833_v37, %v49_v22  ;;  %vm67_vm2 = vcmp.lt.s32.totalorder %v7875_v25, 1  ;;  %vm70_vm3 = vcmp.lt.s32.totalorder %v7875_v25, 4 }
  0x14   :  { %v53_v41 = vshrl.u32 %v7830_v31, %v50_v28  ;;  %v56_v42 = vshrl.u32 %v7831_v33, %v50_v28  ;;  %v59_v43 = vshrl.u32 %v7832_v35, %v50_v28  ;;  %v62_v45 = vshrl.u32 %v7833_v37, %v50_v28 }
  0x15   :  { %v65_v47 = vshrl.u32 %v7834_v46, %v50_v28  ;;  %v7898_v51 = vsub.s32 32, %v7877_v26  ;;  %v51_v52 = vshrl.u32 %v7829_v29, %v50_v28  ;;  %vm69_vm4 = vcmp.lt.s32.totalorder %v7875_v25, 3 }
  0x16   :  { %v54_v48 = vor.u32 %v53_v41, %v52_v30  ;;  %v57_v49 = vor.u32 %v56_v42, %v55_v32  ;;  %v60_v50 = vor.u32 %v59_v43, %v58_v34  ;;  %v63_v53 = vor.u32 %v62_v45, %v61_v36 }
  0x17   :  { %v66_v54 = vor.u32 %v65_v47, %v64_v38  ;;  %vm68_vm5 = vcmp.lt.s32.totalorder %v7875_v25, 2  ;;  %v207_v60 = vshll.u32 %v7829_v29, %v7877_v26  ;;  %v210_v61 = vshll.u32 %v7830_v31, %v7877_v26 }
  0x18   :  { %v75_v55 = vsel %vm67_vm2, %v54_v48, %v57_v49  ;;  %v79_v56 = vsel %vm67_vm2, %v57_v49, %v60_v50  ;;  %v76_v58 = vsel %vm70_vm3, %v63_v53, 920167782  ;;  %v72_v62 = vsel %vm70_vm3, %v60_v50, 2102212464 }
  0x19   :  { %v80_v59 = vsel %vm70_vm3, %v66_v54, 1326507024  ;;  %v77_v63 = vsel %vm69_vm4, %v60_v50, %v76_v58  ;;  %v208_v6 = vshrl.u32 %v7830_v31, %v7898_v51  ;;  %v71_v8 = vsel %vm67_vm2, %v51_v52, %v54_v48 }
  0x1a   :  { %v81_v3 = vsel %vm69_vm4, %v63_v53, %v80_v59  ;;  %v78_v9 = vsel %vm68_vm5, %v75_v55, %v77_v63  ;;  %v211_v11 = vshrl.u32 %v7831_v33, %v7898_v51  ;;  %v73_v16 = vsel %vm69_vm4, %v57_v49, %v72_v62 }
  0x1b   :  { %v82_v10 = vsel %vm68_vm5, %v79_v56, %v81_v3  ;;  %v108_v14 = vand.u32 65535, %v78_v9  ;;  %v109_v15 = vshrl.u32 %v78_v9, 16  ;;  %v7935_v17 = vor.u32 %v208_v6, %v207_v60 }
  0x1c   :  { %v86_v12 = vand.u32 65535, %v82_v10  ;;  %v87_v13 = vshrl.u32 %v82_v10, 16  ;;  %v7937_v18 = vor.u32 %v211_v11, %v210_v61  ;;  %v213_v19 = vshll.u32 %v7831_v33, %v7877_v26 }
  0x1d   :  { %v214_v24 = vshrl.u32 %v7832_v35, %v7898_v51  ;;  %v110_v30 = vmul.u32 %v108_v14, %v84_v39  ;;  %v111_v32 = vmul.u32 %v109_v15, %v84_v39  ;;  %v112_v34 = vmul.u32 %v108_v14, %v85_v40 }
  0x1e   :  { %v88_v20 = vmul.u32 %v86_v12, %v84_v39  ;;  %v89_v22 = vmul.u32 %v87_v13, %v84_v39  ;;  %v90_v23 = vmul.u32 %v86_v12, %v85_v40  ;;  %v91_v28 = vmul.u32 %v87_v13, %v85_v40 }
  0x1f   :  { %v113_v42 = vmul.u32 %v109_v15, %v85_v40  ;;  %v114_v45 = vshll.u32 %v111_v32, 16  ;;  %v115_v47 = vshrl.u32 %v111_v32, 16  ;;  %v116_v48 = vshll.u32 %v112_v34, 16 }
  0x20   :  { %v92_v36 = vshll.u32 %v89_v22, 16  ;;  %v93_v38 = vshrl.u32 %v89_v22, 16  ;;  %v94_v41 = vshll.u32 %v90_v23, 16  ;;  %v95_v43 = vshrl.u32 %v90_v23, 16 }
  0x21   :  { %v117_v50 = vshrl.u32 %v112_v34, 16  ;;  %v216_v52 = vshll.u32 %v7832_v35, %v7877_v26  ;;  %v7835_v53 = vmov 0   ;;  %vm118_vm7 = vc.u32 %v110_v30, %v114_v45 }
  0x22   :  { %vm96_vm6 = vc.u32 %v88_v20, %v92_v36  ;;  %v98_v49 = vadd.s32 %v92_v36, %v88_v20  ;;  %v120_v39 = vadd.s32 %v114_v45, %v110_v30  ;;  %v217_v55 = vshrl.u32 %v7833_v37, %v7898_v51 }
  0x23   :  { %v97_v54 = vsel %vm96_vm6, 1, %v7835_v53  ;;  %v119_v40 = vsel %vm118_vm7, 1, %v7835_v53  ;;  %v219_v58 = vshll.u32 %v7833_v37, %v7877_v26  ;;  %v215_v61 = vor.u32 %v214_v24, %v213_v19 }
  0x24   :  { %v99_v56 = vadd.s32 %v97_v54, %v91_v28  ;;  %vm100_vm8 = vc.u32 %v98_v49, %v94_v41  ;;  %v121_v60 = vadd.s32 %v119_v40, %v113_v42  ;;  %vm122_vm9 = vc.u32 %v120_v39, %v116_v48 }
  0x25   :  { %v101_v59 = vsel %vm100_vm8, 1, %v7835_v53  ;;  %v123_v63 = vsel %vm122_vm9, 1, %v7835_v53  ;;  %v218_v3 = vor.u32 %v217_v55, %v216_v52  ;;  %v220_v6 = vshrl.u32 %v7834_v46, %v7898_v51 }
  0x26   :  { %v103_v62 = vadd.s32 %v101_v59, %v99_v56  ;;  %v7955_v9 = vadd.s32 %v120_v39, %v116_v48  ;;  %v125_v10 = vadd.s32 %v123_v63, %v121_v60  ;;  %vm222_vm10 = vcmp.lt.s32.totalorder %v7907_v57, 1 }
  0x27   :  { %vm224_vm11 = vcmp.lt.s32.totalorder %v7907_v57, 3  ;;  %v221_v11 = vor.u32 %v220_v6, %v219_v58  ;;  %vm223_vm12 = vcmp.lt.s32.totalorder %v7907_v57, 2  ;;  %vm225_vm13 = vcmp.lt.s32.totalorder %v7907_v57, 4 }
  0x28   :  { %v104_v26 = vadd.s32 %v103_v62, %v93_v38  ;;  %v74_v12 = vsel %vm68_vm5, %v71_v8, %v73_v16  ;;  %v126_v13 = vadd.s32 %v125_v10, %v115_v47  ;;  %v230_v14 = vsel %vm222_vm10, %v7935_v17, %v7937_v18 }
  0x29   :  { %v231_v15 = vsel %vm225_vm13, %v218_v3, 920167782  ;;  %v234_v22 = vsel %vm222_vm10, %v7937_v18, %v215_v61  ;;  %v239_v25 = vand.u32 65535, %v7879_v27  ;;  %v235_v23 = vsel %vm225_vm13, %v221_v11, 1326507024 }
  0x2a   :  { %v7969_v19 = vadd.s32 %v104_v26, %v95_v43  ;;  %v232_v20 = vsel %vm224_vm11, %v215_v61, %v231_v15  ;;  %v127_v8 = vadd.s32 %v126_v13, %v117_v50  ;;  %v240_v24 = vshrl.u32 %v7879_v27, 16 }
  0x2b   :  { %v233_v16 = vsel %vm223_vm12, %v230_v14, %v232_v20  ;;  %v128_v28 = vmul.u32 %v7873_v21, %v74_v12  ;;  %v236_v30 = vsel %vm224_vm11, %v218_v3, %v235_v23  ;;  %v206_v41 = vshrl.u32 %v7829_v29, %v7898_v51 }
  0x2c   :  { %vm130_vm14 = vc.u32 %v7969_v19, %v7955_v9  ;;  %v263_v32 = vand.u32 65535, %v233_v16  ;;  %v131_v34 = vadd.s32 1, %v127_v8  ;;  %v237_v36 = vsel %vm223_vm12, %v234_v22, %v236_v30 }
  0x2d   :  { %v264_v38 = vshrl.u32 %v233_v16, 16  ;;  %v241_v42 = vand.u32 65535, %v237_v36  ;;  %v242_v43 = vshrl.u32 %v237_v36, 16  ;;  %v227_v39 = vsel %vm225_vm13, %v215_v61, 2102212464 }
  0x2e   :  { %v132_v21 = vsel %vm130_vm14, %v131_v34, %v127_v8  ;;  %v265_v45 = vmul.u32 %v263_v32, %v239_v25  ;;  %v267_v48 = vmul.u32 %v263_v32, %v240_v24  ;;  %v345_v56 = vand.u32 2147483647, %v7859_v4 }
  0x2f   :  { %v266_v47 = vmul.u32 %v264_v38, %v239_v25  ;;  %v133_v49 = vadd.s32 %v132_v21, %v128_v28  ;;  %v243_v50 = vmul.u32 %v241_v42, %v239_v25  ;;  %v244_v52 = vmul.u32 %v242_v43, %v239_v25 }
  0x30   :  { %v245_v54 = vmul.u32 %v241_v42, %v240_v24  ;;  %v357_v51 = vsel %vm356_vm15, %v7891_v44, 0  ;;  %v246_v58 = vmul.u32 %v242_v43, %v240_v24  ;;  %v226_v62 = vsel %vm222_vm10, %v206_v41, %v7935_v17 }
  0x31   :  { %v269_v55 = vshll.u32 %v266_v47, 16  ;;  %v134_v40 = vadd.s32 536870912, %v133_v49  ;;  %v247_v59 = vshll.u32 %v244_v52, 16  ;;  %v268_v63 = vmul.u32 %v264_v38, %v240_v24 }
  0x32   :  { %v249_v60 = vshll.u32 %v245_v54, 16  ;;  %v271_v3 = vshll.u32 %v267_v48, 16  ;;  %v228_v61 = vsel %vm224_vm11, %v7937_v18, %v227_v39  ;;  %v270_v26 = vshrl.u32 %v266_v47, 16 }
  0x33   :  { %vm273_vm0 = vc.u32 %v265_v45, %v269_v55  ;;  %v135_v6 = vshrl.u32 %v134_v40, 30  ;;  %vm251_vm1 = vc.u32 %v243_v50, %v247_v59  ;;  %v253_v10 = vadd.s32 %v247_v59, %v243_v50 }
  0x34   :  { %v252_v44 = vsel %vm251_vm1, 1, %v7835_v53  ;;  %v274_v11 = vsel %vm273_vm0, 1, %v7835_v53  ;;  %v275_v12 = vadd.s32 %v269_v55, %v265_v45  ;;  %v248_v14 = vshrl.u32 %v244_v52, 16 }
  0x35   :  { %v136_v13 = vshll.u32 %v135_v6, 30  ;;  %v254_v15 = vadd.s32 %v252_v44, %v246_v58  ;;  %vm255_vm2 = vc.u32 %v253_v10, %v249_v60  ;;  %v276_v20 = vadd.s32 %v274_v11, %v268_v63 }
  0x36   :  { %v256_v17 = vsel %vm255_vm2, 1, %v7835_v53  ;;  %vm277_vm3 = vc.u32 %v275_v12, %v271_v3  ;;  %v359_v22 = vand.u32 31, %v357_v51  ;;  %v250_v8 = vshrl.u32 %v245_v54, 16 }
  0x37   :  { %v137_v25 = vsub.s32 %v133_v49, %v136_v13  ;;  %v258_v18 = vadd.s32 %v256_v17, %v254_v15  ;;  %v278_v16 = vsel %vm277_vm3, 1, %v7835_v53  ;;  %v272_v23 = vshrl.u32 %v267_v48, 16 }
  0x38   :  { %v280_v24 = vadd.s32 %v278_v16, %v276_v20  ;;  %v8006_v32 = vadd.s32 %v275_v12, %v271_v3  ;;  %v229_v34 = vsel %vm223_vm12, %v226_v62, %v228_v61  ;;  %v360_v38 = vsub.s32 32, %v359_v22 }
  0x39   :  { %vm138_vm4 = vcmp.lt.s32.totalorder %v137_v25, 0  ;;  %v139_v28 = vsub.s32 0, %v137_v25  ;;  %v259_v30 = vadd.s32 %v258_v18, %v248_v14  ;;  %vm37_vm5 = vcmp.lt.s32.totalorder %v7852_v0, 0 }
  0x3a   :  { %v281_v36 = vadd.s32 %v280_v24, %v270_v26  ;;  %v352_v43 = vand.u32 8388607, %v345_v56  ;;  %v129_v21 = vadd.s32 %v7955_v9, %v7969_v19  ;;  %v159_v47 = vsub.s32 4, %v135_v6 }
  0x3b   :  { %v140_v41 = vsel %vm138_vm4, %v139_v28, %v137_v25  ;;  %v8011_v42 = vadd.s32 %v259_v30, %v250_v8  ;;  %v283_v49 = vmul.u32 %v7879_v27, %v229_v34  ;;  %v362_v57 = vshll.u32 %v7829_v29, %v359_v22 }
  0x3c   :  { %v141_v45 = vclz %v140_v41  ;;  %v282_v48 = vadd.s32 %v281_v36, %v272_v23  ;;  %v365_v50 = vshll.u32 %v7830_v31, %v359_v22  ;;  %v363_v39 = vshrl.u32 %v7830_v31, %v360_v38 }
  0x3d   :  { %vm285_vm6 = vc.u32 %v8011_v42, %v8006_v32  ;;  %v366_v55 = vshrl.u32 %v7831_v33, %v360_v38  ;;  %v368_v9 = vshll.u32 %v7831_v33, %v359_v22  ;;  %v369_v19 = vshrl.u32 %v7832_v35, %v360_v38 }
  0x3e   :  { %v7599_v52 = vadd.s32 4294967294, %v141_v45  ;;  %v286_v54 = vadd.s32 1, %v282_v48  ;;  %v371_v40 = vshll.u32 %v7832_v35, %v359_v22  ;;  %v372_v27 = vshrl.u32 %v7833_v37, %v360_v38 }
  0x3f   :  { %v160_v58 = vsel %vm37_vm5, %v159_v47, %v135_v6  ;;  %v8030_v60 = vshrl.u32 %v357_v51, 5  ;;  %v374_v3 = vshll.u32 %v7833_v37, %v359_v22  ;;  %v375_v61 = vshrl.u32 %v7834_v46, %v360_v38 }
  0x40   :  { %vm7600_vm7 = vcmp.lt.s32.totalorder %v7599_v52, 0  ;;  %v287_v59 = vsel %vm285_vm6, %v286_v54, %v282_v48  ;;  %v364_v11 = vor.u32 %v363_v39, %v362_v57  ;;  %v367_v13 = vor.u32 %v366_v55, %v365_v50 }
  0x41   :  { %v144_v62 = vsel %vm7600_vm7, 0, %v7599_v52  ;;  %v288_v63 = vadd.s32 %v287_v59, %v283_v49  ;;  %v370_v14 = vor.u32 %v369_v19, %v368_v9  ;;  %v373_v15 = vor.u32 %v372_v27, %v371_v40 }
  0x42   :  { %v145_v10 = vsub.s32 32, %v144_v62  ;;  %v146_v44 = vshll.u32 %v137_v25, %v144_v62  ;;  %v149_v26 = vsub.s32 4294967266, %v144_v62  ;;  %vm377_vm8 = vcmp.lt.s32.totalorder %v8030_v60, 1 }
  0x43   :  { %v289_v12 = vadd.s32 536870912, %v288_v63  ;;  %vm380_vm9 = vcmp.lt.s32.totalorder %v8030_v60, 4  ;;  %vm8038_vm10 = vcmp.le.f32.partialorder %v35_v2, 0.7853982  ;;  %v376_v22 = vor.u32 %v375_v61, %v374_v3 }
  0x44   :  { %v147_v17 = vshrl.u32 %v129_v21, %v145_v10  ;;  %v150_v20 = vadd.s32 127, %v149_v26  ;;  %vm379_vm11 = vcmp.lt.s32.totalorder %v8030_v60, 3  ;;  %v162_v18 = vsel %vm8038_vm10, 0, %v160_v58 }
  0x45   :  { %v8042_v6 = vshrl.u32 %v289_v12, 30  ;;  %v353_v16 = vor.u32 8388608, %v352_v43  ;;  %vm378_vm12 = vcmp.lt.s32.totalorder %v8030_v60, 2  ;;  %v385_v2 = vsel %vm377_vm8, %v364_v11, %v367_v13 }
  0x46   :  { %v148_v25 = vor.u32 %v147_v17, %v146_v44  ;;  %v151_v8 = vshll.u32 %v150_v20, 23  ;;  %v386_v24 = vsel %vm380_vm9, %v373_v15, 920167782  ;;  %v389_v36 = vsel %vm377_vm8, %v367_v13, %v370_v14 }
  0x47   :  { %v291_v23 = vshll.u32 %v8042_v6, 30  ;;  %v387_v34 = vsel %vm379_vm11, %v370_v14, %v386_v24  ;;  %v361_v43 = vshrl.u32 %v7829_v29, %v360_v38  ;;  %v390_v21 = vsel %vm380_vm9, %v376_v22, 1326507024 }
  0x48   :  { %v152_v28 = vor.u32 4788187, %v151_v8  ;;  %v155_v30 = vcvt.s32.f32 %v148_v25  ;;  %v179_v47 = vadd.s32 3, %v162_v18  ;;  %v391_v48 = vsel %vm379_vm11, %v373_v15, %v390_v21 }
  0x49   :  { %v8057_v41 = vsub.s32 %v288_v63, %v291_v23  ;;  %v8064_v49 = vshll.u32 %v353_v16, 8  ;;  %v388_v50 = vsel %vm378_vm12, %v385_v2, %v387_v34  ;;  %v392_v38 = vsel %vm378_vm12, %v389_v36, %v391_v48 }
  0x4a   :  { %v153_v45 = vand.u32 2147483647, %v152_v28  ;;  %v396_v55 = vand.u32 65535, %v392_v38  ;;  %v397_v19 = vshrl.u32 %v392_v38, 16  ;;  %v284_v27 = vadd.s32 %v8006_v32, %v8011_v42 }
  0x4b   :  { %vm293_vm13 = vcmp.lt.s32.totalorder %v8057_v41, 0  ;;  %v294_v57 = vsub.s32 0, %v8057_v41  ;;  %v394_v54 = vand.u32 65535, %v8064_v49  ;;  %v395_v39 = vshrl.u32 %v8064_v49, 16 }
  0x4c   :  { %v156_v52 = vmul.f32 %v155_v30, %v153_v45  ;;  %v382_v62 = vsel %vm380_vm9, %v370_v14, 2102212464  ;;  %v419_v61 = vshrl.u32 %v388_v50, 16  ;;  %v8083_v44 = vand.u32 3, %v179_v47 }
  0x4d   :  { %v295_v9 = vsel %vm293_vm13, %v294_v57, %v8057_v41  ;;  %v8077_v59 = vmul.u32 %v396_v55, %v395_v39  ;;  %v398_v63 = vmul.u32 %v396_v55, %v394_v54  ;;  %v399_v3 = vmul.u32 %v397_v19, %v394_v54 }
  0x4e   :  { %v157_v40 = vxor.u32 2147483648, %v156_v52  ;;  %v296_v58 = vclz %v295_v9  ;;  %v381_v12 = vsel %vm377_vm8, %v361_v43, %v364_v11  ;;  %v418_v15 = vand.u32 65535, %v388_v50 }
  0x4f   :  { %v402_v42 = vshll.u32 %v399_v3, 16  ;;  %v404_v14 = vshll.u32 %v8077_v59, 16  ;;  %vm192_vm14 = vcmp.lt.s32.totalorder %v7854_v1, 0  ;;  %v383_v20 = vsel %vm379_vm11, %v367_v13, %v382_v62 }
  0x50   :  { %v158_v10 = vsel %vm37_vm5, %v157_v40, %v156_v52  ;;  %v7602_v26 = vadd.s32 4294967294, %v296_v58  ;;  %v401_v22 = vmul.u32 %v397_v19, %v395_v39  ;;  %v8098_v51 = vmul.u32 %v419_v61, %v394_v54 }
  0x51   :  { %v8090_v32 = vsel %vm8038_vm10, %v7852_v0, %v158_v10  ;;  %vm406_vm0 = vc.u32 %v398_v63, %v402_v42  ;;  %v408_v25 = vadd.s32 %v402_v42, %v398_v63  ;;  %v8102_v28 = vmul.u32 %v418_v15, %v395_v39 }
  0x52   :  { %v163_v17 = vmul.f32 %v8090_v32, %v8090_v32  ;;  %vm7603_vm15 = vcmp.lt.s32.totalorder %v7602_v26, 0  ;;  %v407_v24 = vsel %vm406_vm0, 1, %v7835_v53  ;;  %vm8106_vm2 = vcmp.le.f32.partialorder %v190_v5, 0.7853982 }
  0x53   :  { %v299_v11 = vsel %vm7603_vm15, 0, %v7602_v26  ;;  %vm410_vm1 = vc.u32 %v408_v25, %v404_v14  ;;  %v409_v43 = vadd.s32 %v407_v24, %v401_v22  ;;  %vm185_vm3 = vcmp.eq.s32.totalorder %v8083_v44, 2 }
  0x54   :  { %v164_v8 = vmul.f32 -0.001358992, %v163_v17  ;;  %v171_v18 = vmul.f32 -0.00019511016, %v163_v17  ;;  %v300_v16 = vsub.s32 32, %v299_v11  ;;  %v301_v23 = vshll.u32 %v8057_v41, %v299_v11 }
  0x55   :  { %v304_v2 = vsub.s32 4294967266, %v299_v11  ;;  %v314_v41 = vsub.s32 4, %v8042_v6  ;;  %v403_v45 = vshrl.u32 %v399_v3, 16  ;;  %v420_v47 = vmul.u32 %v418_v15, %v394_v54 }
  0x56   :  { %v165_v30 = vadd.f32 0.041655596, %v164_v8  ;;  %v172_v34 = vadd.f32 0.008332121, %v171_v18  ;;  %v302_v36 = vshrl.u32 %v284_v27, %v300_v16  ;;  %v411_v38 = vsel %vm410_vm1, 1, %v7835_v53 }
  0x57   :  { %v305_v21 = vadd.s32 127, %v304_v2  ;;  %vm182_vm4 = vcmp.eq.s32.totalorder %v8083_v44, 0  ;;  %v413_v52 = vadd.s32 %v411_v38, %v409_v43  ;;  %v423_v55 = vmul.u32 %v419_v61, %v395_v39 }
  0x58   :  { %v166_v48 = vmul.f32 %v165_v30, %v163_v17  ;;  %v173_v57 = vmul.f32 %v172_v34, %v163_v17  ;;  %v303_v50 = vor.u32 %v302_v36, %v301_v23  ;;  %v424_v9 = vshll.u32 %v8098_v51, 16 }
  0x59   :  { %v306_v5 = vshll.u32 %v305_v21, 23  ;;  %v384_v27 = vsel %vm378_vm12, %v381_v12, %v383_v20  ;;  %v426_v58 = vshll.u32 %v8102_v28, 16  ;;  %v315_v63 = vsel %vm192_vm14, %v314_v41, %v8042_v6 }
  0x5a   :  { %v167_v19 = vadd.f32 -0.4999988, %v166_v48  ;;  %v174_v40 = vadd.f32 -0.16666654, %v173_v57  ;;  %v310_v62 = vcvt.s32.f32 %v303_v50  ;;  %vm428_vm5 = vc.u32 %v420_v47, %v424_v9 }
  0x5b   :  { %v307_v54 = vor.u32 4788187, %v306_v5  ;;  %v429_v39 = vsel %vm428_vm5, 1, %v7835_v53  ;;  %v430_v61 = vadd.s32 %v424_v9, %v420_v47  ;;  %v405_v42 = vshrl.u32 %v8077_v59, 16 }
  0x5c   :  { %v168_v3 = vmul.f32 %v167_v19, %v163_v17  ;;  %v175_v10 = vmul.f32 %v174_v40, %v163_v17  ;;  %v414_v14 = vadd.s32 %v413_v52, %v403_v45  ;;  %v431_v60 = vadd.s32 %v429_v39, %v423_v55 }
  0x5d   :  { %v308_v26 = vand.u32 2147483647, %v307_v54  ;;  %v425_v20 = vshrl.u32 %v8098_v51, 16  ;;  %vm432_vm6 = vc.u32 %v430_v61, %v426_v58  ;;  %v317_v6 = vsel %vm8106_vm2, 0, %v315_v63 }
  0x5e   :  { %v169_v12 = vadd.f32 1.0, %v168_v3  ;;  %v176_v15 = vadd.f32 1.0, %v175_v10  ;;  %v433_v11 = vsel %vm432_vm6, 1, %v7835_v53  ;;  %v503_v17 = vand.u32 2139095040, %v7864_v7 }
  0x5f   :  { %v311_v22 = vmul.f32 %v310_v62, %v308_v26  ;;  %v427_v59 = vshrl.u32 %v8102_v28, 16  ;;  %v435_v18 = vadd.s32 %v433_v11, %v431_v60  ;;  %v8130_v23 = vadd.s32 %v414_v14, %v405_v42 }
  0x60   :  { %v177_v25 = vmul.f32 %v176_v15, %v8090_v32  ;;  %v186_v8 = vxor.u32 2147483648, %v169_v12  ;;  %v8132_v2 = vadd.s32 %v430_v61, %v426_v58  ;;  %v504_v51 = vshrl.u32 %v503_v17, 23 }
  0x61   :  { %v312_v16 = vxor.u32 2147483648, %v311_v22  ;;  %vm181_vm7 = vcmp.lt.s32.totalorder %v8083_v44, 2  ;;  %v436_v34 = vadd.s32 %v435_v18, %v425_v20  ;;  %vm178_vm8 = vweird.f32 %v7852_v0 }
  0x62   :  { %v183_v24 = vxor.u32 2147483648, %v177_v25  ;;  %v187_v30 = vsel %vm185_vm3, %v186_v8, %v177_v25  ;;  %v438_v28 = vmul.u32 %v8064_v49, %v384_v27  ;;  %v7607_v36 = vadd.s32 4294967169, %v504_v51 }
  0x63   :  { %v313_v32 = vsel %vm192_vm14, %v312_v16, %v311_v22  ;;  %v334_v41 = vadd.s32 3, %v317_v6  ;;  %v437_v45 = vadd.s32 %v436_v34, %v427_v59  ;;  %vm440_vm9 = vc.u32 %v8130_v23, %v8132_v2 }
  0x64   :  { %v184_v43 = vsel %vm182_vm4, %v169_v12, %v183_v24  ;;  %v316_v21 = vsel %vm8106_vm2, %v7854_v1, %v313_v32  ;;  %v510_v57 = vadd.s32 1, %v7607_v36  ;;  %v500_v49 = vand.u32 2147483647, %v7864_v7 }
  0x65   :  { %v188_v47 = vsel %vm181_vm7, %v184_v43, %v187_v30  ;;  %v318_v48 = vmul.f32 %v316_v21, %v316_v21  ;;  %v441_v38 = vadd.s32 1, %v437_v45  ;;  %v8149_v44 = vand.u32 3, %v334_v41 }
  0x66   :  { %v189_v50 = vsel %vm178_vm8, nan, %v188_v47  ;;  %vm511_vm10 = vcmp.gt.s32.totalorder %v510_v57, 0  ;;  %v507_v63 = vand.u32 8388607, %v500_v49  ;;  %vm333_vm13 = vweird.f32 %v7854_v1 }
  0x67   :  { %v319_v5 = vmul.f32 -0.001358992, %v318_v48  ;;  %v326_v52 = vmul.f32 -0.00019511016, %v318_v48  ;;  %656 = vst [vmem:[#allocation5 + $0x20] sm:$0xff] %v189_v50  ;;  %v442_v13 = vsel %vm440_vm9, %v441_v38, %v437_v45  ;;  %v512_v55 = vsel %vm511_vm10, %v510_v57, 0 }
  0x68   :  { %v443_v40 = vadd.s32 %v442_v13, %v438_v28  ;;  %v514_v27 = vand.u32 31, %v512_v55  ;;  %vm337_vm11 = vcmp.eq.s32.totalorder %v8149_v44, 0  ;;  %v8154_v3 = vshrl.u32 %v512_v55, 5 }
  0x69   :  { %v320_v9 = vadd.f32 0.041655596, %v319_v5  ;;  %v327_v19 = vadd.f32 0.008332121, %v326_v52  ;;  %vm336_vm12 = vcmp.lt.s32.totalorder %v8149_v44, 2  ;;  %vm340_vm14 = vcmp.eq.s32.totalorder %v8149_v44, 2 }
  0x6a   :  { %v444_v62 = vadd.s32 536870912, %v443_v40  ;;  %v8156_v10 = vsub.s32 32, %v514_v27  ;;  %v517_v39 = vshll.u32 %v7829_v29, %v514_v27  ;;  %v520_v61 = vshll.u32 %v7830_v31, %v514_v27 }
  0x6b   :  { %v321_v58 = vmul.f32 %v320_v9, %v318_v48  ;;  %v328_v54 = vmul.f32 %v327_v19, %v318_v48  ;;  %v523_v60 = vshll.u32 %v7831_v33, %v514_v27  ;;  %v526_v22 = vshll.u32 %v7832_v35, %v514_v27 }
  0x6c   :  { %v8161_v14 = vshrl.u32 %v444_v62, 30  ;;  %v518_v12 = vshrl.u32 %v7830_v31, %v8156_v10  ;;  %v521_v15 = vshrl.u32 %v7831_v33, %v8156_v10  ;;  %v524_v20 = vshrl.u32 %v7832_v35, %v8156_v10 }
  0x6d   :  { %v322_v26 = vadd.f32 -0.4999988, %v321_v58  ;;  %v329_v42 = vadd.f32 -0.16666654, %v328_v54  ;;  %v508_v25 = vor.u32 8388608, %v507_v63  ;;  %v527_v59 = vshrl.u32 %v7833_v37, %v8156_v10 }
  0x6e   :  { %v446_v17 = vshll.u32 %v8161_v14, 30  ;;  %v8174_v8 = vor.u32 %v518_v12, %v517_v39  ;;  %vm532_vm15 = vcmp.lt.s32.totalorder %v8154_v3, 1  ;;  %v8179_v24 = vor.u32 %v521_v15, %v520_v61 }
  0x6f   :  { %v323_v6 = vmul.f32 %v322_v26, %v318_v48  ;;  %v330_v11 = vmul.f32 %v329_v42, %v318_v48  ;;  %v525_v30 = vor.u32 %v524_v20, %v523_v60  ;;  %v528_v34 = vor.u32 %v527_v59, %v526_v22 }
  0x70   :  { %v447_v51 = vsub.s32 %v443_v40, %v446_v17  ;;  %v529_v32 = vshll.u32 %v7833_v37, %v514_v27  ;;  %v530_v28 = vshrl.u32 %v7834_v46, %v8156_v10  ;;  %vm534_vm1 = vcmp.lt.s32.totalorder %v8154_v3, 3 }
  0x71   :  { %v324_v18 = vadd.f32 1.0, %v323_v6  ;;  %v331_v16 = vadd.f32 1.0, %v330_v11  ;;  %vm535_vm2 = vcmp.lt.s32.totalorder %v8154_v3, 4  ;;  %v8186_v45 = vshll.u32 %v508_v25, 8 }
  0x72   :  { %vm448_vm0 = vcmp.lt.s32.totalorder %v447_v51, 0  ;;  %v449_v41 = vsub.s32 0, %v447_v51  ;;  %v8189_v47 = vadd.f32 1.5707964, %v7852_v0  ;;  %v531_v38 = vor.u32 %v530_v28, %v529_v32 }
  0x73   :  { %v332_v36 = vmul.f32 %v331_v16, %v316_v21  ;;  %v341_v43 = vxor.u32 2147483648, %v324_v18  ;;  %vm533_vm3 = vcmp.lt.s32.totalorder %v8154_v3, 2  ;;  %v540_v21 = vsel %vm532_vm15, %v8174_v8, %v8179_v24 }
  0x74   :  { %v450_v50 = vsel %vm448_vm0, %v449_v41, %v447_v51  ;;  %v541_v52 = vsel %vm535_vm2, %v528_v34, 920167782  ;;  %vm347_vm4 = vcmp.lt.s32.totalorder %v7859_v4, 0  ;;  %vm8209_vm5 = vcmp.le.f32.partialorder %v345_v56, 0.7853982 }
  0x75   :  { %v338_v48 = vxor.u32 2147483648, %v332_v36  ;;  %v342_v57 = vsel %vm340_vm14, %v341_v43, %v332_v36  ;;  %v451_v5 = vclz %v450_v50  ;;  %v542_v13 = vsel %vm534_vm1, %v525_v30, %v541_v52 }
  0x76   :  { %v439_v19 = vadd.s32 %v8132_v2, %v8130_v23  ;;  %v667_v27 = vand.u32 2139095040, %v8189_v47  ;;  %v469_v54 = vsub.s32 4, %v8161_v14  ;;  %v543_v44 = vsel %vm533_vm3, %v540_v21, %v542_v13 }
  0x77   :  { %v339_v0 = vsel %vm337_vm11, %v324_v18, %v338_v48  ;;  %v7605_v40 = vadd.s32 4294967294, %v451_v5  ;;  %v544_v56 = vsel %vm532_vm15, %v8179_v24, %v525_v30  ;;  %v545_v62 = vsel %vm535_vm2, %v531_v38, 1326507024 }
  0x78   :  { %v343_v55 = vsel %vm336_vm12, %v339_v0, %v342_v57  ;;  %v549_v23 = vand.u32 65535, %v8186_v45  ;;  %v550_v2 = vshrl.u32 %v8186_v45, 16  ;;  %v546_v63 = vsel %vm534_vm1, %v528_v34, %v545_v62 }
  0x79   :  { %v344_v58 = vsel %vm333_vm13, nan, %v343_v55  ;;  %vm7606_vm6 = vcmp.lt.s32.totalorder %v7605_v40, 0  ;;  %v573_v39 = vand.u32 65535, %v543_v44  ;;  %v574_v61 = vshrl.u32 %v543_v44, 16 }
  0x7a   :  { %657 = vst [vmem:[#allocation5 + $0x28] sm:$0xff] %v344_v58  ;;  %v454_v1 = vsel %vm7606_vm6, 0, %v7605_v40  ;;  %v547_v12 = vsel %vm533_vm3, %v544_v56, %v546_v63  ;;  %v470_v15 = vsel %vm347_vm4, %v469_v54, %v8161_v14  ;;  %v516_v20 = vshrl.u32 %v7829_v29, %v8156_v10 }
  0x7b   :  { %v455_v26 = vsub.s32 32, %v454_v1  ;;  %v456_v42 = vshll.u32 %v447_v51, %v454_v1  ;;  %v459_v60 = vsub.s32 4294967266, %v454_v1  ;;  %v551_v22 = vand.u32 65535, %v547_v12 }
  0x7c   :  { %v668_v6 = vshrl.u32 %v667_v27, 23  ;;  %v537_v25 = vsel %vm535_vm2, %v525_v30, 2102212464  ;;  %v552_v59 = vshrl.u32 %v547_v12, 16  ;;  %v575_v16 = vmul.u32 %v573_v39, %v549_v23 }
  0x7d   :  { %v457_v11 = vshrl.u32 %v439_v19, %v455_v26  ;;  %v460_v17 = vadd.s32 127, %v459_v60  ;;  %v555_v18 = vmul.u32 %v551_v22, %v550_v2  ;;  %v576_v51 = vmul.u32 %v574_v61, %v549_v23 }
  0x7e   :  { %v577_v34 = vmul.u32 %v573_v39, %v550_v2  ;;  %v553_v36 = vmul.u32 %v551_v22, %v549_v23  ;;  %v554_v43 = vmul.u32 %v552_v59, %v549_v23  ;;  %v472_v14 = vsel %vm8209_vm5, 0, %v470_v15 }
  0x7f   :  { %v458_v32 = vor.u32 %v457_v11, %v456_v42  ;;  %v461_v28 = vshll.u32 %v460_v17, 23  ;;  %v556_v10 = vmul.u32 %v552_v59, %v550_v2  ;;  %v578_v41 = vmul.u32 %v574_v61, %v550_v2 }
  0x80   :  { %v579_v48 = vshll.u32 %v576_v51, 16  ;;  %v557_v38 = vshll.u32 %v554_v43, 16  ;;  %v559_v5 = vshll.u32 %v555_v18, 16  ;;  %v536_v30 = vsel %vm532_vm15, %v516_v20, %v8174_v8  ;;  %v8256_v20 = vld [vmem:[#allocation5 + $0x10] sm:$0xff] }
  0x81   :  { %v462_v57 = vor.u32 4788187, %v461_v28  ;;  %v465_v50 = vcvt.s32.f32 %v458_v32  ;;  %v538_v21 = vsel %vm534_vm1, %v8179_v24, %v537_v25  ;;  %v581_v52 = vshll.u32 %v577_v34, 16 }
  0x82   :  { %vm583_vm7 = vc.u32 %v575_v16, %v579_v48  ;;  %vm561_vm8 = vc.u32 %v553_v36, %v557_v38  ;;  %v563_v13 = vadd.s32 %v557_v38, %v553_v36  ;;  %v558_v19 = vshrl.u32 %v554_v43, 16 }
  0x83   :  { %v463_v0 = vand.u32 2147483647, %v462_v57  ;;  %v584_v55 = vsel %vm583_vm7, 1, %v7835_v53  ;;  %v562_v40 = vsel %vm561_vm8, 1, %v7835_v53  ;;  %v585_v27 = vadd.s32 %v579_v48, %v575_v16 }
  0x84   :  { %v586_v58 = vadd.s32 %v584_v55, %v578_v41  ;;  %v564_v44 = vadd.s32 %v562_v40, %v556_v10  ;;  %vm565_vm9 = vc.u32 %v563_v13, %v559_v5  ;;  %v7610_v8 = vadd.s32 4294967169, %v668_v6 }
  0x85   :  { %v466_v54 = vmul.f32 %v465_v50, %v463_v0  ;;  %v560_v56 = vshrl.u32 %v555_v18, 16  ;;  %v566_v62 = vsel %vm565_vm9, 1, %v7835_v53  ;;  %v580_v24 = vshrl.u32 %v576_v51, 16 }
  0x86   :  { %vm587_vm10 = vc.u32 %v585_v27, %v581_v52  ;;  %v568_v2 = vadd.s32 %v566_v62, %v564_v44  ;;  %v674_v63 = vadd.s32 1, %v7610_v8  ;;  %v489_v39 = vadd.s32 3, %v472_v14  ;;  %v7754_v14 = vld [vmem:[#allocation5 + $0x8] sm:$0xff] }
  0x87   :  { %v467_v23 = vxor.u32 2147483648, %v466_v54  ;;  %v588_v1 = vsel %vm587_vm10, 1, %v7835_v53  ;;  %v582_v61 = vshrl.u32 %v577_v34, 16  ;;  %v664_v42 = vand.u32 2147483647, %v8189_v47 }
  0x88   :  { %v590_v26 = vadd.s32 %v588_v1, %v586_v58  ;;  %v569_v12 = vadd.s32 %v568_v2, %v558_v19  ;;  %v8254_v15 = vadd.s32 %v585_v27, %v581_v52  ;;  %vm675_vm11 = vcmp.gt.s32.totalorder %v674_v63, 0 }
  0x89   :  { %v468_v60 = vsel %vm347_vm4, %v467_v23, %v466_v54  ;;  %v539_v6 = vsel %vm533_vm3, %v536_v30, %v538_v21  ;;  %v676_v17 = vsel %vm675_vm11, %v674_v63, 0  ;;  %v8269_v18 = vand.u32 3, %v489_v39  ;;  %v8292_v54 = vld [vmem:[#allocation5 + $0x18] sm:$0xff] }
  0x8a   :  { %v8261_v22 = vsel %vm8209_vm5, %v8256_v20, %v468_v60  ;;  %v591_v11 = vadd.s32 %v590_v26, %v580_v24  ;;  %v8267_v25 = vadd.s32 %v569_v12, %v560_v56  ;;  %v678_v59 = vand.u32 31, %v676_v17 }
  0x8b   :  { %v473_v4 = vmul.f32 %v8261_v22, %v8261_v22  ;;  %v593_v9 = vmul.u32 %v8186_v45, %v539_v6  ;;  %v671_v32 = vand.u32 8388607, %v664_v42  ;;  %v8276_v10 = vadd.f32 1.5707964, %v7754_v14 }
  0x8c   :  { %v592_v16 = vadd.s32 %v591_v11, %v582_v61  ;;  %vm595_vm12 = vc.u32 %v8267_v25, %v8254_v15  ;;  %v679_v28 = vsub.s32 32, %v678_v59  ;;  %v681_v41 = vshll.u32 %v7829_v29, %v678_v59 }
  0x8d   :  { %v474_v51 = vmul.f32 -0.001358992, %v473_v4  ;;  %v481_v34 = vmul.f32 -0.00019511016, %v473_v4  ;;  %vm495_vm13 = vcmp.eq.s32.totalorder %v8269_v18, 2  ;;  %v684_v57 = vshll.u32 %v7830_v31, %v678_v59 }
  0x8e   :  { %v596_v3 = vadd.s32 1, %v592_v16  ;;  %v682_v45 = vshrl.u32 %v7830_v31, %v679_v28  ;;  %v685_v50 = vshrl.u32 %v7831_v33, %v679_v28  ;;  %v690_v21 = vshll.u32 %v7832_v35, %v678_v59 }
  0x8f   :  { %v475_v36 = vadd.f32 0.041655596, %v474_v51  ;;  %v482_v43 = vadd.f32 0.008332121, %v481_v34  ;;  %vm492_vm14 = vcmp.eq.s32.totalorder %v8269_v18, 0  ;;  %v672_v52 = vor.u32 8388608, %v671_v32 }
  0x90   :  { %v597_v48 = vsel %vm595_vm12, %v596_v3, %v592_v16  ;;  %v8285_v0 = vshrl.u32 %v676_v17, 5  ;;  %v687_v13 = vshll.u32 %v7831_v33, %v678_v59  ;;  %v688_v55 = vshrl.u32 %v7832_v35, %v679_v28 }
  0x91   :  { %v476_v38 = vmul.f32 %v475_v36, %v473_v4  ;;  %v483_v5 = vmul.f32 %v482_v43, %v473_v4  ;;  %v598_v30 = vadd.s32 %v597_v48, %v593_v9  ;;  %vm491_vm15 = vcmp.lt.s32.totalorder %v8269_v18, 2 }
  0x92   :  { %v691_v58 = vshrl.u32 %v7833_v37, %v679_v28  ;;  %vm488_vm0 = vweird.f32 %v8256_v20  ;;  %vm502_vm1 = vcmp.lt.s32.totalorder %v8292_v54, 0  ;;  %v683_v44 = vor.u32 %v682_v45, %v681_v41 }
  0x93   :  { %v477_v19 = vadd.f32 -0.4999988, %v476_v38  ;;  %v484_v40 = vadd.f32 -0.16666654, %v483_v5  ;;  %v599_v27 = vadd.s32 536870912, %v598_v30  ;;  %v8295_v8 = vor.u32 %v685_v50, %v684_v57 }
  0x94   :  { %v693_v56 = vshll.u32 %v7833_v37, %v678_v59  ;;  %v694_v62 = vshrl.u32 %v7834_v46, %v679_v28  ;;  %v692_v1 = vor.u32 %v691_v58, %v690_v21  ;;  %v689_v63 = vor.u32 %v688_v55, %v687_v13 }
  0x95   :  { %v478_v24 = vmul.f32 %v477_v19, %v473_v4  ;;  %v485_v23 = vmul.f32 %v484_v40, %v473_v4  ;;  %v600_v2 = vshrl.u32 %v599_v27, 30  ;;  %vm696_vm2 = vcmp.lt.s32.totalorder %v8285_v0, 1 }
  0x96   :  { %vm699_vm3 = vcmp.lt.s32.totalorder %v8285_v0, 4  ;;  %v8301_v39 = vshll.u32 %v672_v52, 8  ;;  %vm698_vm4 = vcmp.lt.s32.totalorder %v8285_v0, 3  ;;  %v695_v6 = vor.u32 %v694_v62, %v693_v56 }
  0x97   :  { %v479_v61 = vadd.f32 1.0, %v478_v24  ;;  %v486_v26 = vadd.f32 1.0, %v485_v23  ;;  %v601_v60 = vshll.u32 %v600_v2, 30  ;;  %v624_v12 = vsub.s32 4, %v600_v2 }
  0x98   :  { %vm697_vm5 = vcmp.lt.s32.totalorder %v8285_v0, 2  ;;  %v705_v11 = vsel %vm699_vm3, %v692_v1, 920167782  ;;  %vm8310_vm6 = vcmp.le.f32.partialorder %v500_v49, 0.7853982  ;;  %v704_v51 = vsel %vm696_vm2, %v683_v44, %v8295_v8 }
  0x99   :  { %v487_v17 = vmul.f32 %v486_v26, %v8261_v22  ;;  %v496_v4 = vxor.u32 2147483648, %v479_v61  ;;  %v602_v16 = vsub.s32 %v598_v30, %v601_v60  ;;  %v706_v34 = vsel %vm698_vm4, %v689_v63, %v705_v11 }
  0x9a   :  { %v708_v9 = vsel %vm696_vm2, %v8295_v8, %v689_v63  ;;  %v713_v22 = vand.u32 65535, %v8301_v39  ;;  %v822_v7 = vand.u32 2139095040, %v8276_v10  ;;  %v680_v36 = vshrl.u32 %v7829_v29, %v679_v28 }
  0x9b   :  { %v493_v49 = vxor.u32 2147483648, %v487_v17  ;;  %v497_v3 = vsel %vm495_vm13, %v496_v4, %v487_v17  ;;  %vm603_vm7 = vcmp.lt.s32.totalorder %v602_v16, 0  ;;  %v604_v32 = vsub.s32 0, %v602_v16 }
  0x9c   :  { %v707_v43 = vsel %vm697_vm5, %v704_v51, %v706_v34  ;;  %v709_v14 = vsel %vm699_vm3, %v695_v6, 1326507024  ;;  %v714_v41 = vshrl.u32 %v8301_v39, 16  ;;  %v8336_v57 = vsel %vm502_vm1, %v624_v12, %v600_v2 }
  0x9d   :  { %v494_v48 = vsel %vm492_vm14, %v479_v61, %v493_v49  ;;  %v605_v45 = vsel %vm603_vm7, %v604_v32, %v602_v16  ;;  %v710_v50 = vsel %vm698_vm4, %v692_v1, %v709_v14  ;;  %v738_v30 = vshrl.u32 %v707_v43, 16 }
  0x9e   :  { %v498_v28 = vsel %vm491_vm15, %v494_v48, %v497_v3  ;;  %v606_v38 = vclz %v605_v45  ;;  %v711_v5 = vsel %vm697_vm5, %v708_v9, %v710_v50  ;;  %v737_v55 = vand.u32 65535, %v707_v43 }
  0x9f   :  { %v499_v21 = vsel %vm488_vm0, nan, %v498_v28  ;;  %v715_v52 = vand.u32 65535, %v711_v5  ;;  %v716_v13 = vshrl.u32 %v711_v5, 16  ;;  %v594_v19 = vadd.s32 %v8254_v15, %v8267_v25 }
  0xa0   :  { %v7608_v40 = vadd.s32 4294967294, %v606_v38  ;;  %658 = vst [vmem:[#allocation5 + $0x30] sm:$0xff] %v499_v21  ;;  %v819_v27 = vand.u32 2147483647, %v8276_v10  ;;  %v823_v18 = vshrl.u32 %v822_v7, 23  ;;  %v700_v58 = vsel %vm696_vm2, %v680_v36, %v683_v44 }
  0xa1   :  { %v718_v56 = vmul.u32 %v716_v13, %v713_v22  ;;  %v719_v62 = vmul.u32 %v715_v52, %v714_v41  ;;  %v740_v24 = vmul.u32 %v738_v30, %v713_v22  ;;  %v627_v23 = vsel %vm8310_vm6, 0, %v8336_v57 }
  0xa2   :  { %vm7609_vm8 = vcmp.lt.s32.totalorder %v7608_v40, 0  ;;  %v701_v2 = vsel %vm699_vm3, %v689_v63, 2102212464  ;;  %v717_v15 = vmul.u32 %v715_v52, %v713_v22  ;;  %v720_v1 = vmul.u32 %v716_v13, %v714_v41 }
  0xa3   :  { %v609_v25 = vsel %vm7609_vm8, 0, %v7608_v40  ;;  %v721_v61 = vshll.u32 %v718_v56, 16  ;;  %v741_v26 = vmul.u32 %v737_v55, %v714_v41  ;;  %v723_v44 = vshll.u32 %v719_v62, 16 }
  0xa4   :  { %v610_v60 = vsub.s32 32, %v609_v25  ;;  %v611_v12 = vshll.u32 %v602_v16, %v609_v25  ;;  %v614_v6 = vsub.s32 4294967266, %v609_v25  ;;  %v702_v11 = vsel %vm698_vm4, %v8295_v8, %v701_v2 }
  0xa5   :  { %v739_v17 = vmul.u32 %v737_v55, %v713_v22  ;;  %v743_v4 = vshll.u32 %v740_v24, 16  ;;  %v7613_v51 = vadd.s32 4294967169, %v823_v18  ;;  %vm725_vm9 = vc.u32 %v717_v15, %v721_v61 }
  0xa6   :  { %v612_v34 = vshrl.u32 %v594_v19, %v610_v60  ;;  %v615_v9 = vadd.s32 127, %v614_v6  ;;  %v727_v63 = vadd.s32 %v721_v61, %v717_v15  ;;  %v722_v7 = vshrl.u32 %v718_v56, 16 }
  0xa7   :  { %v726_v49 = vsel %vm725_vm9, 1, %v7835_v53  ;;  %v742_v3 = vmul.u32 %v738_v30, %v714_v41  ;;  %v745_v32 = vshll.u32 %v741_v26, 16  ;;  %v724_v14 = vshrl.u32 %v719_v62, 16 }
  0xa8   :  { %v613_v36 = vor.u32 %v612_v34, %v611_v12  ;;  %v616_v16 = vshll.u32 %v615_v9, 23  ;;  %v728_v43 = vadd.s32 %v726_v49, %v720_v1  ;;  %vm729_vm10 = vc.u32 %v727_v63, %v723_v44 }
  0xa9   :  { %v730_v48 = vsel %vm729_vm10, 1, %v7835_v53  ;;  %vm747_vm11 = vc.u32 %v739_v17, %v743_v4  ;;  %v749_v8 = vadd.s32 %v743_v4, %v739_v17  ;;  %v744_v28 = vshrl.u32 %v740_v24, 16 }
  0xaa   :  { %v617_v22 = vor.u32 4788187, %v616_v16  ;;  %v620_v45 = vcvt.s32.f32 %v613_v36  ;;  %v732_v57 = vadd.s32 %v730_v48, %v728_v43  ;;  %v748_v50 = vsel %vm747_vm11, 1, %v7835_v53 }
  0xab   :  { %v750_v38 = vadd.s32 %v748_v50, %v742_v3  ;;  %vm751_vm12 = vc.u32 %v749_v8, %v745_v32  ;;  %v826_v41 = vand.u32 8388607, %v819_v27  ;;  %v829_v52 = vadd.s32 1, %v7613_v51 }
  0xac   :  { %v618_v5 = vand.u32 2147483647, %v617_v22  ;;  %v733_v30 = vadd.s32 %v732_v57, %v722_v7  ;;  %v752_v21 = vsel %vm751_vm12, 1, %v7835_v53  ;;  %v746_v13 = vshrl.u32 %v741_v26, 16 }
  0xad   :  { %v754_v55 = vadd.s32 %v752_v21, %v750_v38  ;;  %v8367_v18 = vadd.s32 %v749_v8, %v745_v32  ;;  %vm830_vm13 = vcmp.gt.s32.totalorder %v829_v52, 0  ;;  %v644_v56 = vadd.s32 3, %v627_v23 }
  0xae   :  { %v621_v19 = vmul.f32 %v620_v45, %v618_v5  ;;  %v8365_v40 = vadd.s32 %v733_v30, %v724_v14  ;;  %v703_v62 = vsel %vm697_vm5, %v700_v58, %v702_v11  ;;  %v831_v2 = vsel %vm830_vm13, %v829_v52, 0 }
  0xaf   :  { %v755_v24 = vadd.s32 %v754_v55, %v744_v28  ;;  %v8372_v25 = vadd.f32 1.5707964, %v8256_v20  ;;  %v827_v1 = vor.u32 8388608, %v826_v41  ;;  %v833_v26 = vand.u32 31, %v831_v2 }
  0xb0   :  { %v622_v15 = vxor.u32 2147483648, %v621_v19  ;;  %v757_v12 = vmul.u32 %v8301_v39, %v703_v62  ;;  %vm759_vm14 = vc.u32 %v8365_v40, %v8367_v18  ;;  %v8384_v58 = vand.u32 3, %v644_v56 }
  0xb1   :  { %v756_v61 = vadd.s32 %v755_v24, %v746_v13  ;;  %v834_v23 = vsub.s32 32, %v833_v26  ;;  %v839_v44 = vshll.u32 %v7830_v31, %v833_v26  ;;  %v8389_v11 = vshll.u32 %v827_v1, 8 }
  0xb2   :  { %v623_v60 = vsel %vm502_vm1, %v622_v15, %v621_v19  ;;  %v977_v39 = vand.u32 2139095040, %v8372_v25  ;;  %v8392_v4 = vshrl.u32 %v831_v2, 5  ;;  %v842_v51 = vshll.u32 %v7831_v33, %v833_v26 }
  0xb3   :  { %v8382_v0 = vsel %vm8310_vm6, %v8292_v54, %v623_v60  ;;  %v760_v20 = vadd.s32 1, %v756_v61  ;;  %v840_v59 = vshrl.u32 %v7831_v33, %v834_v23  ;;  %v845_v7 = vshll.u32 %v7832_v35, %v833_v26 }
  0xb4   :  { %v628_v6 = vmul.f32 %v8382_v0, %v8382_v0  ;;  %v836_v49 = vshll.u32 %v7829_v29, %v833_v26  ;;  %v837_v3 = vshrl.u32 %v7830_v31, %v834_v23  ;;  %v843_v36 = vshrl.u32 %v7832_v35, %v834_v23 }
  0xb5   :  { %v761_v17 = vsel %vm759_vm14, %v760_v20, %v756_v61  ;;  %v841_v32 = vor.u32 %v840_v59, %v839_v44  ;;  %v846_v48 = vshrl.u32 %v7833_v37, %v834_v23  ;;  %vm650_vm15 = vcmp.eq.s32.totalorder %v8384_v58, 2 }
  0xb6   :  { %v629_v34 = vmul.f32 -0.001358992, %v628_v6  ;;  %v636_v9 = vmul.f32 -0.00019511016, %v628_v6  ;;  %v762_v63 = vadd.s32 %v761_v17, %v757_v12  ;;  %v844_v8 = vor.u32 %v843_v36, %v842_v51 }
  0xb7   :  { %v848_v22 = vshll.u32 %v7833_v37, %v833_v26  ;;  %v849_v45 = vshrl.u32 %v7834_v46, %v834_v23  ;;  %vm854_vm0 = vcmp.lt.s32.totalorder %v8392_v4, 4  ;;  %v847_v38 = vor.u32 %v846_v48, %v845_v7 }
  0xb8   :  { %v630_v16 = vadd.f32 0.041655596, %v629_v34  ;;  %v637_v43 = vadd.f32 0.008332121, %v636_v9  ;;  %v763_v14 = vadd.s32 536870912, %v762_v63  ;;  %vm647_vm1 = vcmp.eq.s32.totalorder %v8384_v58, 0 }
  0xb9   :  { %v850_v41 = vor.u32 %v849_v45, %v848_v22  ;;  %vm851_vm2 = vcmp.lt.s32.totalorder %v8392_v4, 1  ;;  %v8408_v5 = vand.u32 65535, %v8389_v11  ;;  %v978_v30 = vshrl.u32 %v977_v39, 23 }
  0xba   :  { %v631_v57 = vmul.f32 %v630_v16, %v628_v6  ;;  %v638_v50 = vmul.f32 %v637_v43, %v628_v6  ;;  %v764_v28 = vshrl.u32 %v763_v14, 30  ;;  %vm646_vm3 = vcmp.lt.s32.totalorder %v8384_v58, 2 }
  0xbb   :  { %vm853_vm4 = vcmp.lt.s32.totalorder %v8392_v4, 3  ;;  %vm643_vm5 = vweird.f32 %v8292_v54  ;;  %vm666_vm6 = vcmp.lt.s32.totalorder %v8189_v47, 0  ;;  %v838_v55 = vor.u32 %v837_v3, %v836_v49 }
  0xbc   :  { %v632_v21 = vadd.f32 -0.4999988, %v631_v57  ;;  %v639_v52 = vadd.f32 -0.16666654, %v638_v50  ;;  %v765_v13 = vshll.u32 %v764_v28, 30  ;;  %vm852_vm7 = vcmp.lt.s32.totalorder %v8392_v4, 2 }
  0xbd   :  { %v860_v19 = vsel %vm854_vm0, %v847_v38, 920167782  ;;  %v864_v56 = vsel %vm854_vm0, %v850_v41, 1326507024  ;;  %v863_v15 = vsel %vm851_vm2, %v841_v32, %v844_v8  ;;  %v835_v1 = vshrl.u32 %v7829_v29, %v834_v23 }
  0xbe   :  { %v633_v62 = vmul.f32 %v632_v21, %v628_v6  ;;  %v640_v24 = vmul.f32 %v639_v52, %v628_v6  ;;  %v766_v2 = vsub.s32 %v762_v63, %v765_v13  ;;  %v856_v61 = vsel %vm854_vm0, %v844_v8, 2102212464 }
  0xbf   :  { %v865_v26 = vsel %vm853_vm4, %v847_v38, %v864_v56  ;;  %v869_v60 = vshrl.u32 %v8389_v11, 16  ;;  %vm8429_vm9 = vcmp.le.f32.partialorder %v664_v42, 0.7853982  ;;  %v788_v39 = vsub.s32 4, %v764_v28 }
  0xc0   :  { %v634_v12 = vadd.f32 1.0, %v633_v62  ;;  %v641_v20 = vadd.f32 1.0, %v640_v24  ;;  %vm767_vm8 = vcmp.lt.s32.totalorder %v766_v2, 0  ;;  %v768_v44 = vsub.s32 0, %v766_v2 }
  0xc1   :  { %v859_v23 = vsel %vm851_vm2, %v838_v55, %v841_v32  ;;  %v861_v17 = vsel %vm853_vm4, %v844_v8, %v860_v19  ;;  %v866_v59 = vsel %vm852_vm7, %v863_v15, %v865_v26  ;;  %v758_v42 = vadd.s32 %v8367_v18, %v8365_v40 }
  0xc2   :  { %v642_v51 = vmul.f32 %v641_v20, %v8382_v0  ;;  %v651_v34 = vxor.u32 2147483648, %v634_v12  ;;  %v769_v9 = vsel %vm767_vm8, %v768_v44, %v766_v2  ;;  %v870_v63 = vand.u32 65535, %v866_v59 }
  0xc3   :  { %v770_v7 = vclz %v769_v9  ;;  %v855_v49 = vsel %vm851_vm2, %v835_v1, %v838_v55  ;;  %v871_v3 = vshrl.u32 %v866_v59, 16  ;;  %v857_v43 = vsel %vm853_vm4, %v841_v32, %v856_v61 }
  0xc4   :  { %v648_v36 = vxor.u32 2147483648, %v642_v51  ;;  %v652_v16 = vsel %vm650_vm15, %v651_v34, %v642_v51  ;;  %v8448_v14 = vmul.u32 %v870_v63, %v869_v60  ;;  %v862_v48 = vsel %vm852_vm7, %v859_v23, %v861_v17 }
  0xc5   :  { %v7611_v0 = vadd.s32 4294967294, %v770_v7  ;;  %v872_v40 = vmul.u32 %v870_v63, %v8408_v5  ;;  %v873_v18 = vmul.u32 %v871_v3, %v8408_v5  ;;  %v789_v22 = vsel %vm666_vm6, %v788_v39, %v764_v28 }
  0xc6   :  { %v649_v8 = vsel %vm647_vm1, %v634_v12, %v648_v36  ;;  %v892_v45 = vand.u32 65535, %v862_v48  ;;  %v7616_v57 = vadd.s32 4294967169, %v978_v30  ;;  %v875_v50 = vmul.u32 %v871_v3, %v869_v60 }
  0xc7   :  { %v653_v32 = vsel %vm646_vm3, %v649_v8, %v652_v16  ;;  %vm7612_vm10 = vcmp.lt.s32.totalorder %v7611_v0, 0  ;;  %v876_v38 = vshll.u32 %v873_v18, 16  ;;  %v878_v52 = vshll.u32 %v8448_v14, 16 }
  0xc8   :  { %v654_v41 = vsel %vm643_vm5, nan, %v653_v32  ;;  %v773_v21 = vsel %vm7612_vm10, 0, %v7611_v0  ;;  %v893_v13 = vshrl.u32 %v862_v48, 16  ;;  %v791_v28 = vsel %vm8429_vm9, 0, %v789_v22 }
  0xc9   :  { %659 = vst [vmem:[#allocation5 + $0x38] sm:$0xff] %v654_v41  ;;  %v774_v55 = vsub.s32 32, %v773_v21  ;;  %v775_v19 = vshll.u32 %v766_v2, %v773_v21  ;;  %v778_v56 = vsub.s32 4294967266, %v773_v21  ;;  %vm880_vm11 = vc.u32 %v872_v40, %v876_v38 }
  0xca   :  { %v8467_v58 = vsel %vm852_vm7, %v855_v49, %v857_v43  ;;  %v881_v30 = vsel %vm880_vm11, 1, %v7835_v53  ;;  %v974_v62 = vand.u32 2147483647, %v8372_v25  ;;  %v882_v1 = vadd.s32 %v876_v38, %v872_v40 }
  0xcb   :  { %v776_v24 = vshrl.u32 %v758_v42, %v774_v55  ;;  %v779_v15 = vadd.s32 127, %v778_v56  ;;  %v883_v61 = vadd.s32 %v881_v30, %v875_v50  ;;  %v877_v26 = vshrl.u32 %v873_v18, 16 }
  0xcc   :  { %v894_v2 = vmul.u32 %v892_v45, %v8408_v5  ;;  %v895_v12 = vmul.u32 %v893_v13, %v8408_v5  ;;  %v896_v20 = vmul.u32 %v892_v45, %v869_v60  ;;  %vm884_vm12 = vc.u32 %v882_v1, %v878_v52 }
  0xcd   :  { %v777_v44 = vor.u32 %v776_v24, %v775_v19  ;;  %v780_v39 = vshll.u32 %v779_v15, 23  ;;  %v984_v4 = vadd.s32 1, %v7616_v57  ;;  %v885_v23 = vsel %vm884_vm12, 1, %v7835_v53 }
  0xce   :  { %v897_v17 = vmul.u32 %v893_v13, %v869_v60  ;;  %v898_v59 = vshll.u32 %v895_v12, 16  ;;  %v900_v51 = vshll.u32 %v896_v20, 16  ;;  %v879_v63 = vshrl.u32 %v8448_v14, 16 }
  0xcf   :  { %v781_v34 = vor.u32 4788187, %v780_v39  ;;  %v784_v9 = vcvt.s32.f32 %v777_v44  ;;  %v887_v42 = vadd.s32 %v885_v23, %v883_v61  ;;  %v981_v5 = vand.u32 8388607, %v974_v62 }
  0xd0   :  { %vm902_vm13 = vc.u32 %v894_v2, %v898_v59  ;;  %v904_v7 = vadd.s32 %v898_v59, %v894_v2  ;;  %vm985_vm14 = vcmp.gt.s32.totalorder %v984_v4, 0  ;;  %v899_v43 = vshrl.u32 %v895_v12, 16 }
  0xd1   :  { %v782_v49 = vand.u32 2147483647, %v781_v34  ;;  %v888_v3 = vadd.s32 %v887_v42, %v877_v26  ;;  %v903_v36 = vsel %vm902_vm13, 1, %v7835_v53  ;;  %v986_v16 = vsel %vm985_vm14, %v984_v4, 0 }
  0xd2   :  { %v905_v60 = vadd.s32 %v903_v36, %v897_v17  ;;  %vm906_vm15 = vc.u32 %v904_v7, %v900_v51  ;;  %v912_v14 = vmul.u32 %v8389_v11, %v8467_v58  ;;  %v988_v40 = vand.u32 31, %v986_v16 }
  0xd3   :  { %v785_v0 = vmul.f32 %v784_v9, %v782_v49  ;;  %v907_v48 = vsel %vm906_vm15, 1, %v7835_v53  ;;  %v808_v18 = vadd.s32 3, %v791_v28  ;;  %v901_v8 = vshrl.u32 %v896_v20, 16 }
  0xd4   :  { %v909_v22 = vadd.s32 %v907_v48, %v905_v60  ;;  %v982_v45 = vor.u32 8388608, %v981_v5  ;;  %v8481_v32 = vadd.s32 %v888_v3, %v879_v63  ;;  %v8483_v50 = vadd.s32 %v904_v7, %v900_v51 }
  0xd5   :  { %v786_v57 = vxor.u32 2147483648, %v785_v0  ;;  %v8485_v38 = vsub.s32 32, %v988_v40  ;;  %v8487_v21 = vshrl.u32 %v986_v16, 5  ;;  %v991_v52 = vshll.u32 %v7829_v29, %v988_v40 }
  0xd6   :  { %v910_v41 = vadd.s32 %v909_v22, %v899_v43  ;;  %v994_v13 = vshll.u32 %v7830_v31, %v988_v40  ;;  %v997_v56 = vshll.u32 %v7831_v33, %v988_v40  ;;  %v1000_v24 = vshll.u32 %v7832_v35, %v988_v40 }
  0xd7   :  { %v787_v11 = vsel %vm666_vm6, %v786_v57, %v785_v0  ;;  %v992_v55 = vshrl.u32 %v7830_v31, %v8485_v38  ;;  %v995_v19 = vshrl.u32 %v7831_v33, %v8485_v38  ;;  %v998_v30 = vshrl.u32 %v7832_v35, %v8485_v38 }
  0xd8   :  { %v790_v28 = vsel %vm8429_vm9, %v8189_v47, %v787_v11  ;;  %v911_v58 = vadd.s32 %v910_v41, %v901_v8  ;;  %vm914_vm0 = vc.u32 %v8481_v32, %v8483_v50  ;;  %v1001_v61 = vshrl.u32 %v7833_v37, %v8485_v38 }
  0xd9   :  { %v792_v15 = vmul.f32 %v790_v28, %v790_v28  ;;  %v8506_v1 = vor.u32 %v992_v55, %v991_v52  ;;  %v8510_v2 = vor.u32 %v995_v19, %v994_v13  ;;  %v1003_v6 = vshll.u32 %v7833_v37, %v988_v40 }
  0xda   :  { %v915_v26 = vadd.s32 1, %v911_v58  ;;  %v1004_v12 = vshrl.u32 %v7834_v46, %v8485_v38  ;;  %v1002_v39 = vor.u32 %v1001_v61, %v1000_v24  ;;  %vm1009_vm1 = vcmp.lt.s32.totalorder %v8487_v21, 4 }
  0xdb   :  { %v793_v20 = vmul.f32 -0.001358992, %v792_v15  ;;  %v800_v44 = vmul.f32 -0.00019511016, %v792_v15  ;;  %v8516_v23 = vor.u32 %v998_v30, %v997_v56  ;;  %vm1006_vm2 = vcmp.lt.s32.totalorder %v8487_v21, 1 }
  0xdc   :  { %v916_v4 = vsel %vm914_vm0, %v915_v26, %v911_v58  ;;  %v1005_v17 = vor.u32 %v1004_v12, %v1003_v6  ;;  %vm1008_vm3 = vcmp.lt.s32.totalorder %v8487_v21, 3  ;;  %vm1007_vm4 = vcmp.lt.s32.totalorder %v8487_v21, 2 }
  0xdd   :  { %v794_v59 = vadd.f32 0.041655596, %v793_v20  ;;  %v801_v51 = vadd.f32 0.008332121, %v800_v44  ;;  %v917_v34 = vadd.s32 %v916_v4, %v912_v14  ;;  %v1015_v9 = vsel %vm1009_vm1, %v1002_v39, 920167782 }
  0xde   :  { %v1014_v5 = vsel %vm1006_vm2, %v8506_v1, %v8510_v2  ;;  %v809_v49 = vand.u32 3, %v808_v18  ;;  %v1016_v3 = vsel %vm1008_vm3, %v8516_v23, %v1015_v9  ;;  %v1019_v36 = vsel %vm1009_vm1, %v1005_v17, 1326507024 }
  0xdf   :  { %v795_v63 = vmul.f32 %v794_v59, %v792_v15  ;;  %v802_v42 = vmul.f32 %v801_v51, %v792_v15  ;;  %v918_v7 = vadd.s32 536870912, %v917_v34  ;;  %v8532_v16 = vshll.u32 %v982_v45, 8 }
  0xe0   :  { %v1018_v48 = vsel %vm1006_vm2, %v8510_v2, %v8516_v23  ;;  %v8541_v14 = vadd.f32 1.5707964, %v8292_v54  ;;  %v1017_v40 = vsel %vm1007_vm4, %v1014_v5, %v1016_v3  ;;  %v1020_v18 = vsel %vm1008_vm3, %v1002_v39, %v1019_v36 }
  0xe1   :  { %v796_v43 = vadd.f32 -0.4999988, %v795_v63  ;;  %v803_v60 = vadd.f32 -0.16666654, %v802_v42  ;;  %v8534_v0 = vshrl.u32 %v918_v7, 30  ;;  %vm807_vm5 = vweird.f32 %v8189_v47 }
  0xe2   :  { %vm810_vm6 = vcmp.lt.s32.totalorder %v809_v49, 2  ;;  %v1021_v57 = vsel %vm1007_vm4, %v1018_v48, %v1020_v18  ;;  %v1023_v41 = vand.u32 65535, %v8532_v16  ;;  %v1024_v54 = vshrl.u32 %v8532_v16, 16 }
  0xe3   :  { %v797_v8 = vmul.f32 %v796_v43, %v792_v15  ;;  %v804_v22 = vmul.f32 %v803_v60, %v792_v15  ;;  %v920_v45 = vshll.u32 %v8534_v0, 30  ;;  %v1048_v55 = vshrl.u32 %v1017_v40, 16 }
  0xe4   :  { %vm814_vm7 = vcmp.eq.s32.totalorder %v809_v49, 2  ;;  %v1025_v19 = vand.u32 65535, %v1021_v57  ;;  %v1026_v56 = vshrl.u32 %v1021_v57, 16  ;;  %v1047_v58 = vand.u32 65535, %v1017_v40 }
  0xe5   :  { %v798_v52 = vadd.f32 1.0, %v797_v8  ;;  %v805_v13 = vadd.f32 1.0, %v804_v22  ;;  %v921_v11 = vsub.s32 %v917_v34, %v920_v45  ;;  %vm811_vm9 = vcmp.eq.s32.totalorder %v809_v49, 0 }
  0xe6   :  { %v1027_v61 = vmul.u32 %v1025_v19, %v1023_v41  ;;  %v1028_v26 = vmul.u32 %v1026_v56, %v1023_v41  ;;  %v8553_v6 = vmul.u32 %v1025_v19, %v1024_v54  ;;  %v8555_v39 = vmul.u32 %v1048_v55, %v1023_v41 }
  0xe7   :  { %v806_v30 = vmul.f32 %v805_v13, %v790_v28  ;;  %v815_v24 = vxor.u32 2147483648, %v798_v52  ;;  %vm922_vm8 = vcmp.lt.s32.totalorder %v921_v11, 0  ;;  %v923_v15 = vsub.s32 0, %v921_v11 }
  0xe8   :  { %v1030_v17 = vmul.u32 %v1026_v56, %v1024_v54  ;;  %v1031_v59 = vshll.u32 %v1028_v26, 16  ;;  %v1033_v51 = vshll.u32 %v8553_v6, 16  ;;  %vm821_vm10 = vcmp.lt.s32.totalorder %v8276_v10, 0 }
  0xe9   :  { %v812_v12 = vxor.u32 2147483648, %v806_v30  ;;  %v816_v20 = vsel %vm814_vm7, %v815_v24, %v806_v30  ;;  %v924_v44 = vsel %vm922_vm8, %v923_v15, %v921_v11  ;;  %v913_v28 = vadd.s32 %v8483_v50, %v8481_v32 }
  0xea   :  { %v925_v4 = vclz %v924_v44  ;;  %v1049_v9 = vmul.u32 %v1047_v58, %v1023_v41  ;;  %vm1035_vm11 = vc.u32 %v1027_v61, %v1031_v59  ;;  %v1037_v7 = vadd.s32 %v1031_v59, %v1027_v61 }
  0xeb   :  { %v813_v34 = vsel %vm811_vm9, %v798_v52, %v812_v12  ;;  %v1036_v3 = vsel %vm1035_vm11, 1, %v7835_v53  ;;  %v1051_v36 = vmul.u32 %v1047_v58, %v1024_v54  ;;  %v1053_v43 = vshll.u32 %v8555_v39, 16 }
  0xec   :  { %v817_v63 = vsel %vm810_vm6, %v813_v34, %v816_v20  ;;  %v7614_v42 = vadd.s32 4294967294, %v925_v4  ;;  %v943_v60 = vsub.s32 4, %v8534_v0  ;;  %v1038_v48 = vadd.s32 %v1036_v3, %v1030_v17 }
  0xed   :  { %v818_v5 = vsel %vm807_vm5, nan, %v817_v63  ;;  %vm1039_vm13 = vc.u32 %v1037_v7, %v1033_v51  ;;  %v1032_v50 = vshrl.u32 %v1028_v26, 16  ;;  %v1052_v40 = vmul.u32 %v1048_v55, %v1024_v54 }
  0xee   :  { %vm7615_vm12 = vcmp.lt.s32.totalorder %v7614_v42, 0  ;;  %1285 = vst [vmem:[#allocation5 + $0xe0] sm:$0xff] %v818_v5  ;;  %v1040_v49 = vsel %vm1039_vm13, 1, %v7835_v53  ;;  %vm8570_vm14 = vcmp.le.f32.partialorder %v819_v27, 0.7853982  ;;  %v990_v57 = vshrl.u32 %v7829_v29, %v8485_v38 }
  0xef   :  { %v928_v32 = vsel %vm7615_vm12, 0, %v7614_v42  ;;  %v1042_v22 = vadd.s32 %v1040_v49, %v1038_v48  ;;  %v1055_v41 = vshll.u32 %v1051_v36, 16  ;;  %vm1057_vm15 = vc.u32 %v1049_v9, %v1053_v43 }
  0xf0   :  { %v929_v18 = vsub.s32 32, %v928_v32  ;;  %v930_v8 = vshll.u32 %v921_v11, %v928_v32  ;;  %v933_v47 = vsub.s32 4294967266, %v928_v32  ;;  %v1011_v54 = vsel %vm1009_vm1, %v8516_v23, 2102212464 }
  0xf1   :  { %v1058_v11 = vsel %vm1057_vm15, 1, %v7835_v53  ;;  %v944_v27 = vsel %vm821_vm10, %v943_v60, %v8534_v0  ;;  %v1034_v55 = vshrl.u32 %v8553_v6, 16  ;;  %v1059_v19 = vadd.s32 %v1053_v43, %v1049_v9 }
  0xf2   :  { %v931_v52 = vshrl.u32 %v913_v28, %v929_v18  ;;  %v934_v13 = vadd.s32 127, %v933_v47  ;;  %v1060_v56 = vadd.s32 %v1058_v11, %v1052_v40  ;;  %v1043_v30 = vadd.s32 %v1042_v22, %v1032_v50  ;;  %v7756_v50 = vld [vmem:[#allocation5] sm:$0xff] }
  0xf3   :  { %v1132_v24 = vand.u32 2139095040, %v8541_v14  ;;  %v1010_v15 = vsel %vm1006_vm2, %v990_v57, %v8506_v1  ;;  %v1012_v23 = vsel %vm1008_vm3, %v8510_v2, %v1011_v54  ;;  %v1054_v61 = vshrl.u32 %v8555_v39, 16 }
  0xf4   :  { %v932_v58 = vor.u32 %v931_v52, %v930_v8  ;;  %v935_v38 = vshll.u32 %v934_v13, 23  ;;  %vm1061_vm0 = vc.u32 %v1059_v19, %v1055_v41  ;;  %v946_v20 = vsel %vm8570_vm14, 0, %v944_v27 }
  0xf5   :  { %v1062_v6 = vsel %vm1061_vm0, 1, %v7835_v53  ;;  %v1133_v12 = vshrl.u32 %v1132_v24, 23  ;;  %v1056_v44 = vshrl.u32 %v1051_v36, 16  ;;  %v8595_v59 = vadd.s32 %v1043_v30, %v1034_v55 }
  0xf6   :  { %v936_v0 = vor.u32 4788187, %v935_v38  ;;  %v939_v26 = vcvt.s32.f32 %v932_v58  ;;  %v1064_v4 = vadd.s32 %v1062_v6, %v1060_v56  ;;  %v8597_v1 = vadd.s32 %v1059_v19, %v1055_v41 }
  0xf7   :  { %v7619_v51 = vadd.s32 4294967169, %v1133_v12  ;;  %v1013_v2 = vsel %vm1007_vm4, %v1010_v15, %v1012_v23  ;;  %v963_v28 = vadd.s32 3, %v946_v20  ;;  %v1129_v42 = vand.u32 2147483647, %v8541_v14 }
  0xf8   :  { %v937_v17 = vand.u32 2147483647, %v936_v0  ;;  %v1065_v39 = vadd.s32 %v1064_v4, %v1054_v61  ;;  %v1067_v5 = vmul.u32 %v8532_v16, %v1013_v2  ;;  %vm1069_vm1 = vc.u32 %v8595_v59, %v8597_v1 }
  0xf9   :  { %v1139_v9 = vadd.s32 1, %v7619_v51  ;;  %v8607_v43 = vand.u32 3, %v963_v28  ;;  %v1136_v16 = vand.u32 8388607, %v1129_v42  ;;  %v8616_v49 = vmul.f32 2.0, %v7756_v50 }
  0xfa   :  { %v940_v34 = vmul.f32 %v939_v26, %v937_v17  ;;  %v1066_v63 = vadd.s32 %v1065_v39, %v1056_v44  ;;  %vm976_vm6 = vcmp.lt.s32.totalorder %v8372_v25, 0  ;;  %vm962_vm8 = vweird.f32 %v8276_v10 }
  0xfb   :  { %vm1140_vm2 = vcmp.gt.s32.totalorder %v1139_v9, 0  ;;  %vm969_vm3 = vcmp.eq.s32.totalorder %v8607_v43, 2  ;;  %v1137_v15 = vor.u32 8388608, %v1136_v16  ;;  %v1296_v23 = vand.u32 2139095040, %v8616_v49 }
  0xfc   :  { %v941_v7 = vxor.u32 2147483648, %v940_v34  ;;  %v1070_v3 = vadd.s32 1, %v1066_v63  ;;  %v1141_v36 = vsel %vm1140_vm2, %v1139_v9, 0  ;;  %vm966_vm4 = vcmp.eq.s32.totalorder %v8607_v43, 0 }
  0xfd   :  { %v1143_v60 = vand.u32 31, %v1141_v36  ;;  %v8620_v8 = vshrl.u32 %v1141_v36, 5  ;;  %vm965_vm5 = vcmp.lt.s32.totalorder %v8607_v43, 2  ;;  %v8654_v39 = vshll.u32 %v1137_v15, 8 }
  0xfe   :  { %v942_v21 = vsel %vm821_vm10, %v941_v7, %v940_v34  ;;  %v1071_v32 = vsel %vm1069_vm1, %v1070_v3, %v1066_v63  ;;  %v1297_v34 = vshrl.u32 %v1296_v23, 23  ;;  %vm8658_vm12 = vcmp.le.f32.partialorder %v974_v62, 0.7853982 }
  0xff   :  { %v8612_v48 = vsel %vm8570_vm14, %v8276_v10, %v942_v21  ;;  %v1072_v18 = vadd.s32 %v1071_v32, %v1067_v5  ;;  %v8622_v47 = vsub.s32 32, %v1143_v60  ;;  %v1146_v22 = vshll.u32 %v7829_v29, %v1143_v60 }
 0x100   :  { %v947_v40 = vmul.f32 %v8612_v48, %v8612_v48  ;;  %v1149_v45 = vshll.u32 %v7830_v31, %v1143_v60  ;;  %v1152_v57 = vshll.u32 %v7831_v33, %v1143_v60  ;;  %v1155_v41 = vshll.u32 %v7832_v35, %v1143_v60 }
 0x101   :  { %v1073_v54 = vadd.s32 536870912, %v1072_v18  ;;  %v1158_v11 = vshll.u32 %v7833_v37, %v1143_v60  ;;  %v1147_v27 = vshrl.u32 %v7830_v31, %v8622_v47  ;;  %v1150_v55 = vshrl.u32 %v7831_v33, %v8622_v47 }
 0x102   :  { %v948_v52 = vmul.f32 -0.001358992, %v947_v40  ;;  %v955_v13 = vmul.f32 -0.00019511016, %v947_v40  ;;  %v1153_v19 = vshrl.u32 %v7832_v35, %v8622_v47  ;;  %v1156_v56 = vshrl.u32 %v7833_v37, %v8622_v47 }
 0x103   :  { %v1074_v30 = vshrl.u32 %v1073_v54, 30  ;;  %v1159_v24 = vshrl.u32 %v7834_v46, %v8622_v47  ;;  %v8641_v6 = vor.u32 %v1147_v27, %v1146_v22  ;;  %v8644_v12 = vor.u32 %v1150_v55, %v1149_v45 }
 0x104   :  { %v949_v58 = vadd.f32 0.041655596, %v948_v52  ;;  %v956_v38 = vadd.f32 0.008332121, %v955_v13  ;;  %v8646_v20 = vor.u32 %v1153_v19, %v1152_v57  ;;  %v1157_v44 = vor.u32 %v1156_v56, %v1155_v41 }
 0x105   :  { %v1075_v26 = vshll.u32 %v1074_v30, 30  ;;  %v1160_v4 = vor.u32 %v1159_v24, %v1158_v11  ;;  %vm1161_vm7 = vcmp.lt.s32.totalorder %v8620_v8, 1  ;;  %vm1163_vm9 = vcmp.lt.s32.totalorder %v8620_v8, 3 }
 0x106   :  { %v950_v61 = vmul.f32 %v949_v58, %v947_v40  ;;  %v957_v0 = vmul.f32 %v956_v38, %v947_v40  ;;  %vm1164_vm10 = vcmp.lt.s32.totalorder %v8620_v8, 4  ;;  %vm1162_vm13 = vcmp.lt.s32.totalorder %v8620_v8, 2 }
 0x107   :  { %v1076_v2 = vsub.s32 %v1072_v18, %v1075_v26  ;;  %v1169_v5 = vsel %vm1161_vm7, %v8641_v6, %v8644_v12  ;;  %v1170_v3 = vsel %vm1164_vm10, %v1157_v44, 920167782  ;;  %v1174_v36 = vsel %vm1164_vm10, %v1160_v4, 1326507024 }
 0x108   :  { %v951_v17 = vadd.f32 -0.4999988, %v950_v61  ;;  %v958_v51 = vadd.f32 -0.16666654, %v957_v0  ;;  %v1173_v62 = vsel %vm1161_vm7, %v8644_v12, %v8646_v20  ;;  %v1098_v50 = vsub.s32 4, %v1074_v30 }
 0x109   :  { %vm1077_vm11 = vcmp.lt.s32.totalorder %v1076_v2, 0  ;;  %v1078_v63 = vsub.s32 0, %v1076_v2  ;;  %v1175_v18 = vsel %vm1163_vm9, %v1157_v44, %v1174_v36  ;;  %v1068_v57 = vadd.s32 %v8597_v1, %v8595_v59 }
 0x10a   :  { %v952_v28 = vmul.f32 %v951_v17, %v947_v40  ;;  %v959_v9 = vmul.f32 %v958_v51, %v947_v40  ;;  %v1171_v40 = vsel %vm1163_vm9, %v8646_v20, %v1170_v3  ;;  %v1293_v41 = vand.u32 2147483647, %v8616_v49 }
 0x10b   :  { %v1079_v32 = vsel %vm1077_vm11, %v1078_v63, %v1076_v2  ;;  %v1172_v13 = vsel %vm1162_vm13, %v1169_v5, %v1171_v40  ;;  %v1176_v54 = vsel %vm1162_vm13, %v1173_v62, %v1175_v18  ;;  %v1178_v11 = vand.u32 65535, %v8654_v39 }
 0x10c   :  { %v953_v21 = vadd.f32 1.0, %v952_v28  ;;  %v960_v60 = vadd.f32 1.0, %v959_v9  ;;  %v1080_v16 = vclz %v1079_v32  ;;  %v1180_v19 = vand.u32 65535, %v1176_v54 }
 0x10d   :  { %v1099_v59 = vsel %vm976_vm6, %v1098_v50, %v1074_v30  ;;  %v1181_v1 = vshrl.u32 %v1176_v54, 16  ;;  %v7622_v56 = vadd.s32 4294967169, %v1297_v34  ;;  %v1202_v24 = vand.u32 65535, %v1172_v13 }
 0x10e   :  { %v961_v22 = vmul.f32 %v960_v60, %v8612_v48  ;;  %v970_v45 = vxor.u32 2147483648, %v953_v21  ;;  %v7617_v52 = vadd.s32 4294967294, %v1080_v16  ;;  %v1179_v48 = vshrl.u32 %v8654_v39, 16 }
 0x10f   :  { %v1203_v15 = vshrl.u32 %v1172_v13, 16  ;;  %v1101_v30 = vsel %vm8658_vm12, 0, %v1099_v59  ;;  %v1145_v4 = vshrl.u32 %v7829_v29, %v8622_v47  ;;  %v1182_v17 = vmul.u32 %v1180_v19, %v1178_v11 }
 0x110   :  { %v967_v27 = vxor.u32 2147483648, %v961_v22  ;;  %v971_v55 = vsel %vm969_vm3, %v970_v45, %v961_v22  ;;  %vm7618_vm14 = vcmp.lt.s32.totalorder %v7617_v52, 0  ;;  %v1183_v28 = vmul.u32 %v1181_v1, %v1178_v11 }
 0x111   :  { %v1083_v38 = vsel %vm7618_vm14, 0, %v7617_v52  ;;  %v1184_v9 = vmul.u32 %v1180_v19, %v1179_v48  ;;  %v1166_v43 = vsel %vm1164_vm10, %v8646_v20, 2102212464  ;;  %v1205_v63 = vmul.u32 %v1203_v15, %v1178_v11 }
 0x112   :  { %v968_v58 = vsel %vm966_vm4, %v953_v21, %v967_v27  ;;  %v1084_v61 = vsub.s32 32, %v1083_v38  ;;  %v1085_v0 = vshll.u32 %v1076_v2, %v1083_v38  ;;  %v1088_v26 = vsub.s32 4294967266, %v1083_v38 }
 0x113   :  { %v972_v23 = vsel %vm965_vm5, %v968_v58, %v971_v55  ;;  %v1185_v2 = vmul.u32 %v1181_v1, %v1179_v48  ;;  %v1206_v10 = vmul.u32 %v1202_v24, %v1179_v48  ;;  %v1186_v36 = vshll.u32 %v1183_v28, 16 }
 0x114   :  { %v973_v44 = vsel %vm962_vm8, nan, %v972_v23  ;;  %v1086_v51 = vshrl.u32 %v1068_v57, %v1084_v61  ;;  %v1089_v34 = vadd.s32 127, %v1088_v26  ;;  %v1204_v21 = vmul.u32 %v1202_v24, %v1178_v11 }
 0x115   :  { %1286 = vst [vmem:[#allocation5 + $0xe8] sm:$0xff] %v973_v44  ;;  %v1165_v47 = vsel %vm1161_vm7, %v1145_v4, %v8641_v6  ;;  %v1188_v60 = vshll.u32 %v1184_v9, 16  ;;  %v1207_v32 = vmul.u32 %v1203_v15, %v1179_v48  ;;  %v1208_v62 = vshll.u32 %v1205_v63, 16 }
 0x116   :  { %v1087_v5 = vor.u32 %v1086_v51, %v1085_v0  ;;  %v1090_v3 = vshll.u32 %v1089_v34, 23  ;;  %vm1190_vm15 = vc.u32 %v1182_v17, %v1186_v36  ;;  %v1192_v40 = vadd.s32 %v1186_v36, %v1182_v17 }
 0x117   :  { %v1167_v20 = vsel %vm1163_vm9, %v8644_v12, %v1166_v43  ;;  %v1187_v18 = vshrl.u32 %v1183_v28, 16  ;;  %v1191_v22 = vsel %vm1190_vm15, 1, %v7835_v53  ;;  %v1210_v45 = vshll.u32 %v1206_v10, 16 }
 0x118   :  { %v1091_v16 = vor.u32 4788187, %v1090_v3  ;;  %v1094_v50 = vcvt.s32.f32 %v1087_v5  ;;  %v1193_v52 = vadd.s32 %v1191_v22, %v1185_v2  ;;  %vm1194_vm0 = vc.u32 %v1192_v40, %v1188_v60 }
 0x119   :  { %vm1212_vm1 = vc.u32 %v1204_v21, %v1208_v62  ;;  %v1189_v6 = vshrl.u32 %v1184_v9, 16  ;;  %v1195_v13 = vsel %vm1194_vm0, 1, %v7835_v53  ;;  %v1214_v11 = vadd.s32 %v1208_v62, %v1204_v21 }
 0x11a   :  { %v1092_v57 = vand.u32 2147483647, %v1091_v16  ;;  %v1213_v54 = vsel %vm1212_vm1, 1, %v7835_v53  ;;  %v1197_v55 = vadd.s32 %v1195_v13, %v1193_v52  ;;  %v1303_v19 = vadd.s32 1, %v7622_v56 }
 0x11b   :  { %v1215_v48 = vadd.s32 %v1213_v54, %v1207_v32  ;;  %v1168_v12 = vsel %vm1162_vm13, %v1165_v47, %v1167_v20  ;;  %v1209_v59 = vshrl.u32 %v1205_v63, 16  ;;  %vm1216_vm2 = vc.u32 %v1214_v11, %v1210_v45 }
 0x11c   :  { %v1095_v27 = vmul.f32 %v1094_v50, %v1092_v57  ;;  %v1300_v1 = vand.u32 8388607, %v1293_v41  ;;  %v1198_v38 = vadd.s32 %v1197_v55, %v1187_v18  ;;  %v1217_v24 = vsel %vm1216_vm2, 1, %v7835_v53 }
 0x11d   :  { %vm1304_vm3 = vcmp.gt.s32.totalorder %v1303_v19, 0  ;;  %v1118_v15 = vadd.s32 3, %v1101_v30  ;;  %v1211_v23 = vshrl.u32 %v1206_v10, 16  ;;  %v1219_v61 = vadd.s32 %v1217_v24, %v1215_v48 }
 0x11e   :  { %v1096_v58 = vxor.u32 2147483648, %v1095_v27  ;;  %v1305_v0 = vsel %vm1304_vm3, %v1303_v19, 0  ;;  %v8723_v26 = vadd.s32 %v1198_v38, %v1189_v6  ;;  %v8725_v8 = vadd.s32 %v1214_v11, %v1210_v45  ;;  %v7757_v45 = vld [vmem:[#allocation5 + $0x8] sm:$0xff] }
 0x11f   :  { %v1307_v44 = vand.u32 31, %v1305_v0  ;;  %v1220_v17 = vadd.s32 %v1219_v61, %v1209_v59  ;;  %v1301_v34 = vor.u32 8388608, %v1300_v1  ;;  %v8732_v30 = vand.u32 3, %v1118_v15 }
 0x120   :  { %v1097_v56 = vsel %vm976_vm6, %v1096_v58, %v1095_v27  ;;  %v1222_v43 = vmul.u32 %v8654_v39, %v1168_v12  ;;  %v8735_v2 = vshrl.u32 %v1305_v0, 5  ;;  %vm1224_vm4 = vc.u32 %v8723_v26, %v8725_v8 }
 0x121   :  { %v1100_v4 = vsel %vm8658_vm12, %v8372_v25, %v1097_v56  ;;  %v8730_v28 = vsub.s32 32, %v1307_v44  ;;  %v1221_v9 = vadd.s32 %v1220_v17, %v1211_v23  ;;  %v1310_v7 = vshll.u32 %v7829_v29, %v1307_v44 }
 0x122   :  { %v1102_v51 = vmul.f32 %v1100_v4, %v1100_v4  ;;  %v1313_v36 = vshll.u32 %v7830_v31, %v1307_v44  ;;  %v1319_v21 = vshll.u32 %v7832_v35, %v1307_v44  ;;  %v1316_v16 = vshll.u32 %v7831_v33, %v1307_v44 }
 0x123   :  { %v1225_v5 = vadd.s32 1, %v1221_v9  ;;  %v1311_v3 = vshrl.u32 %v7830_v31, %v8730_v28  ;;  %v1314_v39 = vshrl.u32 %v7831_v33, %v8730_v28  ;;  %v1320_v32 = vshrl.u32 %v7833_v37, %v8730_v28 }
 0x124   :  { %v1103_v63 = vmul.f32 -0.001358992, %v1102_v51  ;;  %v1110_v10 = vmul.f32 -0.00019511016, %v1102_v51  ;;  %v1317_v50 = vshrl.u32 %v7832_v35, %v8730_v28  ;;  %v1322_v40 = vshll.u32 %v7833_v37, %v1307_v44 }
 0x125   :  { %v1226_v62 = vsel %vm1224_vm4, %v1225_v5, %v1221_v9  ;;  %v8752_v57 = vmul.f32 2.0, %v7757_v45  ;;  %v8754_v52 = vor.u32 %v1311_v3, %v1310_v7  ;;  %v1321_v6 = vor.u32 %v1320_v32, %v1319_v21 }
 0x126   :  { %v1104_v47 = vadd.f32 0.041655596, %v1103_v63  ;;  %v1111_v60 = vadd.f32 0.008332121, %v1110_v10  ;;  %v1227_v22 = vadd.s32 %v1226_v62, %v1222_v43  ;;  %v1323_v13 = vshrl.u32 %v7834_v46, %v8730_v28 }
 0x127   :  { %v8758_v54 = vshll.u32 %v1301_v34, 8  ;;  %vm1120_vm5 = vcmp.lt.s32.totalorder %v8732_v30, 2  ;;  %v1315_v48 = vor.u32 %v1314_v39, %v1313_v36  ;;  %vm1117_vm6 = vweird.f32 %v8372_v25 }
 0x128   :  { %v1105_v20 = vmul.f32 %v1104_v47, %v1102_v51  ;;  %v1112_v18 = vmul.f32 %v1111_v60, %v1102_v51  ;;  %v1228_v55 = vadd.s32 536870912, %v1227_v22  ;;  %v1318_v19 = vor.u32 %v1317_v50, %v1316_v16 }
 0x129   :  { %v1324_v12 = vor.u32 %v1323_v13, %v1322_v40  ;;  %vm1325_vm7 = vcmp.lt.s32.totalorder %v8735_v2, 1  ;;  %vm1328_vm8 = vcmp.lt.s32.totalorder %v8735_v2, 4  ;;  %vm1327_vm9 = vcmp.lt.s32.totalorder %v8735_v2, 3 }
 0x12a   :  { %v1106_v11 = vadd.f32 -0.4999988, %v1105_v20  ;;  %v1113_v27 = vadd.f32 -0.16666654, %v1112_v18  ;;  %v8764_v58 = vshrl.u32 %v1228_v55, 30  ;;  %vm1121_vm10 = vcmp.eq.s32.totalorder %v8732_v30, 0 }
 0x12b   :  { %vm1124_vm11 = vcmp.eq.s32.totalorder %v8732_v30, 2  ;;  %vm1326_vm12 = vcmp.lt.s32.totalorder %v8735_v2, 2  ;;  %v1334_v38 = vsel %vm1328_vm8, %v1321_v6, 920167782  ;;  %v1333_v61 = vsel %vm1325_vm7, %v8754_v52, %v1315_v48 }
 0x12c   :  { %v1107_v59 = vmul.f32 %v1106_v11, %v1102_v51  ;;  %v1114_v1 = vmul.f32 %v1113_v27, %v1102_v51  ;;  %v1230_v23 = vshll.u32 %v8764_v58, 30  ;;  %v1335_v0 = vsel %vm1327_vm9, %v1318_v19, %v1334_v38 }
 0x12d   :  { %v1338_v56 = vsel %vm1328_vm8, %v1324_v12, 1326507024  ;;  %v1342_v44 = vand.u32 65535, %v8758_v54  ;;  %v1448_v17 = vand.u32 2147483647, %v8752_v57  ;;  %v1337_v43 = vsel %vm1325_vm7, %v1315_v48, %v1318_v19 }
 0x12e   :  { %v1108_v24 = vadd.f32 1.0, %v1107_v59  ;;  %v1115_v15 = vadd.f32 1.0, %v1114_v1  ;;  %v1231_v9 = vsub.s32 %v1227_v22, %v1230_v23  ;;  %v1336_v63 = vsel %vm1326_vm12, %v1333_v61, %v1335_v0 }
 0x12f   :  { %v1339_v10 = vsel %vm1327_vm9, %v1321_v6, %v1338_v56  ;;  %v1343_v7 = vshrl.u32 %v8758_v54, 16  ;;  %v1451_v5 = vand.u32 2139095040, %v8752_v57  ;;  %vm1131_vm14 = vcmp.lt.s32.totalorder %v8541_v14, 0 }
 0x130   :  { %v1116_v51 = vmul.f32 %v1115_v15, %v1100_v4  ;;  %v1125_v34 = vxor.u32 2147483648, %v1108_v24  ;;  %vm1232_vm13 = vcmp.lt.s32.totalorder %v1231_v9, 0  ;;  %v1233_v4 = vsub.s32 0, %v1231_v9 }
 0x131   :  { %v1309_v21 = vshrl.u32 %v7829_v29, %v8730_v28  ;;  %v1330_v47 = vsel %vm1328_vm8, %v1318_v19, 2102212464  ;;  %v1340_v60 = vsel %vm1326_vm12, %v1337_v43, %v1339_v10  ;;  %v1367_v39 = vshrl.u32 %v1336_v63, 16 }
 0x132   :  { %v1122_v3 = vxor.u32 2147483648, %v1116_v51  ;;  %v1126_v36 = vsel %vm1124_vm11, %v1125_v34, %v1116_v51  ;;  %v1234_v62 = vsel %vm1232_vm13, %v1233_v4, %v1231_v9  ;;  %v1344_v16 = vand.u32 65535, %v1340_v60 }
 0x133   :  { %v1345_v50 = vshrl.u32 %v1340_v60, 16  ;;  %v1235_v20 = vclz %v1234_v62  ;;  %v1366_v18 = vand.u32 65535, %v1336_v63  ;;  %v8803_v22 = vmul.u32 %v1367_v39, %v1342_v44 }
 0x134   :  { %v1123_v32 = vsel %vm1121_vm10, %v1108_v24, %v1122_v3  ;;  %v1346_v45 = vmul.u32 %v1344_v16, %v1342_v44  ;;  %v1348_v13 = vmul.u32 %v1344_v16, %v1343_v7  ;;  %v1223_v11 = vadd.s32 %v8725_v8, %v8723_v26 }
 0x135   :  { %v1127_v40 = vsel %vm1120_vm5, %v1123_v32, %v1126_v36  ;;  %v1347_v6 = vmul.u32 %v1345_v50, %v1342_v44  ;;  %v7620_v27 = vadd.s32 4294967294, %v1235_v20  ;;  %v1329_v30 = vsel %vm1325_vm7, %v1309_v21, %v8754_v52 }
 0x136   :  { %v1128_v28 = vsel %vm1117_vm6, nan, %v1127_v40  ;;  %v1331_v55 = vsel %vm1327_vm9, %v1315_v48, %v1330_v47  ;;  %vm8816_vm15 = vcmp.le.f32.partialorder %v1129_v42, 0.7853982  ;;  %v1253_v19 = vsub.s32 4, %v8764_v58 }
 0x137   :  { %1287 = vst [vmem:[#allocation5 + $0xf0] sm:$0xff] %v1128_v28  ;;  %v1349_v12 = vmul.u32 %v1345_v50, %v1343_v7  ;;  %v1350_v59 = vshll.u32 %v1347_v6, 16  ;;  %v1452_v26 = vshrl.u32 %v1451_v5, 23  ;;  %vm7621_vm0 = vcmp.lt.s32.totalorder %v7620_v27, 0 }
 0x138   :  { %v1352_v8 = vshll.u32 %v1348_v13, 16  ;;  %v1368_v1 = vmul.u32 %v1366_v18, %v1342_v44  ;;  %v1370_v38 = vmul.u32 %v1366_v18, %v1343_v7  ;;  %v1238_v24 = vsel %vm7621_vm0, 0, %v7620_v27 }
 0x139   :  { %vm1354_vm1 = vc.u32 %v1346_v45, %v1350_v59  ;;  %v1356_v52 = vadd.s32 %v1350_v59, %v1346_v45  ;;  %v1372_v48 = vshll.u32 %v8803_v22, 16  ;;  %v1239_v15 = vsub.s32 32, %v1238_v24 }
 0x13a   :  { %v1240_v23 = vshll.u32 %v1231_v9, %v1238_v24  ;;  %v1243_v42 = vsub.s32 4294967266, %v1238_v24  ;;  %v1355_v61 = vsel %vm1354_vm1, 1, %v7835_v53  ;;  %v1254_v0 = vsel %vm1131_vm14, %v1253_v19, %v8764_v58 }
 0x13b   :  { %v1357_v56 = vadd.s32 %v1355_v61, %v1349_v12  ;;  %v1371_v51 = vmul.u32 %v1367_v39, %v1343_v7  ;;  %v7625_v34 = vadd.s32 4294967169, %v1452_v26  ;;  %v1241_v43 = vshrl.u32 %v1223_v11, %v1239_v15 }
 0x13c   :  { %v1244_v44 = vadd.s32 127, %v1243_v42  ;;  %v1351_v63 = vshrl.u32 %v1347_v6, 16  ;;  %vm1358_vm2 = vc.u32 %v1356_v52, %v1352_v8  ;;  %v1353_v10 = vshrl.u32 %v1348_v13, 16 }
 0x13d   :  { %v1359_v5 = vsel %vm1358_vm2, 1, %v7835_v53  ;;  %v1374_v3 = vshll.u32 %v1370_v38, 16  ;;  %vm1376_vm3 = vc.u32 %v1368_v1, %v1372_v48  ;;  %v1242_v9 = vor.u32 %v1241_v43, %v1240_v23 }
 0x13e   :  { %v1245_v36 = vshll.u32 %v1244_v44, 23  ;;  %v1361_v4 = vadd.s32 %v1359_v5, %v1357_v56  ;;  %v1377_v21 = vsel %vm1376_vm3, 1, %v7835_v53  ;;  %v1332_v58 = vsel %vm1326_vm12, %v1329_v30, %v1331_v55 }
 0x13f   :  { %v1378_v47 = vadd.s32 %v1372_v48, %v1368_v1  ;;  %v1379_v7 = vadd.s32 %v1377_v21, %v1371_v51  ;;  %v1458_v60 = vadd.s32 1, %v7625_v34  ;;  %v1249_v32 = vcvt.s32.f32 %v1242_v9 }
 0x140   :  { %v1246_v39 = vor.u32 4788187, %v1245_v36  ;;  %v1256_v62 = vsel %vm8816_vm15, 0, %v1254_v0  ;;  %v1362_v16 = vadd.s32 %v1361_v4, %v1351_v63  ;;  %v1373_v50 = vshrl.u32 %v8803_v22, 16 }
 0x141   :  { %vm1380_vm4 = vc.u32 %v1378_v47, %v1374_v3  ;;  %v8833_v40 = vadd.s32 %v1378_v47, %v1374_v3  ;;  %vm1459_vm5 = vcmp.gt.s32.totalorder %v1458_v60, 0  ;;  %v1375_v45 = vshrl.u32 %v1370_v38, 16 }
 0x142   :  { %v1247_v20 = vand.u32 2147483647, %v1246_v39  ;;  %v8835_v18 = vadd.s32 %v1362_v16, %v1353_v10  ;;  %v1381_v2 = vsel %vm1380_vm4, 1, %v7835_v53  ;;  %v1460_v28 = vsel %vm1459_vm5, %v1458_v60, 0 }
 0x143   :  { %v1383_v6 = vadd.s32 %v1381_v2, %v1379_v7  ;;  %v1462_v13 = vand.u32 31, %v1460_v28  ;;  %v1386_v27 = vmul.u32 %v8758_v54, %v1332_v58  ;;  %v1455_v30 = vand.u32 8388607, %v1448_v17 }
 0x144   :  { %v1250_v11 = vmul.f32 %v1249_v32, %v1247_v20  ;;  %v1273_v22 = vadd.s32 3, %v1256_v62  ;;  %v8841_v19 = vshrl.u32 %v1460_v28, 5  ;;  %vm1388_vm6 = vc.u32 %v8835_v18, %v8833_v40  ;;  %v7758_v20 = vld [vmem:[#allocation5 + $0x10] sm:$0xff] }
 0x145   :  { %v1384_v55 = vadd.s32 %v1383_v6, %v1373_v50  ;;  %v8843_v12 = vsub.s32 32, %v1462_v13  ;;  %v1468_v26 = vshll.u32 %v7830_v31, %v1462_v13  ;;  %v1471_v8 = vshll.u32 %v7831_v33, %v1462_v13 }
 0x146   :  { %v1251_v59 = vxor.u32 2147483648, %v1250_v11  ;;  %v1474_v38 = vshll.u32 %v7832_v35, %v1462_v13  ;;  %v1477_v24 = vshll.u32 %v7833_v37, %v1462_v13  ;;  %v1465_v0 = vshll.u32 %v7829_v29, %v1462_v13 }
 0x147   :  { %v1385_v1 = vadd.s32 %v1384_v55, %v1375_v45  ;;  %v1469_v54 = vshrl.u32 %v7831_v33, %v8843_v12  ;;  %v1472_v48 = vshrl.u32 %v7832_v35, %v8843_v12  ;;  %v1475_v15 = vshrl.u32 %v7833_v37, %v8843_v12 }
 0x148   :  { %v1252_v52 = vsel %vm1131_vm14, %v1251_v59, %v1250_v11  ;;  %v1478_v23 = vshrl.u32 %v7834_v46, %v8843_v12  ;;  %v1466_v56 = vshrl.u32 %v7830_v31, %v8843_v12  ;;  %v1456_v34 = vor.u32 8388608, %v1455_v30 }
 0x149   :  { %v1255_v42 = vsel %vm8816_vm15, %v8541_v14, %v1252_v52  ;;  %v1389_v61 = vadd.s32 1, %v1385_v1  ;;  %v8870_v44 = vor.u32 %v1469_v54, %v1468_v26  ;;  %v1476_v63 = vor.u32 %v1475_v15, %v1474_v38 }
 0x14a   :  { %v1257_v51 = vmul.f32 %v1255_v42, %v1255_v42  ;;  %v1479_v10 = vor.u32 %v1478_v23, %v1477_v24  ;;  %v1473_v9 = vor.u32 %v1472_v48, %v1471_v8  ;;  %v8872_v36 = vand.u32 3, %v1273_v22 }
 0x14b   :  { %v1390_v43 = vsel %vm1388_vm6, %v1389_v61, %v1385_v1  ;;  %v8874_v4 = vor.u32 %v1466_v56, %v1465_v0  ;;  %vm1480_vm7 = vcmp.lt.s32.totalorder %v8841_v19, 1  ;;  %vm1483_vm8 = vcmp.lt.s32.totalorder %v8841_v19, 4 }
 0x14c   :  { %v1258_v5 = vmul.f32 -0.001358992, %v1257_v51  ;;  %v1265_v3 = vmul.f32 -0.00019511016, %v1257_v51  ;;  %v1391_v25 = vadd.s32 %v1390_v43, %v1386_v27  ;;  %vm1482_vm9 = vcmp.lt.s32.totalorder %v8841_v19, 3 }
 0x14d   :  { %vm1481_vm10 = vcmp.lt.s32.totalorder %v8841_v19, 2  ;;  %v1489_v7 = vsel %vm1483_vm8, %v1476_v63, 920167782  ;;  %v1493_v60 = vsel %vm1483_vm8, %v1479_v10, 1326507024  ;;  %v8884_v39 = vshll.u32 %v1456_v34, 8 }
 0x14e   :  { %v1259_v21 = vadd.f32 0.041655596, %v1258_v5  ;;  %v1266_v58 = vadd.f32 0.008332121, %v1265_v3  ;;  %v1392_v47 = vadd.s32 536870912, %v1391_v25  ;;  %v1492_v50 = vsel %vm1480_vm7, %v8870_v44, %v1473_v9 }
 0x14f   :  { %v8891_v2 = vmul.f32 2.0, %v7758_v20  ;;  %v1488_v28 = vsel %vm1480_vm7, %v8874_v4, %v8870_v44  ;;  %v1494_v45 = vsel %vm1482_vm9, %v1476_v63, %v1493_v60  ;;  %vm1275_vm11 = vcmp.lt.s32.totalorder %v8872_v36, 2 }
 0x150   :  { %v1260_v32 = vmul.f32 %v1259_v21, %v1257_v51  ;;  %v1267_v62 = vmul.f32 %v1266_v58, %v1257_v51  ;;  %v8886_v16 = vshrl.u32 %v1392_v47, 30  ;;  %v1490_v27 = vsel %vm1482_vm9, %v1473_v9, %v1489_v7 }
 0x151   :  { %vm1272_vm12 = vweird.f32 %v8541_v14  ;;  %vm1276_vm13 = vcmp.eq.s32.totalorder %v8872_v36, 0  ;;  %v1495_v30 = vsel %vm1481_vm10, %v1492_v50, %v1494_v45  ;;  %v1497_v22 = vand.u32 65535, %v8884_v39 }
 0x152   :  { %v1261_v6 = vadd.f32 -0.4999988, %v1260_v32  ;;  %v1268_v13 = vadd.f32 -0.16666654, %v1267_v62  ;;  %v1394_v11 = vshll.u32 %v8886_v16, 30  ;;  %v1498_v55 = vshrl.u32 %v8884_v39, 16 }
 0x153   :  { %vm1279_vm14 = vcmp.eq.s32.totalorder %v8872_v36, 2  ;;  %v1387_v1 = vadd.s32 %v8833_v40, %v8835_v18  ;;  %v1491_v54 = vsel %vm1481_vm10, %v1488_v28, %v1490_v27  ;;  %v1499_v38 = vand.u32 65535, %v1495_v30 }
 0x154   :  { %v1262_v59 = vmul.f32 %v1261_v6, %v1257_v51  ;;  %v1269_v26 = vmul.f32 %v1268_v13, %v1257_v51  ;;  %v1395_v8 = vsub.s32 %v1391_v25, %v1394_v11  ;;  %v1500_v24 = vshrl.u32 %v1495_v30, 16 }
 0x155   :  { %v1464_v23 = vshrl.u32 %v7829_v29, %v8843_v12  ;;  %v1501_v61 = vmul.u32 %v1499_v38, %v1497_v22  ;;  %v8916_v56 = vmul.u32 %v1499_v38, %v1498_v55  ;;  %v1521_v40 = vand.u32 65535, %v1491_v54 }
 0x156   :  { %v1263_v52 = vadd.f32 1.0, %v1262_v59  ;;  %v1270_v48 = vadd.f32 1.0, %v1269_v26  ;;  %vm1396_vm15 = vcmp.lt.s32.totalorder %v1395_v8, 0  ;;  %v1397_v15 = vsub.s32 0, %v1395_v8 }
 0x157   :  { %v1502_v0 = vmul.u32 %v1500_v24, %v1497_v22  ;;  %vm1295_vm0 = vcmp.lt.s32.totalorder %v8616_v49, 0  ;;  %v1504_v63 = vmul.u32 %v1500_v24, %v1498_v55  ;;  %v1522_v5 = vshrl.u32 %v1491_v54, 16 }
 0x158   :  { %v1271_v51 = vmul.f32 %v1270_v48, %v1255_v42  ;;  %v1280_v34 = vxor.u32 2147483648, %v1263_v52  ;;  %v1398_v43 = vsel %vm1396_vm15, %v1397_v15, %v1395_v8  ;;  %v1485_v12 = vsel %vm1483_vm8, %v1473_v9, 2102212464 }
 0x159   :  { %v1399_v18 = vclz %v1398_v43  ;;  %v1505_v10 = vshll.u32 %v1502_v0, 16  ;;  %v1507_v21 = vshll.u32 %v8916_v56, 16  ;;  %v1606_v47 = vand.u32 2139095040, %v8891_v2 }
 0x15a   :  { %v1277_v3 = vxor.u32 2147483648, %v1271_v51  ;;  %v1281_v25 = vsel %vm1279_vm14, %v1280_v34, %v1271_v51  ;;  %v1417_v60 = vsub.s32 4, %v8886_v16  ;;  %v1523_v62 = vmul.u32 %v1521_v40, %v1497_v22 }
 0x15b   :  { %v7623_v58 = vadd.s32 4294967294, %v1399_v18  ;;  %vm1509_vm1 = vc.u32 %v1501_v61, %v1505_v10  ;;  %v1511_v42 = vadd.s32 %v1505_v10, %v1501_v61  ;;  %v1524_v20 = vmul.u32 %v1522_v5, %v1497_v22 }
 0x15c   :  { %v1278_v7 = vsel %vm1276_vm13, %v1263_v52, %v1277_v3  ;;  %v1510_v32 = vsel %vm1509_vm1, 1, %v7835_v53  ;;  %v1525_v6 = vmul.u32 %v1521_v40, %v1498_v55  ;;  %v1484_v36 = vsel %vm1480_vm7, %v1464_v23, %v8874_v4 }
 0x15d   :  { %v1282_v50 = vsel %vm1275_vm11, %v1278_v7, %v1281_v25  ;;  %vm7624_vm2 = vcmp.lt.s32.totalorder %v7623_v58, 0  ;;  %v1512_v9 = vadd.s32 %v1510_v32, %v1504_v63  ;;  %vm1513_vm3 = vc.u32 %v1511_v42, %v1507_v21 }
 0x15e   :  { %v1283_v28 = vsel %vm1272_vm12, nan, %v1282_v50  ;;  %v1402_v45 = vsel %vm7624_vm2, 0, %v7623_v58  ;;  %v1514_v30 = vsel %vm1513_vm3, 1, %v7835_v53  ;;  %v1506_v59 = vshrl.u32 %v1502_v0, 16 }
 0x15f   :  { %1288 = vst [vmem:[#allocation5 + $0xf8] sm:$0xff] %v1283_v28  ;;  %v1403_v13 = vsub.s32 32, %v1402_v45  ;;  %v1404_v11 = vshll.u32 %v1395_v8, %v1402_v45  ;;  %v1407_v27 = vsub.s32 4294967266, %v1402_v45  ;;  %v1516_v26 = vadd.s32 %v1514_v30, %v1512_v9 }
 0x160   :  { %v1607_v54 = vshrl.u32 %v1606_v47, 23  ;;  %v1526_v14 = vmul.u32 %v1522_v5, %v1498_v55  ;;  %v1527_v24 = vshll.u32 %v1524_v20, 16  ;;  %v1418_v52 = vsel %vm1295_vm0, %v1417_v60, %v8886_v16 }
 0x161   :  { %v1405_v22 = vshrl.u32 %v1387_v1, %v1403_v13  ;;  %v1408_v38 = vadd.s32 127, %v1407_v27  ;;  %v1486_v8 = vsel %vm1482_vm9, %v8870_v44, %v1485_v12  ;;  %v1508_v48 = vshrl.u32 %v8916_v56, 16 }
 0x162   :  { %v1529_v15 = vshll.u32 %v1525_v6, 16  ;;  %vm1531_vm4 = vc.u32 %v1523_v62, %v1527_v24  ;;  %v1533_v23 = vadd.s32 %v1527_v24, %v1523_v62  ;;  %v1517_v0 = vadd.s32 %v1516_v26, %v1506_v59 }
 0x163   :  { %v1406_v61 = vor.u32 %v1405_v22, %v1404_v11  ;;  %v1409_v4 = vshll.u32 %v1408_v38, 23  ;;  %v1528_v1 = vshrl.u32 %v1524_v20, 16  ;;  %v1532_v55 = vsel %vm1531_vm4, 1, %v7835_v53  ;;  %v7759_v22 = vld [vmem:[#allocation5 + $0x18] sm:$0xff] }
 0x164   :  { %v7628_v51 = vadd.s32 4294967169, %v1607_v54  ;;  %v1534_v40 = vadd.s32 %v1532_v55, %v1526_v14  ;;  %vm1535_vm5 = vc.u32 %v1533_v23, %v1529_v15  ;;  %vm8947_vm6 = vcmp.le.f32.partialorder %v1293_v41, 0.7853982 }
 0x165   :  { %v1410_v34 = vor.u32 4788187, %v1409_v4  ;;  %v1413_v43 = vcvt.s32.f32 %v1406_v61  ;;  %v1536_v16 = vsel %vm1535_vm5, 1, %v7835_v53  ;;  %v1603_v56 = vand.u32 2147483647, %v8891_v2 }
 0x166   :  { %v1613_v18 = vadd.s32 1, %v7628_v51  ;;  %v1487_v10 = vsel %vm1481_vm10, %v1484_v36, %v1486_v8  ;;  %v1530_v5 = vshrl.u32 %v1525_v6, 16  ;;  %v1538_v3 = vadd.s32 %v1536_v16, %v1534_v40 }
 0x167   :  { %v1411_v63 = vand.u32 2147483647, %v1410_v34  ;;  %v1420_v25 = vsel %vm8947_vm6, 0, %v1418_v52  ;;  %v8957_v12 = vadd.s32 %v1517_v0, %v1508_v48  ;;  %v8959_v41 = vadd.s32 %v1533_v23, %v1529_v15 }
 0x168   :  { %vm1614_vm7 = vcmp.gt.s32.totalorder %v1613_v18, 0  ;;  %v1539_v58 = vadd.s32 %v1538_v3, %v1528_v1  ;;  %v1541_v47 = vmul.u32 %v8884_v39, %v1487_v10  ;;  %v1437_v32 = vadd.s32 3, %v1420_v25 }
 0x169   :  { %v1414_v21 = vmul.f32 %v1413_v43, %v1411_v63  ;;  %v1615_v42 = vsel %vm1614_vm7, %v1613_v18, 0  ;;  %v1610_v62 = vand.u32 8388607, %v1603_v56  ;;  %vm1543_vm8 = vc.u32 %v8957_v12, %v8959_v41 }
 0x16a   :  { %v1617_v7 = vand.u32 31, %v1615_v42  ;;  %v1540_v19 = vadd.s32 %v1539_v58, %v1530_v5  ;;  %v8966_v50 = vshrl.u32 %v1615_v42, 5  ;;  %v8991_v38 = vmul.f32 2.0, %v7759_v22 }
 0x16b   :  { %v1415_v60 = vxor.u32 2147483648, %v1414_v21  ;;  %v8993_v14 = vand.u32 3, %v1437_v32  ;;  %v1611_v52 = vor.u32 8388608, %v1610_v62  ;;  %vm1450_vm2 = vcmp.lt.s32.totalorder %v8752_v57, 0 }
 0x16c   :  { %v8968_v9 = vsub.s32 32, %v1617_v7  ;;  %v1620_v20 = vshll.u32 %v7829_v29, %v1617_v7  ;;  %v1544_v39 = vadd.s32 1, %v1540_v19  ;;  %v1623_v45 = vshll.u32 %v7830_v31, %v1617_v7 }
 0x16d   :  { %v1416_v28 = vsel %vm1295_vm0, %v1415_v60, %v1414_v21  ;;  %v1626_v6 = vshll.u32 %v7831_v33, %v1617_v7  ;;  %v1629_v30 = vshll.u32 %v7832_v35, %v1617_v7  ;;  %v1632_v61 = vshll.u32 %v7833_v37, %v1617_v7 }
 0x16e   :  { %v8978_v13 = vsel %vm8947_vm6, %v8616_v49, %v1416_v28  ;;  %v1621_v11 = vshrl.u32 %v7830_v31, %v8968_v9  ;;  %v1624_v27 = vshrl.u32 %v7831_v33, %v8968_v9  ;;  %v1545_v59 = vsel %vm1543_vm8, %v1544_v39, %v1540_v19 }
 0x16f   :  { %v1421_v36 = vmul.f32 %v8978_v13, %v8978_v13  ;;  %v1627_v26 = vshrl.u32 %v7832_v35, %v8968_v9  ;;  %v1630_v54 = vshrl.u32 %v7833_v37, %v8968_v9  ;;  %v1546_v24 = vadd.s32 %v1545_v59, %v1541_v47 }
 0x170   :  { %v8995_v15 = vor.u32 %v1621_v11, %v1620_v20  ;;  %v8998_v23 = vor.u32 %v1624_v27, %v1623_v45  ;;  %v1633_v1 = vshrl.u32 %v7834_v46, %v8968_v9  ;;  %vm1635_vm9 = vcmp.lt.s32.totalorder %v8966_v50, 1 }
 0x171   :  { %v1422_v8 = vmul.f32 -0.001358992, %v1421_v36  ;;  %v1429_v48 = vmul.f32 -0.00019511016, %v1421_v36  ;;  %v1547_v4 = vadd.s32 536870912, %v1546_v24  ;;  %v1631_v0 = vor.u32 %v1630_v54, %v1629_v30 }
 0x172   :  { %v9002_v34 = vor.u32 %v1627_v26, %v1626_v6  ;;  %vm1637_vm10 = vcmp.lt.s32.totalorder %v8966_v50, 3  ;;  %vm1638_vm11 = vcmp.lt.s32.totalorder %v8966_v50, 4  ;;  %v9009_v40 = vshll.u32 %v1611_v52, 8 }
 0x173   :  { %v1423_v55 = vadd.f32 0.041655596, %v1422_v8  ;;  %v1430_v51 = vadd.f32 0.008332121, %v1429_v48  ;;  %v9005_v43 = vshrl.u32 %v1547_v4, 30  ;;  %vm1443_vm12 = vcmp.eq.s32.totalorder %v8993_v14, 2 }
 0x174   :  { %v1634_v18 = vor.u32 %v1633_v1, %v1632_v61  ;;  %vm1440_vm13 = vcmp.eq.s32.totalorder %v8993_v14, 0  ;;  %vm1636_vm14 = vcmp.lt.s32.totalorder %v8966_v50, 2  ;;  %v1643_v10 = vsel %vm1635_vm9, %v8995_v15, %v8998_v23 }
 0x175   :  { %v1424_v44 = vmul.f32 %v1423_v55, %v1421_v36  ;;  %v1431_v16 = vmul.f32 %v1430_v51, %v1421_v36  ;;  %v1549_v63 = vshll.u32 %v9005_v43, 30  ;;  %v1644_v5 = vsel %vm1638_vm11, %v1631_v0, 920167782 }
 0x176   :  { %vm1439_vm15 = vcmp.lt.s32.totalorder %v8993_v14, 2  ;;  %v1645_v21 = vsel %vm1637_vm10, %v9002_v34, %v1644_v5  ;;  %v1761_v58 = vand.u32 2139095040, %v8991_v38  ;;  %vm1436_vm0 = vweird.f32 %v8616_v49 }
 0x177   :  { %v1425_v3 = vadd.f32 -0.4999988, %v1424_v44  ;;  %v1432_v25 = vadd.f32 -0.16666654, %v1431_v16  ;;  %v9027_v42 = vsub.s32 %v1546_v24, %v1549_v63  ;;  %v1647_v47 = vsel %vm1635_vm9, %v8998_v23, %v9002_v34 }
 0x178   :  { %v1652_v7 = vand.u32 65535, %v9009_v40  ;;  %v1758_v60 = vand.u32 2147483647, %v8991_v38  ;;  %v1646_v62 = vsel %vm1636_vm14, %v1643_v10, %v1645_v21  ;;  %v1648_v20 = vsel %vm1638_vm11, %v1634_v18, 1326507024 }
 0x179   :  { %v1426_v32 = vmul.f32 %v1425_v3, %v1421_v36  ;;  %v1433_v19 = vmul.f32 %v1432_v25, %v1421_v36  ;;  %vm1551_vm1 = vcmp.lt.s32.totalorder %v9027_v42, 0  ;;  %v1552_v28 = vsub.s32 0, %v9027_v42 }
 0x17a   :  { %v1649_v39 = vsel %vm1637_vm10, %v1631_v0, %v1648_v20  ;;  %v1653_v45 = vshrl.u32 %v9009_v40, 16  ;;  %v1762_v30 = vshrl.u32 %v1761_v58, 23  ;;  %v1677_v54 = vshrl.u32 %v1646_v62, 16 }
 0x17b   :  { %v1427_v6 = vadd.f32 1.0, %v1426_v32  ;;  %v1434_v11 = vadd.f32 1.0, %v1433_v19  ;;  %v1650_v27 = vsel %vm1636_vm14, %v1647_v47, %v1649_v39  ;;  %v1553_v36 = vsel %vm1551_vm1, %v1552_v28, %v9027_v42 }
 0x17c   :  { %v1654_v59 = vand.u32 65535, %v1650_v27  ;;  %v1655_v26 = vshrl.u32 %v1650_v27, 16  ;;  %v1554_v52 = vclz %v1553_v36  ;;  %v1676_v8 = vand.u32 65535, %v1646_v62 }
 0x17d   :  { %v1435_v22 = vmul.f32 %v1434_v11, %v8978_v13  ;;  %v1444_v24 = vxor.u32 2147483648, %v1427_v6  ;;  %v1542_v48 = vadd.s32 %v8959_v41, %v8957_v12  ;;  %v7631_v44 = vadd.s32 4294967169, %v1762_v30 }
 0x17e   :  { %v1656_v61 = vmul.u32 %v1654_v59, %v1652_v7  ;;  %v1657_v4 = vmul.u32 %v1655_v26, %v1652_v7  ;;  %v1658_v0 = vmul.u32 %v1654_v59, %v1653_v45  ;;  %v7626_v51 = vadd.s32 4294967294, %v1554_v52 }
 0x17f   :  { %v1441_v1 = vxor.u32 2147483648, %v1435_v22  ;;  %v1445_v55 = vsel %vm1443_vm12, %v1444_v24, %v1435_v22  ;;  %v1572_v16 = vsub.s32 4, %v9005_v43  ;;  %v1619_v13 = vshrl.u32 %v7829_v29, %v8968_v9 }
 0x180   :  { %v1660_v18 = vshll.u32 %v1657_v4, 16  ;;  %v1679_v63 = vmul.u32 %v1677_v54, %v1652_v7  ;;  %vm7627_vm3 = vcmp.lt.s32.totalorder %v7626_v51, 0  ;;  %v1659_v12 = vmul.u32 %v1655_v26, %v1653_v45 }
 0x181   :  { %v1442_v10 = vsel %vm1440_vm13, %v1427_v6, %v1441_v1  ;;  %v1680_v41 = vmul.u32 %v1676_v8, %v1653_v45  ;;  %v1557_v3 = vsel %vm7627_vm3, 0, %v7626_v51  ;;  %v1662_v25 = vshll.u32 %v1658_v0, 16 }
 0x182   :  { %v1446_v5 = vsel %vm1439_vm15, %v1442_v10, %v1445_v55  ;;  %vm1664_vm4 = vc.u32 %v1656_v61, %v1660_v18  ;;  %vm9064_vm5 = vcmp.le.f32.partialorder %v1448_v17, 0.7853982  ;;  %v1558_v58 = vsub.s32 32, %v1557_v3 }
 0x183   :  { %v1447_v21 = vsel %vm1436_vm0, nan, %v1446_v5  ;;  %v1559_v47 = vshll.u32 %v9027_v42, %v1557_v3  ;;  %v1562_v32 = vsub.s32 4294967266, %v1557_v3  ;;  %v1639_v14 = vsel %vm1635_vm9, %v1619_v13, %v8995_v15 }
 0x184   :  { %v1640_v19 = vsel %vm1638_vm11, %v9002_v34, 2102212464  ;;  %v1665_v62 = vsel %vm1664_vm4, 1, %v7835_v53  ;;  %v1678_v20 = vmul.u32 %v1676_v8, %v1652_v7  ;;  %1914 = vst [vmem:[#allocation5 + $0x40] sm:$0xff] %v1447_v21  ;;  %v1560_v17 = vshrl.u32 %v1542_v48, %v1558_v58 }
 0x185   :  { %v1563_v28 = vadd.s32 127, %v1562_v32  ;;  %v1666_v39 = vadd.s32 %v1660_v18, %v1656_v61  ;;  %v1667_v6 = vadd.s32 %v1665_v62, %v1659_v12  ;;  %v1573_v42 = vsel %vm1450_vm2, %v1572_v16, %v9005_v43 }
 0x186   :  { %v1681_v11 = vmul.u32 %v1677_v54, %v1653_v45  ;;  %v1682_v27 = vshll.u32 %v1679_v63, 16  ;;  %v1684_v30 = vshll.u32 %v1680_v41, 16  ;;  %v1561_v15 = vor.u32 %v1560_v17, %v1559_v47 }
 0x187   :  { %v1564_v36 = vshll.u32 %v1563_v28, 23  ;;  %v1661_v59 = vshrl.u32 %v1657_v4, 16  ;;  %vm1668_vm6 = vc.u32 %v1666_v39, %v1662_v25  ;;  %v1663_v34 = vshrl.u32 %v1658_v0, 16 }
 0x188   :  { %v1669_v26 = vsel %vm1668_vm6, 1, %v7835_v53  ;;  %vm1686_vm7 = vc.u32 %v1678_v20, %v1682_v27  ;;  %v1688_v7 = vadd.s32 %v1682_v27, %v1678_v20  ;;  %v1568_v24 = vcvt.s32.f32 %v1561_v15 }
 0x189   :  { %v1565_v22 = vor.u32 4788187, %v1564_v36  ;;  %v1671_v52 = vadd.s32 %v1669_v26, %v1667_v6  ;;  %v1687_v8 = vsel %vm1686_vm7, 1, %v7835_v53  ;;  %v1641_v43 = vsel %vm1637_vm10, %v8998_v23, %v1640_v19 }
 0x18a   :  { %v1683_v45 = vshrl.u32 %v1679_v63, 16  ;;  %v1689_v54 = vadd.s32 %v1687_v8, %v1681_v11  ;;  %vm1690_vm8 = vc.u32 %v1688_v7, %v1684_v30  ;;  %v1768_v0 = vadd.s32 1, %v7631_v44 }
 0x18b   :  { %v1566_v48 = vand.u32 2147483647, %v1565_v22  ;;  %v1672_v61 = vadd.s32 %v1671_v52, %v1661_v59  ;;  %v1691_v4 = vsel %vm1690_vm8, 1, %v7835_v53  ;;  %v1575_v1 = vsel %vm9064_vm5, 0, %v1573_v42 }
 0x18c   :  { %v1685_v55 = vshrl.u32 %v1680_v41, 16  ;;  %v1693_v51 = vadd.s32 %v1691_v4, %v1689_v54  ;;  %v9089_v18 = vadd.s32 %v1688_v7, %v1684_v30  ;;  %vm1769_vm9 = vcmp.gt.s32.totalorder %v1768_v0, 0 }
 0x18d   :  { %v1569_v16 = vmul.f32 %v1568_v24, %v1566_v48  ;;  %v9087_v13 = vadd.s32 %v1672_v61, %v1663_v34  ;;  %v1642_v23 = vsel %vm1636_vm14, %v1639_v14, %v1641_v43  ;;  %v1770_v10 = vsel %vm1769_vm9, %v1768_v0, 0 }
 0x18e   :  { %v1694_v63 = vadd.s32 %v1693_v51, %v1683_v45  ;;  %v1592_v5 = vadd.s32 3, %v1575_v1  ;;  %v1765_v44 = vand.u32 8388607, %v1758_v60  ;;  %v1772_v25 = vand.u32 31, %v1770_v10 }
 0x18f   :  { %v1570_v12 = vxor.u32 2147483648, %v1569_v16  ;;  %v1696_v21 = vmul.u32 %v9009_v40, %v1642_v23  ;;  %vm1698_vm10 = vc.u32 %v9087_v13, %v9089_v18  ;;  %v9108_v17 = vshrl.u32 %v1770_v10, 5 }
 0x190   :  { %v1695_v3 = vadd.s32 %v1694_v63, %v1685_v55  ;;  %v9103_v47 = vsub.s32 32, %v1772_v25  ;;  %v9105_v14 = vand.u32 3, %v1592_v5  ;;  %v1766_v19 = vor.u32 8388608, %v1765_v44 }
 0x191   :  { %v1571_v41 = vsel %vm1450_vm2, %v1570_v12, %v1569_v16  ;;  %v1778_v62 = vshll.u32 %v7830_v31, %v1772_v25  ;;  %v1781_v28 = vshll.u32 %v7831_v33, %v1772_v25  ;;  %v1784_v42 = vshll.u32 %v7832_v35, %v1772_v25 }
 0x192   :  { %v1574_v50 = vsel %vm9064_vm5, %v8752_v57, %v1571_v41  ;;  %v1699_v58 = vadd.s32 1, %v1695_v3  ;;  %v1779_v40 = vshrl.u32 %v7831_v33, %v9103_v47  ;;  %v1775_v11 = vshll.u32 %v7829_v29, %v1772_v25 }
 0x193   :  { %v1576_v32 = vmul.f32 %v1574_v50, %v1574_v50  ;;  %v1776_v27 = vshrl.u32 %v7830_v31, %v9103_v47  ;;  %v1782_v15 = vshrl.u32 %v7832_v35, %v9103_v47  ;;  %v1785_v26 = vshrl.u32 %v7833_v37, %v9103_v47 }
 0x194   :  { %v1700_v20 = vsel %vm1698_vm10, %v1699_v58, %v1695_v3  ;;  %v9117_v30 = vor.u32 %v1779_v40, %v1778_v62  ;;  %v1787_v22 = vshll.u32 %v7833_v37, %v1772_v25  ;;  %v1788_v24 = vshrl.u32 %v7834_v46, %v9103_v47 }
 0x195   :  { %v1577_v39 = vmul.f32 -0.001358992, %v1576_v32  ;;  %v1584_v9 = vmul.f32 -0.00019511016, %v1576_v32  ;;  %v1701_v6 = vadd.s32 %v1700_v20, %v1696_v21  ;;  %v9123_v7 = vor.u32 %v1782_v15, %v1781_v28 }
 0x196   :  { %vm1793_vm11 = vcmp.lt.s32.totalorder %v9108_v17, 4  ;;  %v1786_v45 = vor.u32 %v1785_v26, %v1784_v42  ;;  %v1789_v54 = vor.u32 %v1788_v24, %v1787_v22  ;;  %vm1790_vm12 = vcmp.lt.s32.totalorder %v9108_v17, 1 }
 0x197   :  { %v1578_v36 = vadd.f32 0.041655596, %v1577_v39  ;;  %v1585_v59 = vadd.f32 0.008332121, %v1584_v9  ;;  %v1702_v34 = vadd.s32 536870912, %v1701_v6  ;;  %v9132_v48 = vshll.u32 %v1766_v19, 8 }
 0x198   :  { %vm1594_vm13 = vcmp.lt.s32.totalorder %v9105_v14, 2  ;;  %vm1792_vm14 = vcmp.lt.s32.totalorder %v9108_v17, 3  ;;  %vm1591_vm15 = vweird.f32 %v8752_v57  ;;  %v1777_v1 = vor.u32 %v1776_v27, %v1775_v11 }
 0x199   :  { %v1579_v52 = vmul.f32 %v1578_v36, %v1576_v32  ;;  %v1586_v8 = vmul.f32 %v1585_v59, %v1576_v32  ;;  %v9129_v43 = vshrl.u32 %v1702_v34, 30  ;;  %vm1791_vm0 = vcmp.lt.s32.totalorder %v9108_v17, 2 }
 0x19a   :  { %v1799_v55 = vsel %vm1793_vm11, %v1786_v45, 920167782  ;;  %v1803_v51 = vsel %vm1793_vm11, %v1789_v54, 1326507024  ;;  %v1802_v10 = vsel %vm1790_vm12, %v9117_v30, %v9123_v7  ;;  %vm1598_vm1 = vcmp.eq.s32.totalorder %v9105_v14, 2 }
 0x19b   :  { %v1580_v61 = vadd.f32 -0.4999988, %v1579_v52  ;;  %v1587_v4 = vadd.f32 -0.16666654, %v1586_v8  ;;  %v1704_v0 = vshll.u32 %v9129_v43, 30  ;;  %v1804_v12 = vsel %vm1792_vm14, %v1786_v45, %v1803_v51 }
 0x19c   :  { %v1808_v5 = vshrl.u32 %v9132_v48, 16  ;;  %v9152_v44 = vadd.f32 1.5707964, %v8616_v49  ;;  %vm1605_vm3 = vcmp.lt.s32.totalorder %v8891_v2, 0  ;;  %v1798_v21 = vsel %vm1790_vm12, %v1777_v1, %v9117_v30 }
 0x19d   :  { %v1581_v16 = vmul.f32 %v1580_v61, %v1576_v32  ;;  %v1588_v23 = vmul.f32 %v1587_v4, %v1576_v32  ;;  %v1705_v63 = vsub.s32 %v1701_v6, %v1704_v0  ;;  %v1800_v58 = vsel %vm1792_vm14, %v9123_v7, %v1799_v55 }
 0x19e   :  { %v1805_v32 = vsel %vm1791_vm0, %v1802_v10, %v1804_v12  ;;  %v1807_v49 = vand.u32 65535, %v9132_v48  ;;  %vm1595_vm4 = vcmp.eq.s32.totalorder %v9105_v14, 0  ;;  %v1697_v28 = vadd.s32 %v9089_v18, %v9087_v13 }
 0x19f   :  { %v1582_v3 = vadd.f32 1.0, %v1581_v16  ;;  %v1589_v25 = vadd.f32 1.0, %v1588_v23  ;;  %vm1706_vm2 = vcmp.lt.s32.totalorder %v1705_v63, 0  ;;  %v1707_v41 = vsub.s32 0, %v1705_v63 }
 0x1a0   :  { %v1809_v40 = vand.u32 65535, %v1805_v32  ;;  %v1810_v9 = vshrl.u32 %v1805_v32, 16  ;;  %v1774_v11 = vshrl.u32 %v7829_v29, %v9103_v47  ;;  %v1801_v15 = vsel %vm1791_vm0, %v1798_v21, %v1800_v58 }
 0x1a1   :  { %v1590_v19 = vmul.f32 %v1589_v25, %v1574_v50  ;;  %v1599_v62 = vxor.u32 2147483648, %v1582_v3  ;;  %v1708_v20 = vsel %vm1706_vm2, %v1707_v41, %v1705_v63  ;;  %v1727_v13 = vsub.s32 4, %v9129_v43 }
 0x1a2   :  { %v1709_v39 = vclz %v1708_v20  ;;  %v9171_v27 = vmul.u32 %v1809_v40, %v1808_v5  ;;  %v1811_v36 = vmul.u32 %v1809_v40, %v1807_v49  ;;  %v1812_v59 = vmul.u32 %v1810_v9, %v1807_v49 }
 0x1a3   :  { %v1596_v6 = vxor.u32 2147483648, %v1590_v19  ;;  %v1600_v42 = vsel %vm1598_vm1, %v1599_v62, %v1590_v19  ;;  %v1831_v18 = vand.u32 65535, %v1801_v15  ;;  %v1925_v26 = vand.u32 2139095040, %v9152_v44 }
 0x1a4   :  { %v7629_v50 = vadd.s32 4294967294, %v1709_v39  ;;  %vm9181_vm5 = vcmp.le.f32.partialorder %v1603_v56, 0.7853982  ;;  %v1814_v24 = vmul.u32 %v1810_v9, %v1808_v5  ;;  %v1815_v52 = vshll.u32 %v1812_v59, 16 }
 0x1a5   :  { %v1597_v34 = vsel %vm1595_vm4, %v1582_v3, %v1596_v6  ;;  %v1817_v54 = vshll.u32 %v9171_v27, 16  ;;  %v1832_v61 = vshrl.u32 %v1801_v15, 16  ;;  %v1728_v56 = vsel %vm1605_vm3, %v1727_v13, %v9129_v43 }
 0x1a6   :  { %v1601_v22 = vsel %vm1594_vm13, %v1597_v34, %v1600_v42  ;;  %vm7630_vm6 = vcmp.lt.s32.totalorder %v7629_v50, 0  ;;  %vm1819_vm7 = vc.u32 %v1811_v36, %v1815_v52  ;;  %v1794_v55 = vsel %vm1790_vm12, %v1774_v11, %v1777_v1 }
 0x1a7   :  { %v1602_v8 = vsel %vm1591_vm15, nan, %v1601_v22  ;;  %v1712_v45 = vsel %vm7630_vm6, 0, %v7629_v50  ;;  %v1795_v51 = vsel %vm1793_vm11, %v9123_v7, 2102212464  ;;  %v1820_v16 = vsel %vm1819_vm7, 1, %v7835_v53 }
 0x1a8   :  { %v1713_v4 = vsub.s32 32, %v1712_v45  ;;  %v1714_v0 = vshll.u32 %v1705_v63, %v1712_v45  ;;  %v1717_v14 = vsub.s32 4294967266, %v1712_v45  ;;  %1915 = vst [vmem:[#allocation5 + $0x48] sm:$0xff] %v1602_v8  ;;  %v1821_v12 = vadd.s32 %v1815_v52, %v1811_v36 }
 0x1a9   :  { %v1822_v63 = vadd.s32 %v1820_v16, %v1814_v24  ;;  %v1833_v3 = vmul.u32 %v1831_v18, %v1807_v49  ;;  %v1834_v25 = vmul.u32 %v1832_v61, %v1807_v49  ;;  %v1835_v41 = vmul.u32 %v1831_v18, %v1808_v5 }
 0x1aa   :  { %v1715_v23 = vshrl.u32 %v1697_v28, %v1713_v4  ;;  %v1718_v10 = vadd.s32 127, %v1717_v14  ;;  %v1926_v21 = vshrl.u32 %v1925_v26, 23  ;;  %v1816_v43 = vshrl.u32 %v1812_v59, 16 }
 0x1ab   :  { %vm1823_vm8 = vc.u32 %v1821_v12, %v1817_v54  ;;  %v1836_v19 = vmul.u32 %v1832_v61, %v1808_v5  ;;  %v1837_v62 = vshll.u32 %v1834_v25, 16  ;;  %v1839_v20 = vshll.u32 %v1835_v41, 16 }
 0x1ac   :  { %v1716_v58 = vor.u32 %v1715_v23, %v1714_v0  ;;  %v1719_v32 = vshll.u32 %v1718_v10, 23  ;;  %v1824_v1 = vsel %vm1823_vm8, 1, %v7835_v53  ;;  %v1796_v28 = vsel %vm1792_vm14, %v9117_v30, %v1795_v51 }
 0x1ad   :  { %v1826_v39 = vadd.s32 %v1824_v1, %v1822_v63  ;;  %v1730_v49 = vsel %vm9181_vm5, 0, %v1728_v56  ;;  %vm1841_vm9 = vc.u32 %v1833_v3, %v1837_v62  ;;  %v1843_v9 = vadd.s32 %v1837_v62, %v1833_v3 }
 0x1ae   :  { %v1720_v7 = vor.u32 4788187, %v1719_v32  ;;  %v1723_v40 = vcvt.s32.f32 %v1716_v58  ;;  %v7634_v6 = vadd.s32 4294967169, %v1926_v21  ;;  %v1818_v11 = vshrl.u32 %v9171_v27, 16 }
 0x1af   :  { %v1827_v50 = vadd.s32 %v1826_v39, %v1816_v43  ;;  %v1842_v5 = vsel %vm1841_vm9, 1, %v7835_v53  ;;  %v1838_v15 = vshrl.u32 %v1834_v25, 16  ;;  %vm1845_vm10 = vc.u32 %v1843_v9, %v1839_v20 }
 0x1b0   :  { %v1721_v42 = vand.u32 2147483647, %v1720_v7  ;;  %v1844_v36 = vadd.s32 %v1842_v5, %v1836_v19  ;;  %v1932_v59 = vadd.s32 1, %v7634_v6  ;;  %v1747_v13 = vadd.s32 3, %v1730_v49 }
 0x1b1   :  { %v1846_v30 = vsel %vm1845_vm10, 1, %v7835_v53  ;;  %v1922_v18 = vand.u32 2147483647, %v9152_v44  ;;  %v1797_v26 = vsel %vm1791_vm0, %v1794_v55, %v1796_v28  ;;  %v1840_v22 = vshrl.u32 %v1835_v41, 16 }
 0x1b2   :  { %v1724_v34 = vmul.f32 %v1723_v40, %v1721_v42  ;;  %v1848_v24 = vadd.s32 %v1846_v30, %v1844_v36  ;;  %vm1933_vm11 = vcmp.gt.s32.totalorder %v1932_v59, 0  ;;  %v9209_v52 = vadd.s32 %v1827_v50, %v1818_v11 }
 0x1b3   :  { %v9211_v8 = vadd.s32 %v1843_v9, %v1839_v20  ;;  %v1934_v45 = vsel %vm1933_vm11, %v1932_v59, 0  ;;  %v9215_v0 = vand.u32 3, %v1747_v13  ;;  %v1851_v14 = vmul.u32 %v9132_v48, %v1797_v26 }
 0x1b4   :  { %v1725_v27 = vxor.u32 2147483648, %v1724_v34  ;;  %v1849_v54 = vadd.s32 %v1848_v24, %v1838_v15  ;;  %v1936_v61 = vand.u32 31, %v1934_v45  ;;  %v1929_v55 = vand.u32 8388607, %v1922_v18 }
 0x1b5   :  { %vm1853_vm12 = vc.u32 %v9209_v52, %v9211_v8  ;;  %v9231_v23 = vshrl.u32 %v1934_v45, 5  ;;  %v9247_v7 = vadd.f32 1.5707964, %v8752_v57  ;;  %vm1750_vm13 = vcmp.eq.s32.totalorder %v9215_v0, 0 }
 0x1b6   :  { %v1726_v4 = vsel %vm1605_vm3, %v1725_v27, %v1724_v34  ;;  %v1850_v56 = vadd.s32 %v1849_v54, %v1840_v22  ;;  %v9225_v51 = vsub.s32 32, %v1936_v61  ;;  %v1939_v48 = vshll.u32 %v7829_v29, %v1936_v61 }
 0x1b7   :  { %v9221_v17 = vsel %vm9181_vm5, %v8891_v2, %v1726_v4  ;;  %v1942_v12 = vshll.u32 %v7830_v31, %v1936_v61  ;;  %v1948_v63 = vshll.u32 %v7832_v35, %v1936_v61  ;;  %v1945_v32 = vshll.u32 %v7831_v33, %v1936_v61 }
 0x1b8   :  { %v1731_v16 = vmul.f32 %v9221_v17, %v9221_v17  ;;  %v1854_v10 = vadd.s32 1, %v1850_v56  ;;  %v1940_v47 = vshrl.u32 %v7830_v31, %v9225_v51  ;;  %v1943_v41 = vshrl.u32 %v7831_v33, %v9225_v51 }
 0x1b9   :  { %v1949_v21 = vshrl.u32 %v7833_v37, %v9225_v51  ;;  %v1946_v43 = vshrl.u32 %v7832_v35, %v9225_v51  ;;  %v1951_v1 = vshll.u32 %v7833_v37, %v1936_v61  ;;  %v1930_v40 = vor.u32 8388608, %v1929_v55 }
 0x1ba   :  { %v1732_v3 = vmul.f32 -0.001358992, %v1731_v16  ;;  %v1739_v25 = vmul.f32 -0.00019511016, %v1731_v16  ;;  %v1855_v58 = vsel %vm1853_vm12, %v1854_v10, %v1850_v56  ;;  %v9249_v28 = vor.u32 %v1940_v47, %v1939_v48 }
 0x1bb   :  { %v1856_v20 = vadd.s32 %v1855_v58, %v1851_v14  ;;  %v1950_v39 = vor.u32 %v1949_v21, %v1948_v63  ;;  %v1952_v49 = vshrl.u32 %v7834_v46, %v9225_v51  ;;  %v9253_v11 = vor.u32 %v1943_v41, %v1942_v12 }
 0x1bc   :  { %v1733_v19 = vadd.f32 0.041655596, %v1732_v3  ;;  %v1740_v62 = vadd.f32 0.008332121, %v1739_v25  ;;  %v1947_v50 = vor.u32 %v1946_v43, %v1945_v32  ;;  %vm1954_vm14 = vcmp.lt.s32.totalorder %v9231_v23, 1 }
 0x1bd   :  { %v1857_v42 = vadd.s32 536870912, %v1856_v20  ;;  %v1953_v5 = vor.u32 %v1952_v49, %v1951_v1  ;;  %vm1957_vm15 = vcmp.lt.s32.totalorder %v9231_v23, 4  ;;  %vm1749_vm0 = vcmp.lt.s32.totalorder %v9215_v0, 2 }
 0x1be   :  { %v1734_v9 = vmul.f32 %v1733_v19, %v1731_v16  ;;  %v1741_v6 = vmul.f32 %v1740_v62, %v1731_v16  ;;  %vm1956_vm1 = vcmp.lt.s32.totalorder %v9231_v23, 3  ;;  %vm1746_vm2 = vweird.f32 %v8891_v2 }
 0x1bf   :  { %v1858_v36 = vshrl.u32 %v1857_v42, 30  ;;  %vm1753_vm3 = vcmp.eq.s32.totalorder %v9215_v0, 2  ;;  %vm1955_vm4 = vcmp.lt.s32.totalorder %v9231_v23, 2  ;;  %v1963_v59 = vsel %vm1957_vm15, %v1950_v39, 920167782 }
 0x1c0   :  { %v1735_v57 = vadd.f32 -0.4999988, %v1734_v9  ;;  %v1742_v15 = vadd.f32 -0.16666654, %v1741_v6  ;;  %v9265_v34 = vshll.u32 %v1930_v40, 8  ;;  %v1962_v22 = vsel %vm1954_vm14, %v9249_v28, %v9253_v11 }
 0x1c1   :  { %v1859_v26 = vshll.u32 %v1858_v36, 30  ;;  %vm1760_vm5 = vcmp.lt.s32.totalorder %v8991_v38, 0  ;;  %v1964_v24 = vsel %vm1956_vm1, %v1947_v50, %v1963_v59  ;;  %v1967_v27 = vsel %vm1957_vm15, %v1953_v5, 1326507024 }
 0x1c2   :  { %v1736_v13 = vmul.f32 %v1735_v57, %v1731_v16  ;;  %v1743_v30 = vmul.f32 %v1742_v15, %v1731_v16  ;;  %v2077_v45 = vand.u32 2147483647, %v9247_v7  ;;  %v2080_v54 = vand.u32 2139095040, %v9247_v7 }
 0x1c3   :  { %v1860_v14 = vsub.s32 %v1856_v20, %v1859_v26  ;;  %v1966_v56 = vsel %vm1954_vm14, %v9253_v11, %v1947_v50  ;;  %v1965_v55 = vsel %vm1955_vm4, %v1962_v22, %v1964_v24  ;;  %v1968_v16 = vsel %vm1956_vm1, %v1950_v39, %v1967_v27 }
 0x1c4   :  { %v1737_v61 = vadd.f32 1.0, %v1736_v13  ;;  %v1744_v4 = vadd.f32 1.0, %v1743_v30  ;;  %v1971_v48 = vand.u32 65535, %v9265_v34  ;;  %v1972_v10 = vshrl.u32 %v9265_v34, 16 }
 0x1c5   :  { %vm1861_vm6 = vcmp.lt.s32.totalorder %v1860_v14, 0  ;;  %v1862_v63 = vsub.s32 0, %v1860_v14  ;;  %v1882_v3 = vsub.s32 4, %v1858_v36  ;;  %v1938_v25 = vshrl.u32 %v7829_v29, %v9225_v51 }
 0x1c6   :  { %v1745_v47 = vmul.f32 %v1744_v4, %v9221_v17  ;;  %v1754_v12 = vxor.u32 2147483648, %v1737_v61  ;;  %v1969_v41 = vsel %vm1955_vm4, %v1966_v56, %v1968_v16  ;;  %v1996_v21 = vshrl.u32 %v1965_v55, 16 }
 0x1c7   :  { %v1863_v43 = vsel %vm1861_vm6, %v1862_v63, %v1860_v14  ;;  %v1973_v1 = vand.u32 65535, %v1969_v41  ;;  %vm9296_vm7 = vcmp.le.f32.partialorder %v1758_v60, 0.7853982  ;;  %v1852_v19 = vadd.s32 %v9211_v8, %v9209_v52 }
 0x1c8   :  { %v1751_v58 = vxor.u32 2147483648, %v1745_v47  ;;  %v1755_v32 = vsel %vm1753_vm3, %v1754_v12, %v1745_v47  ;;  %v1864_v51 = vclz %v1863_v43  ;;  %v1974_v62 = vshrl.u32 %v1969_v41, 16 }
 0x1c9   :  { %v1995_v20 = vand.u32 65535, %v1965_v55  ;;  %v1977_v39 = vmul.u32 %v1973_v1, %v1972_v10  ;;  %v1998_v49 = vmul.u32 %v1996_v21, %v1971_v48  ;;  %v2081_v9 = vshrl.u32 %v2080_v54, 23 }
 0x1ca   :  { %v1752_v40 = vsel %vm1750_vm13, %v1737_v61, %v1751_v58  ;;  %v7632_v42 = vadd.s32 4294967294, %v1864_v51  ;;  %v1975_v60 = vmul.u32 %v1973_v1, %v1971_v48  ;;  %v1976_v5 = vmul.u32 %v1974_v62, %v1971_v48 }
 0x1cb   :  { %v1756_v6 = vsel %vm1749_vm0, %v1752_v40, %v1755_v32  ;;  %v1883_v52 = vsel %vm1760_vm5, %v1882_v3, %v1858_v36  ;;  %v1958_v8 = vsel %vm1954_vm14, %v1938_v25, %v9249_v28  ;;  %v1959_v15 = vsel %vm1957_vm15, %v1947_v50, 2102212464 }
 0x1cc   :  { %v1757_v57 = vsel %vm1746_vm2, nan, %v1756_v6  ;;  %vm7633_vm8 = vcmp.lt.s32.totalorder %v7632_v42, 0  ;;  %v1978_v0 = vmul.u32 %v1974_v62, %v1972_v10  ;;  %v1979_v59 = vshll.u32 %v1976_v5, 16 }
 0x1cd   :  { %1916 = vst [vmem:[#allocation5 + $0x50] sm:$0xff] %v1757_v57  ;;  %v1997_v13 = vmul.u32 %v1995_v20, %v1971_v48  ;;  %v1867_v30 = vsel %vm7633_vm8, 0, %v7632_v42  ;;  %v1981_v26 = vshll.u32 %v1977_v39, 16  ;;  %v1999_v22 = vmul.u32 %v1995_v20, %v1972_v10 }
 0x1ce   :  { %v2001_v24 = vshll.u32 %v1998_v49, 16  ;;  %v1868_v27 = vsub.s32 32, %v1867_v30  ;;  %v1869_v54 = vshll.u32 %v1860_v14, %v1867_v30  ;;  %v1872_v61 = vsub.s32 4294967266, %v1867_v30 }
 0x1cf   :  { %vm1983_vm9 = vc.u32 %v1975_v60, %v1979_v59  ;;  %v1960_v28 = vsel %vm1956_vm1, %v9253_v11, %v1959_v15  ;;  %v2000_v50 = vmul.u32 %v1996_v21, %v1972_v10  ;;  %v7637_v4 = vadd.s32 4294967169, %v2081_v9 }
 0x1d0   :  { %v1984_v36 = vsel %vm1983_vm9, 1, %v7835_v53  ;;  %v1870_v56 = vshrl.u32 %v1852_v19, %v1868_v27  ;;  %v1873_v55 = vadd.s32 127, %v1872_v61  ;;  %v1985_v16 = vadd.s32 %v1979_v59, %v1975_v60 }
 0x1d1   :  { %v1986_v48 = vadd.s32 %v1984_v36, %v1978_v0  ;;  %v1885_v47 = vsel %vm9296_vm7, 0, %v1883_v52  ;;  %v1980_v12 = vshrl.u32 %v1976_v5, 16  ;;  %v2003_v63 = vshll.u32 %v1999_v22, 16 }
 0x1d2   :  { %vm2005_vm10 = vc.u32 %v1997_v13, %v2001_v24  ;;  %v1871_v14 = vor.u32 %v1870_v56, %v1869_v54  ;;  %v1874_v3 = vshll.u32 %v1873_v55, 23  ;;  %vm1987_vm11 = vc.u32 %v1985_v16, %v1981_v26 }
 0x1d3   :  { %v2006_v25 = vsel %vm2005_vm10, 1, %v7835_v53  ;;  %v1988_v11 = vsel %vm1987_vm11, 1, %v7835_v53  ;;  %v2007_v41 = vadd.s32 %v2001_v24, %v1997_v13  ;;  %v2087_v21 = vadd.s32 1, %v7637_v4 }
 0x1d4   :  { %v2008_v10 = vadd.s32 %v2006_v25, %v2000_v50  ;;  %v1875_v58 = vor.u32 4788187, %v1874_v3  ;;  %v1878_v32 = vcvt.s32.f32 %v1871_v14  ;;  %v1982_v43 = vshrl.u32 %v1977_v39, 16 }
 0x1d5   :  { %v1990_v1 = vadd.s32 %v1988_v11, %v1986_v48  ;;  %v1961_v19 = vsel %vm1955_vm4, %v1958_v8, %v1960_v28  ;;  %v2002_v51 = vshrl.u32 %v1998_v49, 16  ;;  %vm2009_vm12 = vc.u32 %v2007_v41, %v2003_v63 }
 0x1d6   :  { %vm2088_vm13 = vcmp.gt.s32.totalorder %v2087_v21, 0  ;;  %v1876_v62 = vand.u32 2147483647, %v1875_v58  ;;  %v2010_v40 = vsel %vm2009_vm12, 1, %v7835_v53  ;;  %v2004_v6 = vshrl.u32 %v1999_v22, 16 }
 0x1d7   :  { %v1991_v20 = vadd.s32 %v1990_v1, %v1980_v12  ;;  %v2089_v9 = vsel %vm2088_vm13, %v2087_v21, 0  ;;  %v9326_v42 = vadd.s32 %v2007_v41, %v2003_v63  ;;  %v2012_v60 = vadd.s32 %v2010_v40, %v2008_v10 }
 0x1d8   :  { %v2091_v5 = vand.u32 31, %v2089_v9  ;;  %v1879_v57 = vmul.f32 %v1878_v32, %v1876_v62  ;;  %v2015_v23 = vmul.u32 %v9265_v34, %v1961_v19  ;;  %v2084_v49 = vand.u32 8388607, %v2077_v45 }
 0x1d9   :  { %v9328_v52 = vadd.s32 %v1991_v20, %v1982_v43  ;;  %v2013_v39 = vadd.s32 %v2012_v60, %v2002_v51  ;;  %v1902_v0 = vadd.s32 3, %v1885_v47  ;;  %v9333_v59 = vshrl.u32 %v2089_v9, 5 }
 0x1da   :  { %v2092_v8 = vsub.s32 32, %v2091_v5  ;;  %v1880_v15 = vxor.u32 2147483648, %v1879_v57  ;;  %v2094_v13 = vshll.u32 %v7829_v29, %v2091_v5  ;;  %v2097_v22 = vshll.u32 %v7830_v31, %v2091_v5 }
 0x1db   :  { %v2014_v30 = vadd.s32 %v2013_v39, %v2004_v6  ;;  %vm2017_vm14 = vc.u32 %v9328_v52, %v9326_v42  ;;  %v2103_v27 = vshll.u32 %v7832_v35, %v2091_v5  ;;  %v2100_v36 = vshll.u32 %v7831_v33, %v2091_v5 }
 0x1dc   :  { %v2095_v26 = vshrl.u32 %v7830_v31, %v2092_v8  ;;  %v1881_v34 = vsel %vm1760_vm5, %v1880_v15, %v1879_v57  ;;  %v2098_v24 = vshrl.u32 %v7831_v33, %v2092_v8  ;;  %v2104_v54 = vshrl.u32 %v7833_v37, %v2092_v8 }
 0x1dd   :  { %v1884_v61 = vsel %vm9296_vm7, %v8991_v38, %v1881_v34  ;;  %v2018_v28 = vadd.s32 1, %v2014_v30  ;;  %v2101_v50 = vshrl.u32 %v7832_v35, %v2092_v8  ;;  %v9350_v56 = vand.u32 3, %v1902_v0 }
 0x1de   :  { %v1886_v4 = vmul.f32 %v1884_v61, %v1884_v61  ;;  %v2085_v55 = vor.u32 8388608, %v2084_v49  ;;  %v2106_v16 = vshll.u32 %v7833_v37, %v2091_v5  ;;  %v9353_v47 = vor.u32 %v2095_v26, %v2094_v13 }
 0x1df   :  { %v2019_v48 = vsel %vm2017_vm14, %v2018_v28, %v2014_v30  ;;  %v2105_v12 = vor.u32 %v2104_v54, %v2103_v27  ;;  %v2107_v63 = vshrl.u32 %v7834_v46, %v2092_v8  ;;  %v9356_v25 = vor.u32 %v2098_v24, %v2097_v22 }
 0x1e0   :  { %v1887_v14 = vmul.f32 -0.001358992, %v1886_v4  ;;  %v1894_v17 = vmul.f32 -0.00019511016, %v1886_v4  ;;  %v2020_v3 = vadd.s32 %v2019_v48, %v2015_v23  ;;  %v2102_v11 = vor.u32 %v2101_v50, %v2100_v36 }
 0x1e1   :  { %v2108_v41 = vor.u32 %v2107_v63, %v2106_v16  ;;  %vm2109_vm15 = vcmp.lt.s32.totalorder %v9333_v59, 1  ;;  %vm2112_vm0 = vcmp.lt.s32.totalorder %v9333_v59, 4  ;;  %vm2111_vm1 = vcmp.lt.s32.totalorder %v9333_v59, 3 }
 0x1e2   :  { %v1888_v10 = vadd.f32 0.041655596, %v1887_v14  ;;  %v1895_v21 = vadd.f32 0.008332121, %v1894_v17  ;;  %v2021_v58 = vadd.s32 536870912, %v2020_v3  ;;  %vm2110_vm2 = vcmp.lt.s32.totalorder %v9333_v59, 2 }
 0x1e3   :  { %v2118_v32 = vsel %vm2112_vm0, %v2105_v12, 920167782  ;;  %v9364_v43 = vshll.u32 %v2085_v55, 8  ;;  %v2117_v62 = vsel %vm2109_vm15, %v9353_v47, %v9356_v25  ;;  %vm1905_vm3 = vcmp.eq.s32.totalorder %v9350_v56, 0 }
 0x1e4   :  { %v1889_v1 = vmul.f32 %v1888_v10, %v1886_v4  ;;  %v1896_v19 = vmul.f32 %v1895_v21, %v1886_v4  ;;  %v9366_v51 = vshrl.u32 %v2021_v58, 30  ;;  %v9374_v20 = vadd.f32 1.5707964, %v8891_v2 }
 0x1e5   :  { %v2119_v40 = vsel %vm2111_vm1, %v2102_v11, %v2118_v32  ;;  %v2122_v9 = vsel %vm2112_vm0, %v2108_v41, 1326507024  ;;  %vm1904_vm4 = vcmp.lt.s32.totalorder %v9350_v56, 2  ;;  %v2121_v57 = vsel %vm2109_vm15, %v9356_v25, %v2102_v11 }
 0x1e6   :  { %v1890_v6 = vadd.f32 -0.4999988, %v1889_v1  ;;  %v1897_v60 = vadd.f32 -0.16666654, %v1896_v19  ;;  %v2023_v5 = vshll.u32 %v9366_v51, 30  ;;  %vm1901_vm5 = vweird.f32 %v8991_v38 }
 0x1e7   :  { %vm1908_vm6 = vcmp.eq.s32.totalorder %v9350_v56, 2  ;;  %v2120_v2 = vsel %vm2110_vm2, %v2117_v62, %v2119_v40  ;;  %v2123_v39 = vsel %vm2111_vm1, %v2105_v12, %v2122_v9  ;;  %v2232_v23 = vand.u32 2147483647, %v9374_v20 }
 0x1e8   :  { %v1891_v49 = vmul.f32 %v1890_v6, %v1886_v4  ;;  %v1898_v15 = vmul.f32 %v1897_v60, %v1886_v4  ;;  %v2024_v0 = vsub.s32 %v2020_v3, %v2023_v5  ;;  %v2126_v13 = vand.u32 65535, %v9364_v43 }
 0x1e9   :  { %v2093_v30 = vshrl.u32 %v7829_v29, %v2092_v8  ;;  %v2124_v26 = vsel %vm2110_vm2, %v2121_v57, %v2123_v39  ;;  %v2127_v22 = vshrl.u32 %v9364_v43, 16  ;;  %v2151_v34 = vshrl.u32 %v2120_v2, 16 }
 0x1ea   :  { %v1892_v24 = vadd.f32 1.0, %v1891_v49  ;;  %v1899_v27 = vadd.f32 1.0, %v1898_v15  ;;  %vm2025_vm7 = vcmp.lt.s32.totalorder %v2024_v0, 0  ;;  %v2026_v54 = vsub.s32 0, %v2024_v0 }
 0x1eb   :  { %v2016_v28 = vadd.s32 %v9326_v42, %v9328_v52  ;;  %v2128_v36 = vand.u32 65535, %v2124_v26  ;;  %v2129_v50 = vshrl.u32 %v2124_v26, 16  ;;  %v2235_v4 = vand.u32 2139095040, %v9374_v20 }
 0x1ec   :  { %v1900_v55 = vmul.f32 %v1899_v27, %v1884_v61  ;;  %v1909_v16 = vxor.u32 2147483648, %v1892_v24  ;;  %v2027_v8 = vsel %vm2025_vm7, %v2026_v54, %v2024_v0  ;;  %v2150_v48 = vand.u32 65535, %v2120_v2 }
 0x1ed   :  { %v2028_v12 = vclz %v2027_v8  ;;  %v2130_v63 = vmul.u32 %v2128_v36, %v2126_v13  ;;  %v2131_v14 = vmul.u32 %v2129_v50, %v2126_v13  ;;  %v2132_v17 = vmul.u32 %v2128_v36, %v2127_v22 }
 0x1ee   :  { %v1906_v3 = vxor.u32 2147483648, %v1900_v55  ;;  %v1910_v41 = vsel %vm1908_vm6, %v1909_v16, %v1900_v55  ;;  %v2113_v42 = vsel %vm2109_vm15, %v2093_v30, %v9353_v47  ;;  %v9405_v52 = vmul.u32 %v2151_v34, %v2126_v13 }
 0x1ef   :  { %v7635_v10 = vadd.s32 4294967294, %v2028_v12  ;;  %v2114_v61 = vsel %vm2112_vm0, %v2102_v11, 2102212464  ;;  %v2134_v21 = vshll.u32 %v2131_v14, 16  ;;  %v2236_v58 = vshrl.u32 %v2235_v4, 23 }
 0x1f0   :  { %v1907_v32 = vsel %vm1905_vm3, %v1892_v24, %v1906_v3  ;;  %v2133_v1 = vmul.u32 %v2129_v50, %v2127_v22  ;;  %v2152_v19 = vmul.u32 %v2150_v48, %v2126_v13  ;;  %v9411_v62 = vmul.u32 %v2150_v48, %v2127_v22 }
 0x1f1   :  { %v1911_v40 = vsel %vm1904_vm4, %v1907_v32, %v1910_v41  ;;  %vm7636_vm8 = vcmp.lt.s32.totalorder %v7635_v10, 0  ;;  %v2136_v47 = vshll.u32 %v2132_v17, 16  ;;  %vm2138_vm9 = vc.u32 %v2130_v63, %v2134_v21 }
 0x1f2   :  { %v1912_v9 = vsel %vm1901_vm5, nan, %v1911_v40  ;;  %v2031_v6 = vsel %vm7636_vm8, 0, %v7635_v10  ;;  %v2139_v11 = vsel %vm2138_vm9, 1, %v7835_v53  ;;  %v2156_v60 = vshll.u32 %v9405_v52, 16 }
 0x1f3   :  { %1917 = vst [vmem:[#allocation5 + $0x58] sm:$0xff] %v1912_v9  ;;  %v2032_v5 = vsub.s32 32, %v2031_v6  ;;  %v2033_v57 = vshll.u32 %v2024_v0, %v2031_v6  ;;  %v2036_v2 = vsub.s32 4294967266, %v2031_v6  ;;  %v2140_v39 = vadd.s32 %v2134_v21, %v2130_v63 }
 0x1f4   :  { %v2115_v56 = vsel %vm2111_vm1, %v9356_v25, %v2114_v61  ;;  %v2141_v49 = vadd.s32 %v2139_v11, %v2133_v1  ;;  %v2155_v15 = vmul.u32 %v2151_v34, %v2127_v22  ;;  %v7640_v13 = vadd.s32 4294967169, %v2236_v58 }
 0x1f5   :  { %v2034_v30 = vshrl.u32 %v2016_v28, %v2032_v5  ;;  %v2037_v26 = vadd.s32 127, %v2036_v2  ;;  %v2135_v24 = vshrl.u32 %v2131_v14, 16  ;;  %vm2142_vm10 = vc.u32 %v2140_v39, %v2136_v47 }
 0x1f6   :  { %v2137_v27 = vshrl.u32 %v2132_v17, 16  ;;  %v2143_v54 = vsel %vm2142_vm10, 1, %v7835_v53  ;;  %v2158_v36 = vshll.u32 %v9411_v62, 16  ;;  %vm2160_vm11 = vc.u32 %v2152_v19, %v2156_v60 }
 0x1f7   :  { %v2035_v0 = vor.u32 %v2034_v30, %v2033_v57  ;;  %v2038_v50 = vshll.u32 %v2037_v26, 23  ;;  %v2145_v4 = vadd.s32 %v2143_v54, %v2141_v49  ;;  %v2161_v55 = vsel %vm2160_vm11, 1, %v7835_v53 }
 0x1f8   :  { %v2116_v25 = vsel %vm2110_vm2, %v2113_v42, %v2115_v56  ;;  %v2162_v22 = vadd.s32 %v2156_v60, %v2152_v19  ;;  %v2163_v34 = vadd.s32 %v2161_v55, %v2155_v15  ;;  %v2242_v28 = vadd.s32 1, %v7640_v13 }
 0x1f9   :  { %v2039_v16 = vor.u32 4788187, %v2038_v50  ;;  %v2042_v8 = vcvt.s32.f32 %v2035_v0  ;;  %v2046_v48 = vsub.s32 4, %v9366_v51  ;;  %v2146_v12 = vadd.s32 %v2145_v4, %v2135_v24 }
 0x1fa   :  { %v2157_v63 = vshrl.u32 %v9405_v52, 16  ;;  %vm2164_vm12 = vc.u32 %v2162_v22, %v2158_v36  ;;  %v9429_v14 = vadd.s32 %v2162_v22, %v2158_v36  ;;  %vm2243_vm13 = vcmp.gt.s32.totalorder %v2242_v28, 0 }
 0x1fb   :  { %v2040_v17 = vand.u32 2147483647, %v2039_v16  ;;  %v9431_v3 = vadd.s32 %v2146_v12, %v2137_v27  ;;  %v2165_v59 = vsel %vm2164_vm12, 1, %v7835_v53  ;;  %v2244_v41 = vsel %vm2243_vm13, %v2242_v28, 0 }
 0x1fc   :  { %vm1924_vm14 = vcmp.lt.s32.totalorder %v9152_v44, 0  ;;  %v2159_v42 = vshrl.u32 %v9411_v62, 16  ;;  %v2167_v10 = vadd.s32 %v2165_v59, %v2163_v34  ;;  %v2246_v61 = vand.u32 31, %v2244_v41 }
 0x1fd   :  { %vm9438_vm15 = vcmp.le.f32.partialorder %v1922_v18, 0.7853982  ;;  %v2043_v21 = vmul.f32 %v2042_v8, %v2040_v17  ;;  %v2047_v58 = vsel %vm1924_vm14, %v2046_v48, %v9366_v51  ;;  %v2170_v32 = vmul.u32 %v9364_v43, %v2116_v25 }
 0x1fe   :  { %v2168_v1 = vadd.s32 %v2167_v10, %v2157_v63  ;;  %v2239_v19 = vand.u32 8388607, %v2232_v23  ;;  %v9448_v62 = vshrl.u32 %v2244_v41, 5  ;;  %v9450_v40 = vsub.s32 32, %v2246_v61 }
 0x1ff   :  { %v2044_v47 = vxor.u32 2147483648, %v2043_v21  ;;  %vm2172_vm0 = vc.u32 %v9431_v3, %v9429_v14  ;;  %v2252_v18 = vshll.u32 %v7830_v31, %v2246_v61  ;;  %v2255_v9 = vshll.u32 %v7831_v33, %v2246_v61 }
 0x200   :  { %v2169_v6 = vadd.s32 %v2168_v1, %v2159_v42  ;;  %v2253_v43 = vshrl.u32 %v7831_v33, %v9450_v40  ;;  %v2258_v51 = vshll.u32 %v7832_v35, %v2246_v61  ;;  %v2261_v11 = vshll.u32 %v7833_v37, %v2246_v61 }
 0x201   :  { %v2045_v60 = vsel %vm1924_vm14, %v2044_v47, %v2043_v21  ;;  %v2256_v5 = vshrl.u32 %v7832_v35, %v9450_v40  ;;  %v2259_v57 = vshrl.u32 %v7833_v37, %v9450_v40  ;;  %v2262_v2 = vshrl.u32 %v7834_v46, %v9450_v40 }
 0x202   :  { %v2048_v39 = vsel %vm9438_vm15, %v9152_v44, %v2045_v60  ;;  %v2173_v56 = vadd.s32 1, %v2169_v6  ;;  %v2249_v49 = vshll.u32 %v7829_v29, %v2246_v61  ;;  %v2250_v15 = vshrl.u32 %v7830_v31, %v9450_v40 }
 0x203   :  { %v2049_v13 = vsel %vm9438_vm15, 0, %v2047_v58  ;;  %v2050_v30 = vmul.f32 %v2048_v39, %v2048_v39  ;;  %v2240_v26 = vor.u32 8388608, %v2239_v19  ;;  %v9479_v27 = vor.u32 %v2253_v43, %v2252_v18 }
 0x204   :  { %v2174_v24 = vsel %vm2172_vm0, %v2173_v56, %v2169_v6  ;;  %v2260_v54 = vor.u32 %v2259_v57, %v2258_v51  ;;  %v2263_v36 = vor.u32 %v2262_v2, %v2261_v11  ;;  %v9481_v55 = vor.u32 %v2256_v5, %v2255_v9 }
 0x205   :  { %v2051_v0 = vmul.f32 -0.001358992, %v2050_v30  ;;  %v2058_v50 = vmul.f32 -0.00019511016, %v2050_v30  ;;  %v2175_v4 = vadd.s32 %v2174_v24, %v2170_v32  ;;  %v2066_v25 = vadd.s32 3, %v2049_v13 }
 0x206   :  { %v9483_v22 = vor.u32 %v2250_v15, %v2249_v49  ;;  %vm2264_vm1 = vcmp.lt.s32.totalorder %v9448_v62, 1  ;;  %vm2267_vm2 = vcmp.lt.s32.totalorder %v9448_v62, 4  ;;  %vm2266_vm3 = vcmp.lt.s32.totalorder %v9448_v62, 3 }
 0x207   :  { %v2052_v34 = vadd.f32 0.041655596, %v2051_v0  ;;  %v2059_v28 = vadd.f32 0.008332121, %v2058_v50  ;;  %v2176_v16 = vadd.s32 536870912, %v2175_v4  ;;  %vm2265_vm4 = vcmp.lt.s32.totalorder %v9448_v62, 2 }
 0x208   :  { %v2273_v8 = vsel %vm2267_vm2, %v2260_v54, 920167782  ;;  %v2277_v48 = vsel %vm2267_vm2, %v2263_v36, 1326507024  ;;  %v9493_v12 = vshll.u32 %v2240_v26, 8  ;;  %v2276_v41 = vsel %vm2264_vm1, %v9479_v27, %v9481_v55 }
 0x209   :  { %v2053_v63 = vmul.f32 %v2052_v34, %v2050_v30  ;;  %v2060_v17 = vmul.f32 %v2059_v28, %v2050_v30  ;;  %v9495_v59 = vshrl.u32 %v2176_v16, 30  ;;  %v2067_v42 = vand.u32 3, %v2066_v25 }
 0x20a   :  { %v2272_v10 = vsel %vm2264_vm1, %v9483_v22, %v9479_v27  ;;  %v2278_v61 = vsel %vm2266_vm3, %v2260_v54, %v2277_v48  ;;  %v2274_v32 = vsel %vm2266_vm3, %v9481_v55, %v2273_v8  ;;  %v9512_v1 = vadd.f32 1.5707964, %v8991_v38 }
 0x20b   :  { %v2054_v52 = vadd.f32 -0.4999988, %v2053_v63  ;;  %v2061_v21 = vadd.f32 -0.16666654, %v2060_v17  ;;  %v2178_v58 = vshll.u32 %v9495_v59, 30  ;;  %v2279_v19 = vsel %vm2265_vm4, %v2276_v41, %v2278_v61 }
 0x20c   :  { %v2281_v47 = vand.u32 65535, %v9493_v12  ;;  %v2282_v18 = vshrl.u32 %v9493_v12, 16  ;;  %vm2065_vm5 = vweird.f32 %v9152_v44  ;;  %vm2069_vm6 = vcmp.eq.s32.totalorder %v2067_v42, 0 }
 0x20d   :  { %v2055_v9 = vmul.f32 %v2054_v52, %v2050_v30  ;;  %v2062_v6 = vmul.f32 %v2061_v21, %v2050_v30  ;;  %v2179_v43 = vsub.s32 %v2175_v4, %v2178_v58  ;;  %v2275_v51 = vsel %vm2265_vm4, %v2272_v10, %v2274_v32 }
 0x20e   :  { %v2283_v11 = vand.u32 65535, %v2279_v19  ;;  %v2284_v60 = vshrl.u32 %v2279_v19, 16  ;;  %vm2072_vm8 = vcmp.eq.s32.totalorder %v2067_v42, 2  ;;  %v2305_v26 = vand.u32 65535, %v2275_v51 }
 0x20f   :  { %v2056_v38 = vadd.f32 1.0, %v2055_v9  ;;  %v2063_v5 = vadd.f32 1.0, %v2062_v6  ;;  %vm2180_vm7 = vcmp.lt.s32.totalorder %v2179_v43, 0  ;;  %v2181_v57 = vsub.s32 0, %v2179_v43 }
 0x210   :  { %v2285_v2 = vmul.u32 %v2283_v11, %v2281_v47  ;;  %v2286_v56 = vmul.u32 %v2284_v60, %v2281_v47  ;;  %v9521_v49 = vmul.u32 %v2283_v11, %v2282_v18  ;;  %vm2079_vm9 = vcmp.lt.s32.totalorder %v9247_v7, 0 }
 0x211   :  { %v2064_v15 = vmul.f32 %v2063_v5, %v2048_v39  ;;  %v2073_v13 = vxor.u32 2147483648, %v2056_v38  ;;  %v2182_v30 = vsel %vm2180_vm7, %v2181_v57, %v2179_v43  ;;  %v2288_v54 = vmul.u32 %v2284_v60, %v2282_v18 }
 0x212   :  { %v2183_v24 = vclz %v2182_v30  ;;  %v2289_v36 = vshll.u32 %v2286_v56, 16  ;;  %v2306_v0 = vshrl.u32 %v2275_v51, 16  ;;  %vm2068_vm10 = vcmp.lt.s32.totalorder %v2067_v42, 2 }
 0x213   :  { %v2070_v50 = vxor.u32 2147483648, %v2064_v15  ;;  %v2074_v4 = vsel %vm2072_vm8, %v2073_v13, %v2064_v15  ;;  %v2291_v25 = vshll.u32 %v9521_v49, 16  ;;  %v2171_v34 = vadd.s32 %v9429_v14, %v9431_v3 }
 0x214   :  { %v7638_v28 = vadd.s32 4294967294, %v2183_v24  ;;  %vm2293_vm11 = vc.u32 %v2285_v2, %v2289_v36  ;;  %v2295_v39 = vadd.s32 %v2289_v36, %v2285_v2  ;;  %v2201_v8 = vsub.s32 4, %v9495_v59 }
 0x215   :  { %v2071_v16 = vsel %vm2069_vm6, %v2056_v38, %v2070_v50  ;;  %v2294_v48 = vsel %vm2293_vm11, 1, %v7835_v53  ;;  %v2307_v63 = vmul.u32 %v2305_v26, %v2281_v47  ;;  %v2308_v10 = vmul.u32 %v2306_v0, %v2281_v47 }
 0x216   :  { %v2075_v17 = vsel %vm2068_vm10, %v2071_v16, %v2074_v4  ;;  %vm7639_vm12 = vcmp.lt.s32.totalorder %v7638_v28, 0  ;;  %v2296_v41 = vadd.s32 %v2294_v48, %v2288_v54  ;;  %vm2297_vm13 = vc.u32 %v2295_v39, %v2291_v25 }
 0x217   :  { %v2076_v61 = vsel %vm2065_vm5, nan, %v2075_v17  ;;  %v2186_v52 = vsel %vm7639_vm12, 0, %v7638_v28  ;;  %v2309_v14 = vmul.u32 %v2305_v26, %v2282_v18  ;;  %vm9534_vm14 = vcmp.le.f32.partialorder %v2077_v45, 0.7853982 }
 0x218   :  { %v2187_v42 = vsub.s32 32, %v2186_v52  ;;  %v2188_v21 = vshll.u32 %v2179_v43, %v2186_v52  ;;  %v2191_v58 = vsub.s32 4294967266, %v2186_v52  ;;  %v2298_v32 = vsel %vm2297_vm13, 1, %v7835_v53  ;;  %2543 = vst [vmem:[#allocation5 + $0x100] sm:$0xff] %v2076_v61 }
 0x219   :  { %v2248_v19 = vshrl.u32 %v7829_v29, %v9450_v40  ;;  %v2290_v44 = vshrl.u32 %v2286_v56, 16  ;;  %v2300_v47 = vadd.s32 %v2298_v32, %v2296_v41  ;;  %v2390_v9 = vand.u32 2139095040, %v9512_v1 }
 0x21a   :  { %v2189_v6 = vshrl.u32 %v2171_v34, %v2187_v42  ;;  %v2192_v51 = vadd.s32 127, %v2191_v58  ;;  %v2310_v11 = vmul.u32 %v2306_v0, %v2282_v18  ;;  %v2311_v45 = vshll.u32 %v2308_v10, 16 }
 0x21b   :  { %v2202_v60 = vsel %vm2079_vm9, %v2201_v8, %v9495_v59  ;;  %v2269_v43 = vsel %vm2267_vm2, %v9481_v55, 2102212464  ;;  %v2292_v38 = vshrl.u32 %v9521_v49, 16  ;;  %v2313_v5 = vshll.u32 %v2309_v14, 16 }
 0x21c   :  { %v2190_v40 = vor.u32 %v2189_v6, %v2188_v21  ;;  %v2193_v57 = vshll.u32 %v2192_v51, 23  ;;  %vm2315_vm15 = vc.u32 %v2307_v63, %v2311_v45  ;;  %v2317_v2 = vadd.s32 %v2311_v45, %v2307_v63 }
 0x21d   :  { %v2301_v56 = vadd.s32 %v2300_v47, %v2290_v44  ;;  %v2312_v15 = vshrl.u32 %v2308_v10, 16  ;;  %v2316_v18 = vsel %vm2315_vm15, 1, %v7835_v53  ;;  %v2391_v13 = vshrl.u32 %v2390_v9, 23 }
 0x21e   :  { %v2194_v30 = vor.u32 4788187, %v2193_v57  ;;  %v2197_v26 = vcvt.s32.f32 %v2190_v40  ;;  %v2318_v24 = vadd.s32 %v2316_v18, %v2310_v11  ;;  %vm2319_vm0 = vc.u32 %v2317_v2, %v2313_v5  ;;  %v7760_v18 = vld [vmem:[#allocation5] sm:$0xff] }
 0x21f   :  { %v2268_v55 = vsel %vm2264_vm1, %v2248_v19, %v9483_v22  ;;  %v2270_v59 = vsel %vm2266_vm3, %v9479_v27, %v2269_v43  ;;  %v2320_v49 = vsel %vm2319_vm0, 1, %v7835_v53  ;;  %v7643_v54 = vadd.s32 4294967169, %v2391_v13 }
 0x220   :  { %v2195_v36 = vand.u32 2147483647, %v2194_v30  ;;  %v2314_v0 = vshrl.u32 %v2309_v14, 16  ;;  %v2322_v50 = vadd.s32 %v2320_v49, %v2318_v24  ;;  %v2387_v4 = vand.u32 2147483647, %v9512_v1 }
 0x221   :  { %v2204_v25 = vsel %vm9534_vm14, 0, %v2202_v60  ;;  %v2302_v34 = vadd.s32 %v2301_v56, %v2292_v38  ;;  %v2321_v28 = vadd.s32 %v2317_v2, %v2313_v5  ;;  %v2397_v39 = vadd.s32 1, %v7643_v54 }
 0x222   :  { %v2198_v16 = vmul.f32 %v2197_v26, %v2195_v36  ;;  %v2271_v22 = vsel %vm2265_vm4, %v2268_v55, %v2270_v59  ;;  %v2323_v8 = vadd.s32 %v2322_v50, %v2312_v15  ;;  %v2221_v48 = vadd.s32 3, %v2204_v25 }
 0x223   :  { %vm2398_vm1 = vcmp.gt.s32.totalorder %v2397_v39, 0  ;;  %v2325_v41 = vmul.u32 %v9493_v12, %v2271_v22  ;;  %vm2327_vm2 = vc.u32 %v2302_v34, %v2321_v28  ;;  %v2394_v10 = vand.u32 8388607, %v2387_v4 }
 0x224   :  { %v2199_v27 = vxor.u32 2147483648, %v2198_v16  ;;  %v2324_v63 = vadd.s32 %v2323_v8, %v2314_v0  ;;  %v2399_v17 = vsel %vm2398_vm1, %v2397_v39, 0  ;;  %v9572_v58 = vand.u32 3, %v2221_v48 }
 0x225   :  { %v2401_v61 = vand.u32 31, %v2399_v17  ;;  %v2395_v19 = vor.u32 8388608, %v2394_v10  ;;  %v9580_v45 = vshrl.u32 %v2399_v17, 5  ;;  %v9594_v13 = vmul.f32 4.0, %v7760_v18 }
 0x226   :  { %v2200_v52 = vsel %vm2079_vm9, %v2199_v27, %v2198_v16  ;;  %v2328_v14 = vadd.s32 1, %v2324_v63  ;;  %vm2227_vm3 = vcmp.eq.s32.totalorder %v9572_v58, 2  ;;  %vm2224_vm4 = vcmp.eq.s32.totalorder %v9572_v58, 0 }
 0x227   :  { %v2203_v62 = vsel %vm9534_vm14, %v9247_v7, %v2200_v52  ;;  %v9570_v42 = vsub.s32 32, %v2401_v61  ;;  %v2404_v44 = vshll.u32 %v7829_v29, %v2401_v61  ;;  %v2407_v47 = vshll.u32 %v7830_v31, %v2401_v61 }
 0x228   :  { %v2205_v21 = vmul.f32 %v2203_v62, %v2203_v62  ;;  %v2329_v32 = vsel %vm2327_vm2, %v2328_v14, %v2324_v63  ;;  %v2413_v60 = vshll.u32 %v7832_v35, %v2401_v61  ;;  %v2410_v40 = vshll.u32 %v7831_v33, %v2401_v61 }
 0x229   :  { %v2330_v12 = vadd.s32 %v2329_v32, %v2325_v41  ;;  %v2405_v51 = vshrl.u32 %v7830_v31, %v9570_v42  ;;  %v2408_v3 = vshrl.u32 %v7831_v33, %v9570_v42  ;;  %v2414_v43 = vshrl.u32 %v7833_v37, %v9570_v42 }
 0x22a   :  { %v2206_v9 = vmul.f32 -0.001358992, %v2205_v21  ;;  %v2213_v6 = vmul.f32 -0.00019511016, %v2205_v21  ;;  %v2411_v57 = vshrl.u32 %v7832_v35, %v9570_v42  ;;  %v2416_v56 = vshll.u32 %v7833_v37, %v2401_v61 }
 0x22b   :  { %v2331_v11 = vadd.s32 536870912, %v2330_v12  ;;  %v2417_v15 = vshrl.u32 %v7834_v46, %v9570_v42  ;;  %v9596_v24 = vor.u32 %v2405_v51, %v2404_v44  ;;  %v9598_v55 = vor.u32 %v2408_v3, %v2407_v47 }
 0x22c   :  { %v2207_v38 = vadd.f32 0.041655596, %v2206_v9  ;;  %v2214_v5 = vadd.f32 0.008332121, %v2213_v6  ;;  %v9601_v59 = vadd.s32 %v2321_v28, %v2302_v34  ;;  %v2415_v54 = vor.u32 %v2414_v43, %v2413_v60 }
 0x22d   :  { %v9589_v2 = vshrl.u32 %v2331_v11, 30  ;;  %vm2419_vm5 = vcmp.lt.s32.totalorder %v9580_v45, 1  ;;  %vm2223_vm6 = vcmp.lt.s32.totalorder %v9572_v58, 2  ;;  %v2412_v50 = vor.u32 %v2411_v57, %v2410_v40 }
 0x22e   :  { %v2208_v30 = vmul.f32 %v2207_v38, %v2205_v21  ;;  %v2215_v26 = vmul.f32 %v2214_v5, %v2205_v21  ;;  %vm2422_vm7 = vcmp.lt.s32.totalorder %v9580_v45, 4  ;;  %vm2220_vm8 = vweird.f32 %v9247_v7 }
 0x22f   :  { %v2333_v49 = vshll.u32 %v9589_v2, 30  ;;  %v2418_v39 = vor.u32 %v2417_v15, %v2416_v56  ;;  %vm2421_vm9 = vcmp.lt.s32.totalorder %v9580_v45, 3  ;;  %v9611_v34 = vshll.u32 %v2395_v19, 8 }
 0x230   :  { %v2209_v36 = vadd.f32 -0.4999988, %v2208_v30  ;;  %v2216_v0 = vadd.f32 -0.16666654, %v2215_v26  ;;  %vm2420_vm10 = vcmp.lt.s32.totalorder %v9580_v45, 2  ;;  %v2427_v22 = vsel %vm2419_vm5, %v9596_v24, %v9598_v55 }
 0x231   :  { %v9608_v25 = vsub.s32 %v2330_v12, %v2333_v49  ;;  %v2428_v27 = vsel %vm2422_vm7, %v2415_v54, 920167782  ;;  %v2554_v48 = vand.u32 2139095040, %v9594_v13  ;;  %v2431_v10 = vsel %vm2419_vm5, %v9598_v55, %v2412_v50 }
 0x232   :  { %v2210_v28 = vmul.f32 %v2209_v36, %v2205_v21  ;;  %v2217_v16 = vmul.f32 %v2216_v0, %v2205_v21  ;;  %v2429_v41 = vsel %vm2421_vm9, %v2412_v50, %v2428_v27  ;;  %v2432_v14 = vsel %vm2422_vm7, %v2418_v39, 1326507024 }
 0x233   :  { %vm2335_vm11 = vcmp.lt.s32.totalorder %v9608_v25, 0  ;;  %v2336_v8 = vsub.s32 0, %v9608_v25  ;;  %v2430_v52 = vsel %vm2420_vm10, %v2427_v22, %v2429_v41  ;;  %v2436_v21 = vand.u32 65535, %v9611_v34 }
 0x234   :  { %v2211_v63 = vadd.f32 1.0, %v2210_v28  ;;  %v2218_v17 = vadd.f32 1.0, %v2217_v16  ;;  %v2433_v44 = vsel %vm2421_vm9, %v2415_v54, %v2432_v14  ;;  %v2437_v9 = vshrl.u32 %v9611_v34, 16 }
 0x235   :  { %v2337_v61 = vsel %vm2335_vm11, %v2336_v8, %v9608_v25  ;;  %v2434_v47 = vsel %vm2420_vm10, %v2431_v10, %v2433_v44  ;;  %v2551_v6 = vand.u32 2147483647, %v9594_v13  ;;  %v2555_v51 = vshrl.u32 %v2554_v48, 23 }
 0x236   :  { %v2219_v32 = vmul.f32 %v2218_v17, %v2203_v62  ;;  %v2228_v12 = vxor.u32 2147483648, %v2211_v63  ;;  %v2338_v19 = vclz %v2337_v61  ;;  %v2438_v43 = vand.u32 65535, %v2434_v47 }
 0x237   :  { %v2356_v62 = vsub.s32 4, %v9589_v2  ;;  %v2403_v38 = vshrl.u32 %v7829_v29, %v9570_v42  ;;  %v2439_v5 = vshrl.u32 %v2434_v47, 16  ;;  %v2461_v40 = vshrl.u32 %v2430_v52, 16 }
 0x238   :  { %v2225_v3 = vxor.u32 2147483648, %v2219_v32  ;;  %v2229_v11 = vsel %vm2227_vm3, %v2228_v12, %v2219_v32  ;;  %v7641_v60 = vadd.s32 4294967294, %v2338_v19  ;;  %v2424_v56 = vsel %vm2422_vm7, %v2412_v50, 2102212464 }
 0x239   :  { %v2460_v15 = vand.u32 65535, %v2430_v52  ;;  %v2440_v26 = vmul.u32 %v2438_v43, %v2436_v21  ;;  %v2441_v49 = vmul.u32 %v2439_v5, %v2436_v21  ;;  %vm2234_vm13 = vcmp.lt.s32.totalorder %v9374_v20, 0 }
 0x23a   :  { %v2226_v57 = vsel %vm2224_vm4, %v2211_v63, %v2225_v3  ;;  %vm7642_vm12 = vcmp.lt.s32.totalorder %v7641_v60, 0  ;;  %v2423_v50 = vsel %vm2419_vm5, %v2403_v38, %v9596_v24  ;;  %v2425_v58 = vsel %vm2421_vm9, %v9598_v55, %v2424_v56 }
 0x23b   :  { %v2230_v18 = vsel %vm2223_vm6, %v2226_v57, %v2229_v11  ;;  %v2341_v30 = vsel %vm7642_vm12, 0, %v7641_v60  ;;  %v2442_v39 = vmul.u32 %v2438_v43, %v2437_v9  ;;  %v2463_v28 = vmul.u32 %v2461_v40, %v2436_v21 }
 0x23c   :  { %v2231_v54 = vsel %vm2220_vm8, nan, %v2230_v18  ;;  %v2342_v42 = vsub.s32 32, %v2341_v30  ;;  %v2343_v36 = vshll.u32 %v9608_v25, %v2341_v30  ;;  %v2346_v0 = vsub.s32 4294967266, %v2341_v30 }
 0x23d   :  { %2544 = vst [vmem:[#allocation5 + $0x108] sm:$0xff] %v2231_v54  ;;  %v2443_v22 = vmul.u32 %v2439_v5, %v2437_v9  ;;  %v2444_v8 = vshll.u32 %v2441_v49, 16  ;;  %v2446_v27 = vshll.u32 %v2442_v39, 16  ;;  %v2462_v48 = vmul.u32 %v2460_v15, %v2436_v21 }
 0x23e   :  { %v2344_v7 = vshrl.u32 %v9601_v59, %v2342_v42  ;;  %v2347_v16 = vadd.s32 127, %v2346_v0  ;;  %v2464_v25 = vmul.u32 %v2460_v15, %v2437_v9  ;;  %v7646_v63 = vadd.s32 4294967169, %v2555_v51 }
 0x23f   :  { %vm9664_vm14 = vcmp.le.f32.partialorder %v2232_v23, 0.7853982  ;;  %vm2448_vm15 = vc.u32 %v2440_v26, %v2444_v8  ;;  %v2450_v41 = vadd.s32 %v2444_v8, %v2440_v26  ;;  %v2445_v10 = vshrl.u32 %v2441_v49, 16 }
 0x240   :  { %v2345_v17 = vor.u32 %v2344_v7, %v2343_v36  ;;  %v2348_v55 = vshll.u32 %v2347_v16, 23  ;;  %v2449_v59 = vsel %vm2448_vm15, 1, %v7835_v53  ;;  %v2465_v61 = vmul.u32 %v2461_v40, %v2437_v9 }
 0x241   :  { %v2466_v52 = vshll.u32 %v2463_v28, 16  ;;  %v2451_v21 = vadd.s32 %v2449_v59, %v2443_v22  ;;  %vm2452_vm0 = vc.u32 %v2450_v41, %v2446_v27  ;;  %v2447_v12 = vshrl.u32 %v2442_v39, 16  ;;  %v7761_v41 = vld [vmem:[#allocation5 + $0x8] sm:$0xff] }
 0x242   :  { %v2349_v14 = vor.u32 4788187, %v2348_v55  ;;  %v2352_v32 = vcvt.s32.f32 %v2345_v17  ;;  %v2453_v19 = vsel %vm2452_vm0, 1, %v7835_v53  ;;  %v2468_v23 = vshll.u32 %v2464_v25, 16 }
 0x243   :  { %vm2470_vm1 = vc.u32 %v2462_v48, %v2466_v52  ;;  %v2455_v47 = vadd.s32 %v2453_v19, %v2451_v21  ;;  %v2472_v3 = vadd.s32 %v2466_v52, %v2462_v48  ;;  %v2357_v11 = vsel %vm2234_vm13, %v2356_v62, %v9589_v2 }
 0x244   :  { %v2350_v44 = vand.u32 2147483647, %v2349_v14  ;;  %v2471_v51 = vsel %vm2470_vm1, 1, %v7835_v53  ;;  %v2426_v9 = vsel %vm2420_vm10, %v2423_v50, %v2425_v58  ;;  %v2561_v43 = vadd.s32 1, %v7646_v63 }
 0x245   :  { %v2473_v60 = vadd.s32 %v2471_v51, %v2465_v61  ;;  %v2456_v5 = vadd.s32 %v2455_v47, %v2445_v10  ;;  %v2467_v40 = vshrl.u32 %v2463_v28, 16  ;;  %vm2474_vm2 = vc.u32 %v2472_v3, %v2468_v23 }
 0x246   :  { %v2353_v38 = vmul.f32 %v2352_v32, %v2350_v44  ;;  %v2469_v57 = vshrl.u32 %v2464_v25, 16  ;;  %v2475_v56 = vsel %vm2474_vm2, 1, %v7835_v53  ;;  %v9677_v15 = vadd.s32 %v2472_v3, %v2468_v23 }
 0x247   :  { %vm2562_vm3 = vcmp.gt.s32.totalorder %v2561_v43, 0  ;;  %v9679_v30 = vadd.s32 %v2456_v5, %v2447_v12  ;;  %v2477_v26 = vadd.s32 %v2475_v56, %v2473_v60  ;;  %v2359_v45 = vsel %vm9664_vm14, 0, %v2357_v11 }
 0x248   :  { %v2354_v18 = vxor.u32 2147483648, %v2353_v38  ;;  %v2563_v2 = vsel %vm2562_vm3, %v2561_v43, 0  ;;  %v2558_v62 = vand.u32 8388607, %v2551_v6  ;;  %v2480_v36 = vmul.u32 %v9611_v34, %v2426_v9 }
 0x249   :  { %v2565_v49 = vand.u32 31, %v2563_v2  ;;  %v2478_v42 = vadd.s32 %v2477_v26, %v2467_v40  ;;  %v9688_v0 = vshrl.u32 %v2563_v2, 5  ;;  %vm2482_vm4 = vc.u32 %v9679_v30, %v9677_v15 }
 0x24a   :  { %v2355_v54 = vsel %vm2234_vm13, %v2354_v18, %v2353_v38  ;;  %v2376_v55 = vadd.s32 3, %v2359_v45  ;;  %v9709_v10 = vmul.f32 4.0, %v7761_v41  ;;  %v2559_v59 = vor.u32 8388608, %v2558_v62 }
 0x24b   :  { %v2358_v50 = vsel %vm9664_vm14, %v9374_v20, %v2355_v54  ;;  %v9695_v58 = vsub.s32 32, %v2565_v49  ;;  %v2568_v39 = vshll.u32 %v7829_v29, %v2565_v49  ;;  %v2479_v7 = vadd.s32 %v2478_v42, %v2469_v57 }
 0x24c   :  { %v2360_v28 = vmul.f32 %v2358_v50, %v2358_v50  ;;  %v2571_v16 = vshll.u32 %v7830_v31, %v2565_v49  ;;  %v2574_v22 = vshll.u32 %v7831_v33, %v2565_v49  ;;  %v2577_v48 = vshll.u32 %v7832_v35, %v2565_v49 }
 0x24d   :  { %v2569_v34 = vshrl.u32 %v7830_v31, %v9695_v58  ;;  %v2572_v8 = vshrl.u32 %v7831_v33, %v9695_v58  ;;  %v2575_v27 = vshrl.u32 %v7832_v35, %v9695_v58  ;;  %v2483_v24 = vadd.s32 1, %v2479_v7 }
 0x24e   :  { %v2361_v25 = vmul.f32 -0.001358992, %v2360_v28  ;;  %v2368_v63 = vmul.f32 -0.00019511016, %v2360_v28  ;;  %v2578_v17 = vshrl.u32 %v7833_v37, %v9695_v58  ;;  %v2580_v21 = vshll.u32 %v7833_v37, %v2565_v49 }
 0x24f   :  { %v9711_v61 = vor.u32 %v2569_v34, %v2568_v39  ;;  %v2484_v32 = vsel %vm2482_vm4, %v2483_v24, %v2479_v7  ;;  %v9717_v19 = vor.u32 %v2572_v8, %v2571_v16  ;;  %v2581_v44 = vshrl.u32 %v7834_v46, %v9695_v58 }
 0x250   :  { %v2362_v52 = vadd.f32 0.041655596, %v2361_v25  ;;  %v2369_v14 = vadd.f32 0.008332121, %v2368_v63  ;;  %v2485_v12 = vadd.s32 %v2484_v32, %v2480_v36  ;;  %v2579_v23 = vor.u32 %v2578_v17, %v2577_v48 }
 0x251   :  { %v9721_v3 = vor.u32 %v2575_v27, %v2574_v22  ;;  %vm2583_vm5 = vcmp.lt.s32.totalorder %v9688_v0, 1  ;;  %v2377_v11 = vand.u32 3, %v2376_v55  ;;  %vm2585_vm6 = vcmp.lt.s32.totalorder %v9688_v0, 3 }
 0x252   :  { %v2363_v47 = vmul.f32 %v2362_v52, %v2360_v28  ;;  %v2370_v51 = vmul.f32 %v2369_v14, %v2360_v28  ;;  %v2486_v9 = vadd.s32 536870912, %v2485_v12  ;;  %vm2586_vm7 = vcmp.lt.s32.totalorder %v9688_v0, 4 }
 0x253   :  { %v2582_v38 = vor.u32 %v2581_v44, %v2580_v21  ;;  %vm2584_vm8 = vcmp.lt.s32.totalorder %v9688_v0, 2  ;;  %v2591_v40 = vsel %vm2583_vm5, %v9711_v61, %v9717_v19  ;;  %v2592_v57 = vsel %vm2586_vm7, %v2579_v23, 920167782  ;;  %v7762_v0 = vld [vmem:[#allocation5 + $0x10] sm:$0xff] }
 0x254   :  { %v2364_v60 = vadd.f32 -0.4999988, %v2363_v47  ;;  %v2371_v43 = vadd.f32 -0.16666654, %v2370_v51  ;;  %v9727_v5 = vshrl.u32 %v2486_v9, 30  ;;  %v9735_v56 = vshll.u32 %v2559_v59, 8 }
 0x255   :  { %vm2375_vm9 = vweird.f32 %v9374_v20  ;;  %v2593_v2 = vsel %vm2585_vm6, %v9721_v3, %v2592_v57  ;;  %vm2379_vm10 = vcmp.eq.s32.totalorder %v2377_v11, 0  ;;  %v2595_v49 = vsel %vm2583_vm5, %v9717_v19, %v9721_v3 }
 0x256   :  { %v2365_v18 = vmul.f32 %v2364_v60, %v2360_v28  ;;  %v2372_v26 = vmul.f32 %v2371_v43, %v2360_v28  ;;  %v2488_v45 = vshll.u32 %v9727_v5, 30  ;;  %v2594_v62 = vsel %vm2584_vm8, %v2591_v40, %v2593_v2 }
 0x257   :  { %vm2382_vm11 = vcmp.eq.s32.totalorder %v2377_v11, 2  ;;  %v2596_v36 = vsel %vm2586_vm7, %v2582_v38, 1326507024  ;;  %v2600_v7 = vand.u32 65535, %v9735_v56  ;;  %v2601_v16 = vshrl.u32 %v9735_v56, 16 }
 0x258   :  { %v2366_v54 = vadd.f32 1.0, %v2365_v18  ;;  %v2373_v42 = vadd.f32 1.0, %v2372_v26  ;;  %v9750_v39 = vsub.s32 %v2485_v12, %v2488_v45  ;;  %v2597_v28 = vsel %vm2585_vm6, %v2579_v23, %v2596_v36 }
 0x259   :  { %v2598_v8 = vsel %vm2584_vm8, %v2595_v49, %v2597_v28  ;;  %v2625_v27 = vshrl.u32 %v2594_v62, 16  ;;  %vm2378_vm13 = vcmp.lt.s32.totalorder %v2377_v11, 2  ;;  %v2624_v55 = vand.u32 65535, %v2594_v62 }
 0x25a   :  { %v2374_v22 = vmul.f32 %v2373_v42, %v2358_v50  ;;  %v2383_v34 = vxor.u32 2147483648, %v2366_v54  ;;  %vm2490_vm12 = vcmp.lt.s32.totalorder %v9750_v39, 0  ;;  %v2491_v48 = vsub.s32 0, %v9750_v39 }
 0x25b   :  { %v2602_v25 = vand.u32 65535, %v2598_v8  ;;  %v2603_v63 = vshrl.u32 %v2598_v8, 16  ;;  %vm2389_vm14 = vcmp.lt.s32.totalorder %v9512_v1, 0  ;;  %v2627_v21 = vmul.u32 %v2625_v27, %v2600_v7 }
 0x25c   :  { %v2380_v24 = vxor.u32 2147483648, %v2374_v22  ;;  %v2384_v17 = vsel %vm2382_vm11, %v2383_v34, %v2374_v22  ;;  %v2492_v50 = vsel %vm2490_vm12, %v2491_v48, %v9750_v39  ;;  %v2709_v12 = vand.u32 2139095040, %v9709_v10 }
 0x25d   :  { %v2604_v41 = vmul.u32 %v2602_v25, %v2600_v7  ;;  %v2605_v59 = vmul.u32 %v2603_v63, %v2600_v7  ;;  %v2606_v52 = vmul.u32 %v2602_v25, %v2601_v16  ;;  %v2493_v32 = vclz %v2492_v50 }
 0x25e   :  { %v2381_v14 = vsel %vm2379_vm10, %v2366_v54, %v2380_v24  ;;  %v2607_v44 = vmul.u32 %v2603_v63, %v2601_v16  ;;  %v2481_v60 = vadd.s32 %v9677_v15, %v9679_v30  ;;  %v2567_v38 = vshrl.u32 %v7829_v29, %v9695_v58 }
 0x25f   :  { %v2385_v23 = vsel %vm2378_vm13, %v2381_v14, %v2384_v17  ;;  %v2608_v47 = vshll.u32 %v2605_v59, 16  ;;  %v2610_v51 = vshll.u32 %v2606_v52, 16  ;;  %v7644_v43 = vadd.s32 4294967294, %v2493_v32 }
 0x260   :  { %v2386_v9 = vsel %vm2375_vm9, nan, %v2385_v23  ;;  %v2511_v11 = vsub.s32 4, %v9727_v5  ;;  %v2626_v57 = vmul.u32 %v2624_v55, %v2600_v7  ;;  %vm9774_vm0 = vcmp.le.f32.partialorder %v2387_v4, 0.7853982 }
 0x261   :  { %2545 = vst [vmem:[#allocation5 + $0x110] sm:$0xff] %v2386_v9  ;;  %vm2612_vm15 = vc.u32 %v2604_v41, %v2608_v47  ;;  %v2614_v40 = vadd.s32 %v2608_v47, %v2604_v41  ;;  %vm7645_vm1 = vcmp.lt.s32.totalorder %v7644_v43, 0  ;;  %v2609_v20 = vshrl.u32 %v2605_v59, 16 }
 0x262   :  { %v2613_v15 = vsel %vm2612_vm15, 1, %v7835_v53  ;;  %v2628_v30 = vmul.u32 %v2624_v55, %v2601_v16  ;;  %v2496_v26 = vsel %vm7645_vm1, 0, %v7644_v43  ;;  %v2630_v58 = vshll.u32 %v2627_v21, 16 }
 0x263   :  { %v2615_v2 = vadd.s32 %v2613_v15, %v2607_v44  ;;  %vm2616_vm2 = vc.u32 %v2614_v40, %v2610_v51  ;;  %v2497_v45 = vsub.s32 32, %v2496_v26  ;;  %v2498_v62 = vshll.u32 %v9750_v39, %v2496_v26 }
 0x264   :  { %v2501_v49 = vsub.s32 4294967266, %v2496_v26  ;;  %v2617_v54 = vsel %vm2616_vm2, 1, %v7835_v53  ;;  %v2587_v4 = vsel %vm2583_vm5, %v2567_v38, %v9711_v61  ;;  %v2588_v42 = vsel %vm2586_vm7, %v9721_v3, 2102212464 }
 0x265   :  { %v2619_v36 = vadd.s32 %v2617_v54, %v2615_v2  ;;  %v2629_v28 = vmul.u32 %v2625_v27, %v2601_v16  ;;  %v2499_v7 = vshrl.u32 %v2481_v60, %v2497_v45  ;;  %v2512_v34 = vsel %vm2389_vm14, %v2511_v11, %v9727_v5 }
 0x266   :  { %v2502_v22 = vadd.s32 127, %v2501_v49  ;;  %v2632_v39 = vshll.u32 %v2628_v30, 16  ;;  %v2611_v8 = vshrl.u32 %v2606_v52, 16  ;;  %vm2634_vm3 = vc.u32 %v2626_v57, %v2630_v58 }
 0x267   :  { %v2620_v48 = vadd.s32 %v2619_v36, %v2609_v20  ;;  %v2636_v25 = vadd.s32 %v2630_v58, %v2626_v57  ;;  %v2500_v63 = vor.u32 %v2499_v7, %v2498_v62  ;;  %v2635_v61 = vsel %vm2634_vm3, 1, %v7835_v53 }
 0x268   :  { %v2503_v24 = vshll.u32 %v2502_v22, 23  ;;  %v2710_v17 = vshrl.u32 %v2709_v12, 23  ;;  %v2589_v3 = vsel %vm2585_vm6, %v9717_v19, %v2588_v42  ;;  %v2631_v16 = vshrl.u32 %v2627_v21, 16 }
 0x269   :  { %v2637_v27 = vadd.s32 %v2635_v61, %v2629_v28  ;;  %vm2638_vm4 = vc.u32 %v2636_v25, %v2632_v39  ;;  %v2507_v50 = vcvt.s32.f32 %v2500_v63  ;;  %v2514_v59 = vsel %vm9774_vm0, 0, %v2512_v34 }
 0x26a   :  { %v2504_v55 = vor.u32 4788187, %v2503_v24  ;;  %v2639_v5 = vsel %vm2638_vm4, 1, %v7835_v53  ;;  %v7649_v41 = vadd.s32 4294967169, %v2710_v17  ;;  %v2633_v52 = vshrl.u32 %v2628_v30, 16 }
 0x26b   :  { %v2641_v14 = vadd.s32 %v2639_v5, %v2637_v27  ;;  %v2621_v23 = vadd.s32 %v2620_v48, %v2611_v8  ;;  %v2640_v12 = vadd.s32 %v2636_v25, %v2632_v39  ;;  %v2590_v19 = vsel %vm2584_vm8, %v2587_v4, %v2589_v3 }
 0x26c   :  { %v2505_v32 = vand.u32 2147483647, %v2504_v55  ;;  %v2716_v44 = vadd.s32 1, %v7649_v41  ;;  %v2531_v51 = vadd.s32 3, %v2514_v59  ;;  %v2706_v60 = vand.u32 2147483647, %v9709_v10 }
 0x26d   :  { %v2642_v21 = vadd.s32 %v2641_v14, %v2631_v16  ;;  %v2644_v11 = vmul.u32 %v9735_v56, %v2590_v19  ;;  %vm2646_vm6 = vc.u32 %v2621_v23, %v2640_v12  ;;  %v9805_v30 = vmul.f32 4.0, %v7762_v0 }
 0x26e   :  { %v2508_v47 = vmul.f32 %v2507_v50, %v2505_v32  ;;  %vm2717_vm5 = vcmp.gt.s32.totalorder %v2716_v44, 0  ;;  %v9803_v15 = vand.u32 3, %v2531_v51  ;;  %v9814_v58 = vadd.s32 %v2640_v12, %v2621_v23 }
 0x26f   :  { %v2643_v9 = vadd.s32 %v2642_v21, %v2633_v52  ;;  %v2718_v43 = vsel %vm2717_vm5, %v2716_v44, 0  ;;  %v2713_v45 = vand.u32 8388607, %v2706_v60  ;;  %v2864_v4 = vand.u32 2139095040, %v9805_v30 }
 0x270   :  { %v2509_v38 = vxor.u32 2147483648, %v2508_v47  ;;  %v2720_v40 = vand.u32 31, %v2718_v43  ;;  %v9830_v8 = vshrl.u32 %v2718_v43, 5  ;;  %vm2537_vm7 = vcmp.eq.s32.totalorder %v9803_v15, 2 }
 0x271   :  { %v2647_v57 = vadd.s32 1, %v2643_v9  ;;  %v2714_v3 = vor.u32 8388608, %v2713_v45  ;;  %v2865_v50 = vshrl.u32 %v2864_v4, 23  ;;  %vm2534_vm8 = vcmp.eq.s32.totalorder %v9803_v15, 0 }
 0x272   :  { %v2510_v20 = vsel %vm2389_vm14, %v2509_v38, %v2508_v47  ;;  %v9807_v26 = vsub.s32 32, %v2720_v40  ;;  %v2723_v54 = vshll.u32 %v7829_v29, %v2720_v40  ;;  %v2726_v18 = vshll.u32 %v7830_v31, %v2720_v40 }
 0x273   :  { %v9812_v2 = vsel %vm9774_vm0, %v9512_v1, %v2510_v20  ;;  %v2648_v56 = vsel %vm2646_vm6, %v2647_v57, %v2643_v9  ;;  %v2732_v28 = vshll.u32 %v7832_v35, %v2720_v40  ;;  %v2729_v48 = vshll.u32 %v7831_v33, %v2720_v40 }
 0x274   :  { %v2515_v62 = vmul.f32 %v9812_v2, %v9812_v2  ;;  %v2649_v49 = vadd.s32 %v2648_v56, %v2644_v11  ;;  %v2724_v42 = vshrl.u32 %v7830_v31, %v9807_v26  ;;  %v2727_v36 = vshrl.u32 %v7831_v33, %v9807_v26 }
 0x275   :  { %v2733_v39 = vshrl.u32 %v7833_v37, %v9807_v26  ;;  %v2730_v25 = vshrl.u32 %v7832_v35, %v9807_v26  ;;  %v2735_v63 = vshll.u32 %v7833_v37, %v2720_v40  ;;  %v2736_v55 = vshrl.u32 %v7834_v46, %v9807_v26 }
 0x276   :  { %v2516_v7 = vmul.f32 -0.001358992, %v2515_v62  ;;  %v2523_v22 = vmul.f32 -0.00019511016, %v2515_v62  ;;  %v2650_v34 = vadd.s32 536870912, %v2649_v49  ;;  %v9839_v16 = vor.u32 %v2724_v42, %v2723_v54 }
 0x277   :  { %v2734_v27 = vor.u32 %v2733_v39, %v2732_v28  ;;  %v2728_v52 = vor.u32 %v2727_v36, %v2726_v18  ;;  %v2731_v14 = vor.u32 %v2730_v25, %v2729_v48  ;;  %v2737_v32 = vor.u32 %v2736_v55, %v2735_v63 }
 0x278   :  { %v2517_v24 = vadd.f32 0.041655596, %v2516_v7  ;;  %v2524_v61 = vadd.f32 0.008332121, %v2523_v22  ;;  %v9836_v17 = vshrl.u32 %v2650_v34, 30  ;;  %vm2738_vm9 = vcmp.lt.s32.totalorder %v9830_v8, 1 }
 0x279   :  { %vm2741_vm10 = vcmp.lt.s32.totalorder %v9830_v8, 4  ;;  %vm2533_vm11 = vcmp.lt.s32.totalorder %v9803_v15, 2  ;;  %vm2740_vm12 = vcmp.lt.s32.totalorder %v9830_v8, 3  ;;  %vm2530_vm13 = vweird.f32 %v9512_v1 }
 0x27a   :  { %v2518_v5 = vmul.f32 %v2517_v24, %v2515_v62  ;;  %v2525_v41 = vmul.f32 %v2524_v61, %v2515_v62  ;;  %v2652_v59 = vshll.u32 %v9836_v17, 30  ;;  %vm2739_vm14 = vcmp.lt.s32.totalorder %v9830_v8, 2 }
 0x27b   :  { %v2747_v19 = vsel %vm2741_vm10, %v2734_v27, 920167782  ;;  %v9855_v21 = vshll.u32 %v2714_v3, 8  ;;  %v2861_v47 = vand.u32 2147483647, %v9805_v30  ;;  %v2746_v38 = vsel %vm2738_vm9, %v9839_v16, %v2728_v52 }
 0x27c   :  { %v2519_v23 = vadd.f32 -0.4999988, %v2518_v5  ;;  %v2526_v12 = vadd.f32 -0.16666654, %v2525_v41  ;;  %v9848_v44 = vsub.s32 %v2649_v49, %v2652_v59  ;;  %v2748_v11 = vsel %vm2740_vm12, %v2731_v14, %v2747_v19 }
 0x27d   :  { %v2750_v40 = vsel %vm2738_vm9, %v2728_v52, %v2731_v14  ;;  %v2751_v57 = vsel %vm2741_vm10, %v2737_v32, 1326507024  ;;  %v7652_v45 = vadd.s32 4294967169, %v2865_v50  ;;  %v2755_v54 = vand.u32 65535, %v9855_v21 }
 0x27e   :  { %v2520_v51 = vmul.f32 %v2519_v23, %v2515_v62  ;;  %v2527_v9 = vmul.f32 %v2526_v12, %v2515_v62  ;;  %vm2654_vm15 = vcmp.lt.s32.totalorder %v9848_v44, 0  ;;  %v2655_v43 = vsub.s32 0, %v9848_v44 }
 0x27f   :  { %v2752_v49 = vsel %vm2740_vm12, %v2734_v27, %v2751_v57  ;;  %v2756_v4 = vshrl.u32 %v9855_v21, 16  ;;  %v2749_v36 = vsel %vm2739_vm14, %v2746_v38, %v2748_v11  ;;  %v2722_v22 = vshrl.u32 %v7829_v29, %v9807_v26 }
 0x280   :  { %v2521_v20 = vadd.f32 1.0, %v2520_v51  ;;  %v2528_v0 = vadd.f32 1.0, %v2527_v9  ;;  %v2656_v56 = vsel %vm2654_vm15, %v2655_v43, %v9848_v44  ;;  %v2753_v28 = vsel %vm2739_vm14, %v2750_v40, %v2752_v49 }
 0x281   :  { %v2657_v62 = vclz %v2656_v56  ;;  %v2757_v34 = vand.u32 65535, %v2753_v28  ;;  %v2758_v39 = vshrl.u32 %v2753_v28, 16  ;;  %v2675_v63 = vsub.s32 4, %v9836_v17 }
 0x282   :  { %v2529_v42 = vmul.f32 %v2528_v0, %v9812_v2  ;;  %v2538_v18 = vxor.u32 2147483648, %v2521_v20  ;;  %v2743_v2 = vsel %vm2741_vm10, %v2731_v14, 2102212464  ;;  %vm2553_vm0 = vcmp.lt.s32.totalorder %v9594_v13, 0 }
 0x283   :  { %v7647_v7 = vadd.s32 4294967294, %v2657_v62  ;;  %v2760_v24 = vmul.u32 %v2758_v39, %v2755_v54  ;;  %v2779_v61 = vand.u32 65535, %v2749_v36  ;;  %v2780_v3 = vshrl.u32 %v2749_v36, 16 }
 0x284   :  { %v2535_v48 = vxor.u32 2147483648, %v2529_v42  ;;  %v2539_v25 = vsel %vm2537_vm7, %v2538_v18, %v2529_v42  ;;  %v2759_v55 = vmul.u32 %v2757_v34, %v2755_v54  ;;  %v2761_v50 = vmul.u32 %v2757_v34, %v2756_v4 }
 0x285   :  { %vm7648_vm1 = vcmp.lt.s32.totalorder %v7647_v7, 0  ;;  %v2742_v23 = vsel %vm2738_vm9, %v2722_v22, %v9839_v16  ;;  %v2744_v12 = vsel %vm2740_vm12, %v2728_v52, %v2743_v2  ;;  %v2871_v19 = vadd.s32 1, %v7652_v45 }
 0x286   :  { %v2536_v26 = vsel %vm2534_vm8, %v2521_v20, %v2535_v48  ;;  %v2660_v27 = vsel %vm7648_vm1, 0, %v7647_v7  ;;  %vm9901_vm2 = vcmp.le.f32.partialorder %v2551_v6, 0.7853982  ;;  %v2762_v1 = vmul.u32 %v2758_v39, %v2756_v4 }
 0x287   :  { %v2540_v5 = vsel %vm2533_vm11, %v2536_v26, %v2539_v25  ;;  %v2661_v41 = vsub.s32 32, %v2660_v27  ;;  %v2662_v59 = vshll.u32 %v9848_v44, %v2660_v27  ;;  %v2665_v32 = vsub.s32 4294967266, %v2660_v27 }
 0x288   :  { %v2541_v14 = vsel %vm2530_vm13, nan, %v2540_v5  ;;  %v2763_v9 = vshll.u32 %v2760_v24, 16  ;;  %v2764_v43 = vshrl.u32 %v2760_v24, 16  ;;  %v2765_v38 = vshll.u32 %v2761_v50, 16 }
 0x289   :  { %2546 = vst [vmem:[#allocation5 + $0x118] sm:$0xff] %v2541_v14  ;;  %v2663_v44 = vshrl.u32 %v9814_v58, %v2661_v41  ;;  %v2666_v51 = vadd.s32 127, %v2665_v32  ;;  %v2781_v11 = vmul.u32 %v2779_v61, %v2755_v54  ;;  %v2782_v16 = vmul.u32 %v2780_v3, %v2755_v54 }
 0x28a   :  { %vm2767_vm3 = vc.u32 %v2759_v55, %v2763_v9  ;;  %v2769_v52 = vadd.s32 %v2763_v9, %v2759_v55  ;;  %v2783_v0 = vmul.u32 %v2779_v61, %v2756_v4  ;;  %v2784_v6 = vmul.u32 %v2780_v3, %v2756_v4 }
 0x28b   :  { %v2664_v40 = vor.u32 %v2663_v44, %v2662_v59  ;;  %v2667_v57 = vshll.u32 %v2666_v51, 23  ;;  %v2768_v20 = vsel %vm2767_vm3, 1, %v7835_v53  ;;  %v2785_v56 = vshll.u32 %v2782_v16, 16 }
 0x28c   :  { %v2770_v49 = vadd.s32 %v2768_v20, %v2762_v1  ;;  %vm2771_vm4 = vc.u32 %v2769_v52, %v2765_v38  ;;  %v2676_v58 = vsel %vm2553_vm0, %v2675_v63, %v9836_v17  ;;  %v2766_v42 = vshrl.u32 %v2761_v50, 16 }
 0x28d   :  { %v2668_v45 = vor.u32 4788187, %v2667_v57  ;;  %v2671_v62 = vcvt.s32.f32 %v2664_v40  ;;  %v2772_v54 = vsel %vm2771_vm4, 1, %v7835_v53  ;;  %v2787_v18 = vshll.u32 %v2783_v0, 16 }
 0x28e   :  { %v2774_v28 = vadd.s32 %v2772_v54, %v2770_v49  ;;  %vm2789_vm5 = vc.u32 %v2781_v11, %v2785_v56  ;;  %v2791_v7 = vadd.s32 %v2785_v56, %v2781_v11  ;;  %v2745_v4 = vsel %vm2739_vm14, %v2742_v23, %v2744_v12 }
 0x28f   :  { %v2669_v36 = vand.u32 2147483647, %v2668_v45  ;;  %v2786_v22 = vshrl.u32 %v2782_v16, 16  ;;  %v2790_v34 = vsel %vm2789_vm5, 1, %v7835_v53  ;;  %vm2872_vm6 = vcmp.gt.s32.totalorder %v2871_v19, 0 }
 0x290   :  { %v2775_v48 = vadd.s32 %v2774_v28, %v2764_v43  ;;  %v2792_v25 = vadd.s32 %v2790_v34, %v2784_v6  ;;  %vm2793_vm7 = vc.u32 %v2791_v7, %v2787_v18  ;;  %v2678_v17 = vsel %vm9901_vm2, 0, %v2676_v58  ;;  %v7763_v28 = vld [vmem:[#allocation5 + $0x18] sm:$0xff] }
 0x291   :  { %v2672_v39 = vmul.f32 %v2671_v62, %v2669_v36  ;;  %v2794_v63 = vsel %vm2793_vm7, 1, %v7835_v53  ;;  %v9917_v2 = vadd.s32 %v2791_v7, %v2787_v18  ;;  %v2873_v24 = vsel %vm2872_vm6, %v2871_v19, 0 }
 0x292   :  { %v9919_v3 = vadd.s32 %v2775_v48, %v2766_v42  ;;  %v2788_v8 = vshrl.u32 %v2783_v0, 16  ;;  %v2796_v26 = vadd.s32 %v2794_v63, %v2792_v25  ;;  %v2799_v27 = vmul.u32 %v9855_v21, %v2745_v4 }
 0x293   :  { %v2673_v61 = vxor.u32 2147483648, %v2672_v39  ;;  %v2868_v55 = vand.u32 8388607, %v2861_v47  ;;  %v2875_v50 = vand.u32 31, %v2873_v24  ;;  %v2695_v41 = vadd.s32 3, %v2678_v17 }
 0x294   :  { %v2797_v59 = vadd.s32 %v2796_v26, %v2786_v22  ;;  %v9926_v32 = vshrl.u32 %v2873_v24, 5  ;;  %vm2801_vm8 = vc.u32 %v9919_v3, %v9917_v2  ;;  %v9960_v7 = vmul.f32 4.0, %v7763_v28 }
 0x295   :  { %v2674_v5 = vsel %vm2553_vm0, %v2673_v61, %v2672_v39  ;;  %v9933_v23 = vsub.s32 32, %v2875_v50  ;;  %v2878_v21 = vshll.u32 %v7829_v29, %v2875_v50  ;;  %v2881_v44 = vshll.u32 %v7830_v31, %v2875_v50 }
 0x296   :  { %v2677_v14 = vsel %vm9901_vm2, %v9594_v13, %v2674_v5  ;;  %v2798_v19 = vadd.s32 %v2797_v59, %v2788_v8  ;;  %v2884_v51 = vshll.u32 %v7831_v33, %v2875_v50  ;;  %v2887_v43 = vshll.u32 %v7832_v35, %v2875_v50 }
 0x297   :  { %v2679_v12 = vmul.f32 %v2677_v14, %v2677_v14  ;;  %v2879_v1 = vshrl.u32 %v7830_v31, %v9933_v23  ;;  %v2882_v15 = vshrl.u32 %v7831_v33, %v9933_v23  ;;  %v2885_v9 = vshrl.u32 %v7832_v35, %v9933_v23 }
 0x298   :  { %v2802_v16 = vadd.s32 1, %v2798_v19  ;;  %v2888_v40 = vshrl.u32 %v7833_v37, %v9933_v23  ;;  %v9947_v57 = vand.u32 3, %v2695_v41  ;;  %v2869_v52 = vor.u32 8388608, %v2868_v55 }
 0x299   :  { %v2680_v38 = vmul.f32 -0.001358992, %v2679_v12  ;;  %v2687_v11 = vmul.f32 -0.00019511016, %v2679_v12  ;;  %v9949_v20 = vor.u32 %v2879_v1, %v2878_v21  ;;  %v2890_v45 = vshll.u32 %v7833_v37, %v2875_v50 }
 0x29a   :  { %v2803_v56 = vsel %vm2801_vm8, %v2802_v16, %v2798_v19  ;;  %v9955_v49 = vor.u32 %v2882_v15, %v2881_v44  ;;  %v2889_v58 = vor.u32 %v2888_v40, %v2887_v43  ;;  %v2891_v42 = vshrl.u32 %v7834_v46, %v9933_v23 }
 0x29b   :  { %v2681_v0 = vadd.f32 0.041655596, %v2680_v38  ;;  %v2688_v6 = vadd.f32 0.008332121, %v2687_v11  ;;  %v2804_v62 = vadd.s32 %v2803_v56, %v2799_v27  ;;  %v2886_v36 = vor.u32 %v2885_v9, %v2884_v51 }
 0x29c   :  { %vm2893_vm9 = vcmp.lt.s32.totalorder %v9926_v32, 1  ;;  %vm2895_vm10 = vcmp.lt.s32.totalorder %v9926_v32, 3  ;;  %vm2896_vm11 = vcmp.lt.s32.totalorder %v9926_v32, 4  ;;  %v2892_v39 = vor.u32 %v2891_v42, %v2890_v45 }
 0x29d   :  { %v2682_v54 = vmul.f32 %v2681_v0, %v2679_v12  ;;  %v2689_v18 = vmul.f32 %v2688_v6, %v2679_v12  ;;  %v2805_v4 = vadd.s32 536870912, %v2804_v62  ;;  %vm2894_vm12 = vcmp.lt.s32.totalorder %v9926_v32, 2 }
 0x29e   :  { %vm2694_vm13 = vweird.f32 %v9594_v13  ;;  %v2901_v25 = vsel %vm2893_vm9, %v9949_v20, %v9955_v49  ;;  %v2902_v17 = vsel %vm2896_vm11, %v2889_v58, 920167782  ;;  %v9974_v63 = vshll.u32 %v2869_v52, 8 }
 0x29f   :  { %v2683_v22 = vadd.f32 -0.4999988, %v2682_v54  ;;  %v2690_v34 = vadd.f32 -0.16666654, %v2689_v18  ;;  %v9966_v48 = vshrl.u32 %v2805_v4, 30  ;;  %vm2697_vm14 = vcmp.lt.s32.totalorder %v9947_v57, 2 }
 0x2a0   :  { %v2903_v8 = vsel %vm2895_vm10, %v2886_v36, %v2902_v17  ;;  %vm2698_vm15 = vcmp.eq.s32.totalorder %v9947_v57, 0  ;;  %v2905_v55 = vsel %vm2893_vm9, %v9955_v49, %v2886_v36  ;;  %vm2701_vm0 = vcmp.eq.s32.totalorder %v9947_v57, 2 }
 0x2a1   :  { %v2684_v24 = vmul.f32 %v2683_v22, %v2679_v12  ;;  %v2691_v61 = vmul.f32 %v2690_v34, %v2679_v12  ;;  %v2807_v26 = vshll.u32 %v9966_v48, 30  ;;  %v2904_v27 = vsel %vm2894_vm12, %v2901_v25, %v2903_v8 }
 0x2a2   :  { %v2906_v41 = vsel %vm2896_vm11, %v2892_v39, 1326507024  ;;  %v2910_v12 = vand.u32 65535, %v9974_v63  ;;  %v2911_v19 = vshrl.u32 %v9974_v63, 16  ;;  %v2935_v15 = vshrl.u32 %v2904_v27, 16 }
 0x2a3   :  { %v2685_v50 = vadd.f32 1.0, %v2684_v24  ;;  %v2692_v5 = vadd.f32 1.0, %v2691_v61  ;;  %v9989_v59 = vsub.s32 %v2804_v62, %v2807_v26  ;;  %v2907_v21 = vsel %vm2895_vm10, %v2889_v58, %v2906_v41 }
 0x2a4   :  { %v2908_v1 = vsel %vm2894_vm12, %v2905_v55, %v2907_v21  ;;  %v2934_v40 = vand.u32 65535, %v2904_v27  ;;  %v3019_v52 = vand.u32 2139095040, %v9960_v7  ;;  %vm2708_vm2 = vcmp.lt.s32.totalorder %v9709_v10, 0 }
 0x2a5   :  { %v2693_v44 = vmul.f32 %v2692_v5, %v2677_v14  ;;  %v2702_v51 = vxor.u32 2147483648, %v2685_v50  ;;  %vm2809_vm1 = vcmp.lt.s32.totalorder %v9989_v59, 0  ;;  %v2810_v9 = vsub.s32 0, %v9989_v59 }
 0x2a6   :  { %v2912_v43 = vand.u32 65535, %v2908_v1  ;;  %v2913_v38 = vshrl.u32 %v2908_v1, 16  ;;  %v2800_v62 = vadd.s32 %v9917_v2, %v9919_v3  ;;  %v2937_v42 = vmul.u32 %v2935_v15, %v2910_v12 }
 0x2a7   :  { %v2699_v11 = vxor.u32 2147483648, %v2693_v44  ;;  %v2703_v16 = vsel %vm2701_vm0, %v2702_v51, %v2693_v44  ;;  %v2811_v14 = vsel %vm2809_vm1, %v2810_v9, %v9989_v59  ;;  %v2877_v39 = vshrl.u32 %v7829_v29, %v9933_v23 }
 0x2a8   :  { %v2914_v0 = vmul.u32 %v2912_v43, %v2910_v12  ;;  %v2915_v6 = vmul.u32 %v2913_v38, %v2910_v12  ;;  %v2916_v56 = vmul.u32 %v2912_v43, %v2911_v19  ;;  %v2812_v58 = vclz %v2811_v14 }
 0x2a9   :  { %v2700_v45 = vsel %vm2698_vm15, %v2685_v50, %v2699_v11  ;;  %v2917_v18 = vmul.u32 %v2913_v38, %v2911_v19  ;;  %v2898_v25 = vsel %vm2896_vm11, %v2886_v36, 2102212464  ;;  %v2830_v2 = vsub.s32 4, %v9966_v48 }
 0x2aa   :  { %v2704_v54 = vsel %vm2697_vm14, %v2700_v45, %v2703_v16  ;;  %v2918_v28 = vshll.u32 %v2915_v6, 16  ;;  %v2920_v4 = vshll.u32 %v2916_v56, 16  ;;  %v7650_v34 = vadd.s32 4294967294, %v2812_v58 }
 0x2ab   :  { %v2705_v22 = vsel %vm2694_vm13, nan, %v2704_v54  ;;  %v2936_v17 = vmul.u32 %v2934_v40, %v2910_v12  ;;  %vm10017_vm4 = vcmp.le.f32.partialorder %v2706_v60, 0.7853982  ;;  %v2919_v24 = vshrl.u32 %v2915_v6, 16 }
 0x2ac   :  { %vm2922_vm3 = vc.u32 %v2914_v0, %v2918_v28  ;;  %v2924_v3 = vadd.s32 %v2918_v28, %v2914_v0  ;;  %3172 = vst [vmem:[#allocation5 + $0x60] sm:$0xff] %v2705_v22  ;;  %vm7651_vm5 = vcmp.lt.s32.totalorder %v7650_v34, 0  ;;  %v2938_v23 = vmul.u32 %v2934_v40, %v2911_v19 }
 0x2ad   :  { %v2923_v61 = vsel %vm2922_vm3, 1, %v7835_v53  ;;  %v2815_v8 = vsel %vm7651_vm5, 0, %v7650_v34  ;;  %v2940_v36 = vshll.u32 %v2937_v42, 16  ;;  %v2897_v60 = vsel %vm2893_vm9, %v2877_v39, %v9949_v20 }
 0x2ae   :  { %v2925_v26 = vadd.s32 %v2923_v61, %v2917_v18  ;;  %vm2926_vm6 = vc.u32 %v2924_v3, %v2920_v4  ;;  %v2816_v27 = vsub.s32 32, %v2815_v8  ;;  %v2817_v55 = vshll.u32 %v9989_v59, %v2815_v8 }
 0x2af   :  { %v2820_v50 = vsub.s32 4294967266, %v2815_v8  ;;  %v2927_v5 = vsel %vm2926_vm6, 1, %v7835_v53  ;;  %v2899_v41 = vsel %vm2895_vm10, %v9955_v49, %v2898_v25  ;;  %v2939_v12 = vmul.u32 %v2935_v15, %v2911_v19 }
 0x2b0   :  { %v2929_v21 = vadd.s32 %v2927_v5, %v2925_v26  ;;  %v2818_v44 = vshrl.u32 %v2800_v62, %v2816_v27  ;;  %v2831_v1 = vsel %vm2708_vm2, %v2830_v2, %v9966_v48  ;;  %v2942_v59 = vshll.u32 %v2938_v23, 16 }
 0x2b1   :  { %v2821_v51 = vadd.s32 127, %v2820_v50  ;;  %v2921_v9 = vshrl.u32 %v2916_v56, 16  ;;  %vm2944_vm7 = vc.u32 %v2936_v17, %v2940_v36  ;;  %v2946_v38 = vadd.s32 %v2940_v36, %v2936_v17 }
 0x2b2   :  { %v2930_v43 = vadd.s32 %v2929_v21, %v2919_v24  ;;  %v2819_v11 = vor.u32 %v2818_v44, %v2817_v55  ;;  %v2945_v20 = vsel %vm2944_vm7, 1, %v7835_v53  ;;  %v3020_v40 = vshrl.u32 %v3019_v52, 23 }
 0x2b3   :  { %v2822_v16 = vshll.u32 %v2821_v51, 23  ;;  %v2941_v14 = vshrl.u32 %v2937_v42, 16  ;;  %v2947_v49 = vadd.s32 %v2945_v20, %v2939_v12  ;;  %vm2948_vm8 = vc.u32 %v2946_v38, %v2942_v59 }
 0x2b4   :  { %v3016_v19 = vand.u32 2147483647, %v9960_v7  ;;  %v2826_v0 = vcvt.s32.f32 %v2819_v11  ;;  %v2949_v6 = vsel %vm2948_vm8, 1, %v7835_v53  ;;  %v7655_v48 = vadd.s32 4294967169, %v3020_v40 }
 0x2b5   :  { %v2823_v15 = vor.u32 4788187, %v2822_v16  ;;  %v2833_v56 = vsel %vm10017_vm4, 0, %v2831_v1  ;;  %v2900_v45 = vsel %vm2894_vm12, %v2897_v60, %v2899_v41  ;;  %v2943_v62 = vshrl.u32 %v2938_v23, 16 }
 0x2b6   :  { %v2951_v58 = vadd.s32 %v2949_v6, %v2947_v49  ;;  %v2931_v52 = vadd.s32 %v2930_v43, %v2921_v9  ;;  %v2950_v42 = vadd.s32 %v2946_v38, %v2942_v59  ;;  %v3026_v18 = vadd.s32 1, %v7655_v48 }
 0x2b7   :  { %v2824_v54 = vand.u32 2147483647, %v2823_v15  ;;  %v2850_v22 = vadd.s32 3, %v2833_v56  ;;  %v2954_v39 = vmul.u32 %v9974_v63, %v2900_v45  ;;  %v3023_v32 = vand.u32 8388607, %v3016_v19 }
 0x2b8   :  { %v2952_v28 = vadd.s32 %v2951_v58, %v2941_v14  ;;  %vm3027_vm9 = vcmp.gt.s32.totalorder %v3026_v18, 0  ;;  %vm2956_vm10 = vc.u32 %v2931_v52, %v2950_v42  ;;  %v10055_v26 = vadd.f32 1.5707964, %v9594_v13 }
 0x2b9   :  { %v2827_v4 = vmul.f32 %v2826_v0, %v2824_v54  ;;  %v3028_v25 = vsel %vm3027_vm9, %v3026_v18, 0  ;;  %v10052_v8 = vand.u32 3, %v2850_v22  ;;  %v3024_v55 = vor.u32 8388608, %v3023_v32 }
 0x2ba   :  { %v2953_v34 = vadd.s32 %v2952_v28, %v2943_v62  ;;  %v3030_v3 = vand.u32 31, %v3028_v25  ;;  %v10068_v51 = vshrl.u32 %v3028_v25, 5  ;;  %v10074_v11 = vadd.s32 %v2950_v42, %v2931_v52 }
 0x2bb   :  { %v2828_v2 = vxor.u32 2147483648, %v2827_v4  ;;  %vm2856_vm11 = vcmp.eq.s32.totalorder %v10052_v8, 2  ;;  %v10083_v49 = vshll.u32 %v3024_v55, 8  ;;  %vm2853_vm12 = vcmp.eq.s32.totalorder %v10052_v8, 0 }
 0x2bc   :  { %v2957_v17 = vadd.s32 1, %v2953_v34  ;;  %v10045_v61 = vsub.s32 32, %v3030_v3  ;;  %v3033_v50 = vshll.u32 %v7829_v29, %v3030_v3  ;;  %v3036_v57 = vshll.u32 %v7830_v31, %v3030_v3 }
 0x2bd   :  { %v2829_v24 = vsel %vm2708_vm2, %v2828_v2, %v2827_v4  ;;  %v3042_v41 = vshll.u32 %v7832_v35, %v3030_v3  ;;  %v3039_v1 = vshll.u32 %v7831_v33, %v3030_v3  ;;  %v3045_v9 = vshll.u32 %v7833_v37, %v3030_v3 }
 0x2be   :  { %v10050_v23 = vsel %vm10017_vm4, %v9709_v10, %v2829_v24  ;;  %v2958_v63 = vsel %vm2956_vm10, %v2957_v17, %v2953_v34  ;;  %v3034_v5 = vshrl.u32 %v7830_v31, %v10045_v61  ;;  %v3037_v60 = vshrl.u32 %v7831_v33, %v10045_v61 }
 0x2bf   :  { %v2834_v36 = vmul.f32 %v10050_v23, %v10050_v23  ;;  %v2959_v27 = vadd.s32 %v2958_v63, %v2954_v39  ;;  %v3043_v44 = vshrl.u32 %v7833_v37, %v10045_v61  ;;  %v3040_v59 = vshrl.u32 %v7832_v35, %v10045_v61 }
 0x2c0   :  { %v10079_v20 = vor.u32 %v3034_v5, %v3033_v50  ;;  %v3046_v14 = vshrl.u32 %v7834_v46, %v10045_v61  ;;  %v3038_v48 = vor.u32 %v3037_v60, %v3036_v57  ;;  %vm3048_vm13 = vcmp.lt.s32.totalorder %v10068_v51, 1 }
 0x2c1   :  { %v2835_v21 = vmul.f32 -0.001358992, %v2834_v36  ;;  %v2842_v13 = vmul.f32 -0.00019511016, %v2834_v36  ;;  %v2960_v12 = vadd.s32 536870912, %v2959_v27  ;;  %v3044_v40 = vor.u32 %v3043_v44, %v3042_v41 }
 0x2c2   :  { %v3041_v56 = vor.u32 %v3040_v59, %v3039_v1  ;;  %v3047_v45 = vor.u32 %v3046_v14, %v3045_v9  ;;  %vm3051_vm14 = vcmp.lt.s32.totalorder %v10068_v51, 4  ;;  %vm2852_vm15 = vcmp.lt.s32.totalorder %v10052_v8, 2 }
 0x2c3   :  { %v2836_v43 = vadd.f32 0.041655596, %v2835_v21  ;;  %v2843_v38 = vadd.f32 0.008332121, %v2842_v13  ;;  %v10076_v16 = vshrl.u32 %v2960_v12, 30  ;;  %vm3050_vm0 = vcmp.lt.s32.totalorder %v10068_v51, 3 }
 0x2c4   :  { %vm2849_vm1 = vweird.f32 %v9709_v10  ;;  %vm3049_vm2 = vcmp.lt.s32.totalorder %v10068_v51, 2  ;;  %v3057_v52 = vsel %vm3051_vm14, %v3044_v40, 920167782  ;;  %v3180_v42 = vand.u32 2147483647, %v10055_v26 }
 0x2c5   :  { %v2837_v15 = vmul.f32 %v2836_v43, %v2834_v36  ;;  %v2844_v0 = vmul.f32 %v2843_v38, %v2834_v36  ;;  %v2962_v6 = vshll.u32 %v10076_v16, 30  ;;  %v3183_v18 = vand.u32 2139095040, %v10055_v26 }
 0x2c6   :  { %v3056_v34 = vsel %vm3048_vm13, %v10079_v20, %v3038_v48  ;;  %v3058_v39 = vsel %vm3050_vm0, %v3041_v56, %v3057_v52  ;;  %v3060_v25 = vsel %vm3048_vm13, %v3038_v48, %v3041_v56  ;;  %v3061_v2 = vsel %vm3051_vm14, %v3047_v45, 1326507024 }
 0x2c7   :  { %v2838_v62 = vadd.f32 -0.4999988, %v2837_v15  ;;  %v2845_v58 = vadd.f32 -0.16666654, %v2844_v0  ;;  %v10090_v54 = vsub.s32 %v2959_v27, %v2962_v6  ;;  %v3065_v24 = vand.u32 65535, %v10083_v49 }
 0x2c8   :  { %v3066_v27 = vshrl.u32 %v10083_v49, 16  ;;  %v3184_v55 = vshrl.u32 %v3183_v18, 23  ;;  %v3059_v57 = vsel %vm3049_vm2, %v3056_v34, %v3058_v39  ;;  %v3032_v21 = vshrl.u32 %v7829_v29, %v10045_v61 }
 0x2c9   :  { %v2839_v28 = vmul.f32 %v2838_v62, %v2834_v36  ;;  %v2846_v4 = vmul.f32 %v2845_v58, %v2834_v36  ;;  %vm2964_vm3 = vcmp.lt.s32.totalorder %v10090_v54, 0  ;;  %v2965_v22 = vsub.s32 0, %v10090_v54 }
 0x2ca   :  { %v3062_v36 = vsel %vm3050_vm0, %v3044_v40, %v3061_v2  ;;  %v2985_v59 = vsub.s32 4, %v10076_v16  ;;  %vm2863_vm4 = vcmp.lt.s32.totalorder %v9805_v30, 0  ;;  %v3089_v43 = vand.u32 65535, %v3059_v57 }
 0x2cb   :  { %v2840_v32 = vadd.f32 1.0, %v2839_v28  ;;  %v2847_v3 = vadd.f32 1.0, %v2846_v4  ;;  %v2966_v17 = vsel %vm2964_vm3, %v2965_v22, %v10090_v54  ;;  %v3063_v60 = vsel %vm3049_vm2, %v3060_v25, %v3062_v36 }
 0x2cc   :  { %v2967_v63 = vclz %v2966_v17  ;;  %v3067_v13 = vand.u32 65535, %v3063_v60  ;;  %v3068_v12 = vshrl.u32 %v3063_v60, 16  ;;  %v3090_v38 = vshrl.u32 %v3059_v57, 16 }
 0x2cd   :  { %v2848_v50 = vmul.f32 %v2847_v3, %v10050_v23  ;;  %v2857_v5 = vxor.u32 2147483648, %v2840_v32  ;;  %v3053_v23 = vsel %vm3051_vm14, %v3041_v56, 2102212464  ;;  %v3052_v58 = vsel %vm3048_vm13, %v3032_v21, %v10079_v20 }
 0x2ce   :  { %v7653_v41 = vadd.s32 4294967294, %v2967_v63  ;;  %v3070_v9 = vmul.u32 %v3068_v12, %v3065_v24  ;;  %v3069_v14 = vmul.u32 %v3067_v13, %v3065_v24  ;;  %v3071_v15 = vmul.u32 %v3067_v13, %v3066_v27 }
 0x2cf   :  { %v2854_v44 = vxor.u32 2147483648, %v2848_v50  ;;  %v2858_v1 = vsel %vm2856_vm11, %v2857_v5, %v2848_v50  ;;  %v3054_v52 = vsel %vm3050_vm0, %v3038_v48, %v3053_v23  ;;  %v7658_v18 = vadd.s32 4294967169, %v3184_v55 }
 0x2d0   :  { %vm7654_vm5 = vcmp.lt.s32.totalorder %v7653_v41, 0  ;;  %v3072_v8 = vmul.u32 %v3068_v12, %v3066_v27  ;;  %v3073_v22 = vshll.u32 %v3070_v9, 16  ;;  %v3074_v34 = vshrl.u32 %v3070_v9, 16 }
 0x2d1   :  { %v2855_v61 = vsel %vm2853_vm12, %v2840_v32, %v2854_v44  ;;  %v2970_v40 = vsel %vm7654_vm5, 0, %v7653_v41  ;;  %v3091_v39 = vmul.u32 %v3089_v43, %v3065_v24  ;;  %v3092_v25 = vmul.u32 %v3090_v38, %v3065_v24 }
 0x2d2   :  { %v2859_v0 = vsel %vm2852_vm15, %v2855_v61, %v2858_v1  ;;  %v2971_v6 = vsub.s32 32, %v2970_v40  ;;  %v2972_v45 = vshll.u32 %v10090_v54, %v2970_v40  ;;  %v2975_v62 = vsub.s32 4294967266, %v2970_v40 }
 0x2d3   :  { %v2860_v56 = vsel %vm2849_vm1, nan, %v2859_v0  ;;  %v3075_v54 = vshll.u32 %v3071_v15, 16  ;;  %vm10143_vm6 = vcmp.le.f32.partialorder %v2861_v47, 0.7853982  ;;  %vm3077_vm7 = vc.u32 %v3069_v14, %v3073_v22 }
 0x2d4   :  { %v2973_v28 = vshrl.u32 %v10074_v11, %v2971_v6  ;;  %v2976_v4 = vadd.s32 127, %v2975_v62  ;;  %3173 = vst [vmem:[#allocation5 + $0x68] sm:$0xff] %v2860_v56  ;;  %v3079_v48 = vadd.s32 %v3073_v22, %v3069_v14  ;;  %v3078_v11 = vsel %vm3077_vm7, 1, %v7835_v53 }
 0x2d5   :  { %v3093_v3 = vmul.u32 %v3089_v43, %v3066_v27  ;;  %v3094_v17 = vmul.u32 %v3090_v38, %v3066_v27  ;;  %v3095_v63 = vshll.u32 %v3092_v25, 16  ;;  %v3080_v50 = vadd.s32 %v3078_v11, %v3072_v8 }
 0x2d6   :  { %v2974_v20 = vor.u32 %v2973_v28, %v2972_v45  ;;  %v2977_v32 = vshll.u32 %v2976_v4, 23  ;;  %vm3081_vm8 = vc.u32 %v3079_v48, %v3075_v54  ;;  %v2986_v47 = vsel %vm2863_vm4, %v2985_v59, %v10076_v16 }
 0x2d7   :  { %v3076_v24 = vshrl.u32 %v3071_v15, 16  ;;  %v3082_v5 = vsel %vm3081_vm8, 1, %v7835_v53  ;;  %v3097_v57 = vshll.u32 %v3093_v3, 16  ;;  %vm3099_vm9 = vc.u32 %v3091_v39, %v3095_v63 }
 0x2d8   :  { %v2978_v36 = vor.u32 4788187, %v2977_v32  ;;  %v2981_v55 = vcvt.s32.f32 %v2974_v20  ;;  %v3084_v41 = vadd.s32 %v3082_v5, %v3080_v50  ;;  %v3101_v21 = vadd.s32 %v3095_v63, %v3091_v39 }
 0x2d9   :  { %v3055_v27 = vsel %vm3049_vm2, %v3052_v58, %v3054_v52  ;;  %v3096_v13 = vshrl.u32 %v3092_v25, 16  ;;  %v3100_v12 = vsel %vm3099_vm9, 1, %v7835_v53  ;;  %v3190_v44 = vadd.s32 1, %v7658_v18 }
 0x2da   :  { %v2979_v60 = vand.u32 2147483647, %v2978_v36  ;;  %v3085_v23 = vadd.s32 %v3084_v41, %v3074_v34  ;;  %v3102_v9 = vadd.s32 %v3100_v12, %v3094_v17  ;;  %vm3103_vm10 = vc.u32 %v3101_v21, %v3097_v57 }
 0x2db   :  { %v3098_v16 = vshrl.u32 %v3093_v3, 16  ;;  %v3104_v59 = vsel %vm3103_vm10, 1, %v7835_v53  ;;  %v10156_v43 = vadd.s32 %v3101_v21, %v3097_v57  ;;  %vm3191_vm11 = vcmp.gt.s32.totalorder %v3190_v44, 0 }
 0x2dc   :  { %v2982_v1 = vmul.f32 %v2981_v55, %v2979_v60  ;;  %v10158_v61 = vadd.s32 %v3085_v23, %v3076_v24  ;;  %v3106_v40 = vadd.s32 %v3104_v59, %v3102_v9  ;;  %v3192_v51 = vsel %vm3191_vm11, %v3190_v44, 0 }
 0x2dd   :  { %v2988_v14 = vsel %vm10143_vm6, 0, %v2986_v47  ;;  %v3187_v15 = vand.u32 8388607, %v3180_v42  ;;  %v3194_v0 = vand.u32 31, %v3192_v51  ;;  %v3109_v62 = vmul.u32 %v10083_v49, %v3055_v27 }
 0x2de   :  { %v2983_v38 = vxor.u32 2147483648, %v2982_v1  ;;  %v3107_v45 = vadd.s32 %v3106_v40, %v3096_v13  ;;  %v10167_v56 = vshrl.u32 %v3192_v51, 5  ;;  %vm3111_vm12 = vc.u32 %v10158_v61, %v10156_v43 }
 0x2df   :  { %v10174_v52 = vsub.s32 32, %v3194_v0  ;;  %v3197_v18 = vshll.u32 %v7829_v29, %v3194_v0  ;;  %v3200_v8 = vshll.u32 %v7830_v31, %v3194_v0  ;;  %v3203_v22 = vshll.u32 %v7831_v33, %v3194_v0 }
 0x2e0   :  { %v2984_v6 = vsel %vm2863_vm4, %v2983_v38, %v2982_v1  ;;  %v3108_v4 = vadd.s32 %v3107_v45, %v3098_v16  ;;  %v3206_v39 = vshll.u32 %v7832_v35, %v3194_v0  ;;  %v3005_v48 = vadd.s32 3, %v2988_v14 }
 0x2e1   :  { %v2987_v58 = vsel %vm10143_vm6, %v9805_v30, %v2984_v6  ;;  %v3198_v49 = vshrl.u32 %v7830_v31, %v10174_v52  ;;  %v3201_v34 = vshrl.u32 %v7831_v33, %v10174_v52  ;;  %v3204_v54 = vshrl.u32 %v7832_v35, %v10174_v52 }
 0x2e2   :  { %v2989_v28 = vmul.f32 %v2987_v58, %v2987_v58  ;;  %v3112_v20 = vadd.s32 1, %v3108_v4  ;;  %v3207_v32 = vshrl.u32 %v7833_v37, %v10174_v52  ;;  %v10189_v11 = vadd.f32 1.5707964, %v9709_v10 }
 0x2e3   :  { %v3188_v3 = vor.u32 8388608, %v3187_v15  ;;  %v10191_v17 = vor.u32 %v3198_v49, %v3197_v18  ;;  %v3209_v50 = vshll.u32 %v7833_v37, %v3194_v0  ;;  %v10197_v24 = vor.u32 %v3201_v34, %v3200_v8 }
 0x2e4   :  { %v2990_v25 = vmul.f32 -0.001358992, %v2989_v28  ;;  %v2997_v2 = vmul.f32 -0.00019511016, %v2989_v28  ;;  %v3113_v55 = vsel %vm3111_vm12, %v3112_v20, %v3108_v4  ;;  %v3208_v5 = vor.u32 %v3207_v32, %v3206_v39 }
 0x2e5   :  { %v3114_v47 = vadd.s32 %v3113_v55, %v3109_v62  ;;  %v3210_v57 = vshrl.u32 %v7834_v46, %v10174_v52  ;;  %v10201_v41 = vor.u32 %v3204_v54, %v3203_v22  ;;  %vm3212_vm13 = vcmp.lt.s32.totalorder %v10167_v56, 1 }
 0x2e6   :  { %v2991_v63 = vadd.f32 0.041655596, %v2990_v25  ;;  %v2998_v36 = vadd.f32 0.008332121, %v2997_v2  ;;  %v3006_v21 = vand.u32 3, %v3005_v48  ;;  %vm3214_vm14 = vcmp.lt.s32.totalorder %v10167_v56, 3 }
 0x2e7   :  { %v3115_v27 = vadd.s32 536870912, %v3114_v47  ;;  %vm3215_vm15 = vcmp.lt.s32.totalorder %v10167_v56, 4  ;;  %v3211_v44 = vor.u32 %v3210_v57, %v3209_v50  ;;  %vm3213_vm0 = vcmp.lt.s32.totalorder %v10167_v56, 2 }
 0x2e8   :  { %v2992_v10 = vmul.f32 %v2991_v63, %v2989_v28  ;;  %v2999_v60 = vmul.f32 %v2998_v36, %v2989_v28  ;;  %v3220_v23 = vsel %vm3212_vm13, %v10191_v17, %v10197_v24  ;;  %v3221_v9 = vsel %vm3215_vm15, %v3208_v5, 920167782 }
 0x2e9   :  { %v10207_v1 = vshrl.u32 %v3115_v27, 30  ;;  %v10215_v16 = vshll.u32 %v3188_v3, 8  ;;  %vm3004_vm1 = vweird.f32 %v9805_v30  ;;  %v3222_v40 = vsel %vm3214_vm14, %v10201_v41, %v3221_v9 }
 0x2ea   :  { %v2993_v13 = vadd.f32 -0.4999988, %v2992_v10  ;;  %v3000_v12 = vadd.f32 -0.16666654, %v2999_v60  ;;  %vm3008_vm2 = vcmp.eq.s32.totalorder %v3006_v21, 0  ;;  %v3223_v14 = vsel %vm3213_vm0, %v3220_v23, %v3222_v40 }
 0x2eb   :  { %v3117_v51 = vshll.u32 %v10207_v1, 30  ;;  %v3224_v15 = vsel %vm3212_vm13, %v10197_v24, %v10201_v41  ;;  %vm3011_vm3 = vcmp.eq.s32.totalorder %v3006_v21, 2  ;;  %v3225_v45 = vsel %vm3215_vm15, %v3211_v44, 1326507024 }
 0x2ec   :  { %v2994_v59 = vmul.f32 %v2993_v13, %v2989_v28  ;;  %v3001_v38 = vmul.f32 %v3000_v12, %v2989_v28  ;;  %v3226_v18 = vsel %vm3214_vm14, %v3208_v5, %v3225_v45  ;;  %v3229_v28 = vand.u32 65535, %v10215_v16 }
 0x2ed   :  { %v10230_v62 = vsub.s32 %v3114_v47, %v3117_v51  ;;  %v3230_v4 = vshrl.u32 %v10215_v16, 16  ;;  %v3227_v49 = vsel %vm3213_vm0, %v3224_v15, %v3226_v18  ;;  %v3254_v34 = vshrl.u32 %v3223_v14, 16 }
 0x2ee   :  { %v2995_v0 = vadd.f32 1.0, %v2994_v59  ;;  %v3002_v6 = vadd.f32 1.0, %v3001_v38  ;;  %v3231_v39 = vand.u32 65535, %v3227_v49  ;;  %v3232_v25 = vshrl.u32 %v3227_v49, 16 }
 0x2ef   :  { %vm3119_vm4 = vcmp.lt.s32.totalorder %v10230_v62, 0  ;;  %v3120_v54 = vsub.s32 0, %v10230_v62  ;;  %vm3007_vm5 = vcmp.lt.s32.totalorder %v3006_v21, 2  ;;  %v3253_v32 = vand.u32 65535, %v3223_v14 }
 0x2f0   :  { %v3003_v8 = vmul.f32 %v3002_v6, %v2987_v58  ;;  %v3012_v22 = vxor.u32 2147483648, %v2995_v0  ;;  %v3233_v3 = vmul.u32 %v3231_v39, %v3229_v28  ;;  %v3234_v58 = vmul.u32 %v3232_v25, %v3229_v28 }
 0x2f1   :  { %v3121_v48 = vsel %vm3119_vm4, %v3120_v54, %v10230_v62  ;;  %v3235_v63 = vmul.u32 %v3231_v39, %v3230_v4  ;;  %vm3018_vm6 = vcmp.lt.s32.totalorder %v9960_v7, 0  ;;  %v3256_v50 = vmul.u32 %v3254_v34, %v3229_v28 }
 0x2f2   :  { %v3009_v2 = vxor.u32 2147483648, %v3003_v8  ;;  %v3013_v20 = vsel %vm3011_vm3, %v3012_v22, %v3003_v8  ;;  %v3122_v55 = vclz %v3121_v48  ;;  %v3236_v5 = vmul.u32 %v3232_v25, %v3230_v4 }
 0x2f3   :  { %v3237_v57 = vshll.u32 %v3234_v58, 16  ;;  %v3239_v10 = vshll.u32 %v3235_v63, 16  ;;  %v3110_v27 = vadd.s32 %v10156_v43, %v10158_v61  ;;  %v3196_v12 = vshrl.u32 %v7829_v29, %v10174_v52 }
 0x2f4   :  { %v3010_v36 = vsel %vm3008_vm2, %v2995_v0, %v3009_v2  ;;  %v7656_v13 = vadd.s32 4294967294, %v3122_v55  ;;  %v3140_v21 = vsub.s32 4, %v10207_v1  ;;  %v3255_v23 = vmul.u32 %v3253_v32, %v3229_v28 }
 0x2f5   :  { %v3014_v47 = vsel %vm3007_vm5, %v3010_v36, %v3013_v20  ;;  %vm3241_vm7 = vc.u32 %v3233_v3, %v3237_v57  ;;  %v3243_v44 = vadd.s32 %v3237_v57, %v3233_v3  ;;  %vm10253_vm8 = vcmp.le.f32.partialorder %v3016_v19, 0.7853982 }
 0x2f6   :  { %v3015_v60 = vsel %vm3004_vm1, nan, %v3014_v47  ;;  %vm7657_vm9 = vcmp.lt.s32.totalorder %v7656_v13, 0  ;;  %v3238_v59 = vshrl.u32 %v3234_v58, 16  ;;  %v3242_v43 = vsel %vm3241_vm7, 1, %v7835_v53 }
 0x2f7   :  { %3174 = vst [vmem:[#allocation5 + $0x70] sm:$0xff] %v3015_v60  ;;  %v3257_v61 = vmul.u32 %v3253_v32, %v3230_v4  ;;  %v3125_v38 = vsel %vm7657_vm9, 0, %v7656_v13  ;;  %v3244_v40 = vadd.s32 %v3242_v43, %v3236_v5  ;;  %vm3245_vm10 = vc.u32 %v3243_v44, %v3239_v10 }
 0x2f8   :  { %v3259_v52 = vshll.u32 %v3256_v50, 16  ;;  %v3126_v51 = vsub.s32 32, %v3125_v38  ;;  %v3127_v14 = vshll.u32 %v10230_v62, %v3125_v38  ;;  %v3130_v15 = vsub.s32 4294967266, %v3125_v38 }
 0x2f9   :  { %v3246_v0 = vsel %vm3245_vm10, 1, %v7835_v53  ;;  %v3216_v19 = vsel %vm3212_vm13, %v3196_v12, %v10191_v17  ;;  %v3217_v6 = vsel %vm3215_vm15, %v10201_v41, 2102212464  ;;  %v3258_v18 = vmul.u32 %v3254_v34, %v3230_v4 }
 0x2fa   :  { %v3248_v45 = vadd.s32 %v3246_v0, %v3244_v40  ;;  %v3128_v28 = vshrl.u32 %v3110_v27, %v3126_v51  ;;  %v3131_v8 = vadd.s32 127, %v3130_v15  ;;  %v3141_v22 = vsel %vm3018_vm6, %v3140_v21, %v10207_v1 }
 0x2fb   :  { %v3261_v62 = vshll.u32 %v3257_v61, 16  ;;  %v3240_v49 = vshrl.u32 %v3235_v63, 16  ;;  %vm3263_vm11 = vc.u32 %v3255_v23, %v3259_v52  ;;  %v3265_v39 = vadd.s32 %v3259_v52, %v3255_v23 }
 0x2fc   :  { %v3249_v54 = vadd.s32 %v3248_v45, %v3238_v59  ;;  %v3129_v25 = vor.u32 %v3128_v28, %v3127_v14  ;;  %v3132_v2 = vshll.u32 %v3131_v8, 23  ;;  %v3264_v17 = vsel %vm3263_vm11, 1, %v7835_v53 }
 0x2fd   :  { %v3338_v20 = vand.u32 2139095040, %v10189_v11  ;;  %v3218_v41 = vsel %vm3214_vm14, %v10197_v24, %v3217_v6  ;;  %v3260_v4 = vshrl.u32 %v3256_v50, 16  ;;  %v3266_v34 = vadd.s32 %v3264_v17, %v3258_v18 }
 0x2fe   :  { %vm3267_vm12 = vc.u32 %v3265_v39, %v3261_v62  ;;  %v3133_v32 = vor.u32 4788187, %v3132_v2  ;;  %v3136_v1 = vcvt.s32.f32 %v3129_v25  ;;  %v3143_v58 = vsel %vm10253_vm8, 0, %v3141_v22 }
 0x2ff   :  { %v3268_v48 = vsel %vm3267_vm12, 1, %v7835_v53  ;;  %v3339_v3 = vshrl.u32 %v3338_v20, 23  ;;  %v3262_v63 = vshrl.u32 %v3257_v61, 16  ;;  %v10277_v47 = vadd.s32 %v3249_v54, %v3240_v49 }
 0x300   :  { %v3270_v36 = vadd.s32 %v3268_v48, %v3266_v34  ;;  %v3134_v55 = vand.u32 2147483647, %v3133_v32  ;;  %v10279_v5 = vadd.s32 %v3265_v39, %v3261_v62  ;;  %v3219_v24 = vsel %vm3213_vm0, %v3216_v19, %v3218_v41 }
 0x301   :  { %v7661_v57 = vadd.s32 4294967169, %v3339_v3  ;;  %v3335_v10 = vand.u32 2147483647, %v10189_v11  ;;  %v3160_v13 = vadd.s32 3, %v3143_v58  ;;  %v3273_v44 = vmul.u32 %v10215_v16, %v3219_v24 }
 0x302   :  { %v3271_v50 = vadd.s32 %v3270_v36, %v3260_v4  ;;  %v3137_v60 = vmul.f32 %v3136_v1, %v3134_v55  ;;  %vm3275_vm13 = vc.u32 %v10277_v47, %v10279_v5  ;;  %v10288_v23 = vadd.f32 1.5707964, %v9805_v30 }
 0x303   :  { %v3345_v27 = vadd.s32 1, %v7661_v57  ;;  %v3342_v56 = vand.u32 8388607, %v3335_v10  ;;  %v10301_v30 = vand.u32 3, %v3160_v13  ;;  %vm3159_vm2 = vweird.f32 %v9960_v7 }
 0x304   :  { %v3272_v12 = vadd.s32 %v3271_v50, %v3262_v63  ;;  %v3138_v21 = vxor.u32 2147483648, %v3137_v60  ;;  %v3493_v6 = vand.u32 2139095040, %v10288_v23  ;;  %v3490_v41 = vand.u32 2147483647, %v10288_v23 }
 0x305   :  { %vm3346_vm14 = vcmp.gt.s32.totalorder %v3345_v27, 0  ;;  %v3343_v15 = vor.u32 8388608, %v3342_v56  ;;  %vm3166_vm15 = vcmp.eq.s32.totalorder %v10301_v30, 2  ;;  %vm3163_vm0 = vcmp.eq.s32.totalorder %v10301_v30, 0 }
 0x306   :  { %v3276_v59 = vadd.s32 1, %v3272_v12  ;;  %v3347_v43 = vsel %vm3346_vm14, %v3345_v27, 0  ;;  %v3139_v61 = vsel %vm3018_vm6, %v3138_v21, %v3137_v60  ;;  %v3494_v4 = vshrl.u32 %v3493_v6, 23 }
 0x307   :  { %v3349_v38 = vand.u32 31, %v3347_v43  ;;  %v10297_v16 = vsel %vm10253_vm8, %v9960_v7, %v3139_v61  ;;  %v10321_v17 = vshrl.u32 %v3347_v43, 5  ;;  %v10326_v48 = vshll.u32 %v3343_v15, 8 }
 0x308   :  { %v3277_v40 = vsel %vm3275_vm13, %v3276_v59, %v3272_v12  ;;  %v3144_v52 = vmul.f32 %v10297_v16, %v10297_v16  ;;  %vm3162_vm1 = vcmp.lt.s32.totalorder %v10301_v30, 2  ;;  %vm3182_vm7 = vcmp.lt.s32.totalorder %v10055_v26, 0 }
 0x309   :  { %v3278_v51 = vadd.s32 %v3277_v40, %v3273_v44  ;;  %v10303_v14 = vsub.s32 32, %v3349_v38  ;;  %v3352_v0 = vshll.u32 %v7829_v29, %v3349_v38  ;;  %v3355_v19 = vshll.u32 %v7830_v31, %v3349_v38 }
 0x30a   :  { %v3145_v45 = vmul.f32 -0.001358992, %v3144_v52  ;;  %v3152_v9 = vmul.f32 -0.00019511016, %v3144_v52  ;;  %v3358_v28 = vshll.u32 %v7831_v33, %v3349_v38  ;;  %v3361_v49 = vshll.u32 %v7832_v35, %v3349_v38 }
 0x30b   :  { %v3279_v18 = vadd.s32 536870912, %v3278_v51  ;;  %v3353_v8 = vshrl.u32 %v7830_v31, %v10303_v14  ;;  %v3356_v22 = vshrl.u32 %v7831_v33, %v10303_v14  ;;  %v3359_v62 = vshrl.u32 %v7832_v35, %v10303_v14 }
 0x30c   :  { %v3146_v54 = vadd.f32 0.041655596, %v3145_v45  ;;  %v3153_v39 = vadd.f32 0.008332121, %v3152_v9  ;;  %v3362_v2 = vshrl.u32 %v7833_v37, %v10303_v14  ;;  %v3364_v20 = vshll.u32 %v7833_v37, %v3349_v38 }
 0x30d   :  { %v10316_v25 = vshrl.u32 %v3279_v18, 30  ;;  %v10329_v3 = vor.u32 %v3353_v8, %v3352_v0  ;;  %v10331_v58 = vor.u32 %v3356_v22, %v3355_v19  ;;  %v3365_v36 = vshrl.u32 %v7834_v46, %v10303_v14 }
 0x30e   :  { %v3147_v34 = vmul.f32 %v3146_v54, %v3144_v52  ;;  %v3154_v32 = vmul.f32 %v3153_v39, %v3144_v52  ;;  %v3363_v63 = vor.u32 %v3362_v2, %v3361_v49  ;;  %v3360_v50 = vor.u32 %v3359_v62, %v3358_v28 }
 0x30f   :  { %v3281_v1 = vshll.u32 %v10316_v25, 30  ;;  %v3366_v60 = vor.u32 %v3365_v36, %v3364_v20  ;;  %vm3367_vm3 = vcmp.lt.s32.totalorder %v10321_v17, 1  ;;  %vm3369_vm4 = vcmp.lt.s32.totalorder %v10321_v17, 3 }
 0x310   :  { %v3148_v55 = vadd.f32 -0.4999988, %v3147_v34  ;;  %v3155_v57 = vadd.f32 -0.16666654, %v3154_v32  ;;  %vm3370_vm5 = vcmp.lt.s32.totalorder %v10321_v17, 4  ;;  %v3274_v21 = vadd.s32 %v10279_v5, %v10277_v47 }
 0x311   :  { %v10336_v24 = vsub.s32 %v3278_v51, %v3281_v1  ;;  %vm3368_vm8 = vcmp.lt.s32.totalorder %v10321_v17, 2  ;;  %v3376_v44 = vsel %vm3370_vm5, %v3363_v63, 920167782  ;;  %v10352_v59 = vand.u32 8388607, %v3490_v41 }
 0x312   :  { %v3149_v27 = vmul.f32 %v3148_v55, %v3144_v52  ;;  %v3156_v13 = vmul.f32 %v3155_v57, %v3144_v52  ;;  %v3375_v38 = vsel %vm3367_vm3, %v10329_v3, %v10331_v58  ;;  %v3377_v47 = vsel %vm3369_vm4, %v3360_v50, %v3376_v44 }
 0x313   :  { %vm3283_vm6 = vcmp.lt.s32.totalorder %v10336_v24, 0  ;;  %v3284_v12 = vsub.s32 0, %v10336_v24  ;;  %v3379_v5 = vsel %vm3367_vm3, %v10331_v58, %v3360_v50  ;;  %v7664_v52 = vadd.s32 4294967169, %v3494_v4 }
 0x314   :  { %v3150_v56 = vadd.f32 1.0, %v3149_v27  ;;  %v3157_v43 = vadd.f32 1.0, %v3156_v13  ;;  %v3380_v0 = vsel %vm3370_vm5, %v3366_v60, 1326507024  ;;  %v3384_v19 = vand.u32 65535, %v10326_v48 }
 0x315   :  { %v3285_v61 = vsel %vm3283_vm6, %v3284_v12, %v10336_v24  ;;  %v3378_v45 = vsel %vm3368_vm8, %v3375_v38, %v3377_v47  ;;  %v3381_v9 = vsel %vm3369_vm4, %v3363_v63, %v3380_v0  ;;  %v3385_v18 = vshrl.u32 %v10326_v48, 16 }
 0x316   :  { %v3286_v40 = vclz %v3285_v61  ;;  %v3158_v51 = vmul.f32 %v3157_v43, %v10297_v16  ;;  %v3167_v15 = vxor.u32 2147483648, %v3150_v56  ;;  %v3304_v16 = vsub.s32 4, %v10316_v25 }
 0x317   :  { %v3382_v22 = vsel %vm3368_vm8, %v3379_v5, %v3381_v9  ;;  %v3500_v54 = vadd.s32 1, %v7664_v52  ;;  %v3408_v20 = vand.u32 65535, %v3378_v45  ;;  %v3409_v4 = vshrl.u32 %v3378_v45, 16 }
 0x318   :  { %v7659_v6 = vadd.s32 4294967294, %v3286_v40  ;;  %v3164_v28 = vxor.u32 2147483648, %v3158_v51  ;;  %v3168_v8 = vsel %vm3166_vm15, %v3167_v15, %v3158_v51  ;;  %v3386_v62 = vand.u32 65535, %v3382_v22 }
 0x319   :  { %v3387_v49 = vshrl.u32 %v3382_v22, 16  ;;  %v3305_v55 = vsel %vm3182_vm7, %v3304_v16, %v10316_v25  ;;  %v3351_v57 = vshrl.u32 %v7829_v29, %v10303_v14  ;;  %v3372_v60 = vsel %vm3370_vm5, %v3360_v50, 2102212464 }
 0x31a   :  { %vm7660_vm9 = vcmp.lt.s32.totalorder %v7659_v6, 0  ;;  %v3165_v39 = vsel %vm3163_vm0, %v3150_v56, %v3164_v28  ;;  %vm10394_vm10 = vcmp.le.f32.partialorder %v3180_v42, 0.7853982  ;;  %v3388_v13 = vmul.u32 %v3386_v62, %v3384_v19 }
 0x31b   :  { %v3289_v2 = vsel %vm7660_vm9, 0, %v7659_v6  ;;  %v3169_v34 = vsel %vm3162_vm1, %v3165_v39, %v3168_v8  ;;  %v3389_v12 = vmul.u32 %v3387_v49, %v3384_v19  ;;  %v3390_v44 = vmul.u32 %v3386_v62, %v3385_v18 }
 0x31c   :  { %v3290_v32 = vsub.s32 32, %v3289_v2  ;;  %v3291_v1 = vshll.u32 %v10336_v24, %v3289_v2  ;;  %v3294_v63 = vsub.s32 4294967266, %v3289_v2  ;;  %v3170_v36 = vsel %vm3159_vm2, nan, %v3169_v34 }
 0x31d   :  { %3175 = vst [vmem:[#allocation5 + $0x78] sm:$0xff] %v3170_v36  ;;  %v3410_v56 = vmul.u32 %v3408_v20, %v3384_v19  ;;  %v3411_v25 = vmul.u32 %v3409_v4, %v3384_v19  ;;  %v3412_v43 = vmul.u32 %v3408_v20, %v3385_v18  ;;  %v3391_v38 = vmul.u32 %v3387_v49, %v3385_v18 }
 0x31e   :  { %v3292_v24 = vshrl.u32 %v3274_v21, %v3290_v32  ;;  %v3295_v27 = vadd.s32 127, %v3294_v63  ;;  %v3392_v40 = vshll.u32 %v3389_v12, 16  ;;  %v3371_v50 = vsel %vm3367_vm3, %v3351_v57, %v10329_v3 }
 0x31f   :  { %v3394_v42 = vshll.u32 %v3390_v44, 16  ;;  %v3413_v47 = vmul.u32 %v3409_v4, %v3385_v18  ;;  %v3414_v5 = vshll.u32 %v3411_v25, 16  ;;  %v3373_v15 = vsel %vm3369_vm4, %v10331_v58, %v3372_v60 }
 0x320   :  { %v3293_v61 = vor.u32 %v3292_v24, %v3291_v1  ;;  %v3296_v14 = vshll.u32 %v3295_v27, 23  ;;  %vm3396_vm11 = vc.u32 %v3388_v13, %v3392_v40  ;;  %v3398_v51 = vadd.s32 %v3392_v40, %v3388_v13 }
 0x321   :  { %v3393_v0 = vshrl.u32 %v3389_v12, 16  ;;  %v3397_v19 = vsel %vm3396_vm11, 1, %v7835_v53  ;;  %v3416_v6 = vshll.u32 %v3412_v43, 16  ;;  %vm3418_vm13 = vc.u32 %v3410_v56, %v3414_v5 }
 0x322   :  { %v3297_v52 = vor.u32 4788187, %v3296_v14  ;;  %v3300_v21 = vcvt.s32.f32 %v3293_v61  ;;  %v3399_v9 = vadd.s32 %v3397_v19, %v3391_v38  ;;  %vm3400_vm12 = vc.u32 %v3398_v51, %v3394_v42 }
 0x323   :  { %v3395_v3 = vshrl.u32 %v3390_v44, 16  ;;  %v3401_v18 = vsel %vm3400_vm12, 1, %v7835_v53  ;;  %v3419_v28 = vsel %vm3418_vm13, 1, %v7835_v53  ;;  %v3420_v8 = vadd.s32 %v3414_v5, %v3410_v56 }
 0x324   :  { %v3298_v45 = vand.u32 2147483647, %v3297_v52  ;;  %v3403_v22 = vadd.s32 %v3401_v18, %v3399_v9  ;;  %v3421_v62 = vadd.s32 %v3419_v28, %v3413_v47  ;;  %vm3501_vm14 = vcmp.gt.s32.totalorder %v3500_v54, 0 }
 0x325   :  { %v3307_v58 = vsel %vm10394_vm10, 0, %v3305_v55  ;;  %v3415_v49 = vshrl.u32 %v3411_v25, 16  ;;  %vm3422_vm15 = vc.u32 %v3420_v8, %v3416_v6  ;;  %v3502_v39 = vsel %vm3501_vm14, %v3500_v54, 0 }
 0x326   :  { %v3301_v16 = vmul.f32 %v3300_v21, %v3298_v45  ;;  %v3374_v20 = vsel %vm3368_vm8, %v3371_v50, %v3373_v15  ;;  %v3404_v4 = vadd.s32 %v3403_v22, %v3393_v0  ;;  %v3423_v34 = vsel %vm3422_vm15, 1, %v7835_v53 }
 0x327   :  { %v3417_v32 = vshrl.u32 %v3412_v43, 16  ;;  %v10412_v1 = vadd.s32 %v3420_v8, %v3416_v6  ;;  %v3425_v63 = vadd.s32 %v3423_v34, %v3421_v62  ;;  %v3504_v36 = vand.u32 31, %v3502_v39 }
 0x328   :  { %v3302_v2 = vxor.u32 2147483648, %v3301_v16  ;;  %v10416_v60 = vadd.s32 %v3404_v4, %v3395_v3  ;;  %v3498_v17 = vor.u32 8388608, %v10352_v59  ;;  %v3324_v13 = vadd.s32 3, %v3307_v58 }
 0x329   :  { %v3426_v55 = vadd.s32 %v3425_v63, %v3415_v49  ;;  %v10422_v24 = vsub.s32 32, %v3504_v36  ;;  %v3428_v12 = vmul.u32 %v10326_v48, %v3374_v20  ;;  %v10425_v44 = vshrl.u32 %v3502_v39, 5 }
 0x32a   :  { %v3303_v57 = vsel %vm3182_vm7, %v3302_v2, %v3301_v16  ;;  %vm3430_vm0 = vc.u32 %v10416_v60, %v10412_v1  ;;  %v3507_v25 = vshll.u32 %v7829_v29, %v3504_v36  ;;  %v3510_v59 = vshll.u32 %v7830_v31, %v3504_v36 }
 0x32b   :  { %v3306_v54 = vsel %vm10394_vm10, %v10055_v26, %v3303_v57  ;;  %v3427_v56 = vadd.s32 %v3426_v55, %v3417_v32  ;;  %v3508_v30 = vshrl.u32 %v7830_v31, %v10422_v24  ;;  %v3511_v14 = vshrl.u32 %v7831_v33, %v10422_v24 }
 0x32c   :  { %v3308_v27 = vmul.f32 %v3306_v54, %v3306_v54  ;;  %v3513_v48 = vshll.u32 %v7831_v33, %v3504_v36  ;;  %v3514_v40 = vshrl.u32 %v7832_v35, %v10422_v24  ;;  %v3516_v50 = vshll.u32 %v7832_v35, %v3504_v36 }
 0x32d   :  { %v3431_v38 = vadd.s32 1, %v3427_v56  ;;  %v3517_v5 = vshrl.u32 %v7833_v37, %v10422_v24  ;;  %vm3522_vm1 = vcmp.lt.s32.totalorder %v10425_v44, 1  ;;  %v10442_v21 = vor.u32 %v3508_v30, %v3507_v25 }
 0x32e   :  { %v3309_v43 = vmul.f32 -0.001358992, %v3308_v27  ;;  %v3316_v61 = vmul.f32 -0.00019511016, %v3308_v27  ;;  %v3519_v51 = vshll.u32 %v7833_v37, %v3504_v36  ;;  %v3520_v15 = vshrl.u32 %v7834_v46, %v10422_v24 }
 0x32f   :  { %v3432_v52 = vsel %vm3430_vm0, %v3431_v38, %v3427_v56  ;;  %v3512_v45 = vor.u32 %v3511_v14, %v3510_v59  ;;  %v3515_v9 = vor.u32 %v3514_v40, %v3513_v48  ;;  %v3518_v3 = vor.u32 %v3517_v5, %v3516_v50 }
 0x330   :  { %v3310_v42 = vadd.f32 0.041655596, %v3309_v43  ;;  %v3317_v47 = vadd.f32 0.008332121, %v3316_v61  ;;  %v3433_v6 = vadd.s32 %v3432_v52, %v3428_v12  ;;  %v3521_v18 = vor.u32 %v3520_v15, %v3519_v51 }
 0x331   :  { %vm3525_vm2 = vcmp.lt.s32.totalorder %v10425_v44, 4  ;;  %vm3524_vm3 = vcmp.lt.s32.totalorder %v10425_v44, 3  ;;  %v3325_v22 = vand.u32 3, %v3324_v13  ;;  %vm3523_vm4 = vcmp.lt.s32.totalorder %v10425_v44, 2 }
 0x332   :  { %v3311_v0 = vmul.f32 %v3310_v42, %v3308_v27  ;;  %v3318_v19 = vmul.f32 %v3317_v47, %v3308_v27  ;;  %v3434_v16 = vadd.s32 536870912, %v3433_v6  ;;  %v3531_v62 = vsel %vm3525_vm2, %v3518_v3, 920167782 }
 0x333   :  { %v10452_v58 = vshll.u32 %v3498_v17, 8  ;;  %v3530_v20 = vsel %vm3522_vm1, %v10442_v21, %v3512_v45  ;;  %vm3323_vm5 = vweird.f32 %v10055_v26  ;;  %v3532_v4 = vsel %vm3524_vm3, %v3515_v9, %v3531_v62 }
 0x334   :  { %v3312_v28 = vadd.f32 -0.4999988, %v3311_v0  ;;  %v3319_v8 = vadd.f32 -0.16666654, %v3318_v19  ;;  %v10454_v2 = vshrl.u32 %v3434_v16, 30  ;;  %v3534_v57 = vsel %vm3522_vm1, %v3512_v45, %v3515_v9 }
 0x335   :  { %v3535_v34 = vsel %vm3525_vm2, %v3521_v18, 1326507024  ;;  %vm3326_vm6 = vcmp.lt.s32.totalorder %v3325_v22, 2  ;;  %vm3330_vm7 = vcmp.eq.s32.totalorder %v3325_v22, 2  ;;  %v3533_v55 = vsel %vm3523_vm4, %v3530_v20, %v3532_v4 }
 0x336   :  { %v3313_v49 = vmul.f32 %v3312_v28, %v3308_v27  ;;  %v3320_v39 = vmul.f32 %v3319_v8, %v3308_v27  ;;  %v3436_v36 = vshll.u32 %v10454_v2, 30  ;;  %v3536_v17 = vsel %vm3524_vm3, %v3518_v3, %v3535_v34 }
 0x337   :  { %v3539_v56 = vand.u32 65535, %v10452_v58  ;;  %vm3327_vm8 = vcmp.eq.s32.totalorder %v3325_v22, 0  ;;  %v3537_v25 = vsel %vm3523_vm4, %v3534_v57, %v3536_v17  ;;  %v3540_v30 = vshrl.u32 %v10452_v58, 16 }
 0x338   :  { %v3314_v32 = vadd.f32 1.0, %v3313_v49  ;;  %v3321_v63 = vadd.f32 1.0, %v3320_v39  ;;  %v3437_v12 = vsub.s32 %v3433_v6, %v3436_v36  ;;  %v3564_v43 = vshrl.u32 %v3533_v55, 16 }
 0x339   :  { %v3506_v38 = vshrl.u32 %v7829_v29, %v10422_v24  ;;  %v3541_v48 = vand.u32 65535, %v3537_v25  ;;  %v3542_v40 = vshrl.u32 %v3537_v25, 16  ;;  %v3563_v47 = vand.u32 65535, %v3533_v55 }
 0x33a   :  { %v3322_v27 = vmul.f32 %v3321_v63, %v3306_v54  ;;  %v3331_v13 = vxor.u32 2147483648, %v3314_v32  ;;  %vm3438_vm9 = vcmp.lt.s32.totalorder %v3437_v12, 0  ;;  %v3439_v14 = vsub.s32 0, %v3437_v12 }
 0x33b   :  { %v3527_v54 = vsel %vm3525_vm2, %v3515_v9, 2102212464  ;;  %v10479_v5 = vmul.u32 %v3564_v43, %v3539_v56  ;;  %v3543_v15 = vmul.u32 %v3541_v48, %v3539_v56  ;;  %v3544_v0 = vmul.u32 %v3542_v40, %v3539_v56 }
 0x33c   :  { %v3328_v61 = vxor.u32 2147483648, %v3322_v27  ;;  %v3332_v59 = vsel %vm3330_vm7, %v3331_v13, %v3322_v27  ;;  %v3440_v42 = vsel %vm3438_vm9, %v3439_v14, %v3437_v12  ;;  %v10483_v19 = vadd.f32 1.5707964, %v9960_v7 }
 0x33d   :  { %v3441_v51 = vclz %v3440_v42  ;;  %v3429_v6 = vadd.s32 %v10412_v1, %v10416_v60  ;;  %v3545_v9 = vmul.u32 %v3541_v48, %v3540_v30  ;;  %v3526_v18 = vsel %vm3522_vm1, %v3506_v38, %v10442_v21 }
 0x33e   :  { %v3329_v50 = vsel %vm3327_vm8, %v3314_v32, %v3328_v61  ;;  %v3546_v28 = vmul.u32 %v3542_v40, %v3540_v30  ;;  %v3547_v8 = vshll.u32 %v3544_v0, 16  ;;  %v3528_v16 = vsel %vm3524_vm3, %v3512_v45, %v3527_v54 }
 0x33f   :  { %v3333_v52 = vsel %vm3326_vm6, %v3329_v50, %v3332_v59  ;;  %v7662_v3 = vadd.s32 4294967294, %v3441_v51  ;;  %v3549_v7 = vshll.u32 %v3545_v9, 16  ;;  %v3565_v22 = vmul.u32 %v3563_v47, %v3539_v56 }
 0x340   :  { %v3334_v24 = vsel %vm3323_vm5, nan, %v3333_v52  ;;  %v3567_v62 = vmul.u32 %v3563_v47, %v3540_v30  ;;  %vm3551_vm11 = vc.u32 %v3543_v15, %v3547_v8  ;;  %v3553_v26 = vadd.s32 %v3547_v8, %v3543_v15 }
 0x341   :  { %3801 = vst [vmem:[#allocation5 + $0x120] sm:$0xff] %v3334_v24  ;;  %vm7663_vm10 = vcmp.lt.s32.totalorder %v7662_v3, 0  ;;  %v3569_v1 = vshll.u32 %v10479_v5, 16  ;;  %v3552_v49 = vsel %vm3551_vm11, 1, %v7835_v53  ;;  %v3568_v39 = vmul.u32 %v3564_v43, %v3540_v30 }
 0x342   :  { %v3444_v60 = vsel %vm7663_vm10, 0, %v7662_v3  ;;  %v3648_v21 = vand.u32 2139095040, %v10483_v19  ;;  %v3554_v32 = vadd.s32 %v3552_v49, %v3546_v28  ;;  %v3459_v45 = vsub.s32 4, %v10454_v2 }
 0x343   :  { %v3445_v20 = vsub.s32 32, %v3444_v60  ;;  %v3446_v4 = vshll.u32 %v3437_v12, %v3444_v60  ;;  %v3449_v34 = vsub.s32 4294967266, %v3444_v60  ;;  %v3548_v63 = vshrl.u32 %v3544_v0, 16 }
 0x344   :  { %vm3555_vm12 = vc.u32 %v3553_v26, %v3549_v7  ;;  %v3571_v36 = vshll.u32 %v3567_v62, 16  ;;  %vm3573_vm13 = vc.u32 %v3565_v22, %v3569_v1  ;;  %v3575_v56 = vadd.s32 %v3569_v1, %v3565_v22 }
 0x345   :  { %v3447_v57 = vshrl.u32 %v3429_v6, %v3445_v20  ;;  %v3450_v55 = vadd.s32 127, %v3449_v34  ;;  %v3556_v17 = vsel %vm3555_vm12, 1, %v7835_v53  ;;  %v3574_v13 = vsel %vm3573_vm13, 1, %v7835_v53 }
 0x346   :  { %v3558_v27 = vadd.s32 %v3556_v17, %v3554_v32  ;;  %v3649_v25 = vshrl.u32 %v3648_v21, 23  ;;  %v3550_v12 = vshrl.u32 %v3545_v9, 16  ;;  %v3576_v61 = vadd.s32 %v3574_v13, %v3568_v39 }
 0x347   :  { %v3448_v30 = vor.u32 %v3447_v57, %v3446_v4  ;;  %v3451_v43 = vshll.u32 %v3450_v55, 23  ;;  %v3570_v14 = vshrl.u32 %v10479_v5, 16  ;;  %vm3577_vm14 = vc.u32 %v3575_v56, %v3571_v36 }
 0x348   :  { %v3559_v59 = vadd.s32 %v3558_v27, %v3548_v63  ;;  %v7667_v38 = vadd.s32 4294967169, %v3649_v25  ;;  %v3578_v40 = vsel %vm3577_vm14, 1, %v7835_v53  ;;  %v3645_v50 = vand.u32 2147483647, %v10483_v19 }
 0x349   :  { %v3452_v54 = vor.u32 4788187, %v3451_v43  ;;  %v3455_v48 = vcvt.s32.f32 %v3448_v30  ;;  %vm3337_vm15 = vcmp.lt.s32.totalorder %v10189_v11, 0  ;;  %v3572_v42 = vshrl.u32 %v3567_v62, 16 }
 0x34a   :  { %v3580_v47 = vadd.s32 %v3578_v40, %v3576_v61  ;;  %v3655_v52 = vadd.s32 1, %v7667_v38  ;;  %v3460_v15 = vsel %vm3337_vm15, %v3459_v45, %v10454_v2  ;;  %v10507_v0 = vadd.s32 %v3559_v59, %v3550_v12 }
 0x34b   :  { %v3453_v51 = vand.u32 2147483647, %v3452_v54  ;;  %v10509_v5 = vadd.s32 %v3575_v56, %v3571_v36  ;;  %v3529_v24 = vsel %vm3523_vm4, %v3526_v18, %v3528_v16  ;;  %vm3336_vm1 = vcmp.le.f32.partialorder %v3335_v10, 0.7853982 }
 0x34c   :  { %v3581_v6 = vadd.s32 %v3580_v47, %v3570_v14  ;;  %vm3656_vm0 = vcmp.gt.s32.totalorder %v3655_v52, 0  ;;  %v3652_v3 = vand.u32 8388607, %v3645_v50  ;;  %v3462_v8 = vsel %vm3336_vm1, 0, %v3460_v15 }
 0x34d   :  { %v3456_v9 = vmul.f32 %v3455_v48, %v3453_v51  ;;  %v3657_v28 = vsel %vm3656_vm0, %v3655_v52, 0  ;;  %v3583_v62 = vmul.u32 %v10452_v58, %v3529_v24  ;;  %vm3585_vm2 = vc.u32 %v10507_v0, %v10509_v5  ;;  %v7764_v52 = vld [vmem:[#allocation5] sm:$0xff] }
 0x34e   :  { %v3582_v7 = vadd.s32 %v3581_v6, %v3572_v42  ;;  %v3659_v2 = vand.u32 31, %v3657_v28  ;;  %v3479_v10 = vadd.s32 3, %v3462_v8  ;;  %v3653_v26 = vor.u32 8388608, %v3652_v3 }
 0x34f   :  { %v3457_v22 = vxor.u32 2147483648, %v3456_v9  ;;  %v10525_v49 = vshrl.u32 %v3657_v28, 5  ;;  %v10557_v51 = vmul.f32 8.0, %v7764_v52  ;;  %vm3478_vm8 = vweird.f32 %v10189_v11 }
 0x350   :  { %v3586_v44 = vadd.s32 1, %v3582_v7  ;;  %v3660_v18 = vsub.s32 32, %v3659_v2  ;;  %v3665_v39 = vshll.u32 %v7830_v31, %v3659_v2  ;;  %v3668_v20 = vshll.u32 %v7831_v33, %v3659_v2 }
 0x351   :  { %v3458_v16 = vsel %vm3337_vm15, %v3457_v22, %v3456_v9  ;;  %v3671_v4 = vshll.u32 %v7832_v35, %v3659_v2  ;;  %v3674_v63 = vshll.u32 %v7833_v37, %v3659_v2  ;;  %v10536_v55 = vand.u32 3, %v3479_v10 }
 0x352   :  { %v10523_v1 = vsel %vm3336_vm1, %v10189_v11, %v3458_v16  ;;  %v3587_v60 = vsel %vm3585_vm2, %v3586_v44, %v3582_v7  ;;  %v3666_v34 = vshrl.u32 %v7831_v33, %v3660_v18  ;;  %v3669_v32 = vshrl.u32 %v7832_v35, %v3660_v18 }
 0x353   :  { %v3463_v58 = vmul.f32 %v10523_v1, %v10523_v1  ;;  %v3588_v21 = vadd.s32 %v3587_v60, %v3583_v62  ;;  %v3672_v45 = vshrl.u32 %v7833_v37, %v3660_v18  ;;  %v3662_v27 = vshll.u32 %v7829_v29, %v3659_v2 }
 0x354   :  { %v3663_v13 = vshrl.u32 %v7830_v31, %v3660_v18  ;;  %v3675_v56 = vshrl.u32 %v7834_v46, %v3660_v18  ;;  %v10541_v25 = vshll.u32 %v3653_v26, 8  ;;  %v10545_v59 = vor.u32 %v3666_v34, %v3665_v39 }
 0x355   :  { %v3464_v36 = vmul.f32 -0.001358992, %v3463_v58  ;;  %v3471_v57 = vmul.f32 -0.00019511016, %v3463_v58  ;;  %v3589_v17 = vadd.s32 536870912, %v3588_v21  ;;  %v3673_v61 = vor.u32 %v3672_v45, %v3671_v4 }
 0x356   :  { %v10547_v14 = vor.u32 %v3669_v32, %v3668_v20  ;;  %v3676_v38 = vor.u32 %v3675_v56, %v3674_v63  ;;  %vm3680_vm3 = vcmp.lt.s32.totalorder %v10525_v49, 4  ;;  %vm3677_vm4 = vcmp.lt.s32.totalorder %v10525_v49, 1 }
 0x357   :  { %v3465_v30 = vadd.f32 0.041655596, %v3464_v36  ;;  %v3472_v43 = vadd.f32 0.008332121, %v3471_v57  ;;  %v10543_v12 = vshrl.u32 %v3589_v17, 30  ;;  %vm3482_vm5 = vcmp.eq.s32.totalorder %v10536_v55, 0 }
 0x358   :  { %v3664_v42 = vor.u32 %v3663_v13, %v3662_v27  ;;  %vm3679_vm6 = vcmp.lt.s32.totalorder %v10525_v49, 3  ;;  %v10555_v47 = vand.u32 65535, %v10541_v25  ;;  %vm3481_vm7 = vcmp.lt.s32.totalorder %v10536_v55, 2 }
 0x359   :  { %v3466_v54 = vmul.f32 %v3465_v30, %v3463_v58  ;;  %v3473_v48 = vmul.f32 %v3472_v43, %v3463_v58  ;;  %v3591_v40 = vshll.u32 %v10543_v12, 30  ;;  %v3686_v9 = vsel %vm3680_vm3, %v3673_v61, 920167782 }
 0x35a   :  { %vm3678_vm9 = vcmp.lt.s32.totalorder %v10525_v49, 2  ;;  %v3689_v3 = vsel %vm3677_vm4, %v10545_v59, %v10547_v14  ;;  %v3690_v28 = vsel %vm3680_vm3, %v3676_v38, 1326507024  ;;  %v3695_v8 = vshrl.u32 %v10541_v25, 16 }
 0x35b   :  { %v3467_v15 = vadd.f32 -0.4999988, %v3466_v54  ;;  %v3474_v24 = vadd.f32 -0.16666654, %v3473_v48  ;;  %v10560_v6 = vsub.s32 %v3588_v21, %v3591_v40  ;;  %vm3492_vm11 = vcmp.lt.s32.totalorder %v10288_v23, 0 }
 0x35c   :  { %v3661_v62 = vshrl.u32 %v7829_v29, %v3660_v18  ;;  %v3685_v44 = vsel %vm3677_vm4, %v3664_v42, %v10545_v59  ;;  %v3687_v16 = vsel %vm3679_vm6, %v10547_v14, %v3686_v9  ;;  %v3691_v10 = vsel %vm3679_vm6, %v3673_v61, %v3690_v28 }
 0x35d   :  { %v3468_v7 = vmul.f32 %v3467_v15, %v3463_v58  ;;  %v3475_v2 = vmul.f32 %v3474_v24, %v3463_v58  ;;  %vm3593_vm10 = vcmp.lt.s32.totalorder %v10560_v6, 0  ;;  %v3594_v22 = vsub.s32 0, %v10560_v6 }
 0x35e   :  { %v3692_v58 = vsel %vm3678_vm9, %v3689_v3, %v3691_v10  ;;  %vm3485_vm12 = vcmp.eq.s32.totalorder %v10536_v55, 2  ;;  %v3584_v32 = vadd.s32 %v10509_v5, %v10507_v0  ;;  %v3812_v45 = vand.u32 2139095040, %v10557_v51 }
 0x35f   :  { %v3469_v26 = vadd.f32 1.0, %v3468_v7  ;;  %v3476_v60 = vadd.f32 1.0, %v3475_v2  ;;  %v3595_v39 = vsel %vm3593_vm10, %v3594_v22, %v10560_v6  ;;  %v3696_v21 = vand.u32 65535, %v3692_v58 }
 0x360   :  { %v3596_v18 = vclz %v3595_v39  ;;  %v3697_v20 = vshrl.u32 %v3692_v58, 16  ;;  %v10595_v36 = vsel %vm3677_vm4, %v3661_v62, %v3664_v42  ;;  %v3688_v57 = vsel %vm3678_vm9, %v3685_v44, %v3687_v16 }
 0x361   :  { %v3477_v4 = vmul.f32 %v3476_v60, %v10523_v1  ;;  %v3486_v34 = vxor.u32 2147483648, %v3469_v26  ;;  %v3614_v1 = vsub.s32 4, %v10543_v12  ;;  %v3700_v56 = vmul.u32 %v3696_v21, %v3695_v8 }
 0x362   :  { %v7665_v63 = vadd.s32 4294967294, %v3596_v18  ;;  %v3699_v17 = vmul.u32 %v3697_v20, %v10555_v47  ;;  %v3698_v0 = vmul.u32 %v3696_v21, %v10555_v47  ;;  %v3718_v30 = vand.u32 65535, %v3688_v57 }
 0x363   :  { %v3483_v27 = vxor.u32 2147483648, %v3477_v4  ;;  %v3487_v13 = vsel %vm3485_vm12, %v3486_v34, %v3477_v4  ;;  %v3701_v38 = vmul.u32 %v3697_v20, %v3695_v8  ;;  %v3719_v54 = vshrl.u32 %v3688_v57, 16 }
 0x364   :  { %vm7666_vm13 = vcmp.lt.s32.totalorder %v7665_v63, 0  ;;  %v3702_v5 = vshll.u32 %v3699_v17, 16  ;;  %v3615_v24 = vsel %vm3492_vm11, %v3614_v1, %v10543_v12  ;;  %v3682_v9 = vsel %vm3680_vm3, %v10547_v14, 2102212464 }
 0x365   :  { %v3484_v43 = vsel %vm3482_vm5, %v3469_v26, %v3483_v27  ;;  %v3599_v61 = vsel %vm7666_vm13, 0, %v7665_v63  ;;  %v3704_v3 = vshll.u32 %v3700_v56, 16  ;;  %vm10617_vm14 = vcmp.le.f32.partialorder %v3490_v41, 0.7853982 }
 0x366   :  { %v3488_v48 = vsel %vm3481_vm7, %v3484_v43, %v3487_v13  ;;  %v3600_v40 = vsub.s32 32, %v3599_v61  ;;  %v3601_v42 = vshll.u32 %v10560_v6, %v3599_v61  ;;  %v3604_v52 = vsub.s32 4294967266, %v3599_v61 }
 0x367   :  { %v3489_v15 = vsel %vm3478_vm8, nan, %v3488_v48  ;;  %vm3706_vm15 = vc.u32 %v3698_v0, %v3702_v5  ;;  %v3813_v11 = vshrl.u32 %v3812_v45, 23  ;;  %v3708_v2 = vadd.s32 %v3702_v5, %v3698_v0 }
 0x368   :  { %v3602_v6 = vshrl.u32 %v3584_v32, %v3600_v40  ;;  %v3605_v28 = vadd.s32 127, %v3604_v52  ;;  %3802 = vst [vmem:[#allocation5 + $0x128] sm:$0xff] %v3489_v15  ;;  %v3707_v7 = vsel %vm3706_vm15, 1, %v7835_v53  ;;  %v3720_v12 = vmul.u32 %v3718_v30, %v10555_v47 }
 0x369   :  { %v3721_v22 = vmul.u32 %v3719_v54, %v10555_v47  ;;  %v3709_v44 = vadd.s32 %v3707_v7, %v3701_v38  ;;  %v3722_v16 = vmul.u32 %v3718_v30, %v3695_v8  ;;  %v3703_v41 = vshrl.u32 %v3699_v17, 16 }
 0x36a   :  { %v3603_v14 = vor.u32 %v3602_v6, %v3601_v42  ;;  %v3606_v62 = vshll.u32 %v3605_v28, 23  ;;  %vm3710_vm0 = vc.u32 %v3708_v2, %v3704_v3  ;;  %v3723_v10 = vmul.u32 %v3719_v54, %v3695_v8 }
 0x36b   :  { %v3724_v26 = vshll.u32 %v3721_v22, 16  ;;  %v3711_v58 = vsel %vm3710_vm0, 1, %v7835_v53  ;;  %v3726_v18 = vshll.u32 %v3722_v16, 16  ;;  %v3683_v21 = vsel %vm3679_vm6, %v10545_v59, %v3682_v9 }
 0x36c   :  { %v3607_v60 = vor.u32 4788187, %v3606_v62  ;;  %v3610_v39 = vcvt.s32.f32 %v3603_v14  ;;  %v3713_v20 = vadd.s32 %v3711_v58, %v3709_v44  ;;  %v3705_v34 = vshrl.u32 %v3700_v56, 16 }
 0x36d   :  { %vm3728_vm1 = vc.u32 %v3720_v12, %v3724_v26  ;;  %v3730_v47 = vadd.s32 %v3724_v26, %v3720_v12  ;;  %v7670_v45 = vadd.s32 4294967169, %v3813_v11  ;;  %v3725_v8 = vshrl.u32 %v3721_v22, 16  ;;  %v7765_v26 = vld [vmem:[#allocation5 + $0x8] sm:$0xff] }
 0x36e   :  { %v3608_v4 = vand.u32 2147483647, %v3607_v60  ;;  %v3729_v32 = vsel %vm3728_vm1, 1, %v7835_v53  ;;  %v3714_v63 = vadd.s32 %v3713_v20, %v3703_v41  ;;  %v3809_v13 = vand.u32 2147483647, %v10557_v51 }
 0x36f   :  { %v3731_v57 = vadd.s32 %v3729_v32, %v3723_v10  ;;  %vm3732_vm2 = vc.u32 %v3730_v47, %v3726_v18  ;;  %v3819_v1 = vadd.s32 1, %v7670_v45  ;;  %v3617_v59 = vsel %vm10617_vm14, 0, %v3615_v24 }
 0x370   :  { %v3611_v17 = vmul.f32 %v3610_v39, %v3608_v4  ;;  %v3733_v27 = vsel %vm3732_vm2, 1, %v7835_v53  ;;  %v3684_v56 = vsel %vm3678_vm9, %v10595_v36, %v3683_v21  ;;  %v3727_v0 = vshrl.u32 %v3722_v16, 16 }
 0x371   :  { %v3735_v5 = vadd.s32 %v3733_v27, %v3731_v57  ;;  %v10636_v43 = vadd.s32 %v3714_v63, %v3705_v34  ;;  %v10638_v61 = vadd.s32 %v3730_v47, %v3726_v18  ;;  %vm3820_vm3 = vcmp.gt.s32.totalorder %v3819_v1, 0 }
 0x372   :  { %v3612_v30 = vxor.u32 2147483648, %v3611_v17  ;;  %v3821_v54 = vsel %vm3820_vm3, %v3819_v1, 0  ;;  %v3738_v40 = vmul.u32 %v10541_v25, %v3684_v56  ;;  %v3634_v36 = vadd.s32 3, %v3617_v59 }
 0x373   :  { %v3736_v38 = vadd.s32 %v3735_v5, %v3725_v8  ;;  %v3823_v42 = vand.u32 31, %v3821_v54  ;;  %v3816_v15 = vand.u32 8388607, %v3809_v13  ;;  %vm3740_vm4 = vc.u32 %v10636_v43, %v10638_v61 }
 0x374   :  { %v3613_v48 = vsel %vm3492_vm11, %v3612_v30, %v3611_v17  ;;  %v10654_v9 = vshrl.u32 %v3821_v54, 5  ;;  %v10670_v60 = vmul.f32 8.0, %v7765_v26  ;;  %v3635_v39 = vand.u32 3, %v3634_v36 }
 0x375   :  { %v10646_v49 = vsel %vm10617_vm14, %v10288_v23, %v3613_v48  ;;  %v3737_v52 = vadd.s32 %v3736_v38, %v3727_v0  ;;  %v10656_v25 = vsub.s32 32, %v3823_v42  ;;  %v3826_v55 = vshll.u32 %v7829_v29, %v3823_v42 }
 0x376   :  { %v3618_v24 = vmul.f32 %v10646_v49, %v10646_v49  ;;  %v3829_v6 = vshll.u32 %v7830_v31, %v3823_v42  ;;  %v3832_v28 = vshll.u32 %v7831_v33, %v3823_v42  ;;  %v3835_v12 = vshll.u32 %v7832_v35, %v3823_v42 }
 0x377   :  { %v3741_v3 = vadd.s32 1, %v3737_v52  ;;  %v3827_v2 = vshrl.u32 %v7830_v31, %v10656_v25  ;;  %v3830_v14 = vshrl.u32 %v7831_v33, %v10656_v25  ;;  %v3833_v62 = vshrl.u32 %v7832_v35, %v10656_v25 }
 0x378   :  { %v3619_v11 = vmul.f32 -0.001358992, %v3618_v24  ;;  %v3626_v7 = vmul.f32 -0.00019511016, %v3618_v24  ;;  %v3836_v44 = vshrl.u32 %v7833_v37, %v10656_v25  ;;  %v3817_v58 = vor.u32 8388608, %v3816_v15 }
 0x379   :  { %v3742_v22 = vsel %vm3740_vm4, %v3741_v3, %v3737_v52  ;;  %v10672_v18 = vor.u32 %v3827_v2, %v3826_v55  ;;  %v3838_v21 = vshll.u32 %v7833_v37, %v3823_v42  ;;  %v10675_v34 = vor.u32 %v3830_v14, %v3829_v6 }
 0x37a   :  { %v3620_v16 = vadd.f32 0.041655596, %v3619_v11  ;;  %v3627_v41 = vadd.f32 0.008332121, %v3626_v7  ;;  %v3743_v10 = vadd.s32 %v3742_v22, %v3738_v40  ;;  %v3834_v32 = vor.u32 %v3833_v62, %v3832_v28 }
 0x37b   :  { %v3837_v45 = vor.u32 %v3836_v44, %v3835_v12  ;;  %v3839_v63 = vshrl.u32 %v7834_v46, %v10656_v25  ;;  %vm3841_vm5 = vcmp.lt.s32.totalorder %v10654_v9, 1  ;;  %vm3844_vm6 = vcmp.lt.s32.totalorder %v10654_v9, 4 }
 0x37c   :  { %v3621_v20 = vmul.f32 %v3620_v16, %v3618_v24  ;;  %v3628_v47 = vmul.f32 %v3627_v41, %v3618_v24  ;;  %v3744_v4 = vadd.s32 536870912, %v3743_v10  ;;  %vm3633_vm7 = vweird.f32 %v10288_v23 }
 0x37d   :  { %vm3636_vm8 = vcmp.lt.s32.totalorder %v3635_v39, 2  ;;  %vm3637_vm9 = vcmp.eq.s32.totalorder %v3635_v39, 0  ;;  %v3840_v27 = vor.u32 %v3839_v63, %v3838_v21  ;;  %v10682_v1 = vshll.u32 %v3817_v58, 8 }
 0x37e   :  { %v3622_v8 = vadd.f32 -0.4999988, %v3621_v20  ;;  %v3629_v57 = vadd.f32 -0.16666654, %v3628_v47  ;;  %v3745_v17 = vshrl.u32 %v3744_v4, 30  ;;  %vm3843_vm10 = vcmp.lt.s32.totalorder %v10654_v9, 3 }
 0x37f   :  { %vm3842_vm11 = vcmp.lt.s32.totalorder %v10654_v9, 2  ;;  %v3849_v5 = vsel %vm3841_vm5, %v10672_v18, %v10675_v34  ;;  %v3850_v30 = vsel %vm3844_vm6, %v3837_v45, 920167782  ;;  %v3854_v38 = vsel %vm3844_vm6, %v3840_v27, 1326507024 }
 0x380   :  { %v3623_v59 = vmul.f32 %v3622_v8, %v3618_v24  ;;  %v3630_v56 = vmul.f32 %v3629_v57, %v3618_v24  ;;  %v3746_v0 = vshll.u32 %v3745_v17, 30  ;;  %vm3647_vm12 = vcmp.lt.s32.totalorder %v10483_v19, 0 }
 0x381   :  { %v3853_v42 = vsel %vm3841_vm5, %v10675_v34, %v3834_v32  ;;  %vm3640_vm13 = vcmp.eq.s32.totalorder %v3635_v39, 2  ;;  %v3851_v36 = vsel %vm3843_vm10, %v3834_v32, %v3850_v30  ;;  %v3855_v52 = vsel %vm3843_vm10, %v3837_v45, %v3854_v38 }
 0x382   :  { %v3624_v54 = vadd.f32 1.0, %v3623_v59  ;;  %v3631_v48 = vadd.f32 1.0, %v3630_v56  ;;  %v3747_v40 = vsub.s32 %v3743_v10, %v3746_v0  ;;  %v3859_v15 = vshrl.u32 %v10682_v1, 16 }
 0x383   :  { %vm10706_vm15 = vcmp.le.f32.partialorder %v3645_v50, 0.7853982  ;;  %v3852_v28 = vsel %vm3842_vm11, %v3849_v5, %v3851_v36  ;;  %v3856_v11 = vsel %vm3842_vm11, %v3853_v42, %v3855_v52  ;;  %v3858_v7 = vand.u32 65535, %v10682_v1 }
 0x384   :  { %v3632_v24 = vmul.f32 %v3631_v48, %v10646_v49  ;;  %v3641_v3 = vxor.u32 2147483648, %v3624_v54  ;;  %vm3748_vm14 = vcmp.lt.s32.totalorder %v3747_v40, 0  ;;  %v3749_v55 = vsub.s32 0, %v3747_v40 }
 0x385   :  { %v3967_v2 = vand.u32 2139095040, %v10670_v60  ;;  %v3860_v14 = vand.u32 65535, %v3856_v11  ;;  %v3739_v50 = vadd.s32 %v10638_v61, %v10636_v43  ;;  %v3769_v44 = vsub.s32 4, %v3745_v17 }
 0x386   :  { %v3638_v49 = vxor.u32 2147483648, %v3632_v24  ;;  %v3642_v12 = vsel %vm3640_vm13, %v3641_v3, %v3632_v24  ;;  %v3750_v22 = vsel %vm3748_vm14, %v3749_v55, %v3747_v40  ;;  %v3861_v16 = vshrl.u32 %v3856_v11, 16 }
 0x387   :  { %v3751_v62 = vclz %v3750_v22  ;;  %v3825_v10 = vshrl.u32 %v7829_v29, %v10656_v25  ;;  %v3864_v26 = vmul.u32 %v3860_v14, %v3859_v15  ;;  %v3883_v58 = vshrl.u32 %v3852_v28, 16 }
 0x388   :  { %v3639_v41 = vsel %vm3637_vm9, %v3624_v54, %v3638_v49  ;;  %v3862_v47 = vmul.u32 %v3860_v14, %v3858_v7  ;;  %v3863_v4 = vmul.u32 %v3861_v16, %v3858_v7  ;;  %v3846_v43 = vsel %vm3844_vm6, %v3834_v32, 2102212464 }
 0x389   :  { %v3643_v21 = vsel %vm3636_vm8, %v3639_v41, %v3642_v12  ;;  %v7668_v20 = vadd.s32 4294967294, %v3751_v62  ;;  %v3882_v61 = vand.u32 65535, %v3852_v28  ;;  %v3968_v63 = vshrl.u32 %v3967_v2, 23 }
 0x38a   :  { %v3644_v45 = vsel %vm3633_vm7, nan, %v3643_v21  ;;  %v3770_v8 = vsel %vm3647_vm12, %v3769_v44, %v3745_v17  ;;  %v3865_v25 = vmul.u32 %v3861_v16, %v3859_v15  ;;  %v3866_v57 = vshll.u32 %v3863_v4, 16 }
 0x38b   :  { %vm7669_vm0 = vcmp.lt.s32.totalorder %v7668_v20, 0  ;;  %3803 = vst [vmem:[#allocation5 + $0x130] sm:$0xff] %v3644_v45  ;;  %v3845_v27 = vsel %vm3841_vm5, %v3825_v10, %v10672_v18  ;;  %v3868_v59 = vshll.u32 %v3864_v26, 16  ;;  %v3885_v23 = vmul.u32 %v3883_v58, %v3858_v7 }
 0x38c   :  { %v3754_v39 = vsel %vm7669_vm0, 0, %v7668_v20  ;;  %vm3870_vm1 = vc.u32 %v3862_v47, %v3866_v57  ;;  %v3772_v32 = vsel %vm10706_vm15, 0, %v3770_v8  ;;  %v3847_v17 = vsel %vm3843_vm10, %v10675_v34, %v3846_v43 }
 0x38d   :  { %v3755_v56 = vsub.s32 32, %v3754_v39  ;;  %v3756_v0 = vshll.u32 %v3747_v40, %v3754_v39  ;;  %v3759_v5 = vsub.s32 4294967266, %v3754_v39  ;;  %v3871_v30 = vsel %vm3870_vm1, 1, %v7835_v53 }
 0x38e   :  { %v3884_v38 = vmul.u32 %v3882_v61, %v3858_v7  ;;  %v3872_v42 = vadd.s32 %v3866_v57, %v3862_v47  ;;  %v3873_v18 = vadd.s32 %v3871_v30, %v3865_v25  ;;  %v3886_v36 = vmul.u32 %v3882_v61, %v3859_v15 }
 0x38f   :  { %v3757_v54 = vshrl.u32 %v3739_v50, %v3755_v56  ;;  %v3760_v48 = vadd.s32 127, %v3759_v5  ;;  %v3887_v52 = vmul.u32 %v3883_v58, %v3859_v15  ;;  %v3888_v24 = vshll.u32 %v3885_v23, 16 }
 0x390   :  { %v7673_v40 = vadd.s32 4294967169, %v3968_v63  ;;  %v3867_v28 = vshrl.u32 %v3863_v4, 16  ;;  %vm3874_vm2 = vc.u32 %v3872_v42, %v3868_v59  ;;  %v3869_v11 = vshrl.u32 %v3864_v26, 16 }
 0x391   :  { %v3758_v3 = vor.u32 %v3757_v54, %v3756_v0  ;;  %v3761_v55 = vshll.u32 %v3760_v48, 23  ;;  %v3875_v2 = vsel %vm3874_vm2, 1, %v7835_v53  ;;  %v3890_v49 = vshll.u32 %v3886_v36, 16 }
 0x392   :  { %vm3892_vm3 = vc.u32 %v3884_v38, %v3888_v24  ;;  %v3877_v7 = vadd.s32 %v3875_v2, %v3873_v18  ;;  %v3894_v14 = vadd.s32 %v3888_v24, %v3884_v38  ;;  %v3964_v15 = vand.u32 2147483647, %v10670_v60  ;;  %v7766_v24 = vld [vmem:[#allocation5 + $0x10] sm:$0xff] }
 0x393   :  { %v3762_v34 = vor.u32 4788187, %v3761_v55  ;;  %v3765_v12 = vcvt.s32.f32 %v3758_v3  ;;  %v3893_v22 = vsel %vm3892_vm3, 1, %v7835_v53  ;;  %v3974_v62 = vadd.s32 1, %v7673_v40 }
 0x394   :  { %v3895_v50 = vadd.s32 %v3893_v22, %v3887_v52  ;;  %v3789_v16 = vadd.s32 3, %v3772_v32  ;;  %v3848_v41 = vsel %vm3842_vm11, %v3845_v27, %v3847_v17  ;;  %v3878_v10 = vadd.s32 %v3877_v7, %v3867_v28 }
 0x395   :  { %v3763_v44 = vand.u32 2147483647, %v3762_v34  ;;  %v3889_v26 = vshrl.u32 %v3885_v23, 16  ;;  %vm3896_vm4 = vc.u32 %v3894_v14, %v3890_v49  ;;  %v10742_v58 = vadd.s32 %v3894_v14, %v3890_v49 }
 0x396   :  { %vm3975_vm5 = vcmp.gt.s32.totalorder %v3974_v62, 0  ;;  %v10744_v20 = vadd.s32 %v3878_v10, %v3869_v11  ;;  %v3897_v47 = vsel %vm3896_vm4, 1, %v7835_v53  ;;  %v3891_v45 = vshrl.u32 %v3886_v36, 16 }
 0x397   :  { %v3766_v21 = vmul.f32 %v3765_v12, %v3763_v44  ;;  %v3976_v4 = vsel %vm3975_vm5, %v3974_v62, 0  ;;  %v3899_v43 = vadd.s32 %v3897_v47, %v3895_v50  ;;  %v3902_v8 = vmul.u32 %v10682_v1, %v3848_v41 }
 0x398   :  { %v3978_v61 = vand.u32 31, %v3976_v4  ;;  %v3971_v9 = vand.u32 8388607, %v3964_v15  ;;  %v10750_v25 = vand.u32 3, %v3789_v16  ;;  %v10752_v39 = vshrl.u32 %v3976_v4, 5 }
 0x399   :  { %v3767_v63 = vxor.u32 2147483648, %v3766_v21  ;;  %v3900_v57 = vadd.s32 %v3899_v43, %v3889_v26  ;;  %vm3904_vm6 = vc.u32 %v10744_v20, %v10742_v58  ;;  %v10775_v40 = vmul.f32 8.0, %v7766_v24 }
 0x39a   :  { %v3979_v27 = vsub.s32 32, %v3978_v61  ;;  %v3981_v23 = vshll.u32 %v7829_v29, %v3978_v61  ;;  %v3984_v56 = vshll.u32 %v7830_v31, %v3978_v61  ;;  %v3990_v32 = vshll.u32 %v7832_v35, %v3978_v61 }
 0x39b   :  { %v3768_v59 = vsel %vm3647_vm12, %v3767_v63, %v3766_v21  ;;  %v3901_v0 = vadd.s32 %v3900_v57, %v3891_v45  ;;  %v3987_v38 = vshll.u32 %v7831_v33, %v3978_v61  ;;  %v3993_v6 = vshll.u32 %v7833_v37, %v3978_v61 }
 0x39c   :  { %v10763_v1 = vsel %vm10706_vm15, %v10483_v19, %v3768_v59  ;;  %v3982_v5 = vshrl.u32 %v7830_v31, %v3979_v27  ;;  %v3985_v30 = vshrl.u32 %v7831_v33, %v3979_v27  ;;  %v3991_v54 = vshrl.u32 %v7833_v37, %v3979_v27 }
 0x39d   :  { %v3773_v17 = vmul.f32 %v10763_v1, %v10763_v1  ;;  %v3905_v48 = vadd.s32 1, %v3901_v0  ;;  %v3988_v42 = vshrl.u32 %v7832_v35, %v3979_v27  ;;  %v3994_v18 = vshrl.u32 %v7834_v46, %v3979_v27 }
 0x39e   :  { %v3972_v55 = vor.u32 8388608, %v3971_v9  ;;  %v3983_v28 = vor.u32 %v3982_v5, %v3981_v23  ;;  %v3992_v11 = vor.u32 %v3991_v54, %v3990_v32  ;;  %v3986_v12 = vor.u32 %v3985_v30, %v3984_v56 }
 0x39f   :  { %v3774_v36 = vmul.f32 -0.001358992, %v3773_v17  ;;  %v3781_v52 = vmul.f32 -0.00019511016, %v3773_v17  ;;  %v3906_v3 = vsel %vm3904_vm6, %v3905_v48, %v3901_v0  ;;  %vm3795_vm7 = vcmp.eq.s32.totalorder %v10750_v25, 2 }
 0x3a0   :  { %v3907_v34 = vadd.s32 %v3906_v3, %v3902_v8  ;;  %v3989_v7 = vor.u32 %v3988_v42, %v3987_v38  ;;  %v3995_v22 = vor.u32 %v3994_v18, %v3993_v6  ;;  %vm3996_vm8 = vcmp.lt.s32.totalorder %v10752_v39, 1 }
 0x3a1   :  { %v3775_v2 = vadd.f32 0.041655596, %v3774_v36  ;;  %v3782_v49 = vadd.f32 0.008332121, %v3781_v52  ;;  %vm3999_vm9 = vcmp.lt.s32.totalorder %v10752_v39, 4  ;;  %vm3998_vm10 = vcmp.lt.s32.totalorder %v10752_v39, 3 }
 0x3a2   :  { %v3908_v62 = vadd.s32 536870912, %v3907_v34  ;;  %vm3792_vm11 = vcmp.eq.s32.totalorder %v10750_v25, 0  ;;  %vm3997_vm12 = vcmp.lt.s32.totalorder %v10752_v39, 2  ;;  %v4005_v44 = vsel %vm3999_vm9, %v3992_v11, 920167782 }
 0x3a3   :  { %v3776_v14 = vmul.f32 %v3775_v2, %v3773_v17  ;;  %v3783_v50 = vmul.f32 %v3782_v49, %v3773_v17  ;;  %v10788_v16 = vshll.u32 %v3972_v55, 8  ;;  %v4122_v41 = vand.u32 2139095040, %v10775_v40 }
 0x3a4   :  { %vm3791_vm13 = vcmp.lt.s32.totalorder %v10750_v25, 2  ;;  %v10792_v21 = vshrl.u32 %v3908_v62, 30  ;;  %v4004_v47 = vsel %vm3996_vm8, %v3983_v28, %v3986_v12  ;;  %vm3788_vm14 = vweird.f32 %v10483_v19 }
 0x3a5   :  { %v3777_v10 = vadd.f32 -0.4999988, %v3776_v14  ;;  %v3784_v26 = vadd.f32 -0.16666654, %v3783_v50  ;;  %v3980_v4 = vshrl.u32 %v7829_v29, %v3979_v27  ;;  %v4006_v45 = vsel %vm3998_vm10, %v3989_v7, %v4005_v44 }
 0x3a6   :  { %v4009_v43 = vsel %vm3999_vm9, %v3995_v22, 1326507024  ;;  %v4119_v61 = vand.u32 2147483647, %v10775_v40  ;;  %v3910_v9 = vshll.u32 %v10792_v21, 30  ;;  %v4008_v57 = vsel %vm3996_vm8, %v3986_v12, %v3989_v7 }
 0x3a7   :  { %v3778_v63 = vmul.f32 %v3777_v10, %v3773_v17  ;;  %v3785_v8 = vmul.f32 %v3784_v26, %v3773_v17  ;;  %v4007_v59 = vsel %vm3997_vm12, %v4004_v47, %v4006_v45  ;;  %v4010_v27 = vsel %vm3998_vm10, %v3992_v11, %v4009_v43 }
 0x3a8   :  { %v4013_v23 = vand.u32 65535, %v10788_v16  ;;  %v4123_v56 = vshrl.u32 %v4122_v41, 23  ;;  %v3911_v32 = vsub.s32 %v3907_v34, %v3910_v9  ;;  %v4001_v17 = vsel %vm3999_vm9, %v3989_v7, 2102212464 }
 0x3a9   :  { %v3779_v0 = vadd.f32 1.0, %v3778_v63  ;;  %v3786_v5 = vadd.f32 1.0, %v3785_v8  ;;  %v4000_v30 = vsel %vm3996_vm8, %v3980_v4, %v3983_v28  ;;  %v4011_v38 = vsel %vm3997_vm12, %v4008_v57, %v4010_v27 }
 0x3aa   :  { %v4014_v54 = vshrl.u32 %v10788_v16, 16  ;;  %v4038_v48 = vshrl.u32 %v4007_v59, 16  ;;  %vm3912_vm15 = vcmp.lt.s32.totalorder %v3911_v32, 0  ;;  %v3913_v18 = vsub.s32 0, %v3911_v32 }
 0x3ab   :  { %v3787_v42 = vmul.f32 %v3786_v5, %v10763_v1  ;;  %v3796_v6 = vxor.u32 2147483648, %v3779_v0  ;;  %vm3811_vm0 = vcmp.lt.s32.totalorder %v10557_v51, 0  ;;  %v4002_v36 = vsel %vm3998_vm10, %v3986_v12, %v4001_v17 }
 0x3ac   :  { %v4015_v52 = vand.u32 65535, %v4011_v38  ;;  %v4016_v24 = vshrl.u32 %v4011_v38, 16  ;;  %v7676_v3 = vadd.s32 4294967169, %v4123_v56  ;;  %v3914_v11 = vsel %vm3912_vm15, %v3913_v18, %v3911_v32 }
 0x3ad   :  { %v3793_v55 = vxor.u32 2147483648, %v3787_v42  ;;  %v3797_v28 = vsel %vm3795_vm7, %v3796_v6, %v3787_v42  ;;  %v4037_v2 = vand.u32 65535, %v4007_v59  ;;  %v3915_v49 = vclz %v3914_v11 }
 0x3ae   :  { %v4017_v34 = vmul.u32 %v4015_v52, %v4013_v23  ;;  %v4018_v1 = vmul.u32 %v4016_v24, %v4013_v23  ;;  %v4019_v7 = vmul.u32 %v4015_v52, %v4014_v54  ;;  %v3903_v14 = vadd.s32 %v10742_v58, %v10744_v20 }
 0x3af   :  { %v3794_v22 = vsel %vm3792_vm11, %v3779_v0, %v3793_v55  ;;  %v10830_v12 = vsel %vm3997_vm12, %v4000_v30, %v4002_v36  ;;  %v4040_v50 = vmul.u32 %v4038_v48, %v4013_v23  ;;  %v7671_v44 = vadd.s32 4294967294, %v3915_v49 }
 0x3b0   :  { %v3798_v62 = vsel %vm3791_vm13, %v3794_v22, %v3797_v28  ;;  %v4020_v41 = vmul.u32 %v4016_v24, %v4014_v54  ;;  %v4021_v10 = vshll.u32 %v4018_v1, 16  ;;  %v3933_v47 = vsub.s32 4, %v10792_v21 }
 0x3b1   :  { %v3799_v26 = vsel %vm3788_vm14, nan, %v3798_v62  ;;  %v4023_v4 = vshll.u32 %v4019_v7, 16  ;;  %v4129_v45 = vadd.s32 1, %v7676_v3  ;;  %vm7672_vm1 = vcmp.lt.s32.totalorder %v7671_v44, 0 }
 0x3b2   :  { %3804 = vst [vmem:[#allocation5 + $0x138] sm:$0xff] %v3799_v26  ;;  %vm4025_vm2 = vc.u32 %v4017_v34, %v4021_v10  ;;  %v4027_v58 = vadd.s32 %v4021_v10, %v4017_v34  ;;  %v4041_v20 = vmul.u32 %v4037_v2, %v4014_v54  ;;  %v3918_v39 = vsel %vm7672_vm1, 0, %v7671_v44 }
 0x3b3   :  { %v4026_v43 = vsel %vm4025_vm2, 1, %v7835_v53  ;;  %v4039_v25 = vmul.u32 %v4037_v2, %v4013_v23  ;;  %v4043_v63 = vshll.u32 %v4040_v50, 16  ;;  %v3919_v8 = vsub.s32 32, %v3918_v39 }
 0x3b4   :  { %v3920_v9 = vshll.u32 %v3911_v32, %v3918_v39  ;;  %v3923_v57 = vsub.s32 4294967266, %v3918_v39  ;;  %v4028_v59 = vadd.s32 %v4026_v43, %v4020_v41  ;;  %v3934_v19 = vsel %vm3811_vm0, %v3933_v47, %v10792_v21 }
 0x3b5   :  { %v4022_v27 = vshrl.u32 %v4018_v1, 16  ;;  %vm4029_vm3 = vc.u32 %v4027_v58, %v4023_v4  ;;  %v4042_v56 = vmul.u32 %v4038_v48, %v4014_v54  ;;  %v3921_v0 = vshrl.u32 %v3903_v14, %v3919_v8 }
 0x3b6   :  { %v3924_v5 = vadd.s32 127, %v3923_v57  ;;  %v4030_v17 = vsel %vm4029_vm3, 1, %v7835_v53  ;;  %v4045_v30 = vshll.u32 %v4041_v20, 16  ;;  %v4024_v38 = vshrl.u32 %v4019_v7, 16 }
 0x3b7   :  { %v4032_v42 = vadd.s32 %v4030_v17, %v4028_v59  ;;  %vm4047_vm4 = vc.u32 %v4039_v25, %v4043_v63  ;;  %v4049_v23 = vadd.s32 %v4043_v63, %v4039_v25  ;;  %v3922_v6 = vor.u32 %v3921_v0, %v3920_v9 }
 0x3b8   :  { %v3925_v32 = vshll.u32 %v3924_v5, 23  ;;  %v4044_v18 = vshrl.u32 %v4040_v50, 16  ;;  %v4048_v36 = vsel %vm4047_vm4, 1, %v7835_v53  ;;  %vm4130_vm6 = vcmp.gt.s32.totalorder %v4129_v45, 0 }
 0x3b9   :  { %v4033_v52 = vadd.s32 %v4032_v42, %v4022_v27  ;;  %v4050_v24 = vadd.s32 %v4048_v36, %v4042_v56  ;;  %vm4051_vm5 = vc.u32 %v4049_v23, %v4045_v30  ;;  %v10843_v21 = vadd.s32 %v4049_v23, %v4045_v30 }
 0x3ba   :  { %v3926_v54 = vor.u32 4788187, %v3925_v32  ;;  %v3929_v48 = vcvt.s32.f32 %v3922_v6  ;;  %v4052_v3 = vsel %vm4051_vm5, 1, %v7835_v53  ;;  %v4046_v28 = vshrl.u32 %v4041_v20, 16 }
 0x3bb   :  { %v10846_v55 = vadd.s32 %v4033_v52, %v4024_v38  ;;  %v4054_v11 = vadd.s32 %v4052_v3, %v4050_v24  ;;  %v4131_v2 = vsel %vm4130_vm6, %v4129_v45, 0  ;;  %vm10850_vm7 = vcmp.le.f32.partialorder %v3809_v13, 0.7853982 }
 0x3bc   :  { %v3927_v34 = vand.u32 2147483647, %v3926_v54  ;;  %v4057_v1 = vmul.u32 %v10788_v16, %v10830_v12  ;;  %v4133_v7 = vand.u32 31, %v4131_v2  ;;  %v3936_v22 = vsel %vm10850_vm7, 0, %v3934_v19 }
 0x3bd   :  { %v4055_v14 = vadd.s32 %v4054_v11, %v4044_v18  ;;  %v4126_v50 = vand.u32 8388607, %v4119_v61  ;;  %v10860_v62 = vshrl.u32 %v4131_v2, 5  ;;  %vm4059_vm8 = vc.u32 %v10846_v55, %v10843_v21 }
 0x3be   :  { %v3930_v44 = vmul.f32 %v3929_v48, %v3927_v34  ;;  %v10864_v13 = vsub.s32 32, %v4133_v7  ;;  %v4136_v41 = vshll.u32 %v7829_v29, %v4133_v7  ;;  %v4139_v16 = vshll.u32 %v7830_v31, %v4133_v7  ;;  %v7767_v34 = vld [vmem:[#allocation5 + $0x18] sm:$0xff] }
 0x3bf   :  { %v4056_v10 = vadd.s32 %v4055_v14, %v4046_v28  ;;  %v4142_v12 = vshll.u32 %v7831_v33, %v4133_v7  ;;  %v4145_v26 = vshll.u32 %v7832_v35, %v4133_v7  ;;  %v4148_v58 = vshll.u32 %v7833_v37, %v4133_v7 }
 0x3c0   :  { %v3931_v47 = vxor.u32 2147483648, %v3930_v44  ;;  %v4137_v4 = vshrl.u32 %v7830_v31, %v10864_v13  ;;  %v4140_v45 = vshrl.u32 %v7831_v33, %v10864_v13  ;;  %v4143_v39 = vshrl.u32 %v7832_v35, %v10864_v13 }
 0x3c1   :  { %v4060_v20 = vadd.s32 1, %v4056_v10  ;;  %v4146_v43 = vshrl.u32 %v7833_v37, %v10864_v13  ;;  %v4149_v25 = vshrl.u32 %v7834_v46, %v10864_v13  ;;  %v3953_v9 = vadd.s32 3, %v3936_v22 }
 0x3c2   :  { %v3932_v63 = vsel %vm3811_vm0, %v3931_v47, %v3930_v44  ;;  %v4127_v56 = vor.u32 8388608, %v4126_v50  ;;  %v10889_v0 = vor.u32 %v4137_v4, %v4136_v41  ;;  %v10891_v5 = vor.u32 %v4140_v45, %v4139_v16 }
 0x3c3   :  { %v3935_v8 = vsel %vm10850_vm7, %v10557_v51, %v3932_v63  ;;  %v4061_v57 = vsel %vm4059_vm8, %v4060_v20, %v4056_v10  ;;  %v4147_v59 = vor.u32 %v4146_v43, %v4145_v26  ;;  %v4144_v17 = vor.u32 %v4143_v39, %v4142_v12 }
 0x3c4   :  { %v3937_v19 = vmul.f32 %v3935_v8, %v3935_v8  ;;  %v4062_v27 = vadd.s32 %v4061_v57, %v4057_v1  ;;  %v4150_v30 = vor.u32 %v4149_v25, %v4148_v58  ;;  %vm4154_vm9 = vcmp.lt.s32.totalorder %v10860_v62, 4 }
 0x3c5   :  { %vm4151_vm10 = vcmp.lt.s32.totalorder %v10860_v62, 1  ;;  %v10895_v6 = vand.u32 3, %v3953_v9  ;;  %vm4153_vm11 = vcmp.lt.s32.totalorder %v10860_v62, 3  ;;  %v4160_v32 = vsel %vm4154_vm9, %v4147_v59, 920167782 }
 0x3c6   :  { %v3938_v38 = vmul.f32 -0.001358992, %v3937_v19  ;;  %v3945_v42 = vmul.f32 -0.00019511016, %v3937_v19  ;;  %v4063_v23 = vadd.s32 536870912, %v4062_v27  ;;  %v10902_v24 = vshll.u32 %v4127_v56, 8 }
 0x3c7   :  { %vm4152_vm12 = vcmp.lt.s32.totalorder %v10860_v62, 2  ;;  %v4159_v54 = vsel %vm4151_vm10, %v10889_v0, %v10891_v5  ;;  %v4163_v48 = vsel %vm4151_vm10, %v10891_v5, %v4144_v17  ;;  %v4164_v3 = vsel %vm4154_vm9, %v4150_v30, 1326507024 }
 0x3c8   :  { %v3939_v18 = vadd.f32 0.041655596, %v3938_v38  ;;  %v3946_v36 = vadd.f32 0.008332121, %v3945_v42  ;;  %v10900_v52 = vshrl.u32 %v4063_v23, 30  ;;  %v4161_v49 = vsel %vm4153_vm11, %v4144_v17, %v4160_v32 }
 0x3c9   :  { %v10917_v1 = vmul.f32 8.0, %v7767_v34  ;;  %v4165_v7 = vsel %vm4153_vm11, %v4147_v59, %v4164_v3  ;;  %vm3955_vm13 = vcmp.lt.s32.totalorder %v10895_v6, 2  ;;  %vm3956_vm14 = vcmp.eq.s32.totalorder %v10895_v6, 0 }
 0x3ca   :  { %v3940_v28 = vmul.f32 %v3939_v18, %v3937_v19  ;;  %v3947_v11 = vmul.f32 %v3946_v36, %v3937_v19  ;;  %v4065_v2 = vshll.u32 %v10900_v52, 30  ;;  %vm3952_vm15 = vweird.f32 %v10557_v51 }
 0x3cb   :  { %v4162_v44 = vsel %vm4152_vm12, %v4159_v54, %v4161_v49  ;;  %v4166_v41 = vsel %vm4152_vm12, %v4163_v48, %v4165_v7  ;;  %v4168_v10 = vand.u32 65535, %v10902_v24  ;;  %v4169_v16 = vshrl.u32 %v10902_v24, 16 }
 0x3cc   :  { %v3941_v22 = vadd.f32 -0.4999988, %v3940_v28  ;;  %v3948_v14 = vadd.f32 -0.16666654, %v3947_v11  ;;  %v4066_v50 = vsub.s32 %v4062_v27, %v4065_v2  ;;  %vm3959_vm1 = vcmp.eq.s32.totalorder %v10895_v6, 2 }
 0x3cd   :  { %v4058_v4 = vadd.s32 %v10843_v21, %v10846_v55  ;;  %v4170_v45 = vand.u32 65535, %v4166_v41  ;;  %v4171_v58 = vshrl.u32 %v4166_v41, 16  ;;  %v4193_v25 = vshrl.u32 %v4162_v44, 16 }
 0x3ce   :  { %v3942_v12 = vmul.f32 %v3941_v22, %v3937_v19  ;;  %v3949_v26 = vmul.f32 %v3948_v14, %v3937_v19  ;;  %vm4067_vm0 = vcmp.lt.s32.totalorder %v4066_v50, 0  ;;  %v4068_v47 = vsub.s32 0, %v4066_v50 }
 0x3cf   :  { %v4172_v9 = vmul.u32 %v4170_v45, %v4168_v10  ;;  %v4173_v57 = vmul.u32 %v4171_v58, %v4168_v10  ;;  %v10933_v59 = vmul.u32 %v4170_v45, %v4169_v16  ;;  %vm3966_vm2 = vcmp.lt.s32.totalorder %v10670_v60, 0 }
 0x3d0   :  { %v3943_v20 = vadd.f32 1.0, %v3942_v12  ;;  %v3950_v39 = vadd.f32 1.0, %v3949_v26  ;;  %v4069_v43 = vsel %vm4067_vm0, %v4068_v47, %v4066_v50  ;;  %v4135_v56 = vshrl.u32 %v7829_v29, %v10864_v13 }
 0x3d1   :  { %v4070_v63 = vclz %v4069_v43  ;;  %v4192_v30 = vand.u32 65535, %v4162_v44  ;;  %v4088_v55 = vsub.s32 4, %v10900_v52  ;;  %v4156_v38 = vsel %vm4154_vm9, %v4144_v17, 2102212464 }
 0x3d2   :  { %v3951_v27 = vmul.f32 %v3950_v39, %v3935_v8  ;;  %v3960_v19 = vxor.u32 2147483648, %v3943_v20  ;;  %v4176_v42 = vshll.u32 %v4173_v57, 16  ;;  %v4175_v18 = vmul.u32 %v4171_v58, %v4169_v16 }
 0x3d3   :  { %v7674_v21 = vadd.s32 4294967294, %v4070_v63  ;;  %v4195_v8 = vmul.u32 %v4193_v25, %v4168_v10  ;;  %v4178_v36 = vshll.u32 %v10933_v59, 16  ;;  %v4196_v28 = vmul.u32 %v4192_v30, %v4169_v16 }
 0x3d4   :  { %v3957_v23 = vxor.u32 2147483648, %v3951_v27  ;;  %v3961_v32 = vsel %vm3959_vm1, %v3960_v19, %v3951_v27  ;;  %vm4180_vm4 = vc.u32 %v4172_v9, %v4176_v42  ;;  %v4182_v54 = vadd.s32 %v4176_v42, %v4172_v9 }
 0x3d5   :  { %vm7675_vm3 = vcmp.lt.s32.totalorder %v7674_v21, 0  ;;  %v4181_v3 = vsel %vm4180_vm4, 1, %v7835_v53  ;;  %vm10951_vm5 = vcmp.le.f32.partialorder %v3964_v15, 0.7853982  ;;  %v4177_v22 = vshrl.u32 %v4173_v57, 16 }
 0x3d6   :  { %v3958_v13 = vsel %vm3956_vm14, %v3943_v20, %v3957_v23  ;;  %v4073_v48 = vsel %vm7675_vm3, 0, %v7674_v21  ;;  %v4194_v14 = vmul.u32 %v4192_v30, %v4168_v10  ;;  %v4277_v44 = vand.u32 2139095040, %v10917_v1 }
 0x3d7   :  { %v3962_v17 = vsel %vm3955_vm13, %v3958_v13, %v3961_v32  ;;  %v4074_v2 = vsub.s32 32, %v4073_v48  ;;  %v4075_v49 = vshll.u32 %v4066_v50, %v4073_v48  ;;  %v4078_v34 = vsub.s32 4294967266, %v4073_v48 }
 0x3d8   :  { %v3963_v7 = vsel %vm3952_vm15, nan, %v3962_v17  ;;  %v4183_v6 = vadd.s32 %v4181_v3, %v4175_v18  ;;  %vm4184_vm6 = vc.u32 %v4182_v54, %v4178_v36  ;;  %v4197_v26 = vmul.u32 %v4193_v25, %v4169_v16 }
 0x3d9   :  { %v4076_v41 = vshrl.u32 %v4058_v4, %v4074_v2  ;;  %v4079_v12 = vadd.s32 127, %v4078_v34  ;;  %4430 = vst [vmem:[#allocation5 + $0x80] sm:$0xff] %v3963_v7  ;;  %v4185_v15 = vsel %vm4184_vm6, 1, %v7835_v53  ;;  %v4198_v47 = vshll.u32 %v4195_v8, 16 }
 0x3da   :  { %v4200_v45 = vshll.u32 %v4196_v28, 16  ;;  %v4089_v20 = vsel %vm3966_vm2, %v4088_v55, %v10900_v52  ;;  %v4187_v39 = vadd.s32 %v4185_v15, %v4183_v6  ;;  %v4179_v10 = vshrl.u32 %v10933_v59, 16 }
 0x3db   :  { %v4077_v58 = vor.u32 %v4076_v41, %v4075_v49  ;;  %v4080_v50 = vshll.u32 %v4079_v12, 23  ;;  %vm4202_vm7 = vc.u32 %v4194_v14, %v4198_v47  ;;  %v4204_v4 = vadd.s32 %v4198_v47, %v4194_v14 }
 0x3dc   :  { %v4278_v43 = vshrl.u32 %v4277_v44, 23  ;;  %v4188_v57 = vadd.s32 %v4187_v39, %v4177_v22  ;;  %v4203_v27 = vsel %vm4202_vm7, 1, %v7835_v53  ;;  %v4199_v16 = vshrl.u32 %v4195_v8, 16 }
 0x3dd   :  { %v4081_v63 = vor.u32 4788187, %v4080_v50  ;;  %v4084_v9 = vcvt.s32.f32 %v4077_v58  ;;  %v4205_v25 = vadd.s32 %v4203_v27, %v4197_v26  ;;  %vm4206_vm8 = vc.u32 %v4204_v4, %v4200_v45 }
 0x3de   :  { %v7679_v19 = vadd.s32 4294967169, %v4278_v43  ;;  %v4155_v52 = vsel %vm4151_vm10, %v4135_v56, %v10889_v0  ;;  %v4157_v59 = vsel %vm4153_vm11, %v10891_v5, %v4156_v38  ;;  %v4207_v21 = vsel %vm4206_vm8, 1, %v7835_v53 }
 0x3df   :  { %v4082_v30 = vand.u32 2147483647, %v4081_v63  ;;  %v4091_v55 = vsel %vm10951_vm5, 0, %v4089_v20  ;;  %v4201_v42 = vshrl.u32 %v4196_v28, 16  ;;  %v4209_v23 = vadd.s32 %v4207_v21, %v4205_v25 }
 0x3e0   :  { %v4284_v32 = vadd.s32 1, %v7679_v19  ;;  %v10973_v8 = vadd.s32 %v4188_v57, %v4179_v10  ;;  %v10975_v36 = vadd.s32 %v4204_v4, %v4200_v45  ;;  %v4158_v0 = vsel %vm4152_vm12, %v4155_v52, %v4157_v59 }
 0x3e1   :  { %v4085_v18 = vmul.f32 %v4084_v9, %v4082_v30  ;;  %v4210_v56 = vadd.s32 %v4209_v23, %v4199_v16  ;;  %v4274_v54 = vand.u32 2147483647, %v10917_v1  ;;  %v4108_v38 = vadd.s32 3, %v4091_v55 }
 0x3e2   :  { %vm4285_vm9 = vcmp.gt.s32.totalorder %v4284_v32, 0  ;;  %v4212_v17 = vmul.u32 %v10902_v24, %v4158_v0  ;;  %vm4214_vm10 = vc.u32 %v10973_v8, %v10975_v36  ;;  %vm11040_vm4 = vcmp.le.f32.partialorder %v4119_v61, 0.7853982 }
 0x3e3   :  { %v4086_v5 = vxor.u32 2147483648, %v4085_v18  ;;  %v4286_v13 = vsel %vm4285_vm9, %v4284_v32, 0  ;;  %v4211_v48 = vadd.s32 %v4210_v56, %v4201_v42  ;;  %v4281_v49 = vand.u32 8388607, %v4274_v54 }
 0x3e4   :  { %v4288_v3 = vand.u32 31, %v4286_v13  ;;  %v10994_v22 = vand.u32 3, %v4108_v38  ;;  %v11001_v45 = vshrl.u32 %v4286_v13, 5 }
 0x3e5   :  { %v4087_v28 = vsel %vm3966_vm2, %v4086_v5, %v4085_v18  ;;  %v4215_v2 = vadd.s32 1, %v4211_v48  ;;  %v4282_v47 = vor.u32 8388608, %v4281_v49  ;;  %vm4121_vm2 = vcmp.lt.s32.totalorder %v10775_v40, 0 }
 0x3e6   :  { %v10988_v62 = vsel %vm10951_vm5, %v10670_v60, %v4087_v28  ;;  %v4289_v34 = vsub.s32 32, %v4288_v3  ;;  %v4291_v24 = vshll.u32 %v7829_v29, %v4288_v3  ;;  %v4294_v41 = vshll.u32 %v7830_v31, %v4288_v3 }
 0x3e7   :  { %v4092_v7 = vmul.f32 %v10988_v62, %v10988_v62  ;;  %v4216_v14 = vsel %vm4214_vm10, %v4215_v2, %v4211_v48  ;;  %v4300_v26 = vshll.u32 %v7832_v35, %v4288_v3  ;;  %v4297_v58 = vshll.u32 %v7831_v33, %v4288_v3 }
 0x3e8   :  { %v4292_v44 = vshrl.u32 %v7830_v31, %v4289_v34  ;;  %v4295_v11 = vshrl.u32 %v7831_v33, %v4289_v34  ;;  %v4217_v15 = vadd.s32 %v4216_v14, %v4212_v17  ;;  %v4298_v50 = vshrl.u32 %v7832_v35, %v4289_v34 }
 0x3e9   :  { %v4093_v12 = vmul.f32 -0.001358992, %v4092_v7  ;;  %v4100_v6 = vmul.f32 -0.00019511016, %v4092_v7  ;;  %v4301_v4 = vshrl.u32 %v7833_v37, %v4289_v34  ;;  %v4303_v9 = vshll.u32 %v7833_v37, %v4288_v3 }
 0x3ea   :  { %v4218_v10 = vadd.s32 536870912, %v4217_v15  ;;  %v4293_v43 = vor.u32 %v4292_v44, %v4291_v24  ;;  %v11006_v63 = vor.u32 %v4295_v11, %v4294_v41  ;;  %v4304_v57 = vshrl.u32 %v7834_v46, %v4289_v34 }
 0x3eb   :  { %v4094_v20 = vadd.f32 0.041655596, %v4093_v12  ;;  %v4101_v39 = vadd.f32 0.008332121, %v4100_v6  ;;  %v4302_v19 = vor.u32 %v4301_v4, %v4300_v26  ;;  %vm4111_vm11 = vcmp.eq.s32.totalorder %v10994_v22, 0 }
 0x3ec   :  { %v4219_v25 = vshrl.u32 %v4218_v10, 30  ;;  %v11011_v30 = vor.u32 %v4298_v50, %v4297_v58  ;;  %vm4306_vm12 = vcmp.lt.s32.totalorder %v11001_v45, 1  ;;  %vm4309_vm13 = vcmp.lt.s32.totalorder %v11001_v45, 4 }
 0x3ed   :  { %v4095_v27 = vmul.f32 %v4094_v20, %v4092_v7  ;;  %v4102_v16 = vmul.f32 %v4101_v39, %v4092_v7  ;;  %v11015_v52 = vshll.u32 %v4282_v47, 8  ;;  %vm4110_vm14 = vcmp.lt.s32.totalorder %v10994_v22, 2 }
 0x3ee   :  { %v4220_v55 = vshll.u32 %v4219_v25, 30  ;;  %vm4308_vm15 = vcmp.lt.s32.totalorder %v11001_v45, 3  ;;  %vm4114_vm0 = vcmp.eq.s32.totalorder %v10994_v22, 2  ;;  %v4305_v42 = vor.u32 %v4304_v57, %v4303_v9 }
 0x3ef   :  { %v4096_v59 = vadd.f32 -0.4999988, %v4095_v27  ;;  %v4103_v21 = vadd.f32 -0.16666654, %v4102_v16  ;;  %vm4307_vm1 = vcmp.lt.s32.totalorder %v11001_v45, 2  ;;  %v4314_v56 = vsel %vm4306_vm12, %v4293_v43, %v11006_v63 }
 0x3f0   :  { %v4315_v23 = vsel %vm4309_vm13, %v4302_v19, 920167782  ;;  %v4221_v0 = vsub.s32 %v4217_v15, %v4220_v55  ;;  %v4318_v38 = vsel %vm4306_vm12, %v11006_v63, %v11011_v30  ;;  %v4323_v13 = vand.u32 65535, %v11015_v52 }
 0x3f1   :  { %v4097_v32 = vmul.f32 %v4096_v59, %v4092_v7  ;;  %v4104_v18 = vmul.f32 %v4103_v21, %v4092_v7  ;;  %v4316_v5 = vsel %vm4308_vm15, %v11011_v30, %v4315_v23  ;;  %v11036_v48 = vadd.f32 1.5707964, %v10557_v51 }
 0x3f2   :  { %vm4222_vm3 = vcmp.lt.s32.totalorder %v4221_v0, 0  ;;  %v4223_v17 = vsub.s32 0, %v4221_v0  ;;  %v4290_v49 = vshrl.u32 %v7829_v29, %v4289_v34  ;;  %v4317_v7 = vsel %vm4307_vm1, %v4314_v56, %v4316_v5 }
 0x3f3   :  { %v4098_v3 = vadd.f32 1.0, %v4097_v32  ;;  %v4105_v28 = vadd.f32 1.0, %v4104_v18  ;;  %v4319_v24 = vsel %vm4309_vm13, %v4305_v42, 1326507024  ;;  %v4324_v51 = vshrl.u32 %v11015_v52, 16 }
 0x3f4   :  { %v4224_v41 = vsel %vm4222_vm3, %v4223_v17, %v4221_v0  ;;  %v4320_v61 = vsel %vm4308_vm15, %v4302_v19, %v4319_v24  ;;  %v4243_v12 = vsub.s32 4, %v4219_v25  ;;  %v4348_v6 = vshrl.u32 %v4317_v7, 16 }
 0x3f5   :  { %v4106_v14 = vmul.f32 %v4105_v28, %v10988_v62  ;;  %v4115_v44 = vxor.u32 2147483648, %v4098_v3  ;;  %v4225_v11 = vclz %v4224_v41  ;;  %v4321_v34 = vsel %vm4307_vm1, %v4318_v38, %v4320_v61 }
 0x3f6   :  { %v4325_v47 = vand.u32 65535, %v4321_v34  ;;  %v4326_v58 = vshrl.u32 %v4321_v34, 16  ;;  %vm4107_vm5 = vweird.f32 %v10670_v60  ;;  %v4213_v62 = vadd.s32 %v10975_v36, %v10973_v8 }
 0x3f7   :  { %v4112_v15 = vxor.u32 2147483648, %v4106_v14  ;;  %v4116_v26 = vsel %vm4114_vm0, %v4115_v44, %v4106_v14  ;;  %v7677_v50 = vadd.s32 4294967294, %v4225_v11  ;;  %v4441_v20 = vand.u32 2139095040, %v11036_v48 }
 0x3f8   :  { %v4310_v10 = vsel %vm4306_vm12, %v4290_v49, %v4293_v43  ;;  %v4328_v4 = vmul.u32 %v4326_v58, %v4323_v13  ;;  %v4347_v9 = vand.u32 65535, %v4317_v7  ;;  %v4244_v27 = vsel %vm4121_vm2, %v4243_v12, %v4219_v25 }
 0x3f9   :  { %v4113_v39 = vsel %vm4111_vm11, %v4098_v3, %v4112_v15  ;;  %vm7678_vm6 = vcmp.lt.s32.totalorder %v7677_v50, 0  ;;  %v4329_v16 = vmul.u32 %v4325_v47, %v4324_v51  ;;  %v4327_v19 = vmul.u32 %v4325_v47, %v4323_v13 }
 0x3fa   :  { %v4117_v57 = vsel %vm4110_vm14, %v4113_v39, %v4116_v26  ;;  %v4228_v36 = vsel %vm7678_vm6, 0, %v7677_v50  ;;  %v4350_v59 = vmul.u32 %v4348_v6, %v4323_v13  ;;  %v4331_v23 = vshll.u32 %v4328_v4, 16 }
 0x3fb   :  { %v4118_v8 = vsel %vm4107_vm5, nan, %v4117_v57  ;;  %v4229_v21 = vsub.s32 32, %v4228_v36  ;;  %v4230_v55 = vshll.u32 %v4221_v0, %v4228_v36  ;;  %v4233_v42 = vsub.s32 4294967266, %v4228_v36 }
 0x3fc   :  { %4431 = vst [vmem:[#allocation5 + $0x88] sm:$0xff] %v4118_v8  ;;  %v4246_v43 = vsel %vm11040_vm4, 0, %v4244_v27  ;;  %v4311_v22 = vsel %vm4309_vm13, %v11011_v30, 2102212464  ;;  %v4330_v32 = vmul.u32 %v4326_v58, %v4324_v51  ;;  %v4351_v18 = vmul.u32 %v4347_v9, %v4324_v51 }
 0x3fd   :  { %v4231_v25 = vshrl.u32 %v4213_v62, %v4229_v21  ;;  %v4234_v56 = vadd.s32 127, %v4233_v42  ;;  %v4333_v5 = vshll.u32 %v4329_v16, 16  ;;  %v4349_v38 = vmul.u32 %v4347_v9, %v4323_v13 }
 0x3fe   :  { %vm4335_vm7 = vc.u32 %v4327_v19, %v4331_v23  ;;  %v4337_v3 = vadd.s32 %v4331_v23, %v4327_v19  ;;  %v4353_v28 = vshll.u32 %v4350_v59, 16  ;;  %v4442_v0 = vshrl.u32 %v4441_v20, 23 }
 0x3ff   :  { %v4232_v17 = vor.u32 %v4231_v25, %v4230_v55  ;;  %v4235_v49 = vshll.u32 %v4234_v56, 23  ;;  %v4336_v7 = vsel %vm4335_vm7, 1, %v7835_v53  ;;  %v4352_v24 = vmul.u32 %v4348_v6, %v4324_v51 }
 0x400   :  { %v4332_v14 = vshrl.u32 %v4328_v4, 16  ;;  %v4338_v44 = vadd.s32 %v4336_v7, %v4330_v32  ;;  %vm4339_vm8 = vc.u32 %v4337_v3, %v4333_v5  ;;  %v4355_v41 = vshll.u32 %v4351_v18, 16 }
 0x401   :  { %v4236_v30 = vor.u32 4788187, %v4235_v49  ;;  %v4239_v61 = vcvt.s32.f32 %v4232_v17  ;;  %v4340_v11 = vsel %vm4339_vm8, 1, %v7835_v53  ;;  %vm4357_vm9 = vc.u32 %v4349_v38, %v4353_v28 }
 0x402   :  { %v4312_v13 = vsel %vm4308_vm15, %v11006_v63, %v4311_v22  ;;  %v4342_v12 = vadd.s32 %v4340_v11, %v4338_v44  ;;  %v4358_v34 = vsel %vm4357_vm9, 1, %v7835_v53  ;;  %v4359_v15 = vadd.s32 %v4353_v28, %v4349_v38 }
 0x403   :  { %v4237_v26 = vand.u32 2147483647, %v4236_v30  ;;  %v4334_v47 = vshrl.u32 %v4329_v16, 16  ;;  %v4360_v51 = vadd.s32 %v4358_v34, %v4352_v24  ;;  %v7682_v6 = vadd.s32 4294967169, %v4442_v0 }
 0x404   :  { %v4343_v58 = vadd.s32 %v4342_v12, %v4332_v14  ;;  %v4354_v62 = vshrl.u32 %v4350_v59, 16  ;;  %vm4361_vm10 = vc.u32 %v4359_v15, %v4355_v41  ;;  %v4263_v20 = vadd.s32 3, %v4246_v43 }
 0x405   :  { %v4240_v50 = vmul.f32 %v4239_v61, %v4237_v26  ;;  %v4362_v39 = vsel %vm4361_vm10, 1, %v7835_v53  ;;  %v4448_v4 = vadd.s32 1, %v7682_v6  ;;  %v4313_v9 = vsel %vm4307_vm1, %v4310_v10, %v4312_v13 }
 0x406   :  { %v4356_v63 = vshrl.u32 %v4351_v18, 16  ;;  %v4364_v57 = vadd.s32 %v4362_v39, %v4360_v51  ;;  %v4438_v27 = vand.u32 2147483647, %v11036_v48  ;;  %v11084_v36 = vadd.s32 %v4343_v58, %v4334_v47 }
 0x407   :  { %v4241_v8 = vxor.u32 2147483648, %v4240_v50  ;;  %v11086_v16 = vadd.s32 %v4359_v15, %v4355_v41  ;;  %vm4449_vm11 = vcmp.gt.s32.totalorder %v4448_v4, 0  ;;  %v11090_v55 = vand.u32 3, %v4263_v20 }
 0x408   :  { %v4365_v19 = vadd.s32 %v4364_v57, %v4354_v62  ;;  %v4450_v59 = vsel %vm4449_vm11, %v4448_v4, 0  ;;  %v4367_v23 = vmul.u32 %v11015_v52, %v4313_v9  ;;  %v4445_v43 = vand.u32 8388607, %v4438_v27 }
 0x409   :  { %v4242_v21 = vsel %vm4121_vm2, %v4241_v8, %v4240_v50  ;;  %v4452_v42 = vand.u32 31, %v4450_v59  ;;  %vm4369_vm12 = vc.u32 %v11084_v36, %v11086_v16  ;;  %v11100_v32 = vshrl.u32 %v4450_v59, 5 }
 0x40a   :  { %v4245_v45 = vsel %vm11040_vm4, %v10775_v40, %v4242_v21  ;;  %v4366_v10 = vadd.s32 %v4365_v19, %v4356_v63  ;;  %v11111_v41 = vadd.f32 1.5707964, %v10670_v60  ;;  %v4446_v30 = vor.u32 8388608, %v4445_v43 }
 0x40b   :  { %v4247_v22 = vmul.f32 %v4245_v45, %v4245_v45  ;;  %v4453_v18 = vsub.s32 32, %v4452_v42  ;;  %v4455_v56 = vshll.u32 %v7829_v29, %v4452_v42  ;;  %v4458_v5 = vshll.u32 %v7830_v31, %v4452_v42 }
 0x40c   :  { %v4370_v25 = vadd.s32 1, %v4366_v10  ;;  %v4461_v2 = vshll.u32 %v7831_v33, %v4452_v42  ;;  %v4464_v28 = vshll.u32 %v7832_v35, %v4452_v42  ;;  %v4467_v11 = vshll.u32 %v7833_v37, %v4452_v42 }
 0x40d   :  { %v4248_v38 = vmul.f32 -0.001358992, %v4247_v22  ;;  %v4255_v3 = vmul.f32 -0.00019511016, %v4247_v22  ;;  %v4456_v52 = vshrl.u32 %v7830_v31, %v4453_v18  ;;  %v4459_v17 = vshrl.u32 %v7831_v33, %v4453_v18 }
 0x40e   :  { %v4371_v0 = vsel %vm4369_vm12, %v4370_v25, %v4366_v10  ;;  %v4462_v49 = vshrl.u32 %v7832_v35, %v4453_v18  ;;  %v4465_v7 = vshrl.u32 %v7833_v37, %v4453_v18  ;;  %vm4266_vm13 = vcmp.eq.s32.totalorder %v11090_v55, 0 }
 0x40f   :  { %v4249_v24 = vadd.f32 0.041655596, %v4248_v38  ;;  %v4256_v14 = vadd.f32 0.008332121, %v4255_v3  ;;  %v4372_v44 = vadd.s32 %v4371_v0, %v4367_v23  ;;  %v11113_v61 = vor.u32 %v4456_v52, %v4455_v56 }
 0x410   :  { %v11116_v15 = vor.u32 %v4459_v17, %v4458_v5  ;;  %v4463_v26 = vor.u32 %v4462_v49, %v4461_v2  ;;  %v4466_v47 = vor.u32 %v4465_v7, %v4464_v28  ;;  %v4468_v51 = vshrl.u32 %v7834_v46, %v4453_v18 }
 0x411   :  { %v4250_v13 = vmul.f32 %v4249_v24, %v4247_v22  ;;  %v4257_v12 = vmul.f32 %v4256_v14, %v4247_v22  ;;  %v4373_v34 = vadd.s32 536870912, %v4372_v44  ;;  %vm4470_vm14 = vcmp.lt.s32.totalorder %v11100_v32, 1 }
 0x412   :  { %vm4265_vm15 = vcmp.lt.s32.totalorder %v11090_v55, 2  ;;  %vm4473_vm0 = vcmp.lt.s32.totalorder %v11100_v32, 4  ;;  %vm4269_vm1 = vcmp.eq.s32.totalorder %v11090_v55, 2  ;;  %v4469_v62 = vor.u32 %v4468_v51, %v4467_v11 }
 0x413   :  { %v4251_v60 = vadd.f32 -0.4999988, %v4250_v13  ;;  %v4258_v6 = vadd.f32 -0.16666654, %v4257_v12  ;;  %v11122_v58 = vshrl.u32 %v4373_v34, 30  ;;  %v11126_v50 = vshll.u32 %v4446_v30, 8 }
 0x414   :  { %v4593_v20 = vand.u32 2147483647, %v11111_v41  ;;  %vm4472_vm2 = vcmp.lt.s32.totalorder %v11100_v32, 3  ;;  %vm4471_vm3 = vcmp.lt.s32.totalorder %v11100_v32, 2  ;;  %v4478_v63 = vsel %vm4470_vm14, %v11113_v61, %v11116_v15 }
 0x415   :  { %v4252_v39 = vmul.f32 %v4251_v60, %v4247_v22  ;;  %v4259_v4 = vmul.f32 %v4258_v6, %v4247_v22  ;;  %v4375_v9 = vshll.u32 %v11122_v58, 30  ;;  %v4479_v57 = vsel %vm4473_vm0, %v4466_v47, 920167782 }
 0x416   :  { %v4483_v8 = vsel %vm4473_vm0, %v4469_v62, 1326507024  ;;  %v4482_v42 = vsel %vm4470_vm14, %v11116_v15, %v4463_v26  ;;  %v4480_v10 = vsel %vm4472_vm2, %v4463_v26, %v4479_v57  ;;  %v4488_v43 = vshrl.u32 %v11126_v50, 16 }
 0x417   :  { %v4253_v19 = vadd.f32 1.0, %v4252_v39  ;;  %v4260_v59 = vadd.f32 1.0, %v4259_v4  ;;  %v4376_v21 = vsub.s32 %v4372_v44, %v4375_v9  ;;  %v4484_v23 = vsel %vm4472_vm2, %v4466_v47, %v4483_v8 }
 0x418   :  { %v4596_v22 = vand.u32 2139095040, %v11111_v41  ;;  %v4454_v2 = vshrl.u32 %v7829_v29, %v4453_v18  ;;  %v4481_v38 = vsel %vm4471_vm3, %v4478_v63, %v4480_v10  ;;  %v4485_v3 = vsel %vm4471_vm3, %v4482_v42, %v4484_v23 }
 0x419   :  { %v4261_v25 = vmul.f32 %v4260_v59, %v4245_v45  ;;  %v4270_v56 = vxor.u32 2147483648, %v4253_v19  ;;  %vm4377_vm4 = vcmp.lt.s32.totalorder %v4376_v21, 0  ;;  %v4378_v5 = vsub.s32 0, %v4376_v21 }
 0x41a   :  { %v4487_v52 = vand.u32 65535, %v11126_v50  ;;  %v4489_v49 = vand.u32 65535, %v4485_v3  ;;  %vm4262_vm5 = vweird.f32 %v10775_v40  ;;  %v4490_v7 = vshrl.u32 %v4485_v3, 16 }
 0x41b   :  { %v4267_v28 = vxor.u32 2147483648, %v4261_v25  ;;  %v4271_v0 = vsel %vm4269_vm1, %v4270_v56, %v4261_v25  ;;  %v4379_v17 = vsel %vm4377_vm4, %v4378_v5, %v4376_v21  ;;  %v11160_v18 = vand.u32 8388607, %v4593_v20 }
 0x41c   :  { %v4380_v45 = vclz %v4379_v17  ;;  %v11164_v14 = vmul.u32 %v4489_v49, %v4488_v43  ;;  %v4512_v44 = vshrl.u32 %v4481_v38, 16  ;;  %v4597_v30 = vshrl.u32 %v4596_v22, 23 }
 0x41d   :  { %v4268_v24 = vsel %vm4266_vm13, %v4253_v19, %v4267_v28  ;;  %vm4276_vm6 = vcmp.lt.s32.totalorder %v10917_v1, 0  ;;  %v4491_v12 = vmul.u32 %v4489_v49, %v4487_v52  ;;  %v4492_v34 = vmul.u32 %v4490_v7, %v4487_v52 }
 0x41e   :  { %v4272_v11 = vsel %vm4265_vm15, %v4268_v24, %v4271_v0  ;;  %v7680_v13 = vadd.s32 4294967294, %v4380_v45  ;;  %v4368_v51 = vadd.s32 %v11086_v16, %v11084_v36  ;;  %v4474_v60 = vsel %vm4470_vm14, %v4454_v2, %v11113_v61 }
 0x41f   :  { %v4273_v47 = vsel %vm4262_vm5, nan, %v4272_v11  ;;  %v4511_v6 = vand.u32 65535, %v4481_v38  ;;  %v4475_v55 = vsel %vm4473_vm0, %v4463_v26, 2102212464  ;;  %v4494_v62 = vmul.u32 %v4490_v7, %v4488_v43 }
 0x420   :  { %vm7681_vm7 = vcmp.lt.s32.totalorder %v7680_v13, 0  ;;  %4432 = vst [vmem:[#allocation5 + $0x90] sm:$0xff] %v4273_v47  ;;  %v4495_v39 = vshll.u32 %v4492_v34, 16  ;;  %v4497_v9 = vshll.u32 %v11164_v14, 16  ;;  %v4514_v63 = vmul.u32 %v4512_v44, %v4487_v52 }
 0x421   :  { %v4383_v4 = vsel %vm7681_vm7, 0, %v7680_v13  ;;  %v7685_v57 = vadd.s32 4294967169, %v4597_v30  ;;  %v4398_v16 = vsub.s32 4, %v11122_v58  ;;  %v4476_v61 = vsel %vm4472_vm2, %v11116_v15, %v4475_v55 }
 0x422   :  { %v4384_v8 = vsub.s32 32, %v4383_v4  ;;  %v4385_v19 = vshll.u32 %v4376_v21, %v4383_v4  ;;  %v4388_v36 = vsub.s32 4294967266, %v4383_v4  ;;  %vm4499_vm8 = vc.u32 %v4491_v12, %v4495_v39 }
 0x423   :  { %v4500_v59 = vsel %vm4499_vm8, 1, %v7835_v53  ;;  %v4513_v26 = vmul.u32 %v4511_v6, %v4487_v52  ;;  %v4501_v23 = vadd.s32 %v4495_v39, %v4491_v12  ;;  %v4496_v25 = vshrl.u32 %v4492_v34, 16 }
 0x424   :  { %v4386_v42 = vshrl.u32 %v4368_v51, %v4384_v8  ;;  %v4389_v10 = vadd.s32 127, %v4388_v36  ;;  %v4502_v22 = vadd.s32 %v4500_v59, %v4494_v62  ;;  %v4515_v56 = vmul.u32 %v4511_v6, %v4488_v43 }
 0x425   :  { %v4516_v5 = vmul.u32 %v4512_v44, %v4488_v43  ;;  %v4517_v2 = vshll.u32 %v4514_v63, 16  ;;  %vm4503_vm9 = vc.u32 %v4501_v23, %v4497_v9  ;;  %v4603_v3 = vadd.s32 1, %v7685_v57 }
 0x426   :  { %v4387_v21 = vor.u32 %v4386_v42, %v4385_v19  ;;  %v4390_v38 = vshll.u32 %v4389_v10, 23  ;;  %v4399_v28 = vsel %vm4276_vm6, %v4398_v16, %v11122_v58  ;;  %v4504_v15 = vsel %vm4503_vm9, 1, %v7835_v53 }
 0x427   :  { %v4519_v0 = vshll.u32 %v4515_v56, 16  ;;  %vm4521_vm10 = vc.u32 %v4513_v26, %v4517_v2  ;;  %v4506_v49 = vadd.s32 %v4504_v15, %v4502_v22  ;;  %v4477_v43 = vsel %vm4471_vm3, %v4474_v60, %v4476_v61 }
 0x428   :  { %v4391_v52 = vor.u32 4788187, %v4390_v38  ;;  %v4394_v17 = vcvt.s32.f32 %v4387_v21  ;;  %v4522_v45 = vsel %vm4521_vm10, 1, %v7835_v53  ;;  %v4523_v7 = vadd.s32 %v4517_v2, %v4513_v26 }
 0x429   :  { %v4524_v24 = vadd.s32 %v4522_v45, %v4516_v5  ;;  %vm4604_vm11 = vcmp.gt.s32.totalorder %v4603_v3, 0  ;;  %v4498_v30 = vshrl.u32 %v11164_v14, 16  ;;  %v4507_v11 = vadd.s32 %v4506_v49, %v4496_v25 }
 0x42a   :  { %v4392_v44 = vand.u32 2147483647, %v4391_v52  ;;  %v4605_v58 = vsel %vm4604_vm11, %v4603_v3, 0  ;;  %vm11192_vm12 = vcmp.le.f32.partialorder %v4274_v54, 0.7853982  ;;  %v4518_v12 = vshrl.u32 %v4514_v63, 16 }
 0x42b   :  { %vm4525_vm13 = vc.u32 %v4523_v7, %v4519_v0  ;;  %v4607_v34 = vand.u32 31, %v4605_v58  ;;  %v4401_v32 = vsel %vm11192_vm12, 0, %v4399_v28  ;;  %v4531_v60 = vmul.u32 %v11126_v50, %v4477_v43 }
 0x42c   :  { %v4395_v47 = vmul.f32 %v4394_v17, %v4392_v44  ;;  %v4526_v51 = vsel %vm4525_vm13, 1, %v7835_v53  ;;  %v4520_v14 = vshrl.u32 %v4515_v56, 16  ;;  %v4601_v55 = vor.u32 8388608, %v11160_v18 }
 0x42d   :  { %v4528_v6 = vadd.s32 %v4526_v51, %v4524_v24  ;;  %v11201_v62 = vsub.s32 32, %v4607_v34  ;;  %v11203_v39 = vadd.s32 %v4507_v11, %v4498_v30  ;;  %v11205_v4 = vadd.s32 %v4523_v7, %v4519_v0 }
 0x42e   :  { %v4396_v54 = vxor.u32 2147483648, %v4395_v47  ;;  %v4610_v9 = vshll.u32 %v7829_v29, %v4607_v34  ;;  %v4613_v8 = vshll.u32 %v7830_v31, %v4607_v34  ;;  %v11215_v19 = vshrl.u32 %v4605_v58, 5 }
 0x42f   :  { %v4529_v63 = vadd.s32 %v4528_v6, %v4518_v12  ;;  %v4611_v57 = vshrl.u32 %v7830_v31, %v11201_v62  ;;  %v4614_v50 = vshrl.u32 %v7831_v33, %v11201_v62  ;;  %v4619_v36 = vshll.u32 %v7832_v35, %v4607_v34 }
 0x430   :  { %v4397_v18 = vsel %vm4276_vm6, %v4396_v54, %v4395_v47  ;;  %v4620_v16 = vshrl.u32 %v7833_v37, %v11201_v62  ;;  %v4616_v26 = vshll.u32 %v7831_v33, %v4607_v34  ;;  %v4617_v42 = vshrl.u32 %v7832_v35, %v11201_v62 }
 0x431   :  { %v4400_v61 = vsel %vm11192_vm12, %v10917_v1, %v4397_v18  ;;  %v4530_v59 = vadd.s32 %v4529_v63, %v4520_v14  ;;  %vm4533_vm14 = vc.u32 %v11203_v39, %v11205_v4  ;;  %v11228_v23 = vor.u32 %v4611_v57, %v4610_v9 }
 0x432   :  { %v4402_v10 = vmul.f32 %v4400_v61, %v4400_v61  ;;  %v4622_v22 = vshll.u32 %v7833_v37, %v4607_v34  ;;  %v11231_v56 = vor.u32 %v4614_v50, %v4613_v8  ;;  %v4621_v5 = vor.u32 %v4620_v16, %v4619_v36 }
 0x433   :  { %v4534_v25 = vadd.s32 1, %v4530_v59  ;;  %v4623_v2 = vshrl.u32 %v7834_v46, %v11201_v62  ;;  %vm4625_vm15 = vcmp.lt.s32.totalorder %v11215_v19, 1  ;;  %vm4628_vm0 = vcmp.lt.s32.totalorder %v11215_v19, 4 }
 0x434   :  { %v4403_v21 = vmul.f32 -0.001358992, %v4402_v10  ;;  %v4410_v38 = vmul.f32 -0.00019511016, %v4402_v10  ;;  %v4418_v3 = vadd.s32 3, %v4401_v32  ;;  %v11237_v15 = vor.u32 %v4617_v42, %v4616_v26 }
 0x435   :  { %v4535_v28 = vsel %vm4533_vm14, %v4534_v25, %v4530_v59  ;;  %v4624_v0 = vor.u32 %v4623_v2, %v4622_v22  ;;  %vm4627_vm1 = vcmp.lt.s32.totalorder %v11215_v19, 3  ;;  %vm4626_vm2 = vcmp.lt.s32.totalorder %v11215_v19, 2 }
 0x436   :  { %v4404_v52 = vadd.f32 0.041655596, %v4403_v21  ;;  %v4411_v17 = vadd.f32 0.008332121, %v4410_v38  ;;  %v4536_v49 = vadd.s32 %v4535_v28, %v4531_v60  ;;  %v4633_v45 = vsel %vm4625_vm15, %v11228_v23, %v11231_v56 }
 0x437   :  { %v4634_v43 = vsel %vm4628_vm0, %v4621_v5, 920167782  ;;  %v11247_v7 = vshll.u32 %v4601_v55, 8  ;;  %v4419_v11 = vand.u32 3, %v4418_v3  ;;  %v4637_v13 = vsel %vm4625_vm15, %v11231_v56, %v11237_v15 }
 0x438   :  { %v4405_v24 = vmul.f32 %v4404_v52, %v4402_v10  ;;  %v4412_v44 = vmul.f32 %v4411_v17, %v4402_v10  ;;  %v4537_v30 = vadd.s32 536870912, %v4536_v49  ;;  %v4635_v58 = vsel %vm4627_vm1, %v11237_v15, %v4634_v43 }
 0x439   :  { %v4638_v12 = vsel %vm4628_vm0, %v4624_v0, 1326507024  ;;  %v4636_v51 = vsel %vm4626_vm2, %v4633_v45, %v4635_v58  ;;  %v11263_v60 = vadd.f32 1.5707964, %v10775_v40  ;;  %v4642_v6 = vand.u32 65535, %v11247_v7 }
 0x43a   :  { %v4406_v34 = vadd.f32 -0.4999988, %v4405_v24  ;;  %v4413_v47 = vadd.f32 -0.16666654, %v4412_v44  ;;  %v11258_v32 = vshrl.u32 %v4537_v30, 30  ;;  %v4639_v14 = vsel %vm4627_vm1, %v4621_v5, %v4638_v12 }
 0x43b   :  { %v4667_v55 = vshrl.u32 %v4636_v51, 16  ;;  %vm4417_vm3 = vweird.f32 %v10917_v1  ;;  %vm4420_vm4 = vcmp.lt.s32.totalorder %v4419_v11, 2  ;;  %vm4421_vm5 = vcmp.eq.s32.totalorder %v4419_v11, 0 }
 0x43c   :  { %v4407_v54 = vmul.f32 %v4406_v34, %v4402_v10  ;;  %v4414_v9 = vmul.f32 %v4413_v47, %v4402_v10  ;;  %v4539_v63 = vshll.u32 %v11258_v32, 30  ;;  %v4640_v57 = vsel %vm4626_vm2, %v4637_v13, %v4639_v14 }
 0x43d   :  { %v4643_v40 = vshrl.u32 %v11247_v7, 16  ;;  %vm4424_vm6 = vcmp.eq.s32.totalorder %v4419_v11, 2  ;;  %v4644_v36 = vand.u32 65535, %v4640_v57  ;;  %v4645_v16 = vshrl.u32 %v4640_v57, 16 }
 0x43e   :  { %v4408_v8 = vadd.f32 1.0, %v4407_v54  ;;  %v4415_v50 = vadd.f32 1.0, %v4414_v9  ;;  %v4540_v18 = vsub.s32 %v4536_v49, %v4539_v63  ;;  %v4666_v59 = vand.u32 65535, %v4636_v51 }
 0x43f   :  { %v11273_v26 = vmul.u32 %v4667_v55, %v4642_v6  ;;  %v4532_v25 = vadd.s32 %v11205_v4, %v11203_v39  ;;  %v4646_v5 = vmul.u32 %v4644_v36, %v4642_v6  ;;  %v4647_v2 = vmul.u32 %v4645_v16, %v4642_v6 }
 0x440   :  { %v4416_v42 = vmul.f32 %v4415_v50, %v4400_v61  ;;  %v4425_v10 = vxor.u32 2147483648, %v4408_v8  ;;  %vm4541_vm7 = vcmp.lt.s32.totalorder %v4540_v18, 0  ;;  %v4542_v22 = vsub.s32 0, %v4540_v18 }
 0x441   :  { %v4648_v21 = vmul.u32 %v4644_v36, %v4643_v40  ;;  %v4609_v0 = vshrl.u32 %v7829_v29, %v11201_v62  ;;  %v4649_v17 = vmul.u32 %v4645_v16, %v4643_v40  ;;  %v4650_v49 = vshll.u32 %v4647_v2, 16 }
 0x442   :  { %v4422_v38 = vxor.u32 2147483648, %v4416_v42  ;;  %v4426_v3 = vsel %vm4424_vm6, %v4425_v10, %v4416_v42  ;;  %v4543_v28 = vsel %vm4541_vm7, %v4542_v22, %v4540_v18  ;;  %v4668_v43 = vmul.u32 %v4666_v59, %v4642_v6 }
 0x443   :  { %v4544_v52 = vclz %v4543_v28  ;;  %v4652_v45 = vshll.u32 %v4648_v21, 16  ;;  %v4670_v24 = vmul.u32 %v4666_v59, %v4643_v40  ;;  %v4672_v44 = vshll.u32 %v11273_v26, 16 }
 0x444   :  { %v4423_v61 = vsel %vm4421_vm5, %v4408_v8, %v4422_v38  ;;  %vm4440_vm8 = vcmp.lt.s32.totalorder %v11036_v48, 0  ;;  %vm4654_vm9 = vc.u32 %v4646_v5, %v4650_v49  ;;  %v4656_v30 = vadd.s32 %v4650_v49, %v4646_v5 }
 0x445   :  { %v4427_v39 = vsel %vm4420_vm4, %v4423_v61, %v4426_v3  ;;  %v7683_v4 = vadd.s32 4294967294, %v4544_v52  ;;  %v4630_v58 = vsel %vm4628_vm0, %v11237_v15, 2102212464  ;;  %v4655_v13 = vsel %vm4654_vm9, 1, %v7835_v53 }
 0x446   :  { %v4428_v62 = vsel %vm4417_vm3, nan, %v4427_v39  ;;  %v4671_v12 = vmul.u32 %v4667_v55, %v4643_v40  ;;  %v4651_v34 = vshrl.u32 %v4647_v2, 16  ;;  %v4657_v11 = vadd.s32 %v4655_v13, %v4649_v17 }
 0x447   :  { %4433 = vst [vmem:[#allocation5 + $0x98] sm:$0xff] %v4428_v62  ;;  %vm7684_vm10 = vcmp.lt.s32.totalorder %v7683_v4, 0  ;;  %vm4658_vm11 = vc.u32 %v4656_v30, %v4652_v45  ;;  %v4674_v14 = vshll.u32 %v4670_v24, 16  ;;  %vm4676_vm12 = vc.u32 %v4668_v43, %v4672_v44 }
 0x448   :  { %v4547_v47 = vsel %vm7684_vm10, 0, %v7683_v4  ;;  %v4659_v51 = vsel %vm4658_vm11, 1, %v7835_v53  ;;  %v4562_v57 = vsub.s32 4, %v11258_v32  ;;  %v4629_v15 = vsel %vm4625_vm15, %v4609_v0, %v11228_v23 }
 0x449   :  { %v4548_v6 = vsub.s32 32, %v4547_v47  ;;  %v4549_v54 = vshll.u32 %v4540_v18, %v4547_v47  ;;  %v4552_v9 = vsub.s32 4294967266, %v4547_v47  ;;  %v4661_v63 = vadd.s32 %v4659_v51, %v4657_v11 }
 0x44a   :  { %v4677_v55 = vsel %vm4676_vm12, 1, %v7835_v53  ;;  %v4748_v40 = vand.u32 2147483647, %v11263_v60  ;;  %v4631_v36 = vsel %vm4627_vm1, %v11231_v56, %v4630_v58  ;;  %v4678_v16 = vadd.s32 %v4672_v44, %v4668_v43 }
 0x44b   :  { %v4550_v8 = vshrl.u32 %v4532_v25, %v4548_v6  ;;  %v4553_v50 = vadd.s32 127, %v4552_v9  ;;  %v4653_v18 = vshrl.u32 %v4648_v21, 16  ;;  %v4662_v59 = vadd.s32 %v4661_v63, %v4651_v34 }
 0x44c   :  { %v4679_v42 = vadd.s32 %v4677_v55, %v4671_v12  ;;  %v4751_v10 = vand.u32 2139095040, %v11263_v60  ;;  %v4673_v23 = vshrl.u32 %v11273_v26, 16  ;;  %vm4680_vm13 = vc.u32 %v4678_v16, %v4674_v14 }
 0x44d   :  { %v4551_v22 = vor.u32 %v4550_v8, %v4549_v54  ;;  %v4554_v5 = vshll.u32 %v4553_v50, 23  ;;  %vm11303_vm14 = vcmp.le.f32.partialorder %v4438_v27, 0.7853982  ;;  %v4563_v56 = vsel %vm4440_vm8, %v4562_v57, %v11258_v32 }
 0x44e   :  { %v4681_v2 = vsel %vm4680_vm13, 1, %v7835_v53  ;;  %v4752_v21 = vshrl.u32 %v4751_v10, 23  ;;  %v4675_v28 = vshrl.u32 %v4670_v24, 16  ;;  %v4632_v26 = vsel %vm4626_vm2, %v4629_v15, %v4631_v36 }
 0x44f   :  { %v4555_v38 = vor.u32 4788187, %v4554_v5  ;;  %v4558_v3 = vcvt.s32.f32 %v4551_v22  ;;  %v4683_v0 = vadd.s32 %v4681_v2, %v4679_v42  ;;  %v4663_v52 = vadd.s32 %v4662_v59, %v4653_v18 }
 0x450   :  { %v4682_v17 = vadd.s32 %v4678_v16, %v4674_v14  ;;  %v7688_v27 = vadd.s32 4294967169, %v4752_v21  ;;  %v4565_v45 = vsel %vm11303_vm14, 0, %v4563_v56  ;;  %v4755_v32 = vand.u32 8388607, %v4748_v40 }
 0x451   :  { %v4556_v49 = vand.u32 2147483647, %v4555_v38  ;;  %v4684_v61 = vadd.s32 %v4683_v0, %v4673_v23  ;;  %v11318_v43 = vadd.f32 1.5707964, %v10917_v1  ;;  %v4582_v4 = vadd.s32 3, %v4565_v45 }
 0x452   :  { %v4758_v44 = vadd.s32 1, %v7688_v27  ;;  %v4686_v19 = vmul.u32 %v11247_v7, %v4632_v26  ;;  %vm4688_vm15 = vc.u32 %v4663_v52, %v4682_v17  ;;  %v4756_v58 = vor.u32 8388608, %v4755_v32 }
 0x453   :  { %v4559_v24 = vmul.f32 %v4558_v3, %v4556_v49  ;;  %v4685_v39 = vadd.s32 %v4684_v61, %v4675_v28  ;;  %v4906_v34 = vand.u32 2139095040, %v11318_v43  ;;  %v11331_v6 = vand.u32 3, %v4582_v4 }
 0x454   :  { %vm4759_vm0 = vcmp.gt.s32.totalorder %v4758_v44, 0  ;;  %v11333_v54 = vadd.s32 %v4682_v17, %v4663_v52  ;;  %v11335_v9 = vshll.u32 %v4756_v58, 8  ;;  %vm4595_vm2 = vcmp.lt.s32.totalorder %v11111_v41, 0 }
 0x455   :  { %v4560_v30 = vxor.u32 2147483648, %v4559_v24  ;;  %v4689_v62 = vadd.s32 1, %v4685_v39  ;;  %v4760_v13 = vsel %vm4759_vm0, %v4758_v44, 0  ;;  %v4907_v55 = vshrl.u32 %v4906_v34, 23 }
 0x456   :  { %v4762_v12 = vand.u32 31, %v4760_v13  ;;  %v11337_v57 = vshrl.u32 %v4760_v13, 5  ;;  %vm4588_vm1 = vcmp.eq.s32.totalorder %v11331_v6, 2  ;;  %v11351_v38 = vand.u32 65535, %v11335_v9 }
 0x457   :  { %v4561_v11 = vsel %vm4440_vm8, %v4560_v30, %v4559_v24  ;;  %v4690_v1 = vsel %vm4688_vm15, %v4689_v62, %v4685_v39  ;;  %v7691_v26 = vadd.s32 4294967169, %v4907_v55  ;;  %vm4585_vm3 = vcmp.eq.s32.totalorder %v11331_v6, 0 }
 0x458   :  { %v11327_v47 = vsel %vm11303_vm14, %v11036_v48, %v4561_v11  ;;  %v4691_v51 = vadd.s32 %v4690_v1, %v4686_v19  ;;  %v4763_v7 = vsub.s32 32, %v4762_v12  ;;  %v4765_v15 = vshll.u32 %v7829_v29, %v4762_v12 }
 0x459   :  { %v4566_v14 = vmul.f32 %v11327_v47, %v11327_v47  ;;  %v4768_v16 = vshll.u32 %v7830_v31, %v4762_v12  ;;  %v4771_v42 = vshll.u32 %v7831_v33, %v4762_v12  ;;  %v4774_v10 = vshll.u32 %v7832_v35, %v4762_v12 }
 0x45a   :  { %v4692_v63 = vadd.s32 536870912, %v4691_v51  ;;  %v4766_v36 = vshrl.u32 %v7830_v31, %v4763_v7  ;;  %v4769_v59 = vshrl.u32 %v7831_v33, %v4763_v7  ;;  %v4772_v23 = vshrl.u32 %v7832_v35, %v4763_v7 }
 0x45b   :  { %v4567_v8 = vmul.f32 -0.001358992, %v4566_v14  ;;  %v4574_v50 = vmul.f32 -0.00019511016, %v4566_v14  ;;  %v4775_v25 = vshrl.u32 %v7833_v37, %v4763_v7  ;;  %v4777_v2 = vshll.u32 %v7833_v37, %v4762_v12 }
 0x45c   :  { %v4693_v18 = vshrl.u32 %v4692_v63, 30  ;;  %v4778_v21 = vshrl.u32 %v7834_v46, %v4763_v7  ;;  %v4764_v0 = vshrl.u32 %v7829_v29, %v4763_v7  ;;  %v4767_v17 = vor.u32 %v4766_v36, %v4765_v15 }
 0x45d   :  { %v4568_v22 = vadd.f32 0.041655596, %v4567_v8  ;;  %v4575_v5 = vadd.f32 0.008332121, %v4574_v50  ;;  %v4770_v27 = vor.u32 %v4769_v59, %v4768_v16  ;;  %v4776_v49 = vor.u32 %v4775_v25, %v4774_v10 }
 0x45e   :  { %v4694_v56 = vshll.u32 %v4693_v18, 30  ;;  %vm4584_vm4 = vcmp.lt.s32.totalorder %v11331_v6, 2  ;;  %v4773_v32 = vor.u32 %v4772_v23, %v4771_v42  ;;  %vm4780_vm5 = vcmp.lt.s32.totalorder %v11337_v57, 1 }
 0x45f   :  { %v4569_v3 = vmul.f32 %v4568_v22, %v4566_v14  ;;  %v4576_v28 = vmul.f32 %v4575_v5, %v4566_v14  ;;  %vm4581_vm6 = vweird.f32 %v11036_v48  ;;  %v4779_v24 = vor.u32 %v4778_v21, %v4777_v2 }
 0x460   :  { %v11356_v52 = vsub.s32 %v4691_v51, %v4694_v56  ;;  %vm4783_vm8 = vcmp.lt.s32.totalorder %v11337_v57, 4  ;;  %vm11366_vm9 = vcmp.le.f32.partialorder %v4593_v20, 0.7853982  ;;  %v4717_v30 = vsub.s32 4, %v4693_v18 }
 0x461   :  { %v4570_v45 = vadd.f32 -0.4999988, %v4569_v3  ;;  %v4577_v61 = vadd.f32 -0.16666654, %v4576_v28  ;;  %vm4782_vm10 = vcmp.lt.s32.totalorder %v11337_v57, 3  ;;  %vm4781_vm11 = vcmp.lt.s32.totalorder %v11337_v57, 2 }
 0x462   :  { %vm4696_vm7 = vcmp.lt.s32.totalorder %v11356_v52, 0  ;;  %v4697_v44 = vsub.s32 0, %v11356_v52  ;;  %v4788_v58 = vsel %vm4780_vm5, %v4767_v17, %v4770_v27  ;;  %v4789_v13 = vsel %vm4783_vm8, %v4776_v49, 920167782 }
 0x463   :  { %v4571_v39 = vmul.f32 %v4570_v45, %v4566_v14  ;;  %v4578_v4 = vmul.f32 %v4577_v61, %v4566_v14  ;;  %v4798_v20 = vshrl.u32 %v11335_v9, 16  ;;  %v4785_v1 = vsel %vm4783_vm8, %v4773_v32, 2102212464 }
 0x464   :  { %v4698_v62 = vsel %vm4696_vm7, %v4697_v44, %v11356_v52  ;;  %v4790_v51 = vsel %vm4782_vm10, %v4773_v32, %v4789_v13  ;;  %v4792_v7 = vsel %vm4780_vm5, %v4770_v27, %v4773_v32  ;;  %v4793_v14 = vsel %vm4783_vm8, %v4779_v24, 1326507024 }
 0x465   :  { %v4572_v12 = vadd.f32 1.0, %v4571_v39  ;;  %v4579_v34 = vadd.f32 1.0, %v4578_v4  ;;  %v4699_v11 = vclz %v4698_v62  ;;  %v4791_v8 = vsel %vm4781_vm11, %v4788_v58, %v4790_v51 }
 0x466   :  { %v11391_v50 = vsel %vm4595_vm2, %v4717_v30, %v4693_v18  ;;  %v4784_v36 = vsel %vm4780_vm5, %v4764_v0, %v4767_v17  ;;  %v4794_v16 = vsel %vm4782_vm10, %v4776_v49, %v4793_v14  ;;  %v4913_v59 = vadd.s32 1, %v7691_v26 }
 0x467   :  { %v4580_v63 = vmul.f32 %v4579_v34, %v11327_v47  ;;  %v4589_v15 = vxor.u32 2147483648, %v4572_v12  ;;  %v7686_v55 = vadd.s32 4294967294, %v4699_v11  ;;  %v4786_v10 = vsel %vm4782_vm10, %v4770_v27, %v4785_v1 }
 0x468   :  { %v4795_v18 = vsel %vm4781_vm11, %v4792_v7, %v4794_v16  ;;  %v4821_v5 = vand.u32 65535, %v4791_v8  ;;  %v4822_v23 = vshrl.u32 %v4791_v8, 16  ;;  %v4720_v28 = vsel %vm11366_vm9, 0, %v11391_v50 }
 0x469   :  { %v4586_v42 = vxor.u32 2147483648, %v4580_v63  ;;  %v4590_v47 = vsel %vm4588_vm1, %v4589_v15, %v4580_v63  ;;  %vm7687_vm12 = vcmp.lt.s32.totalorder %v7686_v55, 0  ;;  %v4903_v0 = vand.u32 2147483647, %v11318_v43 }
 0x46a   :  { %v4702_v22 = vsel %vm7687_vm12, 0, %v7686_v55  ;;  %vm4914_vm13 = vcmp.gt.s32.totalorder %v4913_v59, 0  ;;  %v4799_v49 = vand.u32 65535, %v4795_v18  ;;  %v4800_v6 = vshrl.u32 %v4795_v18, 16 }
 0x46b   :  { %v4587_v25 = vsel %vm4585_vm3, %v4572_v12, %v4586_v42  ;;  %v4703_v56 = vsub.s32 32, %v4702_v22  ;;  %v4704_v2 = vshll.u32 %v11356_v52, %v4702_v22  ;;  %v4707_v21 = vsub.s32 4294967266, %v4702_v22 }
 0x46c   :  { %v4591_v3 = vsel %vm4584_vm4, %v4587_v25, %v4590_v47  ;;  %v11417_v52 = vsel %vm4781_vm11, %v4784_v36, %v4786_v10  ;;  %v4824_v45 = vmul.u32 %v4822_v23, %v11351_v38  ;;  %v4825_v61 = vmul.u32 %v4821_v5, %v4798_v20 }
 0x46d   :  { %v4592_v26 = vsel %vm4581_vm6, nan, %v4591_v3  ;;  %v4705_v17 = vshrl.u32 %v11333_v54, %v4703_v56  ;;  %v4708_v27 = vadd.s32 127, %v4707_v21  ;;  %v4803_v24 = vmul.u32 %v4799_v49, %v4798_v20 }
 0x46e   :  { %5059 = vst [vmem:[#allocation5 + $0x140] sm:$0xff] %v4592_v26  ;;  %v4823_v39 = vmul.u32 %v4821_v5, %v11351_v38  ;;  %v4801_v48 = vmul.u32 %v4799_v49, %v11351_v38  ;;  %v4802_v54 = vmul.u32 %v4800_v6, %v11351_v38  ;;  %v4827_v4 = vshll.u32 %v4824_v45, 16 }
 0x46f   :  { %v4706_v32 = vor.u32 %v4705_v17, %v4704_v2  ;;  %v4709_v44 = vshll.u32 %v4708_v27, 23  ;;  %v4915_v30 = vsel %vm4914_vm13, %v4913_v59, 0  ;;  %v4804_v58 = vmul.u32 %v4800_v6, %v4798_v20 }
 0x470   :  { %v4826_v13 = vmul.u32 %v4822_v23, %v4798_v20  ;;  %v4805_v12 = vshll.u32 %v4802_v54, 16  ;;  %v4807_v34 = vshll.u32 %v4803_v24, 16  ;;  %v4828_v11 = vshrl.u32 %v4824_v45, 16 }
 0x471   :  { %v4710_v57 = vor.u32 4788187, %v4709_v44  ;;  %v4713_v62 = vcvt.s32.f32 %v4706_v32  ;;  %v4829_v1 = vshll.u32 %v4825_v61, 16  ;;  %v4806_v7 = vshrl.u32 %v4802_v54, 16 }
 0x472   :  { %vm4831_vm14 = vc.u32 %v4823_v39, %v4827_v4  ;;  %v4833_v14 = vadd.s32 %v4827_v4, %v4823_v39  ;;  %vm4809_vm15 = vc.u32 %v4801_v48, %v4805_v12  ;;  %v4811_v63 = vadd.s32 %v4805_v12, %v4801_v48 }
 0x473   :  { %v4711_v51 = vand.u32 2147483647, %v4710_v57  ;;  %v4832_v15 = vsel %vm4831_vm14, 1, %v7835_v53  ;;  %v4917_v38 = vand.u32 31, %v4915_v30  ;;  %v4810_v8 = vsel %vm4809_vm15, 1, %v7835_v53 }
 0x474   :  { %v4834_v50 = vadd.s32 %v4832_v15, %v4826_v13  ;;  %vm4835_vm0 = vc.u32 %v4833_v14, %v4829_v1  ;;  %v4812_v36 = vadd.s32 %v4810_v8, %v4804_v58  ;;  %vm4813_vm1 = vc.u32 %v4811_v63, %v4807_v34 }
 0x475   :  { %v4714_v55 = vmul.f32 %v4713_v62, %v4711_v51  ;;  %v4830_v20 = vshrl.u32 %v4825_v61, 16  ;;  %v4836_v16 = vsel %vm4835_vm0, 1, %v7835_v53  ;;  %v4814_v42 = vsel %vm4813_vm1, 1, %v7835_v53 }
 0x476   :  { %v4838_v47 = vadd.s32 %v4836_v16, %v4834_v50  ;;  %v11428_v10 = vsub.s32 32, %v4917_v38  ;;  %v4808_v22 = vshrl.u32 %v4803_v24, 16  ;;  %v4816_v18 = vadd.s32 %v4814_v42, %v4812_v36 }
 0x477   :  { %v4715_v59 = vxor.u32 2147483648, %v4714_v55  ;;  %v4841_v5 = vmul.u32 %v11335_v9, %v11417_v52  ;;  %v4910_v23 = vand.u32 8388607, %v4903_v0  ;;  %v4737_v56 = vadd.s32 3, %v4720_v28 }
 0x478   :  { %v4839_v2 = vadd.s32 %v4838_v47, %v4828_v11  ;;  %v11436_v21 = vshrl.u32 %v4915_v30, 5  ;;  %v4817_v26 = vadd.s32 %v4816_v18, %v4806_v7  ;;  %v11441_v17 = vadd.s32 %v4833_v14, %v4829_v1 }
 0x479   :  { %v4716_v25 = vsel %vm4595_vm2, %v4715_v59, %v4714_v55  ;;  %v4923_v27 = vshll.u32 %v7830_v31, %v4917_v38  ;;  %v4924_v52 = vshrl.u32 %v7831_v33, %v11428_v10  ;;  %v4926_v6 = vshll.u32 %v7831_v33, %v4917_v38 }
 0x47a   :  { %v4719_v3 = vsel %vm11366_vm9, %v11111_v41, %v4716_v25  ;;  %v4840_v49 = vadd.s32 %v4839_v2, %v4830_v20  ;;  %v11447_v28 = vadd.s32 %v4817_v26, %v4808_v22  ;;  %v4927_v45 = vshrl.u32 %v7832_v35, %v11428_v10 }
 0x47b   :  { %v4721_v9 = vmul.f32 %v4719_v3, %v4719_v3  ;;  %v4929_v19 = vshll.u32 %v7832_v35, %v4917_v38  ;;  %v4930_v61 = vshrl.u32 %v7833_v37, %v11428_v10  ;;  %v4932_v39 = vshll.u32 %v7833_v37, %v4917_v38 }
 0x47c   :  { %v4844_v24 = vadd.s32 1, %v4840_v49  ;;  %vm4843_vm2 = vc.u32 %v11447_v28, %v11441_v17  ;;  %v4920_v48 = vshll.u32 %v7829_v29, %v4917_v38  ;;  %v4921_v54 = vshrl.u32 %v7830_v31, %v11428_v10 }
 0x47d   :  { %v4722_v32 = vmul.f32 -0.001358992, %v4721_v9  ;;  %v4729_v44 = vmul.f32 -0.00019511016, %v4721_v9  ;;  %v4933_v4 = vshrl.u32 %v7834_v46, %v11428_v10  ;;  %v11462_v58 = vor.u32 %v4924_v52, %v4923_v27 }
 0x47e   :  { %v4845_v62 = vsel %vm4843_vm2, %v4844_v24, %v4840_v49  ;;  %v11464_v12 = vor.u32 %v4927_v45, %v4926_v6  ;;  %v4931_v34 = vor.u32 %v4930_v61, %v4929_v19  ;;  %v4738_v7 = vand.u32 3, %v4737_v56 }
 0x47f   :  { %v4723_v30 = vadd.f32 0.041655596, %v4722_v32  ;;  %v4730_v57 = vadd.f32 0.008332121, %v4729_v44  ;;  %v4846_v13 = vadd.s32 %v4845_v62, %v4841_v5  ;;  %v4934_v11 = vor.u32 %v4933_v4, %v4932_v39 }
 0x480   :  { %vm4935_vm3 = vcmp.lt.s32.totalorder %v11436_v21, 1  ;;  %v4911_v63 = vor.u32 8388608, %v4910_v23  ;;  %v11467_v15 = vor.u32 %v4921_v54, %v4920_v48  ;;  %vm4938_vm4 = vcmp.lt.s32.totalorder %v11436_v21, 4 }
 0x481   :  { %v4724_v1 = vmul.f32 %v4723_v30, %v4721_v9  ;;  %v4731_v51 = vmul.f32 %v4730_v57, %v4721_v9  ;;  %v4847_v14 = vadd.s32 536870912, %v4846_v13  ;;  %vm4936_vm5 = vcmp.lt.s32.totalorder %v11436_v21, 2 }
 0x482   :  { %vm4937_vm6 = vcmp.lt.s32.totalorder %v11436_v21, 3  ;;  %v4944_v50 = vsel %vm4938_vm4, %v4931_v34, 920167782  ;;  %v4947_v36 = vsel %vm4935_vm3, %v11462_v58, %v11464_v12  ;;  %v4948_v20 = vsel %vm4938_vm4, %v4934_v11, 1326507024 }
 0x483   :  { %v4725_v38 = vadd.f32 -0.4999988, %v4724_v1  ;;  %v4732_v55 = vadd.f32 -0.16666654, %v4731_v51  ;;  %v11472_v8 = vshrl.u32 %v4847_v14, 30  ;;  %vm4739_vm7 = vcmp.lt.s32.totalorder %v4738_v7, 2 }
 0x484   :  { %v4943_v47 = vsel %vm4935_vm3, %v11467_v15, %v11462_v58  ;;  %v4945_v22 = vsel %vm4937_vm6, %v11464_v12, %v4944_v50  ;;  %v4949_v18 = vsel %vm4937_vm6, %v4931_v34, %v4948_v20  ;;  %v11494_v56 = vshll.u32 %v4911_v63, 8 }
 0x485   :  { %v4726_v16 = vmul.f32 %v4725_v38, %v4721_v9  ;;  %v4733_v59 = vmul.f32 %v4732_v55, %v4721_v9  ;;  %v4849_v42 = vshll.u32 %v11472_v8, 30  ;;  %v4950_v25 = vsel %vm4936_vm5, %v4947_v36, %v4949_v18  ;;  %v7768_v38 = vld [vmem:[#allocation5] sm:$0xff] }
 0x486   :  { %vm4743_vm8 = vcmp.eq.s32.totalorder %v4738_v7, 2  ;;  %v4954_v26 = vand.u32 65535, %v4950_v25  ;;  %v4955_v27 = vshrl.u32 %v4950_v25, 16  ;;  %v4946_v52 = vsel %vm4936_vm5, %v4943_v47, %v4945_v22 }
 0x487   :  { %v4727_v5 = vadd.f32 1.0, %v4726_v16  ;;  %v4734_v23 = vadd.f32 1.0, %v4733_v59  ;;  %v4850_v2 = vsub.s32 %v4846_v13, %v4849_v42  ;;  %v4952_v6 = vand.u32 65535, %v11494_v56 }
 0x488   :  { %vm4740_vm9 = vcmp.eq.s32.totalorder %v4738_v7, 0  ;;  %v4953_v19 = vshrl.u32 %v11494_v56, 16  ;;  %vm4736_vm11 = vweird.f32 %v11111_v41  ;;  %v4976_v34 = vand.u32 65535, %v4946_v52 }
 0x489   :  { %v4735_v9 = vmul.f32 %v4734_v23, %v4719_v3  ;;  %v4744_v49 = vxor.u32 2147483648, %v4727_v5  ;;  %vm4851_vm10 = vcmp.lt.s32.totalorder %v4850_v2, 0  ;;  %v4852_v45 = vsub.s32 0, %v4850_v2 }
 0x48a   :  { %v4956_v44 = vmul.u32 %v4954_v26, %v4952_v6  ;;  %v4957_v24 = vmul.u32 %v4955_v27, %v4952_v6  ;;  %v4958_v48 = vmul.u32 %v4954_v26, %v4953_v19  ;;  %v4977_v3 = vshrl.u32 %v4946_v52, 16 }
 0x48b   :  { %v4741_v61 = vxor.u32 2147483648, %v4735_v9  ;;  %v4745_v32 = vsel %vm4743_vm8, %v4744_v49, %v4735_v9  ;;  %v4853_v39 = vsel %vm4851_vm10, %v4852_v45, %v4850_v2  ;;  %v4959_v30 = vmul.u32 %v4955_v27, %v4953_v19 }
 0x48c   :  { %v4854_v4 = vclz %v4853_v39  ;;  %v4960_v57 = vshll.u32 %v4957_v24, 16  ;;  %v4962_v13 = vshll.u32 %v4958_v48, 16  ;;  %v4842_v14 = vadd.s32 %v11441_v17, %v11447_v28 }
 0x48d   :  { %v4742_v54 = vsel %vm4740_vm9, %v4727_v5, %v4741_v61  ;;  %v4979_v63 = vmul.u32 %v4977_v3, %v4952_v6  ;;  %v11505_v55 = vmul.f32 16.0, %v7768_v38  ;;  %v4961_v50 = vshrl.u32 %v4957_v24, 16 }
 0x48e   :  { %v4746_v62 = vsel %vm4739_vm7, %v4742_v54, %v4745_v32  ;;  %v7689_v1 = vadd.s32 4294967294, %v4854_v4  ;;  %vm4964_vm12 = vc.u32 %v4956_v44, %v4960_v57  ;;  %v4966_v51 = vadd.s32 %v4960_v57, %v4956_v44 }
 0x48f   :  { %v4747_v11 = vsel %vm4736_vm11, nan, %v4746_v62  ;;  %v4965_v41 = vsel %vm4964_vm12, 1, %v7835_v53  ;;  %v4978_v16 = vmul.u32 %v4976_v34, %v4952_v6  ;;  %v4980_v59 = vmul.u32 %v4976_v34, %v4953_v19 }
 0x490   :  { %5060 = vst [vmem:[#allocation5 + $0x148] sm:$0xff] %v4747_v11  ;;  %vm7690_vm13 = vcmp.lt.s32.totalorder %v7689_v1, 0  ;;  %v4967_v7 = vadd.s32 %v4965_v41, %v4959_v30  ;;  %vm4968_vm14 = vc.u32 %v4966_v51, %v4962_v13  ;;  %vm4750_vm15 = vcmp.lt.s32.totalorder %v11263_v60, 0 }
 0x491   :  { %v4857_v36 = vsel %vm7690_vm13, 0, %v7689_v1  ;;  %v4969_v20 = vsel %vm4968_vm14, 1, %v7835_v53  ;;  %v4919_v28 = vshrl.u32 %v7829_v29, %v11428_v10  ;;  %v4981_v18 = vmul.u32 %v4977_v3, %v4953_v19 }
 0x492   :  { %v4858_v42 = vsub.s32 32, %v4857_v36  ;;  %v4859_v47 = vshll.u32 %v4850_v2, %v4857_v36  ;;  %v4862_v22 = vsub.s32 4294967266, %v4857_v36  ;;  %v4971_v17 = vadd.s32 %v4969_v20, %v4967_v7 }
 0x493   :  { %v4982_v5 = vshll.u32 %v4979_v63, 16  ;;  %v4872_v26 = vsub.s32 4, %v11472_v8  ;;  %v4940_v27 = vsel %vm4938_vm4, %v11464_v12, 2102212464  ;;  %v4963_v9 = vshrl.u32 %v4958_v48, 16 }
 0x494   :  { %v4860_v23 = vshrl.u32 %v4842_v14, %v4858_v42  ;;  %v4863_v25 = vadd.s32 127, %v4862_v22  ;;  %v4984_v49 = vshll.u32 %v4980_v59, 16  ;;  %v4972_v45 = vadd.s32 %v4971_v17, %v4961_v50  ;;  %v7769_v14 = vld [vmem:[#allocation5 + $0x8] sm:$0xff] }
 0x495   :  { %vm4986_vm0 = vc.u32 %v4978_v16, %v4982_v5  ;;  %v4988_v2 = vadd.s32 %v4982_v5, %v4978_v16  ;;  %v4939_v10 = vsel %vm4935_vm3, %v4919_v28, %v11467_v15  ;;  %v4983_v19 = vshrl.u32 %v4979_v63, 16 }
 0x496   :  { %v4861_v52 = vor.u32 %v4860_v23, %v4859_v47  ;;  %v4864_v6 = vshll.u32 %v4863_v25, 23  ;;  %v4987_v61 = vsel %vm4986_vm0, 1, %v7835_v53  ;;  %v4941_v12 = vsel %vm4937_vm6, %v11462_v58, %v4940_v27 }
 0x497   :  { %v4989_v32 = vadd.s32 %v4987_v61, %v4981_v18  ;;  %vm4990_vm1 = vc.u32 %v4988_v2, %v4984_v49  ;;  %v4873_v48 = vsel %vm4750_vm15, %v4872_v26, %v11472_v8  ;;  %v4985_v3 = vshrl.u32 %v4980_v59, 16 }
 0x498   :  { %v4865_v44 = vor.u32 4788187, %v4864_v6  ;;  %v4868_v24 = vcvt.s32.f32 %v4861_v52  ;;  %v4991_v39 = vsel %vm4990_vm1, 1, %v7835_v53  ;;  %v4973_v30 = vadd.s32 %v4972_v45, %v4963_v9 }
 0x499   :  { %v4993_v54 = vadd.s32 %v4991_v39, %v4989_v32  ;;  %v4992_v15 = vadd.s32 %v4988_v2, %v4984_v49  ;;  %v5070_v57 = vand.u32 2139095040, %v11505_v55  ;;  %vm11529_vm2 = vcmp.le.f32.partialorder %v4748_v40, 0.7853982 }
 0x49a   :  { %v4866_v4 = vand.u32 2147483647, %v4865_v44  ;;  %v4942_v58 = vsel %vm4936_vm5, %v4939_v10, %v4941_v12  ;;  %v5067_v34 = vand.u32 2147483647, %v11505_v55  ;;  %v4875_v11 = vsel %vm11529_vm2, 0, %v4873_v48 }
 0x49b   :  { %v4994_v13 = vadd.s32 %v4993_v54, %v4983_v19  ;;  %v5071_v1 = vshrl.u32 %v5070_v57, 23  ;;  %v11538_v41 = vmul.f32 16.0, %v7769_v14  ;;  %v4996_v40 = vmul.u32 %v11494_v56, %v4942_v58 }
 0x49c   :  { %v4869_v8 = vmul.f32 %v4868_v24, %v4866_v4  ;;  %vm4998_vm3 = vc.u32 %v4973_v30, %v4992_v15  ;;  %v4892_v50 = vadd.s32 3, %v4875_v11  ;;  %v5074_v7 = vand.u32 8388607, %v5067_v34 }
 0x49d   :  { %v4995_v51 = vadd.s32 %v4994_v13, %v4985_v3  ;;  %v7694_v38 = vadd.s32 4294967169, %v5071_v1  ;;  %v5225_v36 = vand.u32 2139095040, %v11538_v41  ;;  %v11551_v49 = vadd.s32 %v4992_v15, %v4973_v30 }
 0x49e   :  { %v4870_v63 = vxor.u32 2147483648, %v4869_v8  ;;  %v11549_v22 = vand.u32 3, %v4892_v50  ;;  %v5075_v17 = vor.u32 8388608, %v5074_v7  ;;  %vm4891_vm8 = vweird.f32 %v11263_v60 }
 0x49f   :  { %v4999_v21 = vadd.s32 1, %v4995_v51  ;;  %v5077_v16 = vadd.s32 1, %v7694_v38  ;;  %v5226_v18 = vshrl.u32 %v5225_v36, 23  ;;  %v5222_v57 = vand.u32 2147483647, %v11538_v41 }
 0x4a0   :  { %v4871_v20 = vsel %vm4750_vm15, %v4870_v63, %v4869_v8  ;;  %vm4898_vm5 = vcmp.eq.s32.totalorder %v11549_v22, 2  ;;  %v11558_v45 = vshll.u32 %v5075_v17, 8  ;;  %vm4895_vm6 = vcmp.eq.s32.totalorder %v11549_v22, 0 }
 0x4a1   :  { %v4874_v59 = vsel %vm11529_vm2, %v11263_v60, %v4871_v20  ;;  %v5000_v42 = vsel %vm4998_vm3, %v4999_v21, %v4995_v51  ;;  %vm5078_vm4 = vcmp.gt.s32.totalorder %v5077_v16, 0  ;;  %v7697_v61 = vadd.s32 4294967169, %v5226_v18 }
 0x4a2   :  { %v4876_v47 = vmul.f32 %v4874_v59, %v4874_v59  ;;  %v5001_v56 = vadd.s32 %v5000_v42, %v4996_v40  ;;  %v5079_v28 = vsel %vm5078_vm4, %v5077_v16, 0  ;;  %vm4894_vm7 = vcmp.lt.s32.totalorder %v11549_v22, 2 }
 0x4a3   :  { %v5081_v26 = vand.u32 31, %v5079_v28  ;;  %v11556_v52 = vshrl.u32 %v5079_v28, 5  ;;  %v11574_v15 = vand.u32 65535, %v11558_v45  ;;  %v11577_v62 = vadd.s32 1, %v7697_v61 }
 0x4a4   :  { %v4877_v5 = vmul.f32 -0.001358992, %v4876_v47  ;;  %v4884_v23 = vmul.f32 -0.00019511016, %v4876_v47  ;;  %v5002_v25 = vadd.s32 536870912, %v5001_v56  ;;  %vm4905_vm11 = vcmp.lt.s32.totalorder %v11318_v43, 0 }
 0x4a5   :  { %v5082_v6 = vsub.s32 32, %v5081_v26  ;;  %v5084_v44 = vshll.u32 %v7829_v29, %v5081_v26  ;;  %v5087_v12 = vshll.u32 %v7830_v31, %v5081_v26  ;;  %v5090_v48 = vshll.u32 %v7831_v33, %v5081_v26 }
 0x4a6   :  { %v4878_v27 = vadd.f32 0.041655596, %v4877_v5  ;;  %v4885_v9 = vadd.f32 0.008332121, %v4884_v23  ;;  %v11553_v2 = vshrl.u32 %v5002_v25, 30  ;;  %vm5099_vm9 = vcmp.lt.s32.totalorder %v11556_v52, 1 }
 0x4a7   :  { %v5085_v24 = vshrl.u32 %v7830_v31, %v5082_v6  ;;  %v5088_v39 = vshrl.u32 %v7831_v33, %v5082_v6  ;;  %v5091_v30 = vshrl.u32 %v7832_v35, %v5082_v6  ;;  %v5093_v51 = vshll.u32 %v7832_v35, %v5081_v26 }
 0x4a8   :  { %v4879_v10 = vmul.f32 %v4878_v27, %v4876_v47  ;;  %v4886_v19 = vmul.f32 %v4885_v9, %v4876_v47  ;;  %v5004_v32 = vshll.u32 %v11553_v2, 30  ;;  %v5094_v14 = vshrl.u32 %v7833_v37, %v5082_v6 }
 0x4a9   :  { %v5086_v11 = vor.u32 %v5085_v24, %v5084_v44  ;;  %v5089_v1 = vor.u32 %v5088_v39, %v5087_v12  ;;  %v5092_v50 = vor.u32 %v5091_v30, %v5090_v48  ;;  %v5096_v36 = vshll.u32 %v7833_v37, %v5081_v26 }
 0x4aa   :  { %v4880_v3 = vadd.f32 -0.4999988, %v4879_v10  ;;  %v4887_v54 = vadd.f32 -0.16666654, %v4886_v19  ;;  %v11568_v4 = vsub.s32 %v5001_v56, %v5004_v32  ;;  %v5095_v7 = vor.u32 %v5094_v14, %v5093_v51 }
 0x4ab   :  { %v5097_v20 = vshrl.u32 %v7834_v46, %v5082_v6  ;;  %vm5101_vm12 = vcmp.lt.s32.totalorder %v11556_v52, 3  ;;  %vm5102_vm13 = vcmp.lt.s32.totalorder %v11556_v52, 4  ;;  %vm11591_vm14 = vcmp.le.f32.partialorder %v4903_v0, 0.7853982 }
 0x4ac   :  { %v4881_v58 = vmul.f32 %v4880_v3, %v4876_v47  ;;  %v4888_v13 = vmul.f32 %v4887_v54, %v4876_v47  ;;  %vm5006_vm10 = vcmp.lt.s32.totalorder %v11568_v4, 0  ;;  %v5007_v8 = vsub.s32 0, %v11568_v4 }
 0x4ad   :  { %vm5100_vm15 = vcmp.lt.s32.totalorder %v11556_v52, 2  ;;  %v5107_v17 = vsel %vm5099_vm9, %v5086_v11, %v5089_v1  ;;  %v5027_v5 = vsub.s32 4, %v11553_v2  ;;  %v5083_v0 = vshrl.u32 %v7829_v29, %v5082_v6 }
 0x4ae   :  { %v4882_v63 = vadd.f32 1.0, %v4881_v58  ;;  %v4889_v40 = vadd.f32 1.0, %v4888_v13  ;;  %v5008_v38 = vsel %vm5006_vm10, %v5007_v8, %v11568_v4  ;;  %v5098_v23 = vor.u32 %v5097_v20, %v5096_v36 }
 0x4af   :  { %v5009_v21 = vclz %v5008_v38  ;;  %v5117_v26 = vshrl.u32 %v11558_v45, 16  ;;  %v5104_v61 = vsel %vm5102_vm13, %v5092_v50, 2102212464  ;;  %v5028_v12 = vsel %vm4905_vm11, %v5027_v5, %v11553_v2 }
 0x4b0   :  { %v4890_v16 = vmul.f32 %v4889_v40, %v4874_v59  ;;  %v4899_v42 = vxor.u32 2147483648, %v4882_v63  ;;  %v5108_v59 = vsel %vm5102_vm13, %v5095_v7, 920167782  ;;  %v5103_v39 = vsel %vm5099_vm9, %v5083_v0, %v5086_v11 }
 0x4b1   :  { %v7692_v56 = vadd.s32 4294967294, %v5009_v21  ;;  %v5109_v25 = vsel %vm5101_vm12, %v5092_v50, %v5108_v59  ;;  %vm5233_vm1 = vcmp.gt.s32.totalorder %v11577_v62, 0  ;;  %v5111_v3 = vsel %vm5099_vm9, %v5089_v1, %v5092_v50 }
 0x4b2   :  { %v4896_v28 = vxor.u32 2147483648, %v4890_v16  ;;  %v4900_v18 = vsel %vm4898_vm5, %v4899_v42, %v4890_v16  ;;  %v5110_v10 = vsel %vm5100_vm15, %v5107_v17, %v5109_v25  ;;  %v5112_v60 = vsel %vm5102_vm13, %v5098_v23, 1326507024 }
 0x4b3   :  { %vm7693_vm0 = vcmp.lt.s32.totalorder %v7692_v56, 0  ;;  %v5105_v54 = vsel %vm5101_vm12, %v5089_v1, %v5104_v61  ;;  %v5113_v2 = vsel %vm5101_vm12, %v5095_v7, %v5112_v60  ;;  %v5141_v30 = vshrl.u32 %v5110_v10, 16 }
 0x4b4   :  { %v4897_v27 = vsel %vm4895_vm6, %v4882_v63, %v4896_v28  ;;  %v5012_v9 = vsel %vm7693_vm0, 0, %v7692_v56  ;;  %v11637_v8 = vand.u32 8388607, %v5222_v57  ;;  %v5030_v11 = vsel %vm11591_vm14, 0, %v5028_v12 }
 0x4b5   :  { %v4901_v6 = vsel %vm4894_vm7, %v4897_v27, %v4900_v18  ;;  %v5013_v19 = vsub.s32 32, %v5012_v9  ;;  %v5014_v32 = vshll.u32 %v11568_v4, %v5012_v9  ;;  %v5017_v44 = vsub.s32 4294967266, %v5012_v9 }
 0x4b6   :  { %v4902_v24 = vsel %vm4891_vm8, nan, %v4901_v6  ;;  %v5140_v4 = vand.u32 65535, %v5110_v10  ;;  %v5234_v1 = vsel %vm5233_vm1, %v11577_v62, 0  ;;  %v11646_v38 = vsel %vm5100_vm15, %v5103_v39, %v5105_v54 }
 0x4b7   :  { %v5015_v48 = vshrl.u32 %v11551_v49, %v5013_v19  ;;  %v5018_v22 = vadd.s32 127, %v5017_v44  ;;  %5061 = vst [vmem:[#allocation5 + $0x150] sm:$0xff] %v4902_v24  ;;  %v5114_v49 = vsel %vm5100_vm15, %v5111_v3, %v5113_v2  ;;  %v5143_v50 = vmul.u32 %v5141_v30, %v11574_v15 }
 0x4b8   :  { %v5118_v51 = vand.u32 65535, %v5114_v49  ;;  %v5119_v14 = vshrl.u32 %v5114_v49, 16  ;;  %v5142_v20 = vmul.u32 %v5140_v4, %v11574_v15  ;;  %v5144_v56 = vmul.u32 %v5140_v4, %v5117_v26 }
 0x4b9   :  { %v5016_v58 = vor.u32 %v5015_v48, %v5014_v32  ;;  %v5019_v13 = vshll.u32 %v5018_v22, 23  ;;  %v5146_v17 = vshll.u32 %v5143_v50, 16  ;;  %v5145_v18 = vmul.u32 %v5141_v30, %v5117_v26 }
 0x4ba   :  { %v5120_v21 = vmul.u32 %v5118_v51, %v11574_v15  ;;  %v5121_v7 = vmul.u32 %v5119_v14, %v11574_v15  ;;  %v5122_v36 = vmul.u32 %v5118_v51, %v5117_v26  ;;  %v5123_v42 = vmul.u32 %v5119_v14, %v5117_v26 }
 0x4bb   :  { %v5020_v63 = vor.u32 4788187, %v5019_v13  ;;  %v5023_v40 = vcvt.s32.f32 %v5016_v58  ;;  %v5147_v0 = vshrl.u32 %v5143_v50, 16  ;;  %v5148_v23 = vshll.u32 %v5144_v56, 16 }
 0x4bc   :  { %v5124_v62 = vshll.u32 %v5121_v7, 16  ;;  %v5125_v59 = vshrl.u32 %v5121_v7, 16  ;;  %v5126_v28 = vshll.u32 %v5122_v36, 16  ;;  %v5127_v5 = vshrl.u32 %v5122_v36, 16 }
 0x4bd   :  { %v5021_v16 = vand.u32 2147483647, %v5020_v63  ;;  %vm5150_vm3 = vc.u32 %v5142_v20, %v5146_v17  ;;  %v5152_v27 = vadd.s32 %v5146_v17, %v5142_v20  ;;  %v5236_v10 = vand.u32 31, %v5234_v1 }
 0x4be   :  { %vm5128_vm2 = vc.u32 %v5120_v21, %v5124_v62  ;;  %v5130_v25 = vadd.s32 %v5124_v62, %v5120_v21  ;;  %v5151_v15 = vsel %vm5150_vm3, 1, %v7835_v53  ;;  %v5149_v44 = vshrl.u32 %v5144_v56, 16 }
 0x4bf   :  { %v5024_v52 = vmul.f32 %v5023_v40, %v5021_v16  ;;  %v5129_v61 = vsel %vm5128_vm2, 1, %v7835_v53  ;;  %v5153_v19 = vadd.s32 %v5151_v15, %v5145_v18  ;;  %vm5154_vm5 = vc.u32 %v5152_v27, %v5148_v23 }
 0x4c0   :  { %v5131_v6 = vadd.s32 %v5129_v61, %v5123_v42  ;;  %vm5132_vm4 = vc.u32 %v5130_v25, %v5126_v28  ;;  %v5155_v24 = vsel %vm5154_vm5, 1, %v7835_v53  ;;  %v11661_v22 = vsub.s32 32, %v5236_v10 }
 0x4c1   :  { %v5025_v9 = vxor.u32 2147483648, %v5024_v52  ;;  %v5133_v32 = vsel %vm5132_vm4, 1, %v7835_v53  ;;  %v5157_v48 = vadd.s32 %v5155_v24, %v5153_v19  ;;  %v5047_v60 = vadd.s32 3, %v5030_v11 }
 0x4c2   :  { %v5135_v39 = vadd.s32 %v5133_v32, %v5131_v6  ;;  %v5160_v54 = vmul.u32 %v11558_v45, %v11646_v38  ;;  %v5230_v2 = vor.u32 8388608, %v11637_v8  ;;  %v11666_v30 = vadd.s32 %v5152_v27, %v5148_v23 }
 0x4c3   :  { %v5026_v26 = vsel %vm4905_vm11, %v5025_v9, %v5024_v52  ;;  %v5158_v58 = vadd.s32 %v5157_v48, %v5147_v0  ;;  %v11668_v13 = vshrl.u32 %v5234_v1, 5  ;;  %v5239_v51 = vshll.u32 %v7829_v29, %v5236_v10 }
 0x4c4   :  { %v5029_v12 = vsel %vm11591_vm14, %v11318_v43, %v5026_v26  ;;  %v5136_v4 = vadd.s32 %v5135_v39, %v5125_v59  ;;  %v5242_v14 = vshll.u32 %v7830_v31, %v5236_v10  ;;  %v5240_v45 = vshrl.u32 %v7830_v31, %v11661_v22 }
 0x4c5   :  { %v5031_v3 = vmul.f32 %v5029_v12, %v5029_v12  ;;  %v5159_v11 = vadd.s32 %v5158_v58, %v5149_v44  ;;  %v5248_v8 = vshll.u32 %v7832_v35, %v5236_v10  ;;  %v5243_v1 = vshrl.u32 %v7831_v33, %v11661_v22 }
 0x4c6   :  { %v11672_v63 = vadd.s32 %v5136_v4, %v5127_v5  ;;  %v5245_v50 = vshll.u32 %v7831_v33, %v5236_v10  ;;  %v5246_v7 = vshrl.u32 %v7832_v35, %v11661_v22  ;;  %v5249_v36 = vshrl.u32 %v7833_v37, %v11661_v22 }
 0x4c7   :  { %v5032_v49 = vmul.f32 -0.001358992, %v5031_v3  ;;  %v5039_v47 = vmul.f32 -0.00019511016, %v5031_v3  ;;  %v5163_v21 = vadd.s32 1, %v5159_v11  ;;  %v5251_v42 = vshll.u32 %v7833_v37, %v5236_v10 }
 0x4c8   :  { %vm5162_vm6 = vc.u32 %v11672_v63, %v11666_v30  ;;  %v5252_v56 = vshrl.u32 %v7834_v46, %v11661_v22  ;;  %v5048_v17 = vand.u32 3, %v5047_v60  ;;  %v11689_v59 = vor.u32 %v5240_v45, %v5239_v51 }
 0x4c9   :  { %v5033_v40 = vadd.f32 0.041655596, %v5032_v49  ;;  %v5040_v38 = vadd.f32 0.008332121, %v5039_v47  ;;  %v5164_v62 = vsel %vm5162_vm6, %v5163_v21, %v5159_v11  ;;  %v5250_v28 = vor.u32 %v5249_v36, %v5248_v8 }
 0x4ca   :  { %v5165_v5 = vadd.s32 %v5164_v62, %v5160_v54  ;;  %v11691_v0 = vor.u32 %v5243_v1, %v5242_v14  ;;  %v5247_v23 = vor.u32 %v5246_v7, %v5245_v50  ;;  %v5253_v25 = vor.u32 %v5252_v56, %v5251_v42  ;;  %v7770_v56 = vld [vmem:[#allocation5 + $0x10] sm:$0xff] }
 0x4cb   :  { %v5034_v20 = vmul.f32 %v5033_v40, %v5031_v3  ;;  %v5041_v16 = vmul.f32 %v5040_v38, %v5031_v3  ;;  %vm5254_vm7 = vcmp.lt.s32.totalorder %v11668_v13, 1  ;;  %vm5257_vm8 = vcmp.lt.s32.totalorder %v11668_v13, 4 }
 0x4cc   :  { %v5166_v61 = vadd.s32 536870912, %v5165_v5  ;;  %vm5256_vm9 = vcmp.lt.s32.totalorder %v11668_v13, 3  ;;  %vm5049_vm10 = vcmp.lt.s32.totalorder %v5048_v17, 2  ;;  %vm5255_vm11 = vcmp.lt.s32.totalorder %v11668_v13, 2 }
 0x4cd   :  { %v5035_v18 = vadd.f32 -0.4999988, %v5034_v20  ;;  %v5042_v52 = vadd.f32 -0.16666654, %v5041_v16  ;;  %v5263_v15 = vsel %vm5257_vm8, %v5250_v28, 920167782  ;;  %v5262_v26 = vsel %vm5254_vm7, %v11689_v59, %v11691_v0 }
 0x4ce   :  { %v11699_v19 = vshrl.u32 %v5166_v61, 30  ;;  %vm5053_vm12 = vcmp.eq.s32.totalorder %v5048_v17, 2  ;;  %v5264_v32 = vsel %vm5256_vm9, %v5247_v23, %v5263_v15  ;;  %v5267_v44 = vsel %vm5257_vm8, %v5253_v25, 1326507024 }
 0x4cf   :  { %v5036_v27 = vmul.f32 %v5035_v18, %v5031_v3  ;;  %v5043_v9 = vmul.f32 %v5042_v52, %v5031_v3  ;;  %v11709_v24 = vshll.u32 %v5230_v2, 8  ;;  %v5266_v60 = vsel %vm5254_vm7, %v11691_v0, %v5247_v23 }
 0x4d0   :  { %v5168_v3 = vshll.u32 %v11699_v19, 30  ;;  %vm5050_vm13 = vcmp.eq.s32.totalorder %v5048_v17, 0  ;;  %v5265_v54 = vsel %vm5255_vm11, %v5262_v26, %v5264_v32  ;;  %v5268_v4 = vsel %vm5256_vm9, %v5250_v28, %v5267_v44 }
 0x4d1   :  { %v5037_v10 = vadd.f32 1.0, %v5036_v27  ;;  %v5044_v6 = vadd.f32 1.0, %v5043_v9  ;;  %v5271_v58 = vand.u32 65535, %v11709_v24  ;;  %vm5046_vm14 = vweird.f32 %v11318_v43 }
 0x4d2   :  { %v5169_v47 = vsub.s32 %v5165_v5, %v5168_v3  ;;  %v5269_v51 = vsel %vm5255_vm11, %v5266_v60, %v5268_v4  ;;  %v5295_v14 = vand.u32 65535, %v5265_v54  ;;  %v5296_v11 = vshrl.u32 %v5265_v54, 16 }
 0x4d3   :  { %v5045_v39 = vmul.f32 %v5044_v6, %v5029_v12  ;;  %v5054_v48 = vxor.u32 2147483648, %v5037_v10  ;;  %v5272_v12 = vshrl.u32 %v11709_v24, 16  ;;  %v5273_v40 = vand.u32 65535, %v5269_v51 }
 0x4d4   :  { %vm5170_vm15 = vcmp.lt.s32.totalorder %v5169_v47, 0  ;;  %v5171_v8 = vsub.s32 0, %v5169_v47  ;;  %v5274_v1 = vshrl.u32 %v5269_v51, 16  ;;  %v11725_v50 = vmul.u32 %v5296_v11, %v5271_v58 }
 0x4d5   :  { %v5051_v49 = vxor.u32 2147483648, %v5045_v39  ;;  %v5055_v2 = vsel %vm5053_vm12, %v5054_v48, %v5045_v39  ;;  %v5277_v36 = vmul.u32 %v5273_v40, %v5272_v12  ;;  %v5297_v20 = vmul.u32 %v5295_v14, %v5271_v58 }
 0x4d6   :  { %v5172_v7 = vsel %vm5170_vm15, %v5171_v8, %v5169_v47  ;;  %v5275_v16 = vmul.u32 %v5273_v40, %v5271_v58  ;;  %v5276_v42 = vmul.u32 %v5274_v1, %v5271_v58  ;;  %v11727_v62 = vmul.f32 16.0, %v7770_v56 }
 0x4d7   :  { %v5052_v45 = vsel %vm5050_vm13, %v5037_v10, %v5051_v49  ;;  %v5173_v43 = vclz %v5172_v7  ;;  %v5299_v28 = vmul.u32 %v5295_v14, %v5272_v12  ;;  %v5301_v18 = vshll.u32 %v11725_v50, 16 }
 0x4d8   :  { %v5056_v38 = vsel %vm5049_vm10, %v5052_v45, %v5055_v2  ;;  %vm5069_vm0 = vcmp.lt.s32.totalorder %v11505_v55, 0  ;;  %v5238_v52 = vshrl.u32 %v7829_v29, %v11661_v22  ;;  %v5278_v5 = vmul.u32 %v5274_v1, %v5272_v12 }
 0x4d9   :  { %v5057_v21 = vsel %vm5046_vm14, nan, %v5056_v38  ;;  %v7695_v17 = vadd.s32 4294967294, %v5173_v43  ;;  %v5279_v25 = vshll.u32 %v5276_v42, 16  ;;  %v5161_v27 = vadd.s32 %v11666_v30, %v11672_v63 }
 0x4da   :  { %5062 = vst [vmem:[#allocation5 + $0x158] sm:$0xff] %v5057_v21  ;;  %v5259_v9 = vsel %vm5257_vm8, %v5247_v23, 2102212464  ;;  %v5281_v61 = vshll.u32 %v5277_v36, 16  ;;  %vm5305_vm1 = vc.u32 %v5297_v20, %v5301_v18  ;;  %v5300_v10 = vmul.u32 %v5296_v11, %v5272_v12 }
 0x4db   :  { %vm7696_vm2 = vcmp.lt.s32.totalorder %v7695_v17, 0  ;;  %vm5283_vm3 = vc.u32 %v5275_v16, %v5279_v25  ;;  %v5285_v15 = vadd.s32 %v5279_v25, %v5275_v16  ;;  %v5303_v32 = vshll.u32 %v5299_v28, 16 }
 0x4dc   :  { %v5176_v6 = vsel %vm7696_vm2, 0, %v7695_v17  ;;  %v5284_v26 = vsel %vm5283_vm3, 1, %v7835_v53  ;;  %v5306_v22 = vsel %vm5305_vm1, 1, %v7835_v53  ;;  %v5191_v30 = vsub.s32 4, %v11699_v19 }
 0x4dd   :  { %v5177_v44 = vsub.s32 32, %v5176_v6  ;;  %v5178_v39 = vshll.u32 %v5169_v47, %v5176_v6  ;;  %v5181_v48 = vsub.s32 4294967266, %v5176_v6  ;;  %v5286_v3 = vadd.s32 %v5284_v26, %v5278_v5  ;;  %v7771_v5 = vld [vmem:[#allocation5 + $0x18] sm:$0xff] }
 0x4de   :  { %v5258_v63 = vsel %vm5254_vm7, %v5238_v52, %v11689_v59  ;;  %v5280_v23 = vshrl.u32 %v5276_v42, 16  ;;  %vm5287_vm4 = vc.u32 %v5285_v15, %v5281_v61  ;;  %v5307_v58 = vadd.s32 %v5301_v18, %v5297_v20 }
 0x4df   :  { %v5179_v60 = vshrl.u32 %v5161_v27, %v5177_v44  ;;  %v5182_v54 = vadd.s32 127, %v5181_v48  ;;  %v5288_v4 = vsel %vm5287_vm4, 1, %v7835_v53  ;;  %v5260_v49 = vsel %vm5256_vm9, %v11691_v0, %v5259_v9 }
 0x4e0   :  { %v5282_v2 = vshrl.u32 %v5277_v36, 16  ;;  %v5290_v47 = vadd.s32 %v5288_v4, %v5286_v3  ;;  %v5308_v12 = vadd.s32 %v5306_v22, %v5300_v10  ;;  %v5302_v11 = vshrl.u32 %v11725_v50, 16 }
 0x4e1   :  { %v5180_v51 = vor.u32 %v5179_v60, %v5178_v39  ;;  %v5183_v14 = vshll.u32 %v5182_v54, 23  ;;  %vm5309_vm5 = vc.u32 %v5307_v58, %v5303_v32  ;;  %v5192_v59 = vsel %vm5069_vm0, %v5191_v30, %v11699_v19 }
 0x4e2   :  { %v5291_v45 = vadd.s32 %v5290_v47, %v5280_v23  ;;  %v5310_v8 = vsel %vm5309_vm5, 1, %v7835_v53  ;;  %v5380_v40 = vand.u32 2139095040, %v11727_v62  ;;  %v5304_v0 = vshrl.u32 %v5299_v28, 16 }
 0x4e3   :  { %v5184_v38 = vor.u32 4788187, %v5183_v14  ;;  %v5187_v1 = vcvt.s32.f32 %v5180_v51  ;;  %v5312_v21 = vadd.s32 %v5310_v8, %v5308_v12  ;;  %v11755_v36 = vadd.s32 %v5307_v58, %v5303_v32 }
 0x4e4   :  { %v11753_v7 = vadd.s32 %v5291_v45, %v5282_v2  ;;  %v5381_v20 = vshrl.u32 %v5380_v40, 23  ;;  %vm11759_vm6 = vcmp.le.f32.partialorder %v5067_v34, 0.7853982  ;;  %v5261_v43 = vsel %vm5255_vm11, %v5258_v63, %v5260_v49 }
 0x4e5   :  { %v5185_v19 = vand.u32 2147483647, %v5184_v38  ;;  %v5313_v16 = vadd.s32 %v5312_v21, %v5302_v11  ;;  %v5194_v42 = vsel %vm11759_vm6, 0, %v5192_v59  ;;  %v5377_v56 = vand.u32 2147483647, %v11727_v62 }
 0x4e6   :  { %v7700_v28 = vadd.s32 4294967169, %v5381_v20  ;;  %v5315_v52 = vmul.u32 %v11709_v24, %v5261_v43  ;;  %vm5317_vm7 = vc.u32 %v11753_v7, %v11755_v36  ;;  %v11771_v25 = vmul.f32 16.0, %v7771_v5 }
 0x4e7   :  { %v5188_v18 = vmul.f32 %v5187_v1, %v5185_v19  ;;  %v5314_v17 = vadd.s32 %v5313_v16, %v5304_v0  ;;  %v5211_v27 = vadd.s32 3, %v5194_v42  ;;  %v5384_v61 = vand.u32 8388607, %v5377_v56 }
 0x4e8   :  { %v5387_v34 = vadd.s32 1, %v7700_v28  ;;  %v5532_v24 = vand.u32 2147483647, %v11771_v25  ;;  %v5535_v63 = vand.u32 2139095040, %v11771_v25  ;;  %vm5210_vm12 = vweird.f32 %v11505_v55 }
 0x4e9   :  { %v5189_v13 = vxor.u32 2147483648, %v5188_v18  ;;  %v5318_v9 = vadd.s32 1, %v5314_v17  ;;  %v11781_v39 = vand.u32 3, %v5211_v27  ;;  %v5385_v3 = vor.u32 8388608, %v5384_v61 }
 0x4ea   :  { %vm5388_vm8 = vcmp.gt.s32.totalorder %v5387_v34, 0  ;;  %v11787_v4 = vand.u32 8388607, %v5532_v24  ;;  %v5536_v21 = vshrl.u32 %v5535_v63, 23  ;;  %vm5224_vm14 = vcmp.lt.s32.totalorder %v11538_v41, 0 }
 0x4eb   :  { %v5190_v15 = vsel %vm5069_vm0, %v5189_v13, %v5188_v18  ;;  %v5319_v10 = vsel %vm5317_vm7, %v5318_v9, %v5314_v17  ;;  %v5389_v6 = vsel %vm5388_vm8, %v5387_v34, 0  ;;  %vm5217_vm9 = vcmp.eq.s32.totalorder %v11781_v39, 2 }
 0x4ec   :  { %v5193_v26 = vsel %vm11759_vm6, %v11505_v55, %v5190_v15  ;;  %v5320_v32 = vadd.s32 %v5319_v10, %v5315_v52  ;;  %v5391_v22 = vand.u32 31, %v5389_v6  ;;  %v11800_v40 = vshll.u32 %v5385_v3, 8 }
 0x4ed   :  { %v5195_v44 = vmul.f32 %v5193_v26, %v5193_v26  ;;  %v11802_v0 = vshrl.u32 %v5389_v6, 5  ;;  %vm5214_vm10 = vcmp.eq.s32.totalorder %v11781_v39, 0  ;;  %vm5213_vm11 = vcmp.lt.s32.totalorder %v11781_v39, 2 }
 0x4ee   :  { %v5321_v48 = vadd.s32 536870912, %v5320_v32  ;;  %v5392_v30 = vsub.s32 32, %v5391_v22  ;;  %v5394_v54 = vshll.u32 %v7829_v29, %v5391_v22  ;;  %v5397_v2 = vshll.u32 %v7830_v31, %v5391_v22 }
 0x4ef   :  { %v5196_v23 = vmul.f32 -0.001358992, %v5195_v44  ;;  %v5203_v60 = vmul.f32 -0.00019511016, %v5195_v44  ;;  %v5400_v47 = vshll.u32 %v7831_v33, %v5391_v22  ;;  %v5403_v45 = vshll.u32 %v7832_v35, %v5391_v22 }
 0x4f0   :  { %v11789_v58 = vshrl.u32 %v5321_v48, 30  ;;  %v5395_v49 = vshrl.u32 %v7830_v31, %v5392_v30  ;;  %v5398_v14 = vshrl.u32 %v7831_v33, %v5392_v30  ;;  %v5401_v11 = vshrl.u32 %v7832_v35, %v5392_v30 }
 0x4f1   :  { %v5197_v12 = vadd.f32 0.041655596, %v5196_v23  ;;  %v5204_v51 = vadd.f32 0.008332121, %v5203_v60  ;;  %v5404_v8 = vshrl.u32 %v7833_v37, %v5392_v30  ;;  %v5406_v19 = vshll.u32 %v7833_v37, %v5391_v22 }
 0x4f2   :  { %v5323_v59 = vshll.u32 %v11789_v58, 30  ;;  %v5396_v50 = vor.u32 %v5395_v49, %v5394_v54  ;;  %v5407_v43 = vshrl.u32 %v7834_v46, %v5392_v30  ;;  %v5399_v28 = vor.u32 %v5398_v14, %v5397_v2 }
 0x4f3   :  { %v5198_v38 = vmul.f32 %v5197_v12, %v5195_v44  ;;  %v5205_v1 = vmul.f32 %v5204_v51, %v5195_v44  ;;  %v5402_v18 = vor.u32 %v5401_v11, %v5400_v47  ;;  %v5405_v52 = vor.u32 %v5404_v8, %v5403_v45 }
 0x4f4   :  { %v11805_v20 = vsub.s32 %v5320_v32, %v5323_v59  ;;  %v5408_v34 = vor.u32 %v5407_v43, %v5406_v19  ;;  %vm5409_vm15 = vcmp.lt.s32.totalorder %v11802_v0, 1  ;;  %vm5412_vm0 = vcmp.lt.s32.totalorder %v11802_v0, 4 }
 0x4f5   :  { %v5199_v16 = vadd.f32 -0.4999988, %v5198_v38  ;;  %v5206_v42 = vadd.f32 -0.16666654, %v5205_v1  ;;  %v5316_v27 = vadd.s32 %v11755_v36, %v11753_v7  ;;  %v5427_v61 = vshrl.u32 %v11800_v40, 16 }
 0x4f6   :  { %vm5325_vm13 = vcmp.lt.s32.totalorder %v11805_v20, 0  ;;  %v5326_v17 = vsub.s32 0, %v11805_v20  ;;  %v7703_v15 = vadd.s32 4294967169, %v5536_v21  ;;  %vm5411_vm1 = vcmp.lt.s32.totalorder %v11802_v0, 3 }
 0x4f7   :  { %v5200_v5 = vmul.f32 %v5199_v16, %v5195_v44  ;;  %v5207_v13 = vmul.f32 %v5206_v42, %v5195_v44  ;;  %vm5410_vm2 = vcmp.lt.s32.totalorder %v11802_v0, 2  ;;  %v5417_v22 = vsel %vm5409_vm15, %v5396_v50, %v5399_v28 }
 0x4f8   :  { %v5327_v9 = vsel %vm5325_vm13, %v5326_v17, %v11805_v20  ;;  %v5418_v44 = vsel %vm5412_vm0, %v5405_v52, 920167782  ;;  %v5422_v7 = vsel %vm5412_vm0, %v5408_v34, 1326507024  ;;  %vm11830_vm3 = vcmp.le.f32.partialorder %v5222_v57, 0.7853982 }
 0x4f9   :  { %v5201_v10 = vadd.f32 1.0, %v5200_v5  ;;  %v5208_v6 = vadd.f32 1.0, %v5207_v13  ;;  %v5328_v32 = vclz %v5327_v9  ;;  %v5421_v23 = vsel %vm5409_vm15, %v5399_v28, %v5402_v18 }
 0x4fa   :  { %v5346_v60 = vsub.s32 4, %v11789_v58  ;;  %v5393_v54 = vshrl.u32 %v7829_v29, %v5392_v30  ;;  %v5419_v49 = vsel %vm5411_vm1, %v5402_v18, %v5418_v44  ;;  %v5542_v47 = vadd.s32 1, %v7703_v15 }
 0x4fb   :  { %v5209_v36 = vmul.f32 %v5208_v6, %v5193_v26  ;;  %v5218_v48 = vxor.u32 2147483648, %v5201_v10  ;;  %v7698_v63 = vadd.s32 4294967294, %v5328_v32  ;;  %v5423_v26 = vsel %vm5411_vm1, %v5405_v52, %v5422_v7 }
 0x4fc   :  { %v5414_v51 = vsel %vm5412_vm0, %v5402_v18, 2102212464  ;;  %v5420_v14 = vsel %vm5410_vm2, %v5417_v22, %v5419_v49  ;;  %v5424_v30 = vsel %vm5410_vm2, %v5421_v23, %v5423_v26  ;;  %v5347_v1 = vsel %vm5224_vm14, %v5346_v60, %v11789_v58 }
 0x4fd   :  { %v5215_v2 = vxor.u32 2147483648, %v5209_v36  ;;  %v5219_v57 = vsel %vm5217_vm9, %v5218_v48, %v5209_v36  ;;  %vm7699_vm4 = vcmp.lt.s32.totalorder %v7698_v63, 0  ;;  %v5413_v21 = vsel %vm5409_vm15, %v5393_v54, %v5396_v50 }
 0x4fe   :  { %v5331_v12 = vsel %vm7699_vm4, 0, %v7698_v63  ;;  %v5426_v19 = vand.u32 65535, %v11800_v40  ;;  %v5428_v18 = vand.u32 65535, %v5424_v30  ;;  %v5429_v39 = vshrl.u32 %v5424_v30, 16 }
 0x4ff   :  { %v5216_v11 = vsel %vm5214_vm10, %v5201_v10, %v5215_v2  ;;  %v5332_v59 = vsub.s32 32, %v5331_v12  ;;  %v5333_v45 = vshll.u32 %v11805_v20, %v5331_v12  ;;  %v5336_v8 = vsub.s32 4294967266, %v5331_v12 }
 0x500   :  { %v5220_v38 = vsel %vm5213_vm11, %v5216_v11, %v5219_v57  ;;  %v5415_v20 = vsel %vm5411_vm1, %v5399_v28, %v5414_v51  ;;  %v5450_v17 = vand.u32 65535, %v5420_v14  ;;  %v5451_v52 = vshrl.u32 %v5420_v14, 16 }
 0x501   :  { %v5221_v43 = vsel %vm5210_vm12, nan, %v5220_v38  ;;  %v5334_v16 = vshrl.u32 %v5316_v27, %v5332_v59  ;;  %v5337_v42 = vadd.s32 127, %v5336_v8  ;;  %v5432_v5 = vmul.u32 %v5428_v18, %v5427_v61 }
 0x502   :  { %5688 = vst [vmem:[#allocation5 + $0xa0] sm:$0xff] %v5221_v43  ;;  %vm5543_vm5 = vcmp.gt.s32.totalorder %v5542_v47, 0  ;;  %v5349_v50 = vsel %vm11830_vm3, 0, %v5347_v1  ;;  %v5430_v13 = vmul.u32 %v5428_v18, %v5426_v19  ;;  %v5431_v9 = vmul.u32 %v5429_v39, %v5426_v19 }
 0x503   :  { %v5335_v34 = vor.u32 %v5334_v16, %v5333_v45  ;;  %v5338_v58 = vshll.u32 %v5337_v42, 23  ;;  %v5453_v15 = vmul.u32 %v5451_v52, %v5426_v19  ;;  %v11869_v6 = vsel %vm5410_vm2, %v5413_v21, %v5415_v20 }
 0x504   :  { %v5452_v28 = vmul.u32 %v5450_v17, %v5426_v19  ;;  %v5433_v32 = vmul.u32 %v5429_v39, %v5427_v61  ;;  %v5434_v22 = vshll.u32 %v5431_v9, 16  ;;  %v5436_v44 = vshll.u32 %v5432_v5, 16 }
 0x505   :  { %v5339_v27 = vor.u32 4788187, %v5338_v58  ;;  %v5342_v10 = vcvt.s32.f32 %v5335_v34  ;;  %v5454_v7 = vmul.u32 %v5450_v17, %v5427_v61  ;;  %v5435_v48 = vshrl.u32 %v5431_v9, 16 }
 0x506   :  { %v5455_v63 = vmul.u32 %v5451_v52, %v5427_v61  ;;  %v5456_v23 = vshll.u32 %v5453_v15, 16  ;;  %vm5438_vm6 = vc.u32 %v5430_v13, %v5434_v22  ;;  %v5440_v60 = vadd.s32 %v5434_v22, %v5430_v13 }
 0x507   :  { %v5340_v36 = vand.u32 2147483647, %v5339_v27  ;;  %v5458_v54 = vshll.u32 %v5454_v7, 16  ;;  %v5544_v49 = vsel %vm5543_vm5, %v5542_v47, 0  ;;  %v5439_v2 = vsel %vm5438_vm6, 1, %v7835_v53 }
 0x508   :  { %vm5460_vm7 = vc.u32 %v5452_v28, %v5456_v23  ;;  %v5462_v0 = vadd.s32 %v5456_v23, %v5452_v28  ;;  %v5441_v57 = vadd.s32 %v5439_v2, %v5433_v32  ;;  %vm5442_vm8 = vc.u32 %v5440_v60, %v5436_v44 }
 0x509   :  { %v5343_v26 = vmul.f32 %v5342_v10, %v5340_v36  ;;  %v5457_v12 = vshrl.u32 %v5453_v15, 16  ;;  %v5461_v51 = vsel %vm5460_vm7, 1, %v7835_v53  ;;  %v5443_v30 = vsel %vm5442_vm8, 1, %v7835_v53 }
 0x50a   :  { %v5463_v61 = vadd.s32 %v5461_v51, %v5455_v63  ;;  %vm5464_vm9 = vc.u32 %v5462_v0, %v5458_v54  ;;  %v5437_v11 = vshrl.u32 %v5432_v5, 16  ;;  %v5445_v59 = vadd.s32 %v5443_v30, %v5441_v57 }
 0x50b   :  { %v5344_v14 = vxor.u32 2147483648, %v5343_v26  ;;  %v5465_v45 = vsel %vm5464_vm9, 1, %v7835_v53  ;;  %v5546_v47 = vand.u32 31, %v5544_v49  ;;  %v5459_v38 = vshrl.u32 %v5454_v7, 16 }
 0x50c   :  { %v5467_v1 = vadd.s32 %v5465_v45, %v5463_v61  ;;  %v11878_v21 = vshrl.u32 %v5544_v49, 5  ;;  %v5446_v43 = vadd.s32 %v5445_v59, %v5435_v48  ;;  %v11883_v16 = vadd.s32 %v5462_v0, %v5458_v54 }
 0x50d   :  { %v5345_v8 = vsel %vm5224_vm14, %v5344_v14, %v5343_v26  ;;  %v11885_v42 = vsub.s32 32, %v5546_v47  ;;  %v5366_v20 = vadd.s32 3, %v5349_v50  ;;  %v5549_v17 = vshll.u32 %v7829_v29, %v5546_v47 }
 0x50e   :  { %v5348_v19 = vsel %vm11830_vm3, %v11538_v41, %v5345_v8  ;;  %v5468_v39 = vadd.s32 %v5467_v1, %v5457_v12  ;;  %v11888_v52 = vadd.s32 %v5446_v43, %v5437_v11  ;;  %v5470_v34 = vmul.u32 %v11800_v40, %v11869_v6 }
 0x50f   :  { %v5350_v18 = vmul.f32 %v5348_v19, %v5348_v19  ;;  %v5550_v58 = vshrl.u32 %v7830_v31, %v11885_v42  ;;  %v5552_v3 = vshll.u32 %v7830_v31, %v5546_v47  ;;  %v5553_v15 = vshrl.u32 %v7831_v33, %v11885_v42 }
 0x510   :  { %v5469_v9 = vadd.s32 %v5468_v39, %v5459_v38  ;;  %vm5472_vm10 = vc.u32 %v11888_v52, %v11883_v16  ;;  %v5555_v50 = vshll.u32 %v7831_v33, %v5546_v47  ;;  %v5556_v27 = vshrl.u32 %v7832_v35, %v11885_v42 }
 0x511   :  { %v5351_v5 = vmul.f32 -0.001358992, %v5350_v18  ;;  %v5358_v13 = vmul.f32 -0.00019511016, %v5350_v18  ;;  %vm5564_vm11 = vcmp.lt.s32.totalorder %v11878_v21, 1  ;;  %v11903_v28 = vor.u32 %v5550_v58, %v5549_v17 }
 0x512   :  { %v5473_v6 = vadd.s32 1, %v5469_v9  ;;  %v5558_v32 = vshll.u32 %v7832_v35, %v5546_v47  ;;  %v5559_v22 = vshrl.u32 %v7833_v37, %v11885_v42  ;;  %v5561_v44 = vshll.u32 %v7833_v37, %v5546_v47 }
 0x513   :  { %v5352_v40 = vadd.f32 0.041655596, %v5351_v5  ;;  %v5359_v10 = vadd.f32 0.008332121, %v5358_v13  ;;  %v5562_v7 = vshrl.u32 %v7834_v46, %v11885_v42  ;;  %v11911_v23 = vor.u32 %v5553_v15, %v5552_v3 }
 0x514   :  { %v5474_v63 = vsel %vm5472_vm10, %v5473_v6, %v5469_v9  ;;  %v11913_v54 = vor.u32 %v5556_v27, %v5555_v50  ;;  %v5560_v49 = vor.u32 %v5559_v22, %v5558_v32  ;;  %v5540_v57 = vor.u32 8388608, %v11787_v4 }
 0x515   :  { %v5353_v36 = vmul.f32 %v5352_v40, %v5350_v18  ;;  %v5360_v48 = vmul.f32 %v5359_v10, %v5350_v18  ;;  %v5475_v60 = vadd.s32 %v5474_v63, %v5470_v34  ;;  %v5563_v26 = vor.u32 %v5562_v7, %v5561_v44 }
 0x516   :  { %vm5566_vm12 = vcmp.lt.s32.totalorder %v11878_v21, 3  ;;  %v5367_v12 = vand.u32 3, %v5366_v20  ;;  %vm5565_vm13 = vcmp.lt.s32.totalorder %v11878_v21, 2  ;;  %vm5567_vm14 = vcmp.lt.s32.totalorder %v11878_v21, 4 }
 0x517   :  { %v5354_v2 = vadd.f32 -0.4999988, %v5353_v36  ;;  %v5361_v0 = vadd.f32 -0.16666654, %v5360_v48  ;;  %v5476_v51 = vadd.s32 536870912, %v5475_v60  ;;  %v5572_v61 = vsel %vm5564_vm11, %v11903_v28, %v11911_v23 }
 0x518   :  { %v5573_v11 = vsel %vm5567_vm14, %v5560_v49, 920167782  ;;  %v5576_v45 = vsel %vm5564_vm11, %v11911_v23, %v11913_v54  ;;  %v5577_v47 = vsel %vm5567_vm14, %v5563_v26, 1326507024  ;;  %vm5365_vm15 = vweird.f32 %v11538_v41 }
 0x519   :  { %v5355_v14 = vmul.f32 %v5354_v2, %v5350_v18  ;;  %v5362_v30 = vmul.f32 %v5361_v0, %v5350_v18  ;;  %v11925_v59 = vshrl.u32 %v5476_v51, 30  ;;  %v5574_v4 = vsel %vm5566_vm12, %v11913_v54, %v5573_v11 }
 0x51a   :  { %vm5372_vm0 = vcmp.eq.s32.totalorder %v5367_v12, 2  ;;  %v5578_v43 = vsel %vm5566_vm12, %v5560_v49, %v5577_v47  ;;  %v11940_v18 = vshll.u32 %v5540_v57, 8  ;;  %v5575_v17 = vsel %vm5565_vm13, %v5572_v61, %v5574_v4 }
 0x51b   :  { %v5356_v8 = vadd.f32 1.0, %v5355_v14  ;;  %v5363_v38 = vadd.f32 1.0, %v5362_v30  ;;  %v5478_v1 = vshll.u32 %v11925_v59, 30  ;;  %v5579_v34 = vsel %vm5565_vm13, %v5576_v45, %v5578_v43 }
 0x51c   :  { %vm5369_vm1 = vcmp.eq.s32.totalorder %v5367_v12, 0  ;;  %v5581_v3 = vand.u32 65535, %v11940_v18  ;;  %v5582_v5 = vshrl.u32 %v11940_v18, 16  ;;  %vm5368_vm2 = vcmp.lt.s32.totalorder %v5367_v12, 2 }
 0x51d   :  { %v5364_v20 = vmul.f32 %v5363_v38, %v5348_v19  ;;  %v5373_v39 = vxor.u32 2147483648, %v5356_v8  ;;  %v5479_v58 = vsub.s32 %v5475_v60, %v5478_v1  ;;  %v5583_v15 = vand.u32 65535, %v5579_v34 }
 0x51e   :  { %v5584_v19 = vshrl.u32 %v5579_v34, 16  ;;  %v5606_v27 = vshrl.u32 %v5575_v17, 16  ;;  %v5605_v6 = vand.u32 65535, %v5575_v17  ;;  %v5548_v0 = vshrl.u32 %v7829_v29, %v11885_v42 }
 0x51f   :  { %v5370_v13 = vxor.u32 2147483648, %v5364_v20  ;;  %v5374_v9 = vsel %vm5372_vm0, %v5373_v39, %v5364_v20  ;;  %vm5480_vm3 = vcmp.lt.s32.totalorder %v5479_v58, 0  ;;  %v5481_v50 = vsub.s32 0, %v5479_v58 }
 0x520   :  { %v5587_v10 = vmul.u32 %v5583_v15, %v5582_v5  ;;  %v5585_v44 = vmul.u32 %v5583_v15, %v5581_v3  ;;  %v5586_v7 = vmul.u32 %v5584_v19, %v5581_v3  ;;  %v5588_v63 = vmul.u32 %v5584_v19, %v5582_v5 }
 0x521   :  { %v5371_v40 = vsel %vm5369_vm1, %v5356_v8, %v5370_v13  ;;  %v5482_v22 = vsel %vm5480_vm3, %v5481_v50, %v5479_v58  ;;  %v5608_v26 = vmul.u32 %v5606_v27, %v5581_v3  ;;  %v5471_v57 = vadd.s32 %v11883_v16, %v11888_v52 }
 0x522   :  { %v5375_v32 = vsel %vm5368_vm2, %v5371_v40, %v5374_v9  ;;  %v5483_v48 = vclz %v5482_v22  ;;  %v5589_v60 = vshll.u32 %v5586_v7, 16  ;;  %v5591_v49 = vshll.u32 %v5587_v10, 16 }
 0x523   :  { %v5376_v36 = vsel %vm5365_vm15, nan, %v5375_v32  ;;  %v5607_v51 = vmul.u32 %v5605_v6, %v5581_v3  ;;  %vm5379_vm5 = vcmp.lt.s32.totalorder %v11727_v62, 0  ;;  %v5590_v14 = vshrl.u32 %v5586_v7, 16 }
 0x524   :  { %5689 = vst [vmem:[#allocation5 + $0xa8] sm:$0xff] %v5376_v36  ;;  %v7701_v2 = vadd.s32 4294967294, %v5483_v48  ;;  %vm5593_vm4 = vc.u32 %v5585_v44, %v5589_v60  ;;  %v5595_v12 = vadd.s32 %v5589_v60, %v5585_v44  ;;  %v5609_v61 = vmul.u32 %v5605_v6, %v5582_v5 }
 0x525   :  { %v5594_v30 = vsel %vm5593_vm4, 1, %v7835_v53  ;;  %v5611_v45 = vshll.u32 %v5608_v26, 16  ;;  %v5568_v16 = vsel %vm5564_vm11, %v5548_v0, %v11903_v28  ;;  %v5569_v52 = vsel %vm5567_vm14, %v11913_v54, 2102212464 }
 0x526   :  { %vm7702_vm6 = vcmp.lt.s32.totalorder %v7701_v2, 0  ;;  %v5596_v4 = vadd.s32 %v5594_v30, %v5588_v63  ;;  %vm5597_vm7 = vc.u32 %v5595_v12, %v5591_v49  ;;  %v5610_v43 = vmul.u32 %v5606_v27, %v5582_v5 }
 0x527   :  { %v5486_v11 = vsel %vm7702_vm6, 0, %v7701_v2  ;;  %v5598_v38 = vsel %vm5597_vm7, 1, %v7835_v53  ;;  %v5501_v17 = vsub.s32 4, %v11925_v59  ;;  %v5613_v34 = vshll.u32 %v5609_v61, 16 }
 0x528   :  { %v5487_v47 = vsub.s32 32, %v5486_v11  ;;  %v5488_v8 = vshll.u32 %v5479_v58, %v5486_v11  ;;  %v5491_v42 = vsub.s32 4294967266, %v5486_v11  ;;  %v5600_v1 = vadd.s32 %v5598_v38, %v5596_v4 }
 0x529   :  { %v5592_v3 = vshrl.u32 %v5587_v10, 16  ;;  %vm5615_vm8 = vc.u32 %v5607_v51, %v5611_v45  ;;  %v5617_v58 = vadd.s32 %v5611_v45, %v5607_v51  ;;  %v11965_v13 = vadd.f32 1.5707964, %v11505_v55 }
 0x52a   :  { %v5489_v20 = vshrl.u32 %v5471_v57, %v5487_v47  ;;  %v5492_v39 = vadd.s32 127, %v5491_v42  ;;  %v5601_v28 = vadd.s32 %v5600_v1, %v5590_v14  ;;  %v5616_v50 = vsel %vm5615_vm8, 1, %v7835_v53 }
 0x52b   :  { %v5612_v19 = vshrl.u32 %v5608_v26, 16  ;;  %v5618_v54 = vadd.s32 %v5616_v50, %v5610_v43  ;;  %vm5619_vm9 = vc.u32 %v5617_v58, %v5613_v34  ;;  %v11969_v5 = vadd.f32 1.5707964, %v11538_v41 }
 0x52c   :  { %v5490_v9 = vor.u32 %v5489_v20, %v5488_v8  ;;  %v5493_v15 = vshll.u32 %v5492_v39, 23  ;;  %v5570_v10 = vsel %vm5566_vm12, %v11911_v23, %v5569_v52  ;;  %v5620_v55 = vsel %vm5619_vm9, 1, %v7835_v53 }
 0x52d   :  { %v5502_v6 = vsel %vm5379_vm5, %v5501_v17, %v11925_v59  ;;  %v5614_v32 = vshrl.u32 %v5609_v61, 16  ;;  %v5622_v22 = vadd.s32 %v5620_v55, %v5618_v54  ;;  %v5602_v7 = vadd.s32 %v5601_v28, %v5592_v3 }
 0x52e   :  { %v5494_v27 = vor.u32 4788187, %v5493_v15  ;;  %v5497_v40 = vcvt.s32.f32 %v5490_v9  ;;  %v5621_v36 = vadd.s32 %v5617_v58, %v5613_v34  ;;  %v5699_v41 = vand.u32 2139095040, %v11965_v13 }
 0x52f   :  { %vm11981_vm10 = vcmp.le.f32.partialorder %v5377_v56, 0.7853982  ;;  %v5571_v23 = vsel %vm5565_vm13, %v5568_v16, %v5570_v10  ;;  %v5623_v63 = vadd.s32 %v5622_v22, %v5612_v19  ;;  %v5854_v60 = vand.u32 2139095040, %v11969_v5 }
 0x530   :  { %v5495_v44 = vand.u32 2147483647, %v5494_v27  ;;  %v5504_v49 = vsel %vm11981_vm10, 0, %v5502_v6  ;;  %v5700_v26 = vshrl.u32 %v5699_v41, 23  ;;  %v5625_v57 = vmul.u32 %v11940_v18, %v5571_v23 }
 0x531   :  { %v5624_v2 = vadd.s32 %v5623_v63, %v5614_v32  ;;  %vm5627_vm11 = vc.u32 %v5602_v7, %v5621_v36  ;;  %v5521_v12 = vadd.s32 3, %v5504_v49  ;;  %v5696_v14 = vand.u32 2147483647, %v11965_v13 }
 0x532   :  { %v5498_v59 = vmul.f32 %v5497_v40, %v5495_v44  ;;  %v7706_v56 = vadd.s32 4294967169, %v5700_v26  ;;  %v5855_v21 = vshrl.u32 %v5854_v60, 23  ;;  %v5851_v20 = vand.u32 2147483647, %v11969_v5 }
 0x533   :  { %v5628_v51 = vadd.s32 1, %v5624_v2  ;;  %v11997_v18 = vand.u32 3, %v5521_v12  ;;  %v5703_v8 = vand.u32 8388607, %v5696_v14  ;;  %v12002_v34 = vadd.s32 %v5621_v36, %v5602_v7 }
 0x534   :  { %v5499_v0 = vxor.u32 2147483648, %v5498_v59  ;;  %v5706_v61 = vadd.s32 1, %v7706_v56  ;;  %v7709_v38 = vadd.s32 4294967169, %v5855_v21  ;;  %vm5520_vm0 = vweird.f32 %v11727_v62 }
 0x535   :  { %v5629_v4 = vsel %vm5627_vm11, %v5628_v51, %v5624_v2  ;;  %vm5527_vm13 = vcmp.eq.s32.totalorder %v11997_v18, 2  ;;  %v5704_v58 = vor.u32 8388608, %v5703_v8  ;;  %vm5524_vm14 = vcmp.eq.s32.totalorder %v11997_v18, 0 }
 0x536   :  { %v5500_v30 = vsel %vm5379_vm5, %v5499_v0, %v5498_v59  ;;  %v5630_v47 = vadd.s32 %v5629_v4, %v5625_v57  ;;  %vm5707_vm12 = vcmp.gt.s32.totalorder %v5706_v61, 0  ;;  %v5861_v28 = vadd.s32 1, %v7709_v38 }
 0x537   :  { %v5503_v11 = vsel %vm11981_vm10, %v11727_v62, %v5500_v30  ;;  %v5708_v42 = vsel %vm5707_vm12, %v5706_v61, 0  ;;  %vm5523_vm15 = vcmp.lt.s32.totalorder %v11997_v18, 2  ;;  %v12027_v36 = vshll.u32 %v5704_v58, 8 }
 0x538   :  { %v5505_v45 = vmul.f32 %v5503_v11, %v5503_v11  ;;  %v5631_v1 = vadd.s32 536870912, %v5630_v47  ;;  %v5710_v43 = vand.u32 31, %v5708_v42  ;;  %v12007_v9 = vshrl.u32 %v5708_v42, 5 }
 0x539   :  { %v12031_v41 = vand.u32 8388607, %v5851_v20  ;;  %vm5862_vm2 = vcmp.gt.s32.totalorder %v5861_v28, 0  ;;  %vm5534_vm4 = vcmp.lt.s32.totalorder %v11771_v25, 0  ;;  %vm12054_vm8 = vcmp.le.f32.partialorder %v5532_v24, 0.7853982 }
 0x53a   :  { %v5506_v16 = vmul.f32 -0.001358992, %v5505_v45  ;;  %v5513_v52 = vmul.f32 -0.00019511016, %v5505_v45  ;;  %v12004_v3 = vshrl.u32 %v5631_v1, 30  ;;  %v12009_v15 = vsub.s32 32, %v5710_v43 }
 0x53b   :  { %v5713_v27 = vshll.u32 %v7829_v29, %v5710_v43  ;;  %v5716_v10 = vshll.u32 %v7830_v31, %v5710_v43  ;;  %v5719_v6 = vshll.u32 %v7831_v33, %v5710_v43  ;;  %vm5728_vm1 = vcmp.lt.s32.totalorder %v12007_v9, 1 }
 0x53c   :  { %v5507_v39 = vadd.f32 0.041655596, %v5506_v16  ;;  %v5514_v17 = vadd.f32 0.008332121, %v5513_v52  ;;  %v5633_v54 = vshll.u32 %v12004_v3, 30  ;;  %v5714_v40 = vshrl.u32 %v7830_v31, %v12009_v15 }
 0x53d   :  { %v5717_v55 = vshrl.u32 %v7831_v33, %v12009_v15  ;;  %v5720_v7 = vshrl.u32 %v7832_v35, %v12009_v15  ;;  %v5722_v49 = vshll.u32 %v7832_v35, %v5710_v43  ;;  %v5723_v26 = vshrl.u32 %v7833_v37, %v12009_v15 }
 0x53e   :  { %v5508_v50 = vmul.f32 %v5507_v39, %v5505_v45  ;;  %v5515_v19 = vmul.f32 %v5514_v17, %v5505_v45  ;;  %v12021_v44 = vsub.s32 %v5630_v47, %v5633_v54  ;;  %v5715_v60 = vor.u32 %v5714_v40, %v5713_v27 }
 0x53f   :  { %v5718_v59 = vor.u32 %v5717_v55, %v5716_v10  ;;  %v5721_v56 = vor.u32 %v5720_v7, %v5719_v6  ;;  %v5724_v51 = vor.u32 %v5723_v26, %v5722_v49  ;;  %v5725_v21 = vshll.u32 %v7833_v37, %v5710_v43 }
 0x540   :  { %v5509_v32 = vadd.f32 -0.4999988, %v5508_v50  ;;  %v5516_v22 = vadd.f32 -0.16666654, %v5515_v19  ;;  %vm5635_vm3 = vcmp.lt.s32.totalorder %v12021_v44, 0  ;;  %v5636_v63 = vsub.s32 0, %v12021_v44 }
 0x541   :  { %v5726_v30 = vshrl.u32 %v7834_v46, %v12009_v15  ;;  %vm5730_vm5 = vcmp.lt.s32.totalorder %v12007_v9, 3  ;;  %vm5731_vm6 = vcmp.lt.s32.totalorder %v12007_v9, 4  ;;  %vm5729_vm7 = vcmp.lt.s32.totalorder %v12007_v9, 2 }
 0x542   :  { %v5510_v48 = vmul.f32 %v5509_v32, %v5505_v45  ;;  %v5517_v23 = vmul.f32 %v5516_v22, %v5505_v45  ;;  %v5637_v57 = vsel %vm5635_vm3, %v5636_v63, %v12021_v44  ;;  %v5736_v47 = vsel %vm5728_vm1, %v5715_v60, %v5718_v59 }
 0x543   :  { %v5638_v12 = vclz %v5637_v57  ;;  %v5737_v8 = vsel %vm5731_vm6, %v5724_v51, 920167782  ;;  %v5745_v16 = vand.u32 65535, %v12027_v36  ;;  %v5746_v52 = vshrl.u32 %v12027_v36, 16 }
 0x544   :  { %v5511_v2 = vadd.f32 1.0, %v5510_v48  ;;  %v5518_v0 = vadd.f32 1.0, %v5517_v23  ;;  %v5727_v1 = vor.u32 %v5726_v30, %v5725_v21  ;;  %v5738_v43 = vsel %vm5730_vm5, %v5721_v56, %v5737_v8 }
 0x545   :  { %v7704_v45 = vadd.s32 4294967294, %v5638_v12  ;;  %v5863_v39 = vsel %vm5862_vm2, %v5861_v28, 0  ;;  %v5656_v24 = vsub.s32 4, %v12004_v3  ;;  %v5739_v50 = vsel %vm5729_vm7, %v5736_v47, %v5738_v43 }
 0x546   :  { %v5519_v61 = vmul.f32 %v5518_v0, %v5503_v11  ;;  %v5528_v4 = vxor.u32 2147483648, %v5511_v2  ;;  %v5712_v28 = vshrl.u32 %v7829_v29, %v12009_v15  ;;  %v5733_v55 = vsel %vm5731_vm6, %v5721_v56, 2102212464 }
 0x547   :  { %vm7705_vm9 = vcmp.lt.s32.totalorder %v7704_v45, 0  ;;  %v12077_v6 = vshrl.u32 %v5863_v39, 5  ;;  %v5740_v18 = vsel %vm5728_vm1, %v5718_v59, %v5721_v56  ;;  %v12087_v7 = vsel %vm5534_vm4, %v5656_v24, %v12004_v3 }
 0x548   :  { %v5525_v42 = vxor.u32 2147483648, %v5519_v61  ;;  %v5529_v38 = vsel %vm5527_vm13, %v5528_v4, %v5519_v61  ;;  %v5641_v58 = vsel %vm7705_vm9, 0, %v7704_v45  ;;  %v5769_v48 = vand.u32 65535, %v5739_v50 }
 0x549   :  { %v5642_v54 = vsub.s32 32, %v5641_v58  ;;  %v5643_v27 = vshll.u32 %v12021_v44, %v5641_v58  ;;  %v5646_v40 = vsub.s32 4294967266, %v5641_v58  ;;  %v5741_v44 = vsel %vm5731_vm6, %v5727_v1, 1326507024 }
 0x54a   :  { %v5526_v17 = vsel %vm5524_vm14, %v5511_v2, %v5525_v42  ;;  %v5742_v15 = vsel %vm5730_vm5, %v5724_v51, %v5741_v44  ;;  %v5770_v23 = vshrl.u32 %v5739_v50, 16  ;;  %v12093_v26 = vand.u32 31, %v5863_v39 }
 0x54b   :  { %v5530_v19 = vsel %vm5523_vm15, %v5526_v17, %v5529_v38  ;;  %v5644_v32 = vshrl.u32 %v12002_v34, %v5642_v54  ;;  %v5647_v22 = vadd.s32 127, %v5646_v40  ;;  %v5743_v49 = vsel %vm5729_vm7, %v5740_v18, %v5742_v15 }
 0x54c   :  { %v5531_v10 = vsel %vm5520_vm0, nan, %v5530_v19  ;;  %v5732_v2 = vsel %vm5728_vm1, %v5712_v28, %v5715_v60  ;;  %v5734_v0 = vsel %vm5730_vm5, %v5718_v59, %v5733_v55  ;;  %v5747_v3 = vand.u32 65535, %v5743_v49 }
 0x54d   :  { %5690 = vst [vmem:[#allocation5 + $0xb0] sm:$0xff] %v5531_v10  ;;  %v5645_v63 = vor.u32 %v5644_v32, %v5643_v27  ;;  %v5648_v34 = vshll.u32 %v5647_v22, 23  ;;  %v5748_v57 = vshrl.u32 %v5743_v49, 16  ;;  %v5659_v51 = vsel %vm12054_vm8, 0, %v12087_v7 }
 0x54e   :  { %v5772_v21 = vmul.u32 %v5770_v23, %v5745_v16  ;;  %v5749_v30 = vmul.u32 %v5747_v3, %v5745_v16  ;;  %v5751_v4 = vmul.u32 %v5747_v3, %v5746_v52  ;;  %v5771_v45 = vmul.u32 %v5769_v48, %v5745_v16 }
 0x54f   :  { %v5649_v56 = vor.u32 4788187, %v5648_v34  ;;  %v5652_v12 = vcvt.s32.f32 %v5645_v63  ;;  %v5750_v61 = vmul.u32 %v5748_v57, %v5745_v16  ;;  %v12104_v60 = vsel %vm5729_vm7, %v5732_v2, %v5734_v0 }
 0x550   :  { %v5773_v8 = vmul.u32 %v5769_v48, %v5746_v52  ;;  %v5775_v59 = vshll.u32 %v5772_v21, 16  ;;  %v5752_v42 = vmul.u32 %v5748_v57, %v5746_v52  ;;  %v5755_v1 = vshll.u32 %v5751_v4, 16 }
 0x551   :  { %v5650_v47 = vand.u32 2147483647, %v5649_v56  ;;  %v5753_v38 = vshll.u32 %v5750_v61, 16  ;;  %v5774_v43 = vmul.u32 %v5770_v23, %v5746_v52  ;;  %v5754_v17 = vshrl.u32 %v5750_v61, 16 }
 0x552   :  { %v5777_v58 = vshll.u32 %v5773_v8, 16  ;;  %v12107_v24 = vsub.s32 32, %v12093_v26  ;;  %vm5779_vm11 = vc.u32 %v5771_v45, %v5775_v59  ;;  %v5781_v16 = vadd.s32 %v5775_v59, %v5771_v45 }
 0x553   :  { %v5653_v39 = vmul.f32 %v5652_v12, %v5650_v47  ;;  %vm5757_vm10 = vc.u32 %v5749_v30, %v5753_v38  ;;  %v5759_v50 = vadd.s32 %v5753_v38, %v5749_v30  ;;  %v5776_v54 = vshrl.u32 %v5772_v21, 16 }
 0x554   :  { %v5758_v9 = vsel %vm5757_vm10, 1, %v7835_v53  ;;  %v5780_v27 = vsel %vm5779_vm11, 1, %v7835_v53  ;;  %vm5783_vm13 = vc.u32 %v5781_v16, %v5777_v58  ;;  %v5756_v28 = vshrl.u32 %v5751_v4, 16 }
 0x555   :  { %v5654_v19 = vxor.u32 2147483648, %v5653_v39  ;;  %v5760_v40 = vadd.s32 %v5758_v9, %v5752_v42  ;;  %vm5761_vm12 = vc.u32 %v5759_v50, %v5755_v1  ;;  %v5782_v10 = vadd.s32 %v5780_v27, %v5774_v43 }
 0x556   :  { %v5762_v55 = vsel %vm5761_vm12, 1, %v7835_v53  ;;  %v5784_v32 = vsel %vm5783_vm13, 1, %v7835_v53  ;;  %v5778_v44 = vshrl.u32 %v5773_v8, 16  ;;  %v12118_v48 = vadd.s32 %v5781_v16, %v5777_v58 }
 0x557   :  { %v5655_v52 = vsel %vm5534_vm4, %v5654_v19, %v5653_v39  ;;  %v5764_v18 = vadd.s32 %v5762_v55, %v5760_v40  ;;  %v5786_v7 = vadd.s32 %v5784_v32, %v5782_v10  ;;  %v5789_v23 = vmul.u32 %v12027_v36, %v12104_v60 }
 0x558   :  { %v5658_v22 = vsel %vm12054_vm8, %v11771_v25, %v5655_v52  ;;  %v5868_v63 = vshll.u32 %v7829_v29, %v12093_v26  ;;  %v5869_v2 = vshrl.u32 %v7830_v31, %v12107_v24  ;;  %v5871_v11 = vshll.u32 %v7830_v31, %v12093_v26 }
 0x559   :  { %v5660_v15 = vmul.f32 %v5658_v22, %v5658_v22  ;;  %v5765_v34 = vadd.s32 %v5764_v18, %v5754_v17  ;;  %v5787_v49 = vadd.s32 %v5786_v7, %v5776_v54  ;;  %v5872_v57 = vshrl.u32 %v7831_v33, %v12107_v24 }
 0x55a   :  { %v5874_v56 = vshll.u32 %v7831_v33, %v12093_v26  ;;  %v5875_v21 = vshrl.u32 %v7832_v35, %v12107_v24  ;;  %v5877_v30 = vshll.u32 %v7832_v35, %v12093_v26  ;;  %v5878_v45 = vshrl.u32 %v7833_v37, %v12107_v24 }
 0x55b   :  { %v5661_v0 = vmul.f32 -0.001358992, %v5660_v15  ;;  %v5668_v3 = vmul.f32 -0.00019511016, %v5660_v15  ;;  %v12132_v36 = vadd.s32 %v5765_v34, %v5756_v28  ;;  %v5788_v12 = vadd.s32 %v5787_v49, %v5778_v44 }
 0x55c   :  { %v5880_v47 = vshll.u32 %v7833_v37, %v12093_v26  ;;  %v5676_v60 = vadd.s32 3, %v5659_v51  ;;  %v5881_v59 = vshrl.u32 %v7834_v46, %v12107_v24  ;;  %v12146_v1 = vor.u32 %v5869_v2, %v5868_v63 }
 0x55d   :  { %v5662_v61 = vadd.f32 0.041655596, %v5661_v0  ;;  %v5669_v4 = vadd.f32 0.008332121, %v5668_v3  ;;  %vm5791_vm14 = vc.u32 %v12132_v36, %v12118_v48  ;;  %v5792_v8 = vadd.s32 1, %v5788_v12 }
 0x55e   :  { %v12148_v43 = vor.u32 %v5872_v57, %v5871_v11  ;;  %v12150_v17 = vor.u32 %v5875_v21, %v5874_v56  ;;  %v5879_v58 = vor.u32 %v5878_v45, %v5877_v30  ;;  %v5882_v50 = vor.u32 %v5881_v59, %v5880_v47 }
 0x55f   :  { %v5663_v42 = vmul.f32 %v5662_v61, %v5660_v15  ;;  %v5670_v38 = vmul.f32 %v5669_v4, %v5660_v15  ;;  %v5793_v39 = vsel %vm5791_vm14, %v5792_v8, %v5788_v12  ;;  %vm5883_vm15 = vcmp.lt.s32.totalorder %v12077_v6, 1 }
 0x560   :  { %v5794_v16 = vadd.s32 %v5793_v39, %v5789_v23  ;;  %v5677_v19 = vand.u32 3, %v5676_v60  ;;  %v5859_v9 = vor.u32 8388608, %v12031_v41  ;;  %vm5886_vm0 = vcmp.lt.s32.totalorder %v12077_v6, 4 }
 0x561   :  { %v5664_v26 = vadd.f32 -0.4999988, %v5663_v42  ;;  %v5671_v51 = vadd.f32 -0.16666654, %v5670_v38  ;;  %vm5885_vm1 = vcmp.lt.s32.totalorder %v12077_v6, 3  ;;  %vm5884_vm2 = vcmp.lt.s32.totalorder %v12077_v6, 2 }
 0x562   :  { %v5795_v40 = vadd.s32 536870912, %v5794_v16  ;;  %v5891_v10 = vsel %vm5883_vm15, %v12146_v1, %v12148_v43  ;;  %v5892_v52 = vsel %vm5886_vm0, %v5879_v58, 920167782  ;;  %v5896_v41 = vsel %vm5886_vm0, %v5882_v50, 1326507024 }
 0x563   :  { %v5665_v54 = vmul.f32 %v5664_v26, %v5660_v15  ;;  %v5672_v27 = vmul.f32 %v5671_v51, %v5660_v15  ;;  %v5895_v18 = vsel %vm5883_vm15, %v12148_v43, %v12150_v17  ;;  %vm5682_vm3 = vcmp.eq.s32.totalorder %v5677_v19, 2 }
 0x564   :  { %v12165_v32 = vshrl.u32 %v5795_v40, 30  ;;  %v5893_v44 = vsel %vm5885_vm1, %v12150_v17, %v5892_v52  ;;  %v5897_v7 = vsel %vm5885_vm1, %v5879_v58, %v5896_v41  ;;  %v12176_v15 = vshll.u32 %v5859_v9, 8 }
 0x565   :  { %v5666_v28 = vadd.f32 1.0, %v5665_v54  ;;  %v5673_v55 = vadd.f32 1.0, %v5672_v27  ;;  %vm5679_vm4 = vcmp.eq.s32.totalorder %v5677_v19, 0  ;;  %v5894_v49 = vsel %vm5884_vm2, %v5891_v10, %v5893_v44 }
 0x566   :  { %v5797_v34 = vshll.u32 %v12165_v32, 30  ;;  %v5898_v2 = vsel %vm5884_vm2, %v5895_v18, %v5897_v7  ;;  %v5900_v11 = vand.u32 65535, %v12176_v15  ;;  %v5901_v0 = vshrl.u32 %v12176_v15, 16 }
 0x567   :  { %v5674_v23 = vmul.f32 %v5673_v55, %v5658_v22  ;;  %v5683_v63 = vxor.u32 2147483648, %v5666_v28  ;;  %vm5678_vm5 = vcmp.lt.s32.totalorder %v5677_v19, 2  ;;  %vm5675_vm6 = vweird.f32 %v11771_v25 }
 0x568   :  { %v5798_v56 = vsub.s32 %v5794_v16, %v5797_v34  ;;  %v5902_v22 = vand.u32 65535, %v5898_v2  ;;  %v5903_v12 = vshrl.u32 %v5898_v2, 16  ;;  %v5925_v61 = vshrl.u32 %v5894_v49, 16 }
 0x569   :  { %v5680_v3 = vxor.u32 2147483648, %v5674_v23  ;;  %v5684_v57 = vsel %vm5682_vm3, %v5683_v63, %v5674_v23  ;;  %v5924_v42 = vand.u32 65535, %v5894_v49  ;;  %v12190_v26 = vadd.f32 1.5707964, %v11727_v62 }
 0x56a   :  { %vm5799_vm7 = vcmp.lt.s32.totalorder %v5798_v56, 0  ;;  %v5800_v30 = vsub.s32 0, %v5798_v56  ;;  %v5904_v45 = vmul.u32 %v5902_v22, %v5900_v11  ;;  %v5905_v47 = vmul.u32 %v5903_v12, %v5900_v11 }
 0x56b   :  { %v5681_v21 = vsel %vm5679_vm4, %v5666_v28, %v5680_v3  ;;  %v12186_v60 = vmul.u32 %v5902_v22, %v5901_v0  ;;  %v5907_v39 = vmul.u32 %v5903_v12, %v5901_v0  ;;  %v5867_v51 = vshrl.u32 %v7829_v29, %v12107_v24 }
 0x56c   :  { %v5685_v4 = vsel %vm5678_vm5, %v5681_v21, %v5684_v57  ;;  %v5801_v59 = vsel %vm5799_vm7, %v5800_v30, %v5798_v56  ;;  %v5908_v58 = vshll.u32 %v5905_v47, 16  ;;  %v5927_v16 = vmul.u32 %v5925_v61, %v5900_v11 }
 0x56d   :  { %v5686_v8 = vsel %vm5675_vm6, nan, %v5685_v4  ;;  %v5802_v38 = vclz %v5801_v59  ;;  %v5910_v50 = vshll.u32 %v12186_v60, 16  ;;  %v5790_v19 = vadd.s32 %v12118_v48, %v12132_v36 }
 0x56e   :  { %5691 = vst [vmem:[#allocation5 + $0xb8] sm:$0xff] %v5686_v8  ;;  %vm5912_vm8 = vc.u32 %v5904_v45, %v5908_v58  ;;  %v5914_v54 = vadd.s32 %v5908_v58, %v5904_v45  ;;  %vm5698_vm9 = vcmp.lt.s32.totalorder %v11965_v13, 0  ;;  %v5888_v27 = vsel %vm5886_vm0, %v12150_v17, 2102212464 }
 0x56f   :  { %v7707_v9 = vadd.s32 4294967294, %v5802_v38  ;;  %v5913_v40 = vsel %vm5912_vm8, 1, %v7835_v53  ;;  %v5926_v62 = vmul.u32 %v5924_v42, %v5900_v11  ;;  %v5928_v10 = vmul.u32 %v5924_v42, %v5901_v0 }
 0x570   :  { %v5915_v52 = vadd.s32 %v5913_v40, %v5907_v39  ;;  %vm5916_vm11 = vc.u32 %v5914_v54, %v5910_v50  ;;  %v5930_v24 = vshll.u32 %v5927_v16, 16  ;;  %v5909_v28 = vshrl.u32 %v5905_v47, 16 }
 0x571   :  { %vm7708_vm10 = vcmp.lt.s32.totalorder %v7707_v9, 0  ;;  %v5917_v48 = vsel %vm5916_vm11, 1, %v7835_v53  ;;  %v5929_v36 = vmul.u32 %v5925_v61, %v5901_v0  ;;  %v5887_v17 = vsel %vm5883_vm15, %v5867_v51, %v12146_v1 }
 0x572   :  { %v5805_v41 = vsel %vm7708_vm10, 0, %v7707_v9  ;;  %v5919_v7 = vadd.s32 %v5917_v48, %v5915_v52  ;;  %v5889_v23 = vsel %vm5885_vm1, %v12148_v43, %v5888_v27  ;;  %v5932_v63 = vshll.u32 %v5928_v10, 16 }
 0x573   :  { %v5806_v55 = vsub.s32 32, %v5805_v41  ;;  %v5807_v18 = vshll.u32 %v5798_v56, %v5805_v41  ;;  %v5810_v44 = vsub.s32 4294967266, %v5805_v41  ;;  %v6006_v34 = vand.u32 2147483647, %v12190_v26 }
 0x574   :  { %v5820_v11 = vsub.s32 4, %v12165_v32  ;;  %vm5934_vm12 = vc.u32 %v5926_v62, %v5930_v24  ;;  %v5911_v0 = vshrl.u32 %v12186_v60, 16  ;;  %v5936_v57 = vadd.s32 %v5930_v24, %v5926_v62 }
 0x575   :  { %v5808_v49 = vshrl.u32 %v5790_v19, %v5806_v55  ;;  %v5811_v2 = vadd.s32 127, %v5810_v44  ;;  %v5935_v3 = vsel %vm5934_vm12, 1, %v7835_v53  ;;  %v6009_v56 = vand.u32 2139095040, %v12190_v26 }
 0x576   :  { %v5920_v12 = vadd.s32 %v5919_v7, %v5909_v28  ;;  %v5937_v21 = vadd.s32 %v5935_v3, %v5929_v36  ;;  %v5931_v43 = vshrl.u32 %v5927_v16, 16  ;;  %vm5938_vm13 = vc.u32 %v5936_v57, %v5932_v63 }
 0x577   :  { %v5809_v1 = vor.u32 %v5808_v49, %v5807_v18  ;;  %v5812_v22 = vshll.u32 %v5811_v2, 23  ;;  %v6010_v30 = vshrl.u32 %v6009_v56, 23  ;;  %v6013_v61 = vand.u32 8388607, %v6006_v34 }
 0x578   :  { %v5821_v47 = vsel %vm5698_vm9, %v5820_v11, %v12165_v32  ;;  %v5939_v60 = vsel %vm5938_vm13, 1, %v7835_v53  ;;  %vm12221_vm14 = vcmp.le.f32.partialorder %v5696_v14, 0.7853982  ;;  %v5933_v59 = vshrl.u32 %v5928_v10, 16 }
 0x579   :  { %v5813_v4 = vor.u32 4788187, %v5812_v22  ;;  %v5816_v45 = vcvt.s32.f32 %v5809_v1  ;;  %v5941_v42 = vadd.s32 %v5939_v60, %v5937_v21  ;;  %v7712_v38 = vadd.s32 4294967169, %v6010_v30 }
 0x57a   :  { %v5890_v58 = vsel %vm5884_vm2, %v5887_v17, %v5889_v23  ;;  %v12227_v50 = vadd.s32 %v5920_v12, %v5911_v0  ;;  %v12229_v51 = vadd.s32 %v5936_v57, %v5932_v63  ;;  %v5823_v32 = vsel %vm12221_vm14, 0, %v5821_v47 }
 0x57b   :  { %v5814_v39 = vand.u32 2147483647, %v5813_v4  ;;  %v5942_v16 = vadd.s32 %v5941_v42, %v5931_v43  ;;  %v6014_v19 = vor.u32 8388608, %v6013_v61  ;;  %v6016_v14 = vadd.s32 1, %v7712_v38 }
 0x57c   :  { %v5944_v27 = vmul.u32 %v12176_v15, %v5890_v58  ;;  %v5840_v62 = vadd.s32 3, %v5823_v32  ;;  %vm5946_vm0 = vc.u32 %v12227_v50, %v12229_v51  ;;  %v12237_v10 = vadd.f32 1.5707964, %v11771_v25 }
 0x57d   :  { %v5817_v9 = vmul.f32 %v5816_v45, %v5814_v39  ;;  %v5943_v54 = vadd.s32 %v5942_v16, %v5933_v59  ;;  %vm6017_vm15 = vcmp.gt.s32.totalorder %v6016_v14, 0  ;;  %v12239_v41 = vshll.u32 %v6014_v19, 8 }
 0x57e   :  { %v6018_v6 = vsel %vm6017_vm15, %v6016_v14, 0  ;;  %v12252_v25 = vand.u32 3, %v5840_v62  ;;  %v6161_v17 = vand.u32 2147483647, %v12237_v10  ;;  %v6164_v23 = vand.u32 2139095040, %v12237_v10 }
 0x57f   :  { %v5818_v40 = vxor.u32 2147483648, %v5817_v9  ;;  %v5947_v52 = vadd.s32 1, %v5943_v54  ;;  %v6020_v24 = vand.u32 31, %v6018_v6  ;;  %v12254_v44 = vshrl.u32 %v6018_v6, 5 }
 0x580   :  { %v12257_v7 = vand.u32 65535, %v12239_v41  ;;  %vm5846_vm1 = vcmp.eq.s32.totalorder %v12252_v25, 2  ;;  %v6165_v8 = vshrl.u32 %v6164_v23, 23  ;;  %vm5843_vm2 = vcmp.eq.s32.totalorder %v12252_v25, 0 }
 0x581   :  { %v5819_v28 = vsel %vm5698_vm9, %v5818_v40, %v5817_v9  ;;  %v5948_v48 = vsel %vm5946_vm0, %v5947_v52, %v5943_v54  ;;  %v12248_v36 = vsub.s32 32, %v6020_v24  ;;  %v6026_v11 = vshll.u32 %v7830_v31, %v6020_v24 }
 0x582   :  { %v12246_v15 = vsel %vm12221_vm14, %v11965_v13, %v5819_v28  ;;  %v5949_v18 = vadd.s32 %v5948_v48, %v5944_v27  ;;  %v6029_v3 = vshll.u32 %v7831_v33, %v6020_v24  ;;  %v6032_v56 = vshll.u32 %v7832_v35, %v6020_v24 }
 0x583   :  { %v5824_v55 = vmul.f32 %v12246_v15, %v12246_v15  ;;  %v6027_v0 = vshrl.u32 %v7831_v33, %v12248_v36  ;;  %v6030_v57 = vshrl.u32 %v7832_v35, %v12248_v36  ;;  %v6033_v21 = vshrl.u32 %v7833_v37, %v12248_v36 }
 0x584   :  { %v5950_v2 = vadd.s32 536870912, %v5949_v18  ;;  %v6023_v43 = vshll.u32 %v7829_v29, %v6020_v24  ;;  %v6024_v30 = vshrl.u32 %v7830_v31, %v12248_v36  ;;  %v6035_v61 = vshll.u32 %v7833_v37, %v6020_v24 }
 0x585   :  { %v5825_v63 = vmul.f32 -0.001358992, %v5824_v55  ;;  %v5832_v49 = vmul.f32 -0.00019511016, %v5824_v55  ;;  %v6036_v4 = vshrl.u32 %v7834_v46, %v12248_v36  ;;  %v12278_v59 = vor.u32 %v6027_v0, %v6026_v11 }
 0x586   :  { %v5951_v12 = vshrl.u32 %v5950_v2, 30  ;;  %v12280_v42 = vor.u32 %v6030_v57, %v6029_v3  ;;  %v6034_v38 = vor.u32 %v6033_v21, %v6032_v56  ;;  %vm5842_vm3 = vcmp.lt.s32.totalorder %v12252_v25, 2 }
 0x587   :  { %v5826_v1 = vadd.f32 0.041655596, %v5825_v63  ;;  %v5833_v22 = vadd.f32 0.008332121, %v5832_v49  ;;  %v6037_v39 = vor.u32 %v6036_v4, %v6035_v61  ;;  %vm5853_vm4 = vcmp.lt.s32.totalorder %v11969_v5, 0 }
 0x588   :  { %v5952_v60 = vshll.u32 %v5951_v12, 30  ;;  %vm6038_vm5 = vcmp.lt.s32.totalorder %v12254_v44, 1  ;;  %vm5839_vm6 = vweird.f32 %v11965_v13  ;;  %v12286_v19 = vor.u32 %v6024_v30, %v6023_v43 }
 0x589   :  { %v5827_v45 = vmul.f32 %v5826_v1, %v5824_v55  ;;  %v5834_v47 = vmul.f32 %v5833_v22, %v5824_v55  ;;  %vm6040_vm7 = vcmp.lt.s32.totalorder %v12254_v44, 3  ;;  %vm6041_vm8 = vcmp.lt.s32.totalorder %v12254_v44, 4 }
 0x58a   :  { %v5953_v16 = vsub.s32 %v5949_v18, %v5952_v60  ;;  %v12291_v14 = vshrl.u32 %v12239_v41, 16  ;;  %vm6039_vm10 = vcmp.lt.s32.totalorder %v12254_v44, 2  ;;  %v6047_v40 = vsel %vm6041_vm8, %v6034_v38, 920167782 }
 0x58b   :  { %v5828_v58 = vadd.f32 -0.4999988, %v5827_v45  ;;  %v5835_v32 = vadd.f32 -0.16666654, %v5834_v47  ;;  %v6050_v62 = vsel %vm6038_vm5, %v12278_v59, %v12280_v42  ;;  %v6051_v6 = vsel %vm6041_vm8, %v6037_v39, 1326507024 }
 0x58c   :  { %vm5954_vm9 = vcmp.lt.s32.totalorder %v5953_v16, 0  ;;  %v5955_v27 = vsub.s32 0, %v5953_v16  ;;  %v7715_v48 = vadd.s32 4294967169, %v6165_v8  ;;  %vm12304_vm11 = vcmp.le.f32.partialorder %v5851_v20, 0.7853982 }
 0x58d   :  { %v5829_v9 = vmul.f32 %v5828_v58, %v5824_v55  ;;  %v5836_v54 = vmul.f32 %v5835_v32, %v5824_v55  ;;  %v5975_v23 = vsub.s32 4, %v5951_v12  ;;  %v6046_v63 = vsel %vm6038_vm5, %v12286_v19, %v12278_v59 }
 0x58e   :  { %v5956_v28 = vsel %vm5954_vm9, %v5955_v27, %v5953_v16  ;;  %v6052_v49 = vsel %vm6040_vm7, %v6034_v38, %v6051_v6  ;;  %v6048_v20 = vsel %vm6040_vm7, %v12280_v42, %v6047_v40  ;;  %v5945_v3 = vadd.s32 %v12229_v51, %v12227_v50 }
 0x58f   :  { %v5830_v52 = vadd.f32 1.0, %v5829_v9  ;;  %v5837_v24 = vadd.f32 1.0, %v5836_v54  ;;  %v5957_v18 = vclz %v5956_v28  ;;  %v6053_v0 = vsel %vm6039_vm10, %v6050_v62, %v6052_v49 }
 0x590   :  { %v6057_v56 = vand.u32 65535, %v6053_v0  ;;  %v6058_v1 = vshrl.u32 %v6053_v0, 16  ;;  %v6171_v43 = vadd.s32 1, %v7715_v48  ;;  %v5976_v30 = vsel %vm5853_vm4, %v5975_v23, %v5951_v12 }
 0x591   :  { %v5838_v2 = vmul.f32 %v5837_v24, %v12246_v15  ;;  %v5847_v11 = vxor.u32 2147483648, %v5830_v52  ;;  %v7710_v57 = vadd.s32 4294967294, %v5957_v18  ;;  %v12326_v15 = vand.u32 8388607, %v6161_v17 }
 0x592   :  { %v6049_v61 = vsel %vm6039_vm10, %v6046_v63, %v6048_v20  ;;  %v6060_v50 = vmul.u32 %v6058_v1, %v12257_v7  ;;  %v6059_v45 = vmul.u32 %v6057_v56, %v12257_v7  ;;  %v6061_v47 = vmul.u32 %v6057_v56, %v12291_v14 }
 0x593   :  { %v5844_v22 = vxor.u32 2147483648, %v5838_v2  ;;  %v5848_v21 = vsel %vm5846_vm1, %v5847_v11, %v5838_v2  ;;  %vm7711_vm12 = vcmp.lt.s32.totalorder %v7710_v57, 0  ;;  %v6022_v58 = vshrl.u32 %v7829_v29, %v12248_v36 }
 0x594   :  { %v5960_v4 = vsel %vm7711_vm12, 0, %v7710_v57  ;;  %v6079_v32 = vand.u32 65535, %v6049_v61  ;;  %v6080_v9 = vshrl.u32 %v6049_v61, 16  ;;  %v6062_v40 = vmul.u32 %v6058_v1, %v12291_v14 }
 0x595   :  { %v5845_v51 = vsel %vm5843_vm2, %v5830_v52, %v5844_v22  ;;  %v5961_v8 = vsub.s32 32, %v5960_v4  ;;  %v5962_v38 = vshll.u32 %v5953_v16, %v5960_v4  ;;  %v5965_v39 = vsub.s32 4294967266, %v5960_v4 }
 0x596   :  { %v5849_v60 = vsel %vm5842_vm3, %v5845_v51, %v5848_v21  ;;  %v6063_v62 = vshll.u32 %v6060_v50, 16  ;;  %v5978_v25 = vsel %vm12304_vm11, 0, %v5976_v30  ;;  %v6043_v16 = vsel %vm6041_vm8, %v12280_v42, 2102212464 }
 0x597   :  { %v5850_v12 = vsel %vm5839_vm6, nan, %v5849_v60  ;;  %v5963_v54 = vshrl.u32 %v5945_v3, %v5961_v8  ;;  %v5966_v27 = vadd.s32 127, %v5965_v39  ;;  %v6064_v13 = vshrl.u32 %v6060_v50, 16 }
 0x598   :  { %6317 = vst [vmem:[#allocation5 + $0x160] sm:$0xff] %v5850_v12  ;;  %v6065_v6 = vshll.u32 %v6061_v47, 16  ;;  %vm6067_vm13 = vc.u32 %v6059_v45, %v6063_v62  ;;  %v6069_v36 = vadd.s32 %v6063_v62, %v6059_v45  ;;  %v6081_v48 = vmul.u32 %v6079_v32, %v12257_v7 }
 0x599   :  { %v5964_v52 = vor.u32 %v5963_v54, %v5962_v38  ;;  %v5967_v24 = vshll.u32 %v5966_v27, 23  ;;  %v6068_v28 = vsel %vm6067_vm13, 1, %v7835_v53  ;;  %v6082_v18 = vmul.u32 %v6080_v9, %v12257_v7 }
 0x59a   :  { %v6083_v23 = vmul.u32 %v6079_v32, %v12291_v14  ;;  %v6070_v2 = vadd.s32 %v6068_v28, %v6062_v40  ;;  %vm6071_vm14 = vc.u32 %v6069_v36, %v6065_v6  ;;  %v6084_v11 = vmul.u32 %v6080_v9, %v12291_v14 }
 0x59b   :  { %v5968_v63 = vor.u32 4788187, %v5967_v24  ;;  %v5971_v49 = vcvt.s32.f32 %v5964_v52  ;;  %v6072_v42 = vsel %vm6071_vm14, 1, %v7835_v53  ;;  %v6085_v20 = vshll.u32 %v6082_v18, 16 }
 0x59c   :  { %v6087_v0 = vshll.u32 %v6083_v23, 16  ;;  %v6042_v57 = vsel %vm6038_vm5, %v6022_v58, %v12286_v19  ;;  %v6044_v7 = vsel %vm6040_vm7, %v12278_v59, %v6043_v16  ;;  %v6074_v56 = vadd.s32 %v6072_v42, %v6070_v2 }
 0x59d   :  { %v5969_v3 = vand.u32 2147483647, %v5968_v63  ;;  %v6066_v1 = vshrl.u32 %v6061_v47, 16  ;;  %vm6089_vm15 = vc.u32 %v6081_v48, %v6085_v20  ;;  %v6091_v22 = vadd.s32 %v6085_v20, %v6081_v48 }
 0x59e   :  { %vm6172_vm0 = vcmp.gt.s32.totalorder %v6171_v43, 0  ;;  %v6075_v30 = vadd.s32 %v6074_v56, %v6064_v13  ;;  %v6090_v14 = vsel %vm6089_vm15, 1, %v7835_v53  ;;  %v6086_v50 = vshrl.u32 %v6082_v18, 16 }
 0x59f   :  { %v5972_v21 = vmul.f32 %v5971_v49, %v5969_v3  ;;  %v6173_v61 = vsel %vm6172_vm0, %v6171_v43, 0  ;;  %v6092_v51 = vadd.s32 %v6090_v14, %v6084_v11  ;;  %vm6093_vm1 = vc.u32 %v6091_v22, %v6087_v0 }
 0x5a0   :  { %v6094_v19 = vsel %vm6093_vm1, 1, %v7835_v53  ;;  %v6169_v45 = vor.u32 8388608, %v12326_v15  ;;  %v6175_v60 = vand.u32 31, %v6173_v61  ;;  %v5995_v59 = vadd.s32 3, %v5978_v25 }
 0x5a1   :  { %v5973_v4 = vxor.u32 2147483648, %v5972_v21  ;;  %v6045_v47 = vsel %vm6039_vm10, %v6042_v57, %v6044_v7  ;;  %v6088_v8 = vshrl.u32 %v6083_v23, 16  ;;  %v6096_v38 = vadd.s32 %v6094_v19, %v6092_v51 }
 0x5a2   :  { %v12368_v12 = vadd.s32 %v6075_v30, %v6066_v1  ;;  %v12370_v43 = vadd.s32 %v6091_v22, %v6087_v0  ;;  %v12372_v58 = vsub.s32 32, %v6175_v60  ;;  %v12377_v9 = vshrl.u32 %v6173_v61, 5 }
 0x5a3   :  { %v5974_v39 = vsel %vm5853_vm4, %v5973_v4, %v5972_v21  ;;  %v6097_v32 = vadd.s32 %v6096_v38, %v6086_v50  ;;  %v6178_v44 = vshll.u32 %v7829_v29, %v6175_v60  ;;  %v6181_v40 = vshll.u32 %v7830_v31, %v6175_v60 }
 0x5a4   :  { %v5977_v15 = vsel %vm12304_vm11, %v11969_v5, %v5974_v39  ;;  %v6179_v27 = vshrl.u32 %v7830_v31, %v12372_v58  ;;  %v6182_v62 = vshrl.u32 %v7831_v33, %v12372_v58  ;;  %v6184_v16 = vshll.u32 %v7831_v33, %v6175_v60 }
 0x5a5   :  { %v5979_v54 = vmul.f32 %v5977_v15, %v5977_v15  ;;  %v6098_v25 = vadd.s32 %v6097_v32, %v6088_v8  ;;  %v6185_v55 = vshrl.u32 %v7832_v35, %v12372_v58  ;;  %v6187_v13 = vshll.u32 %v7832_v35, %v6175_v60 }
 0x5a6   :  { %v6099_v24 = vmul.u32 %v12239_v41, %v6045_v47  ;;  %vm6101_vm2 = vc.u32 %v12368_v12, %v12370_v43  ;;  %v12392_v28 = vor.u32 %v6179_v27, %v6178_v44  ;;  %v6188_v48 = vshrl.u32 %v7833_v37, %v12372_v58 }
 0x5a7   :  { %v5980_v6 = vmul.f32 -0.001358992, %v5979_v54  ;;  %v5987_v52 = vmul.f32 -0.00019511016, %v5979_v54  ;;  %v6102_v36 = vadd.s32 1, %v6098_v25  ;;  %v6190_v18 = vshll.u32 %v7833_v37, %v6175_v60 }
 0x5a8   :  { %v12397_v49 = vor.u32 %v6182_v62, %v6181_v40  ;;  %v6191_v2 = vshrl.u32 %v7834_v46, %v12372_v58  ;;  %v12401_v41 = vor.u32 %v6185_v55, %v6184_v16  ;;  %v6189_v11 = vor.u32 %v6188_v48, %v6187_v13 }
 0x5a9   :  { %v5981_v23 = vadd.f32 0.041655596, %v5980_v6  ;;  %v5988_v63 = vadd.f32 0.008332121, %v5987_v52  ;;  %v6103_v42 = vsel %vm6101_vm2, %v6102_v36, %v6098_v25  ;;  %vm6193_vm3 = vcmp.lt.s32.totalorder %v12377_v9, 1 }
 0x5aa   :  { %v6104_v3 = vadd.s32 %v6103_v42, %v6099_v24  ;;  %vm6196_vm4 = vcmp.lt.s32.totalorder %v12377_v9, 4  ;;  %v5996_v57 = vand.u32 3, %v5995_v59  ;;  %v6192_v7 = vor.u32 %v6191_v2, %v6190_v18 }
 0x5ab   :  { %v5982_v20 = vmul.f32 %v5981_v23, %v5979_v54  ;;  %v5989_v0 = vmul.f32 %v5988_v63, %v5979_v54  ;;  %vm6194_vm5 = vcmp.lt.s32.totalorder %v12377_v9, 2  ;;  %vm6195_vm6 = vcmp.lt.s32.totalorder %v12377_v9, 3 }
 0x5ac   :  { %v6105_v22 = vadd.s32 536870912, %v6104_v3  ;;  %v6201_v21 = vsel %vm6193_vm3, %v12392_v28, %v12397_v49  ;;  %v6202_v30 = vsel %vm6196_vm4, %v6189_v11, 920167782  ;;  %v6205_v14 = vsel %vm6193_vm3, %v12397_v49, %v12401_v41 }
 0x5ad   :  { %v5983_v56 = vadd.f32 -0.4999988, %v5982_v20  ;;  %v5990_v1 = vadd.f32 -0.16666654, %v5989_v0  ;;  %v6206_v61 = vsel %vm6196_vm4, %v6192_v7, 1326507024  ;;  %v6203_v60 = vsel %vm6195_vm6, %v12401_v41, %v6202_v30 }
 0x5ae   :  { %v12419_v50 = vshll.u32 %v6169_v45, 8  ;;  %v12421_v19 = vshrl.u32 %v6105_v22, 30  ;;  %v6204_v59 = vsel %vm6194_vm5, %v6201_v21, %v6203_v60  ;;  %v6207_v47 = vsel %vm6195_vm6, %v6189_v11, %v6206_v61 }
 0x5af   :  { %v5984_v51 = vmul.f32 %v5983_v56, %v5979_v54  ;;  %v5991_v4 = vmul.f32 %v5990_v1, %v5979_v54  ;;  %vm6001_vm7 = vcmp.eq.s32.totalorder %v5996_v57, 2  ;;  %v6208_v45 = vsel %vm6194_vm5, %v6205_v14, %v6207_v47 }
 0x5b0   :  { %v6107_v39 = vshll.u32 %v12421_v19, 30  ;;  %v6210_v32 = vand.u32 65535, %v12419_v50  ;;  %v6211_v44 = vshrl.u32 %v12419_v50, 16  ;;  %v6235_v62 = vshrl.u32 %v6204_v59, 16 }
 0x5b1   :  { %v5985_v8 = vadd.f32 1.0, %v5984_v51  ;;  %v5992_v38 = vadd.f32 1.0, %v5991_v4  ;;  %vm5997_vm8 = vcmp.lt.s32.totalorder %v5996_v57, 2  ;;  %vm5998_vm9 = vcmp.eq.s32.totalorder %v5996_v57, 0 }
 0x5b2   :  { %v6108_v40 = vsub.s32 %v6104_v3, %v6107_v39  ;;  %v6212_v25 = vand.u32 65535, %v6208_v45  ;;  %v6213_v16 = vshrl.u32 %v6208_v45, 16  ;;  %vm5994_vm11 = vweird.f32 %v11969_v5 }
 0x5b3   :  { %v5993_v54 = vmul.f32 %v5992_v38, %v5977_v15  ;;  %v6002_v27 = vxor.u32 2147483648, %v5985_v8  ;;  %v6234_v15 = vand.u32 65535, %v6204_v59  ;;  %v12438_v23 = vmul.u32 %v6235_v62, %v6210_v32 }
 0x5b4   :  { %vm6109_vm10 = vcmp.lt.s32.totalorder %v6108_v40, 0  ;;  %v6110_v6 = vsub.s32 0, %v6108_v40  ;;  %v6214_v52 = vmul.u32 %v6212_v25, %v6210_v32  ;;  %v6215_v24 = vmul.u32 %v6213_v16, %v6210_v32 }
 0x5b5   :  { %v5999_v55 = vxor.u32 2147483648, %v5993_v54  ;;  %v6003_v13 = vsel %vm6001_vm7, %v6002_v27, %v5993_v54  ;;  %v12436_v36 = vmul.u32 %v6212_v25, %v6211_v44  ;;  %v6217_v42 = vmul.u32 %v6213_v16, %v6211_v44  ;;  %v7772_v27 = vld [vmem:[#allocation5] sm:$0xff] }
 0x5b6   :  { %v6111_v18 = vsel %vm6109_vm10, %v6110_v6, %v6108_v40  ;;  %v6218_v11 = vshll.u32 %v6215_v24, 16  ;;  %v6100_v5 = vadd.s32 %v12370_v43, %v12368_v12  ;;  %v6236_v1 = vmul.u32 %v6234_v15, %v6210_v32 }
 0x5b7   :  { %v6000_v48 = vsel %vm5998_vm9, %v5985_v8, %v5999_v55  ;;  %v6112_v2 = vclz %v6111_v18  ;;  %v6220_v0 = vshll.u32 %v12436_v36, 16  ;;  %v6238_v22 = vmul.u32 %v6234_v15, %v6211_v44 }
 0x5b8   :  { %v6004_v63 = vsel %vm5997_vm8, %v6000_v48, %v6003_v13  ;;  %vm6222_vm12 = vc.u32 %v6214_v52, %v6218_v11  ;;  %v6224_v7 = vadd.s32 %v6218_v11, %v6214_v52  ;;  %v6240_v57 = vshll.u32 %v12438_v23, 16 }
 0x5b9   :  { %v6005_v20 = vsel %vm5994_vm11, nan, %v6004_v63  ;;  %v7713_v3 = vadd.s32 4294967294, %v6112_v2  ;;  %v6223_v56 = vsel %vm6222_vm12, 1, %v7835_v53  ;;  %v6177_v21 = vshrl.u32 %v7829_v29, %v12372_v58 }
 0x5ba   :  { %6318 = vst [vmem:[#allocation5 + $0x168] sm:$0xff] %v6005_v20  ;;  %v6225_v30 = vadd.s32 %v6223_v56, %v6217_v42  ;;  %vm6226_vm14 = vc.u32 %v6224_v7, %v6220_v0  ;;  %v6219_v61 = vshrl.u32 %v6215_v24, 16  ;;  %v6239_v43 = vmul.u32 %v6235_v62, %v6211_v44 }
 0x5bb   :  { %vm7714_vm13 = vcmp.lt.s32.totalorder %v7713_v3, 0  ;;  %v6227_v12 = vsel %vm6226_vm14, 1, %v7835_v53  ;;  %vm6008_vm15 = vcmp.lt.s32.totalorder %v12190_v26, 0  ;;  %v6198_v47 = vsel %vm6196_vm4, %v12401_v41, 2102212464 }
 0x5bc   :  { %v6115_v14 = vsel %vm7714_vm13, 0, %v7713_v3  ;;  %v6229_v59 = vadd.s32 %v6227_v12, %v6225_v30  ;;  %v6242_v8 = vshll.u32 %v6238_v22, 16  ;;  %vm6244_vm0 = vc.u32 %v6236_v1, %v6240_v57  ;;  %v7773_v30 = vld [vmem:[#allocation5 + $0x8] sm:$0xff] }
 0x5bd   :  { %v6116_v51 = vsub.s32 32, %v6115_v14  ;;  %v6117_v4 = vshll.u32 %v6108_v40, %v6115_v14  ;;  %v6120_v60 = vsub.s32 4294967266, %v6115_v14  ;;  %v6130_v39 = vsub.s32 4, %v12421_v19 }
 0x5be   :  { %v6245_v45 = vsel %vm6244_vm0, 1, %v7835_v53  ;;  %v6197_v32 = vsel %vm6193_vm3, %v6177_v21, %v12392_v28  ;;  %v6246_v44 = vadd.s32 %v6240_v57, %v6236_v1  ;;  %v12458_v40 = vmul.f32 32.0, %v7772_v27 }
 0x5bf   :  { %v6118_v58 = vshrl.u32 %v6100_v5, %v6116_v51  ;;  %v6121_v38 = vadd.s32 127, %v6120_v60  ;;  %v6247_v54 = vadd.s32 %v6245_v45, %v6239_v43  ;;  %v6221_v41 = vshrl.u32 %v12436_v36, 16 }
 0x5c0   :  { %v6230_v16 = vadd.s32 %v6229_v59, %v6219_v61  ;;  %v6199_v55 = vsel %vm6195_vm6, %v12397_v49, %v6198_v47  ;;  %v6241_v13 = vshrl.u32 %v12438_v23, 16  ;;  %vm6248_vm1 = vc.u32 %v6246_v44, %v6242_v8 }
 0x5c1   :  { %v6119_v62 = vor.u32 %v6118_v58, %v6117_v4  ;;  %v6122_v25 = vshll.u32 %v6121_v38, 23  ;;  %v6328_v6 = vand.u32 2139095040, %v12458_v40  ;;  %v6131_v24 = vsel %vm6008_vm15, %v6130_v39, %v12421_v19 }
 0x5c2   :  { %v6249_v48 = vsel %vm6248_vm1, 1, %v7835_v53  ;;  %vm12472_vm2 = vcmp.le.f32.partialorder %v6006_v34, 0.7853982  ;;  %v6243_v49 = vshrl.u32 %v6238_v22, 16  ;;  %v6200_v63 = vsel %vm6194_vm5, %v6197_v32, %v6199_v55 }
 0x5c3   :  { %v6123_v28 = vor.u32 4788187, %v6122_v25  ;;  %v6126_v52 = vcvt.s32.f32 %v6119_v62  ;;  %v6251_v18 = vadd.s32 %v6249_v48, %v6247_v54  ;;  %v6329_v15 = vshrl.u32 %v6328_v6, 23 }
 0x5c4   :  { %v12478_v2 = vadd.s32 %v6230_v16, %v6221_v41  ;;  %v12480_v42 = vadd.s32 %v6246_v44, %v6242_v8  ;;  %v6133_v19 = vsel %vm12472_vm2, 0, %v6131_v24  ;;  %v6254_v5 = vmul.u32 %v12419_v50, %v6200_v63 }
 0x5c5   :  { %v6124_v23 = vand.u32 2147483647, %v6123_v28  ;;  %v6252_v11 = vadd.s32 %v6251_v18, %v6241_v13  ;;  %v7718_v20 = vadd.s32 4294967169, %v6329_v15  ;;  %v6150_v56 = vadd.s32 3, %v6133_v19 }
 0x5c6   :  { %vm6256_vm3 = vc.u32 %v12478_v2, %v12480_v42  ;;  %v6325_v9 = vand.u32 2147483647, %v12458_v40  ;;  %v12495_v14 = vmul.f32 32.0, %v7773_v30  ;;  %vm6149_vm8 = vweird.f32 %v12190_v26 }
 0x5c7   :  { %v6127_v34 = vmul.f32 %v6126_v52, %v6124_v23  ;;  %v6253_v0 = vadd.s32 %v6252_v11, %v6243_v49  ;;  %v6335_v3 = vadd.s32 1, %v7718_v20  ;;  %v12499_v43 = vand.u32 3, %v6150_v56 }
 0x5c8   :  { %v6332_v4 = vand.u32 8388607, %v6325_v9  ;;  %v6483_v8 = vand.u32 2139095040, %v12495_v14  ;;  %v6480_v28 = vand.u32 2147483647, %v12495_v14  ;;  %vm6163_vm14 = vcmp.lt.s32.totalorder %v12237_v10, 0 }
 0x5c9   :  { %v6128_v7 = vxor.u32 2147483648, %v6127_v34  ;;  %v6257_v1 = vadd.s32 1, %v6253_v0  ;;  %vm6336_vm4 = vcmp.gt.s32.totalorder %v6335_v3, 0  ;;  %vm6156_vm5 = vcmp.eq.s32.totalorder %v12499_v43, 2 }
 0x5ca   :  { %v6337_v57 = vsel %vm6336_vm4, %v6335_v3, 0  ;;  %v6333_v55 = vor.u32 8388608, %v6332_v4  ;;  %v6484_v36 = vshrl.u32 %v6483_v8, 23  ;;  %vm6153_vm6 = vcmp.eq.s32.totalorder %v12499_v43, 0 }
 0x5cb   :  { %v6129_v22 = vsel %vm6008_vm15, %v6128_v7, %v6127_v34  ;;  %v6258_v50 = vsel %vm6256_vm3, %v6257_v1, %v6253_v0  ;;  %v6339_v61 = vand.u32 31, %v6337_v57  ;;  %v12521_v13 = vshrl.u32 %v6337_v57, 5 }
 0x5cc   :  { %v12493_v21 = vsel %vm12472_vm2, %v12190_v26, %v6129_v22  ;;  %v6259_v51 = vadd.s32 %v6258_v50, %v6254_v5  ;;  %vm6152_vm7 = vcmp.lt.s32.totalorder %v12499_v43, 2  ;;  %v6255_v7 = vadd.s32 %v12480_v42, %v12478_v2 }
 0x5cd   :  { %v6134_v12 = vmul.f32 %v12493_v21, %v12493_v21  ;;  %v12503_v60 = vsub.s32 32, %v6339_v61  ;;  %v6342_v59 = vshll.u32 %v7829_v29, %v6339_v61  ;;  %v6345_v47 = vshll.u32 %v7830_v31, %v6339_v61 }
 0x5ce   :  { %v6260_v39 = vadd.s32 536870912, %v6259_v51  ;;  %v6348_v45 = vshll.u32 %v7831_v33, %v6339_v61  ;;  %v6351_v27 = vshll.u32 %v7832_v35, %v6339_v61  ;;  %v6354_v6 = vshll.u32 %v7833_v37, %v6339_v61 }
 0x5cf   :  { %v6135_v58 = vmul.f32 -0.001358992, %v6134_v12  ;;  %v6142_v38 = vmul.f32 -0.00019511016, %v6134_v12  ;;  %v6343_v32 = vshrl.u32 %v7830_v31, %v12503_v60  ;;  %v6346_v44 = vshrl.u32 %v7831_v33, %v12503_v60 }
 0x5d0   :  { %v6349_v54 = vshrl.u32 %v7832_v35, %v12503_v60  ;;  %v12516_v41 = vshrl.u32 %v6260_v39, 30  ;;  %v6352_v16 = vshrl.u32 %v7833_v37, %v12503_v60  ;;  %v6355_v23 = vshrl.u32 %v7834_v46, %v12503_v60 }
 0x5d1   :  { %v6136_v62 = vadd.f32 0.041655596, %v6135_v58  ;;  %v6143_v25 = vadd.f32 0.008332121, %v6142_v38  ;;  %v12527_v49 = vor.u32 %v6343_v32, %v6342_v59  ;;  %v12529_v18 = vor.u32 %v6346_v44, %v6345_v47 }
 0x5d2   :  { %v6262_v48 = vshll.u32 %v12516_v41, 30  ;;  %v6353_v15 = vor.u32 %v6352_v16, %v6351_v27  ;;  %v6350_v20 = vor.u32 %v6349_v54, %v6348_v45  ;;  %v6356_v34 = vor.u32 %v6355_v23, %v6354_v6 }
 0x5d3   :  { %v6137_v52 = vmul.f32 %v6136_v62, %v6134_v12  ;;  %v6144_v24 = vmul.f32 %v6143_v25, %v6134_v12  ;;  %vm6357_vm9 = vcmp.lt.s32.totalorder %v12521_v13, 1  ;;  %vm6359_vm10 = vcmp.lt.s32.totalorder %v12521_v13, 3 }
 0x5d4   :  { %v12534_v11 = vsub.s32 %v6259_v51, %v6262_v48  ;;  %vm6360_vm11 = vcmp.lt.s32.totalorder %v12521_v13, 4  ;;  %vm6358_vm13 = vcmp.lt.s32.totalorder %v12521_v13, 2  ;;  %v12547_v1 = vshll.u32 %v6333_v55, 8 }
 0x5d5   :  { %v6138_v63 = vadd.f32 -0.4999988, %v6137_v52  ;;  %v6145_v19 = vadd.f32 -0.16666654, %v6144_v24  ;;  %v6366_v56 = vsel %vm6360_vm11, %v6353_v15, 920167782  ;;  %v6365_v30 = vsel %vm6357_vm9, %v12527_v49, %v12529_v18 }
 0x5d6   :  { %vm6264_vm12 = vcmp.lt.s32.totalorder %v12534_v11, 0  ;;  %v6265_v3 = vsub.s32 0, %v12534_v11  ;;  %v6367_v2 = vsel %vm6359_vm10, %v6350_v20, %v6366_v56  ;;  %v6369_v42 = vsel %vm6357_vm9, %v12529_v18, %v6350_v20 }
 0x5d7   :  { %v6139_v0 = vmul.f32 %v6138_v63, %v6134_v12  ;;  %v6146_v5 = vmul.f32 %v6145_v19, %v6134_v12  ;;  %v12562_v12 = vand.u32 8388607, %v6480_v28  ;;  %v6370_v59 = vsel %vm6360_vm11, %v6356_v34, 1326507024 }
 0x5d8   :  { %v6266_v50 = vsel %vm6264_vm12, %v6265_v3, %v12534_v11  ;;  %v7721_v47 = vadd.s32 4294967169, %v6484_v36  ;;  %v6368_v58 = vsel %vm6358_vm13, %v6365_v30, %v6367_v2  ;;  %v6371_v38 = vsel %vm6359_vm10, %v6353_v15, %v6370_v59 }
 0x5d9   :  { %v6140_v22 = vadd.f32 1.0, %v6139_v0  ;;  %v6147_v57 = vadd.f32 1.0, %v6146_v5  ;;  %v6267_v61 = vclz %v6266_v50  ;;  %v6374_v39 = vand.u32 65535, %v12547_v1 }
 0x5da   :  { %v6375_v44 = vshrl.u32 %v12547_v1, 16  ;;  %v6285_v54 = vsub.s32 4, %v12516_v41  ;;  %v6398_v55 = vand.u32 65535, %v6368_v58  ;;  %v6399_v6 = vshrl.u32 %v6368_v58, 16 }
 0x5db   :  { %v6148_v51 = vmul.f32 %v6147_v57, %v12493_v21  ;;  %v6157_v4 = vxor.u32 2147483648, %v6140_v22  ;;  %v7716_v8 = vadd.s32 4294967294, %v6267_v61  ;;  %v6372_v21 = vsel %vm6358_vm13, %v6369_v42, %v6371_v38 }
 0x5dc   :  { %v6376_v27 = vand.u32 65535, %v6372_v21  ;;  %v6377_v62 = vshrl.u32 %v6372_v21, 16  ;;  %v6341_v23 = vshrl.u32 %v7829_v29, %v12503_v60  ;;  %v6362_v63 = vsel %vm6360_vm11, %v6350_v20, 2102212464 }
 0x5dd   :  { %v6154_v45 = vxor.u32 2147483648, %v6148_v51  ;;  %v6158_v32 = vsel %vm6156_vm5, %v6157_v4, %v6148_v51  ;;  %vm7717_vm15 = vcmp.lt.s32.totalorder %v7716_v8, 0  ;;  %v6490_v19 = vadd.s32 1, %v7721_v47 }
 0x5de   :  { %v6270_v16 = vsel %vm7717_vm15, 0, %v7716_v8  ;;  %v6378_v5 = vmul.u32 %v6376_v27, %v6374_v39  ;;  %v6379_v43 = vmul.u32 %v6377_v62, %v6374_v39  ;;  %v6380_v3 = vmul.u32 %v6376_v27, %v6375_v44 }
 0x5df   :  { %v6155_v25 = vsel %vm6153_vm6, %v6140_v22, %v6154_v45  ;;  %v6271_v24 = vsub.s32 32, %v6270_v16  ;;  %v6272_v48 = vshll.u32 %v12534_v11, %v6270_v16  ;;  %v6275_v36 = vsub.s32 4294967266, %v6270_v16 }
 0x5e0   :  { %v6159_v52 = vsel %vm6152_vm7, %v6155_v25, %v6158_v32  ;;  %v12592_v11 = vsel %vm6163_vm14, %v6285_v54, %v12516_v41  ;;  %v6381_v26 = vmul.u32 %v6377_v62, %v6375_v44  ;;  %v6401_v56 = vmul.u32 %v6399_v6, %v6374_v39 }
 0x5e1   :  { %v6160_v15 = vsel %vm6149_vm8, nan, %v6159_v52  ;;  %v6273_v34 = vshrl.u32 %v6255_v7, %v6271_v24  ;;  %v6276_v0 = vadd.s32 127, %v6275_v36  ;;  %vm12596_vm0 = vcmp.le.f32.partialorder %v6161_v17, 0.7853982 }
 0x5e2   :  { %6319 = vst [vmem:[#allocation5 + $0x170] sm:$0xff] %v6160_v15  ;;  %v6382_v22 = vshll.u32 %v6379_v43, 16  ;;  %v6402_v57 = vmul.u32 %v6398_v55, %v6375_v44  ;;  %v6361_v50 = vsel %vm6357_vm9, %v6341_v23, %v12527_v49  ;;  %v6363_v41 = vsel %vm6359_vm10, %v12529_v18, %v6362_v63 }
 0x5e3   :  { %v6274_v20 = vor.u32 %v6273_v34, %v6272_v48  ;;  %v6277_v7 = vshll.u32 %v6276_v0, 23  ;;  %v6384_v30 = vshll.u32 %v6380_v3, 16  ;;  %v6400_v61 = vmul.u32 %v6398_v55, %v6374_v39 }
 0x5e4   :  { %vm6386_vm1 = vc.u32 %v6378_v5, %v6382_v22  ;;  %v6388_v17 = vadd.s32 %v6382_v22, %v6378_v5  ;;  %v6383_v51 = vshrl.u32 %v6379_v43, 16  ;;  %v6403_v59 = vmul.u32 %v6399_v6, %v6375_v44 }
 0x5e5   :  { %v6278_v2 = vor.u32 4788187, %v6277_v7  ;;  %v6281_v42 = vcvt.s32.f32 %v6274_v20  ;;  %v6387_v4 = vsel %vm6386_vm1, 1, %v7835_v53  ;;  %v6404_v47 = vshll.u32 %v6401_v56, 16 }
 0x5e6   :  { %v6389_v58 = vadd.s32 %v6387_v4, %v6381_v26  ;;  %vm6390_vm2 = vc.u32 %v6388_v17, %v6384_v30  ;;  %v6406_v38 = vshll.u32 %v6402_v57, 16  ;;  %v6364_v49 = vsel %vm6358_vm13, %v6361_v50, %v6363_v41 }
 0x5e7   :  { %v6279_v8 = vand.u32 2147483647, %v6278_v2  ;;  %v6391_v18 = vsel %vm6390_vm2, 1, %v7835_v53  ;;  %vm6408_vm3 = vc.u32 %v6400_v61, %v6404_v47  ;;  %v6410_v39 = vadd.s32 %v6404_v47, %v6400_v61 }
 0x5e8   :  { %v6385_v32 = vshrl.u32 %v6380_v3, 16  ;;  %v6393_v21 = vadd.s32 %v6391_v18, %v6389_v58  ;;  %v6409_v54 = vsel %vm6408_vm3, 1, %v7835_v53  ;;  %v6405_v27 = vshrl.u32 %v6401_v56, 16 }
 0x5e9   :  { %v6282_v45 = vmul.f32 %v6281_v42, %v6279_v8  ;;  %v6411_v62 = vadd.s32 %v6409_v54, %v6403_v59  ;;  %vm6412_vm4 = vc.u32 %v6410_v39, %v6406_v38  ;;  %vm6491_vm5 = vcmp.gt.s32.totalorder %v6490_v19, 0 }
 0x5ea   :  { %v6394_v25 = vadd.s32 %v6393_v21, %v6383_v51  ;;  %v6413_v16 = vsel %vm6412_vm4, 1, %v7835_v53  ;;  %v6492_v55 = vsel %vm6491_vm5, %v6490_v19, 0  ;;  %v6407_v13 = vshrl.u32 %v6402_v57, 16  ;;  %v7774_v21 = vld [vmem:[#allocation5 + $0x10] sm:$0xff] }
 0x5eb   :  { %v6283_v44 = vxor.u32 2147483648, %v6282_v45  ;;  %v12612_v6 = vadd.s32 %v6410_v39, %v6406_v38  ;;  %v6415_v52 = vadd.s32 %v6413_v16, %v6411_v62  ;;  %v6494_v24 = vand.u32 31, %v6492_v55 }
 0x5ec   :  { %v12616_v36 = vadd.s32 %v6394_v25, %v6385_v32  ;;  %v6288_v19 = vsel %vm12596_vm0, 0, %v12592_v11  ;;  %v6418_v0 = vmul.u32 %v12547_v1, %v6364_v49  ;;  %v6488_v5 = vor.u32 8388608, %v12562_v12 }
 0x5ed   :  { %v6284_v48 = vsel %vm6163_vm14, %v6283_v44, %v6282_v45  ;;  %v6416_v23 = vadd.s32 %v6415_v52, %v6405_v27  ;;  %v12621_v63 = vsub.s32 32, %v6494_v24  ;;  %v6497_v3 = vshll.u32 %v7829_v29, %v6494_v24 }
 0x5ee   :  { %v6287_v15 = vsel %vm12596_vm0, %v12237_v10, %v6284_v48  ;;  %vm6420_vm6 = vc.u32 %v12616_v36, %v12612_v6  ;;  %v6500_v26 = vshll.u32 %v7830_v31, %v6494_v24  ;;  %v6503_v1 = vshll.u32 %v7831_v33, %v6494_v24 }
 0x5ef   :  { %v6289_v34 = vmul.f32 %v6287_v15, %v6287_v15  ;;  %v6417_v43 = vadd.s32 %v6416_v23, %v6407_v13  ;;  %v6498_v7 = vshrl.u32 %v7830_v31, %v12621_v63  ;;  %v6501_v11 = vshrl.u32 %v7831_v33, %v12621_v63 }
 0x5f0   :  { %v6504_v12 = vshrl.u32 %v7832_v35, %v12621_v63  ;;  %v6506_v22 = vshll.u32 %v7832_v35, %v6494_v24  ;;  %v12640_v41 = vshrl.u32 %v6492_v55, 5  ;;  %v6507_v30 = vshrl.u32 %v7833_v37, %v12621_v63 }
 0x5f1   :  { %v6290_v56 = vmul.f32 -0.001358992, %v6289_v34  ;;  %v6297_v20 = vmul.f32 -0.00019511016, %v6289_v34  ;;  %v6421_v60 = vadd.s32 1, %v6417_v43  ;;  %v6305_v61 = vadd.s32 3, %v6288_v19 }
 0x5f2   :  { %v6509_v42 = vshll.u32 %v7833_v37, %v6494_v24  ;;  %v6510_v17 = vshrl.u32 %v7834_v46, %v12621_v63  ;;  %v12650_v47 = vor.u32 %v6498_v7, %v6497_v3  ;;  %v12652_v8 = vor.u32 %v6501_v11, %v6500_v26 }
 0x5f3   :  { %v6291_v57 = vadd.f32 0.041655596, %v6290_v56  ;;  %v6298_v50 = vadd.f32 0.008332121, %v6297_v20  ;;  %v6422_v2 = vsel %vm6420_vm6, %v6421_v60, %v6417_v43  ;;  %v6505_v58 = vor.u32 %v6504_v12, %v6503_v1 }
 0x5f4   :  { %v6423_v59 = vadd.s32 %v6422_v2, %v6418_v0  ;;  %v6508_v38 = vor.u32 %v6507_v30, %v6506_v22  ;;  %v6511_v49 = vor.u32 %v6510_v17, %v6509_v42  ;;  %vm6512_vm7 = vcmp.lt.s32.totalorder %v12640_v41, 1 }
 0x5f5   :  { %v6292_v51 = vmul.f32 %v6291_v57, %v6289_v34  ;;  %v6299_v4 = vmul.f32 %v6298_v50, %v6289_v34  ;;  %v6306_v32 = vand.u32 3, %v6305_v61  ;;  %v12655_v54 = vmul.f32 32.0, %v7774_v21 }
 0x5f6   :  { %v6424_v45 = vadd.s32 536870912, %v6423_v59  ;;  %vm6515_vm8 = vcmp.lt.s32.totalorder %v12640_v41, 4  ;;  %v12658_v27 = vshll.u32 %v6488_v5, 8  ;;  %vm6514_vm9 = vcmp.lt.s32.totalorder %v12640_v41, 3 }
 0x5f7   :  { %v6293_v18 = vadd.f32 -0.4999988, %v6292_v51  ;;  %v6300_v39 = vadd.f32 -0.16666654, %v6299_v4  ;;  %vm6513_vm10 = vcmp.lt.s32.totalorder %v12640_v41, 2  ;;  %v6520_v16 = vsel %vm6512_vm7, %v12650_v47, %v12652_v8 }
 0x5f8   :  { %v12660_v25 = vshrl.u32 %v6424_v45, 30  ;;  %v6521_v55 = vsel %vm6515_vm8, %v6508_v38, 920167782  ;;  %v6525_v13 = vsel %vm6515_vm8, %v6511_v49, 1326507024  ;;  %v6524_v23 = vsel %vm6512_vm7, %v12652_v8, %v6505_v58 }
 0x5f9   :  { %v6294_v62 = vmul.f32 %v6293_v18, %v6289_v34  ;;  %v6301_v44 = vmul.f32 %v6300_v39, %v6289_v34  ;;  %vm6307_vm11 = vcmp.lt.s32.totalorder %v6306_v32, 2  ;;  %vm6311_vm12 = vcmp.eq.s32.totalorder %v6306_v32, 2 }
 0x5fa   :  { %v6426_v48 = vshll.u32 %v12660_v25, 30  ;;  %v6522_v19 = vsel %vm6514_vm9, %v6505_v58, %v6521_v55  ;;  %v6526_v34 = vsel %vm6514_vm9, %v6508_v38, %v6525_v13  ;;  %vm6308_vm13 = vcmp.eq.s32.totalorder %v6306_v32, 0 }
 0x5fb   :  { %v6295_v52 = vadd.f32 1.0, %v6294_v62  ;;  %v6302_v24 = vadd.f32 1.0, %v6301_v44  ;;  %v6523_v3 = vsel %vm6513_vm10, %v6520_v16, %v6522_v19  ;;  %v6527_v26 = vsel %vm6513_vm10, %v6524_v23, %v6526_v34 }
 0x5fc   :  { %v6427_v43 = vsub.s32 %v6423_v59, %v6426_v48  ;;  %v6529_v56 = vand.u32 65535, %v12658_v27  ;;  %v6530_v20 = vshrl.u32 %v12658_v27, 16  ;;  %vm6304_vm15 = vweird.f32 %v12237_v10 }
 0x5fd   :  { %v6303_v0 = vmul.f32 %v6302_v24, %v6287_v15  ;;  %v6312_v5 = vxor.u32 2147483648, %v6295_v52  ;;  %v6496_v15 = vshrl.u32 %v7829_v29, %v12621_v63  ;;  %v6531_v1 = vand.u32 65535, %v6527_v26 }
 0x5fe   :  { %vm6428_vm14 = vcmp.lt.s32.totalorder %v6427_v43, 0  ;;  %v6429_v60 = vsub.s32 0, %v6427_v43  ;;  %v6532_v12 = vshrl.u32 %v6527_v26, 16  ;;  %v6517_v50 = vsel %vm6515_vm8, %v6505_v58, 2102212464 }
 0x5ff   :  { %v6309_v7 = vxor.u32 2147483648, %v6303_v0  ;;  %v6313_v11 = vsel %vm6311_vm12, %v6312_v5, %v6303_v0  ;;  %v6554_v30 = vshrl.u32 %v6523_v3, 16  ;;  %vm6327_vm0 = vcmp.lt.s32.totalorder %v12458_v40, 0 }
 0x600   :  { %v6430_v57 = vsel %vm6428_vm14, %v6429_v60, %v6427_v43  ;;  %v6533_v42 = vmul.u32 %v6531_v1, %v6529_v56  ;;  %v6534_v17 = vmul.u32 %v6532_v12, %v6529_v56  ;;  %v6535_v10 = vmul.u32 %v6531_v1, %v6530_v20 }
 0x601   :  { %v6310_v22 = vsel %vm6308_vm13, %v6295_v52, %v6309_v7  ;;  %v6431_v2 = vclz %v6430_v57  ;;  %v6553_v4 = vand.u32 65535, %v6523_v3  ;;  %v6638_v63 = vand.u32 2139095040, %v12655_v54 }
 0x602   :  { %v6314_v61 = vsel %vm6307_vm11, %v6310_v22, %v6313_v11  ;;  %v6419_v59 = vadd.s32 %v12612_v6, %v12616_v36  ;;  %v6536_v49 = vmul.u32 %v6532_v12, %v6530_v20  ;;  %v6537_v58 = vshll.u32 %v6534_v17, 16 }
 0x603   :  { %v6315_v51 = vsel %vm6304_vm15, nan, %v6314_v61  ;;  %v7719_v38 = vadd.s32 4294967294, %v6431_v2  ;;  %v6449_v18 = vsub.s32 4, %v12660_v25  ;;  %v6516_v39 = vsel %vm6512_vm7, %v6496_v15, %v12650_v47 }
 0x604   :  { %6320 = vst [vmem:[#allocation5 + $0x178] sm:$0xff] %v6315_v51  ;;  %v6518_v45 = vsel %vm6514_vm9, %v12652_v8, %v6517_v50  ;;  %v6539_v32 = vshll.u32 %v6535_v10, 16  ;;  %vm6541_vm2 = vc.u32 %v6533_v42, %v6537_v58  ;;  %v6543_v21 = vadd.s32 %v6537_v58, %v6533_v42 }
 0x605   :  { %vm7720_vm1 = vcmp.lt.s32.totalorder %v7719_v38, 0  ;;  %v6556_v62 = vmul.u32 %v6554_v30, %v6529_v56  ;;  %v6542_v6 = vsel %vm6541_vm2, 1, %v7835_v53  ;;  %v6555_v36 = vmul.u32 %v6553_v4, %v6529_v56 }
 0x606   :  { %v6434_v44 = vsel %vm7720_vm1, 0, %v7719_v38  ;;  %v6557_v16 = vmul.u32 %v6553_v4, %v6530_v20  ;;  %v6544_v24 = vadd.s32 %v6542_v6, %v6536_v49  ;;  %v6538_v48 = vshrl.u32 %v6534_v17, 16 }
 0x607   :  { %v6435_v55 = vsub.s32 32, %v6434_v44  ;;  %v6436_v13 = vshll.u32 %v6427_v43, %v6434_v44  ;;  %v6439_v52 = vsub.s32 4294967266, %v6434_v44  ;;  %vm6545_vm3 = vc.u32 %v6543_v21, %v6539_v32 }
 0x608   :  { %v6558_v47 = vmul.u32 %v6554_v30, %v6530_v20  ;;  %v6639_v23 = vshrl.u32 %v6638_v63, 23  ;;  %v6546_v34 = vsel %vm6545_vm3, 1, %v7835_v53  ;;  %v6559_v0 = vshll.u32 %v6556_v62, 16 }
 0x609   :  { %v6437_v19 = vshrl.u32 %v6419_v59, %v6435_v55  ;;  %v6440_v8 = vadd.s32 127, %v6439_v52  ;;  %v6450_v5 = vsel %vm6327_vm0, %v6449_v18, %v12660_v25  ;;  %v6540_v3 = vshrl.u32 %v6535_v10, 16 }
 0x60a   :  { %v6548_v26 = vadd.s32 %v6546_v34, %v6544_v24  ;;  %v6561_v56 = vshll.u32 %v6557_v16, 16  ;;  %vm6563_vm4 = vc.u32 %v6555_v36, %v6559_v0  ;;  %v6565_v11 = vadd.s32 %v6559_v0, %v6555_v36 }
 0x60b   :  { %v6438_v7 = vor.u32 %v6437_v19, %v6436_v13  ;;  %v6441_v43 = vshll.u32 %v6440_v8, 23  ;;  %v6560_v15 = vshrl.u32 %v6556_v62, 16  ;;  %v6564_v20 = vsel %vm6563_vm4, 1, %v7835_v53 }
 0x60c   :  { %v6549_v60 = vadd.s32 %v6548_v26, %v6538_v48  ;;  %v7724_v1 = vadd.s32 4294967169, %v6639_v23  ;;  %v6566_v57 = vadd.s32 %v6564_v20, %v6558_v47  ;;  %vm6567_vm5 = vc.u32 %v6565_v11, %v6561_v56 }
 0x60d   :  { %v6442_v12 = vor.u32 4788187, %v6441_v43  ;;  %v6445_v22 = vcvt.s32.f32 %v6438_v7  ;;  %vm12711_vm6 = vcmp.le.f32.partialorder %v6325_v9, 0.7853982  ;;  %v6568_v50 = vsel %vm6567_vm5, 1, %v7835_v53 }
 0x60e   :  { %v6635_v30 = vand.u32 2147483647, %v12655_v54  ;;  %v6645_v61 = vadd.s32 1, %v7724_v1  ;;  %v6519_v42 = vsel %vm6513_vm10, %v6516_v39, %v6518_v45  ;;  %v6562_v17 = vshrl.u32 %v6557_v16, 16 }
 0x60f   :  { %v6443_v2 = vand.u32 2147483647, %v6442_v12  ;;  %v6570_v51 = vadd.s32 %v6568_v50, %v6566_v57  ;;  %v6452_v10 = vsel %vm12711_vm6, 0, %v6450_v5  ;;  %v12721_v4 = vadd.s32 %v6549_v60, %v6540_v3 }
 0x610   :  { %v12723_v9 = vadd.s32 %v6565_v11, %v6561_v56  ;;  %vm6646_vm7 = vcmp.gt.s32.totalorder %v6645_v61, 0  ;;  %v6573_v49 = vmul.u32 %v12658_v27, %v6519_v42  ;;  %v6469_v32 = vadd.s32 3, %v6452_v10 }
 0x611   :  { %v6446_v63 = vmul.f32 %v6445_v22, %v6443_v2  ;;  %v6571_v59 = vadd.s32 %v6570_v51, %v6560_v15  ;;  %v6647_v38 = vsel %vm6646_vm7, %v6645_v61, 0  ;;  %v6642_v39 = vand.u32 8388607, %v6635_v30  ;;  %v7775_v22 = vld [vmem:[#allocation5 + $0x18] sm:$0xff] }
 0x612   :  { %v6649_v58 = vand.u32 31, %v6647_v38  ;;  %vm6575_vm8 = vc.u32 %v12721_v4, %v12723_v9  ;;  %v12730_v45 = vshrl.u32 %v6647_v38, 5  ;;  %v12751_v19 = vand.u32 3, %v6469_v32 }
 0x613   :  { %v6447_v18 = vxor.u32 2147483648, %v6446_v63  ;;  %v6572_v41 = vadd.s32 %v6571_v59, %v6562_v17  ;;  %v6643_v34 = vor.u32 8388608, %v6642_v39  ;;  %v12769_v57 = vmul.f32 32.0, %v7775_v22 }
 0x614   :  { %v12732_v21 = vsub.s32 32, %v6649_v58  ;;  %v6652_v62 = vshll.u32 %v7829_v29, %v6649_v58  ;;  %v6655_v6 = vshll.u32 %v7830_v31, %v6649_v58  ;;  %v6658_v36 = vshll.u32 %v7831_v33, %v6649_v58 }
 0x615   :  { %v6448_v44 = vsel %vm6327_vm0, %v6447_v18, %v6446_v63  ;;  %v6576_v27 = vadd.s32 1, %v6572_v41  ;;  %v6661_v52 = vshll.u32 %v7832_v35, %v6649_v58  ;;  %v6664_v26 = vshll.u32 %v7833_v37, %v6649_v58 }
 0x616   :  { %v6451_v16 = vsel %vm12711_vm6, %v12458_v40, %v6448_v44  ;;  %v6653_v55 = vshrl.u32 %v7830_v31, %v12732_v21  ;;  %v6656_v13 = vshrl.u32 %v7831_v33, %v12732_v21  ;;  %v6659_v47 = vshrl.u32 %v7832_v35, %v12732_v21 }
 0x617   :  { %v6453_v24 = vmul.f32 %v6451_v16, %v6451_v16  ;;  %v6577_v48 = vsel %vm6575_vm8, %v6576_v27, %v6572_v41  ;;  %v6662_v23 = vshrl.u32 %v7833_v37, %v12732_v21  ;;  %v6665_v11 = vshrl.u32 %v7834_v46, %v12732_v21 }
 0x618   :  { %v6578_v8 = vadd.s32 %v6577_v48, %v6573_v49  ;;  %v12753_v3 = vor.u32 %v6653_v55, %v6652_v62  ;;  %v12756_v7 = vor.u32 %v6656_v13, %v6655_v6  ;;  %v12760_v20 = vor.u32 %v6659_v47, %v6658_v36 }
 0x619   :  { %v6454_v0 = vmul.f32 -0.001358992, %v6453_v24  ;;  %v6461_v5 = vmul.f32 -0.00019511016, %v6453_v24  ;;  %v6663_v43 = vor.u32 %v6662_v23, %v6661_v52  ;;  %vm6667_vm9 = vcmp.lt.s32.totalorder %v12730_v45, 1 }
 0x61a   :  { %v6579_v56 = vadd.s32 536870912, %v6578_v8  ;;  %vm6669_vm10 = vcmp.lt.s32.totalorder %v12730_v45, 3  ;;  %vm6670_vm11 = vcmp.lt.s32.totalorder %v12730_v45, 4  ;;  %v12767_v12 = vshll.u32 %v6643_v34, 8 }
 0x61b   :  { %v6455_v60 = vadd.f32 0.041655596, %v6454_v0  ;;  %v6462_v15 = vadd.f32 0.008332121, %v6461_v5  ;;  %v6666_v61 = vor.u32 %v6665_v11, %v6664_v26  ;;  %vm6668_vm12 = vcmp.lt.s32.totalorder %v12730_v45, 2 }
 0x61c   :  { %v12763_v1 = vshrl.u32 %v6579_v56, 30  ;;  %v6675_v42 = vsel %vm6667_vm9, %v12753_v3, %v12756_v7  ;;  %v6676_v17 = vsel %vm6670_vm11, %v6663_v43, 920167782  ;;  %vm6471_vm13 = vcmp.lt.s32.totalorder %v12751_v19, 2 }
 0x61d   :  { %v6456_v25 = vmul.f32 %v6455_v60, %v6453_v24  ;;  %v6463_v50 = vmul.f32 %v6462_v15, %v6453_v24  ;;  %vm6472_vm14 = vcmp.eq.s32.totalorder %v12751_v19, 0  ;;  %v6677_v63 = vsel %vm6669_vm10, %v12760_v20, %v6676_v17 }
 0x61e   :  { %v6581_v2 = vshll.u32 %v12763_v1, 30  ;;  %vm6468_vm15 = vweird.f32 %v12458_v40  ;;  %vm6475_vm0 = vcmp.eq.s32.totalorder %v12751_v19, 2  ;;  %v6679_v38 = vsel %vm6667_vm9, %v12756_v7, %v12760_v20 }
 0x61f   :  { %v6457_v51 = vadd.f32 -0.4999988, %v6456_v25  ;;  %v6464_v10 = vadd.f32 -0.16666654, %v6463_v50  ;;  %v6684_v49 = vand.u32 65535, %v12767_v12  ;;  %v6678_v32 = vsel %vm6668_vm12, %v6675_v42, %v6677_v63 }
 0x620   :  { %v12786_v59 = vsub.s32 %v6578_v8, %v6581_v2  ;;  %v6680_v41 = vsel %vm6670_vm11, %v6666_v61, 1326507024  ;;  %v6685_v44 = vshrl.u32 %v12767_v12, 16  ;;  %v6793_v55 = vand.u32 2139095040, %v12769_v57 }
 0x621   :  { %v6458_v58 = vmul.f32 %v6457_v51, %v6453_v24  ;;  %v6465_v18 = vmul.f32 %v6464_v10, %v6453_v24  ;;  %v6681_v62 = vsel %vm6669_vm10, %v6663_v43, %v6680_v41  ;;  %v6709_v48 = vshrl.u32 %v6678_v32, 16 }
 0x622   :  { %vm6583_vm1 = vcmp.lt.s32.totalorder %v12786_v59, 0  ;;  %v6584_v39 = vsub.s32 0, %v12786_v59  ;;  %v6682_v36 = vsel %vm6668_vm12, %v6679_v38, %v6681_v62  ;;  %vm6482_vm2 = vcmp.lt.s32.totalorder %v12495_v14, 0 }
 0x623   :  { %v6459_v27 = vadd.f32 1.0, %v6458_v58  ;;  %v6466_v6 = vadd.f32 1.0, %v6465_v18  ;;  %v6686_v52 = vand.u32 65535, %v6682_v36  ;;  %v6687_v24 = vshrl.u32 %v6682_v36, 16 }
 0x624   :  { %v6585_v13 = vsel %vm6583_vm1, %v6584_v39, %v12786_v59  ;;  %v6708_v34 = vand.u32 65535, %v6678_v32  ;;  %v6574_v0 = vadd.s32 %v12723_v9, %v12721_v4  ;;  %v6794_v15 = vshrl.u32 %v6793_v55, 23 }
 0x625   :  { %v6467_v47 = vmul.f32 %v6466_v6, %v6451_v16  ;;  %v6476_v23 = vxor.u32 2147483648, %v6459_v27  ;;  %v6586_v8 = vclz %v6585_v13  ;;  %v6688_v5 = vmul.u32 %v6686_v52, %v6684_v49 }
 0x626   :  { %v6689_v26 = vmul.u32 %v6687_v24, %v6684_v49  ;;  %v6690_v56 = vmul.u32 %v6686_v52, %v6685_v44  ;;  %v6604_v22 = vsub.s32 4, %v12763_v1  ;;  %v6651_v16 = vshrl.u32 %v7829_v29, %v12732_v21 }
 0x627   :  { %v6473_v43 = vxor.u32 2147483648, %v6467_v47  ;;  %v6477_v11 = vsel %vm6475_vm0, %v6476_v23, %v6467_v47  ;;  %v7722_v60 = vadd.s32 4294967294, %v6586_v8  ;;  %v6711_v50 = vmul.u32 %v6709_v48, %v6684_v49 }
 0x628   :  { %v6692_v25 = vshll.u32 %v6689_v26, 16  ;;  %v6691_v4 = vmul.u32 %v6687_v24, %v6685_v44  ;;  %v6712_v9 = vmul.u32 %v6708_v34, %v6685_v44  ;;  %v6694_v17 = vshll.u32 %v6690_v56, 16 }
 0x629   :  { %v6474_v61 = vsel %vm6472_vm14, %v6459_v27, %v6473_v43  ;;  %vm7723_vm3 = vcmp.lt.s32.totalorder %v7722_v60, 0  ;;  %vm12823_vm5 = vcmp.le.f32.partialorder %v6480_v28, 0.7853982  ;;  %v6671_v19 = vsel %vm6667_vm9, %v6651_v16, %v12753_v3 }
 0x62a   :  { %v6478_v2 = vsel %vm6471_vm13, %v6474_v61, %v6477_v11  ;;  %v6589_v42 = vsel %vm7723_vm3, 0, %v7722_v60  ;;  %vm6696_vm4 = vc.u32 %v6688_v5, %v6692_v25  ;;  %v6672_v58 = vsel %vm6670_vm11, %v12760_v20, 2102212464 }
 0x62b   :  { %v6479_v51 = vsel %vm6468_vm15, nan, %v6478_v2  ;;  %v6590_v10 = vsub.s32 32, %v6589_v42  ;;  %v6591_v21 = vshll.u32 %v12786_v59, %v6589_v42  ;;  %v6594_v63 = vsub.s32 4294967266, %v6589_v42 }
 0x62c   :  { %v6697_v18 = vsel %vm6696_vm4, 1, %v7835_v53  ;;  %v6710_v32 = vmul.u32 %v6708_v34, %v6684_v49  ;;  %6946 = vst [vmem:[#allocation5 + $0xc0] sm:$0xff] %v6479_v51  ;;  %v6698_v39 = vadd.s32 %v6692_v25, %v6688_v5  ;;  %v6605_v28 = vsel %vm6482_vm2, %v6604_v22, %v12763_v1 }
 0x62d   :  { %v6592_v59 = vshrl.u32 %v6574_v0, %v6590_v10  ;;  %v6595_v41 = vadd.s32 127, %v6594_v63  ;;  %v6699_v62 = vadd.s32 %v6697_v18, %v6691_v4  ;;  %v6713_v27 = vmul.u32 %v6709_v48, %v6685_v44 }
 0x62e   :  { %v6714_v6 = vshll.u32 %v6711_v50, 16  ;;  %v6716_v36 = vshll.u32 %v6712_v9, 16  ;;  %v6693_v13 = vshrl.u32 %v6689_v26, 16  ;;  %vm6700_vm6 = vc.u32 %v6698_v39, %v6694_v17 }
 0x62f   :  { %v6593_v3 = vor.u32 %v6592_v59, %v6591_v21  ;;  %v6596_v55 = vshll.u32 %v6595_v41, 23  ;;  %v6695_v20 = vshrl.u32 %v6690_v56, 16  ;;  %v6701_v52 = vsel %vm6700_vm6, 1, %v7835_v53 }
 0x630   :  { %vm6718_vm7 = vc.u32 %v6710_v32, %v6714_v6  ;;  %v6720_v49 = vadd.s32 %v6714_v6, %v6710_v32  ;;  %v6703_v23 = vadd.s32 %v6701_v52, %v6699_v62  ;;  %v6715_v34 = vshrl.u32 %v6711_v50, 16 }
 0x631   :  { %v6597_v24 = vor.u32 4788187, %v6596_v55  ;;  %v6600_v47 = vcvt.s32.f32 %v6593_v3  ;;  %v6719_v8 = vsel %vm6718_vm7, 1, %v7835_v53  ;;  %v7727_v1 = vadd.s32 4294967169, %v6794_v15 }
 0x632   :  { %v6721_v0 = vadd.s32 %v6719_v8, %v6713_v27  ;;  %vm6722_vm8 = vc.u32 %v6720_v49, %v6716_v36  ;;  %v6673_v48 = vsel %vm6669_vm10, %v12756_v7, %v6672_v58  ;;  %v6704_v5 = vadd.s32 %v6703_v23, %v6693_v13 }
 0x633   :  { %v6598_v44 = vand.u32 2147483647, %v6597_v24  ;;  %v6723_v26 = vsel %vm6722_vm8, 1, %v7835_v53  ;;  %v6717_v56 = vshrl.u32 %v6712_v9, 16  ;;  %v6790_v11 = vand.u32 2147483647, %v12769_v57 }
 0x634   :  { %v6725_v43 = vadd.s32 %v6723_v26, %v6721_v0  ;;  %v6800_v60 = vadd.s32 1, %v7727_v1  ;;  %v6607_v16 = vsel %vm12823_vm5, 0, %v6605_v28  ;;  %v12846_v25 = vadd.s32 %v6704_v5, %v6695_v20 }
 0x635   :  { %v6601_v22 = vmul.f32 %v6600_v47, %v6598_v44  ;;  %v12848_v15 = vadd.s32 %v6720_v49, %v6716_v36  ;;  %v6674_v50 = vsel %vm6668_vm12, %v6671_v19, %v6673_v48  ;;  %v6624_v9 = vadd.s32 3, %v6607_v16 }
 0x636   :  { %v6726_v7 = vadd.s32 %v6725_v43, %v6715_v34  ;;  %vm6801_vm9 = vcmp.gt.s32.totalorder %v6800_v60, 0  ;;  %v6797_v42 = vand.u32 8388607, %v6790_v11  ;;  %v6728_v10 = vmul.u32 %v12767_v12, %v6674_v50 }
 0x637   :  { %v6602_v61 = vxor.u32 2147483648, %v6601_v22  ;;  %v6802_v4 = vsel %vm6801_vm9, %v6800_v60, 0  ;;  %vm6730_vm10 = vc.u32 %v12846_v25, %v12848_v15  ;;  %v12864_v58 = vand.u32 3, %v6624_v9 }
 0x638   :  { %v6727_v2 = vadd.s32 %v6726_v7, %v6717_v56  ;;  %v6804_v17 = vand.u32 31, %v6802_v4  ;;  %v6798_v32 = vor.u32 8388608, %v6797_v42  ;;  %v12866_v59 = vshrl.u32 %v6802_v4, 5 }
 0x639   :  { %v6603_v51 = vsel %vm6482_vm2, %v6602_v61, %v6601_v22  ;;  %vm6626_vm12 = vcmp.lt.s32.totalorder %v12864_v58, 2  ;;  %vm6623_vm14 = vweird.f32 %v12495_v14  ;;  %vm6627_vm0 = vcmp.eq.s32.totalorder %v12864_v58, 0 }
 0x63a   :  { %v6606_v45 = vsel %vm12823_vm5, %v12495_v14, %v6603_v51  ;;  %v6731_v21 = vadd.s32 1, %v6727_v2  ;;  %v12862_v63 = vsub.s32 32, %v6804_v17  ;;  %v6816_v62 = vshll.u32 %v7832_v35, %v6804_v17 }
 0x63b   :  { %v6608_v19 = vmul.f32 %v6606_v45, %v6606_v45  ;;  %v6810_v28 = vshll.u32 %v7830_v31, %v6804_v17  ;;  %v6813_v27 = vshll.u32 %v7831_v33, %v6804_v17  ;;  %v6807_v20 = vshll.u32 %v7829_v29, %v6804_v17 }
 0x63c   :  { %v6732_v18 = vsel %vm6730_vm10, %v6731_v21, %v6727_v2  ;;  %v6811_v38 = vshrl.u32 %v7831_v33, %v12862_v63  ;;  %v6814_v6 = vshrl.u32 %v7832_v35, %v12862_v63  ;;  %v6817_v13 = vshrl.u32 %v7833_v37, %v12862_v63 }
 0x63d   :  { %v6609_v41 = vmul.f32 -0.001358992, %v6608_v19  ;;  %v6616_v39 = vmul.f32 -0.00019511016, %v6608_v19  ;;  %v6733_v12 = vadd.s32 %v6732_v18, %v6728_v10  ;;  %v6808_v52 = vshrl.u32 %v7830_v31, %v12862_v63 }
 0x63e   :  { %v6819_v49 = vshll.u32 %v7833_v37, %v6804_v17  ;;  %v6820_v24 = vshrl.u32 %v7834_v46, %v12862_v63  ;;  %v6818_v34 = vor.u32 %v6817_v13, %v6816_v62  ;;  %v12885_v0 = vor.u32 %v6811_v38, %v6810_v28 }
 0x63f   :  { %v6610_v36 = vadd.f32 0.041655596, %v6609_v41  ;;  %v6617_v3 = vadd.f32 0.008332121, %v6616_v39  ;;  %v6734_v55 = vadd.s32 536870912, %v6733_v12  ;;  %v12887_v1 = vor.u32 %v6814_v6, %v6813_v27 }
 0x640   :  { %vm6825_vm11 = vcmp.lt.s32.totalorder %v12866_v59, 4  ;;  %vm6822_vm13 = vcmp.lt.s32.totalorder %v12866_v59, 1  ;;  %v6809_v26 = vor.u32 %v6808_v52, %v6807_v20  ;;  %v6821_v56 = vor.u32 %v6820_v24, %v6819_v49 }
 0x641   :  { %v6611_v47 = vmul.f32 %v6610_v36, %v6608_v19  ;;  %v6618_v23 = vmul.f32 %v6617_v3, %v6608_v19  ;;  %v12883_v8 = vshrl.u32 %v6734_v55, 30  ;;  %vm6824_vm15 = vcmp.lt.s32.totalorder %v12866_v59, 3 }
 0x642   :  { %v12895_v43 = vshll.u32 %v6798_v32, 8  ;;  %v6831_v50 = vsel %vm6825_vm11, %v6818_v34, 920167782  ;;  %vm6630_vm1 = vcmp.eq.s32.totalorder %v12864_v58, 2  ;;  %vm6823_vm2 = vcmp.lt.s32.totalorder %v12866_v59, 2 }
 0x643   :  { %v6612_v44 = vadd.f32 -0.4999988, %v6611_v47  ;;  %v6619_v48 = vadd.f32 -0.16666654, %v6618_v23  ;;  %v6736_v5 = vshll.u32 %v12883_v8, 30  ;;  %v6834_v7 = vsel %vm6822_vm13, %v12885_v0, %v12887_v1 }
 0x644   :  { %vm6637_vm4 = vcmp.lt.s32.totalorder %v12655_v54, 0  ;;  %v6830_v2 = vsel %vm6822_vm13, %v6809_v26, %v12885_v0  ;;  %v6832_v42 = vsel %vm6824_vm15, %v12887_v1, %v6831_v50  ;;  %v6835_v17 = vsel %vm6825_vm11, %v6821_v56, 1326507024 }
 0x645   :  { %v6613_v60 = vmul.f32 %v6612_v44, %v6608_v19  ;;  %v6620_v22 = vmul.f32 %v6619_v48, %v6608_v19  ;;  %v6737_v16 = vsub.s32 %v6733_v12, %v6736_v5  ;;  %v6839_v51 = vand.u32 65535, %v12895_v43 }
 0x646   :  { %v6836_v18 = vsel %vm6824_vm15, %v6818_v34, %v6835_v17  ;;  %v6840_v39 = vshrl.u32 %v12895_v43, 16  ;;  %v12922_v12 = vadd.f32 1.5707964, %v12458_v40  ;;  %v6729_v27 = vadd.s32 %v12848_v15, %v12846_v25 }
 0x647   :  { %v6614_v61 = vadd.f32 1.0, %v6613_v60  ;;  %v6621_v4 = vadd.f32 1.0, %v6620_v22  ;;  %vm6738_vm3 = vcmp.lt.s32.totalorder %v6737_v16, 0  ;;  %v6739_v9 = vsub.s32 0, %v6737_v16 }
 0x648   :  { %v6837_v41 = vsel %vm6823_vm2, %v6834_v7, %v6836_v18  ;;  %v6806_v36 = vshrl.u32 %v7829_v29, %v12862_v63  ;;  %v6833_v3 = vsel %vm6823_vm2, %v6830_v2, %v6832_v42  ;;  %v6759_v55 = vsub.s32 4, %v12883_v8 }
 0x649   :  { %v6622_v10 = vmul.f32 %v6621_v4, %v6606_v45  ;;  %v6631_v21 = vxor.u32 2147483648, %v6614_v61  ;;  %v6740_v19 = vsel %vm6738_vm3, %v6739_v9, %v6737_v16  ;;  %v6841_v38 = vand.u32 65535, %v6837_v41 }
 0x64a   :  { %v6741_v32 = vclz %v6740_v19  ;;  %v6842_v45 = vshrl.u32 %v6837_v41, 16  ;;  %v6863_v20 = vand.u32 65535, %v6833_v3  ;;  %vm12939_vm5 = vcmp.le.f32.partialorder %v6635_v30, 0.7853982 }
 0x64b   :  { %v6628_v62 = vxor.u32 2147483648, %v6622_v10  ;;  %v6632_v28 = vsel %vm6630_vm1, %v6631_v21, %v6622_v10  ;;  %v6845_v15 = vmul.u32 %v6841_v38, %v6840_v39  ;;  %v6957_v63 = vand.u32 2139095040, %v12922_v12 }
 0x64c   :  { %v7725_v6 = vadd.s32 4294967294, %v6741_v32  ;;  %v6844_v13 = vmul.u32 %v6842_v45, %v6839_v51  ;;  %v6843_v47 = vmul.u32 %v6841_v38, %v6839_v51  ;;  %v6864_v23 = vshrl.u32 %v6833_v3, 16 }
 0x64d   :  { %v6629_v40 = vsel %vm6627_vm0, %v6614_v61, %v6628_v62  ;;  %v6760_v30 = vsel %vm6637_vm4, %v6759_v55, %v12883_v8  ;;  %v6826_v5 = vsel %vm6822_vm13, %v6806_v36, %v6809_v26  ;;  %v6846_v56 = vmul.u32 %v6842_v45, %v6840_v39 }
 0x64e   :  { %v6633_v52 = vsel %vm6626_vm12, %v6629_v40, %v6632_v28  ;;  %vm7726_vm6 = vcmp.lt.s32.totalorder %v7725_v6, 0  ;;  %v6847_v48 = vshll.u32 %v6844_v13, 16  ;;  %v6867_v60 = vmul.u32 %v6863_v20, %v6840_v39 }
 0x64f   :  { %v6634_v49 = vsel %vm6623_vm14, nan, %v6633_v52  ;;  %v6744_v24 = vsel %vm7726_vm6, 0, %v7725_v6  ;;  %v6849_v7 = vshll.u32 %v6845_v15, 16  ;;  %v6865_v61 = vmul.u32 %v6863_v20, %v6839_v51 }
 0x650   :  { %v6745_v34 = vsub.s32 32, %v6744_v24  ;;  %v6746_v44 = vshll.u32 %v6737_v16, %v6744_v24  ;;  %v6749_v58 = vsub.s32 4294967266, %v6744_v24  ;;  %6947 = vst [vmem:[#allocation5 + $0xc8] sm:$0xff] %v6634_v49  ;;  %v6848_v4 = vshrl.u32 %v6844_v13, 16 }
 0x651   :  { %vm6851_vm7 = vc.u32 %v6843_v47, %v6847_v48  ;;  %v6853_v9 = vadd.s32 %v6847_v48, %v6843_v47  ;;  %v6866_v16 = vmul.u32 %v6864_v23, %v6839_v51  ;;  %v6868_v10 = vmul.u32 %v6864_v23, %v6840_v39 }
 0x652   :  { %v6747_v22 = vshrl.u32 %v6729_v27, %v6745_v34  ;;  %v6750_v50 = vadd.s32 127, %v6749_v58  ;;  %v6852_v17 = vsel %vm6851_vm7, 1, %v7835_v53  ;;  %v6871_v19 = vshll.u32 %v6867_v60, 16 }
 0x653   :  { %v6854_v21 = vadd.s32 %v6852_v17, %v6846_v56  ;;  %vm6855_vm8 = vc.u32 %v6853_v9, %v6849_v7  ;;  %v6869_v8 = vshll.u32 %v6866_v16, 16  ;;  %v6827_v32 = vsel %vm6825_vm11, %v12887_v1, 2102212464 }
 0x654   :  { %v6748_v2 = vor.u32 %v6747_v22, %v6746_v44  ;;  %v6751_v42 = vshll.u32 %v6750_v50, 23  ;;  %v6856_v41 = vsel %vm6855_vm8, 1, %v7835_v53  ;;  %v6762_v51 = vsel %vm12939_vm5, 0, %v6760_v30 }
 0x655   :  { %v6858_v62 = vadd.s32 %v6856_v41, %v6854_v21  ;;  %vm6873_vm9 = vc.u32 %v6865_v61, %v6869_v8  ;;  %v6875_v28 = vadd.s32 %v6869_v8, %v6865_v61  ;;  %v6850_v39 = vshrl.u32 %v6845_v15, 16 }
 0x656   :  { %v6752_v26 = vor.u32 4788187, %v6751_v42  ;;  %v6755_v18 = vcvt.s32.f32 %v6748_v2  ;;  %v6874_v45 = vsel %vm6873_vm9, 1, %v7835_v53  ;;  %v6958_v27 = vshrl.u32 %v6957_v63, 23 }
 0x657   :  { %v6859_v6 = vadd.s32 %v6858_v62, %v6848_v4  ;;  %v6870_v36 = vshrl.u32 %v6866_v16, 16  ;;  %v6876_v3 = vadd.s32 %v6874_v45, %v6868_v10  ;;  %vm6877_vm10 = vc.u32 %v6875_v28, %v6871_v19 }
 0x658   :  { %v6753_v38 = vand.u32 2147483647, %v6752_v26  ;;  %v6828_v1 = vsel %vm6824_vm15, %v12885_v0, %v6827_v32  ;;  %v6878_v55 = vsel %vm6877_vm10, 1, %v7835_v53  ;;  %v7730_v13 = vadd.s32 4294967169, %v6958_v27 }
 0x659   :  { %v6872_v20 = vshrl.u32 %v6867_v60, 16  ;;  %v6880_v52 = vadd.s32 %v6878_v55, %v6876_v3  ;;  %v12963_v24 = vadd.s32 %v6859_v6, %v6850_v39  ;;  %v12965_v15 = vadd.s32 %v6875_v28, %v6871_v19 }
 0x65a   :  { %v6756_v40 = vmul.f32 %v6755_v18, %v6753_v38  ;;  %v6964_v63 = vadd.s32 1, %v7730_v13  ;;  %v6779_v47 = vadd.s32 3, %v6762_v51  ;;  %v6829_v23 = vsel %vm6823_vm2, %v6826_v5, %v6828_v1 }
 0x65b   :  { %v6881_v34 = vadd.s32 %v6880_v52, %v6870_v36  ;;  %v12972_v0 = vadd.f32 1.5707964, %v12495_v14  ;;  %v6954_v30 = vand.u32 2147483647, %v12922_v12  ;;  %v6883_v59 = vmul.u32 %v12895_v43, %v6829_v23 }
 0x65c   :  { %v6757_v49 = vxor.u32 2147483648, %v6756_v40  ;;  %vm6965_vm11 = vcmp.gt.s32.totalorder %v6964_v63, 0  ;;  %vm6885_vm12 = vc.u32 %v12963_v24, %v12965_v15  ;;  %v12981_v22 = vand.u32 3, %v6779_v47 }
 0x65d   :  { %v6882_v48 = vadd.s32 %v6881_v34, %v6872_v20  ;;  %v6966_v56 = vsel %vm6965_vm11, %v6964_v63, 0  ;;  %v6961_v4 = vand.u32 8388607, %v6954_v30  ;;  %v7109_v9 = vand.u32 2147483647, %v12972_v0 }
 0x65e   :  { %v6758_v44 = vsel %vm6637_vm4, %v6757_v49, %v6756_v40  ;;  %v6968_v5 = vand.u32 31, %v6966_v56  ;;  %v7112_v16 = vand.u32 2139095040, %v12972_v0  ;;  %vm6785_vm13 = vcmp.eq.s32.totalorder %v12981_v22, 2 }
 0x65f   :  { %v6761_v58 = vsel %vm12939_vm5, %v12655_v54, %v6758_v44  ;;  %v6886_v14 = vadd.s32 1, %v6882_v48  ;;  %v12997_v41 = vshrl.u32 %v6966_v56, 5  ;;  %vm6782_vm14 = vcmp.eq.s32.totalorder %v12981_v22, 0 }
 0x660   :  { %v6763_v60 = vmul.f32 %v6761_v58, %v6761_v58  ;;  %v12983_v61 = vsub.s32 32, %v6968_v5  ;;  %v6971_v17 = vshll.u32 %v7829_v29, %v6968_v5  ;;  %v6974_v21 = vshll.u32 %v7830_v31, %v6968_v5 }
 0x661   :  { %v6887_v25 = vsel %vm6885_vm12, %v6886_v14, %v6882_v48  ;;  %v6980_v19 = vshll.u32 %v7832_v35, %v6968_v5  ;;  %v6977_v51 = vshll.u32 %v7831_v33, %v6968_v5  ;;  %v6983_v38 = vshll.u32 %v7833_v37, %v6968_v5 }
 0x662   :  { %v6764_v50 = vmul.f32 -0.001358992, %v6763_v60  ;;  %v6771_v7 = vmul.f32 -0.00019511016, %v6763_v60  ;;  %v6888_v42 = vadd.s32 %v6887_v25, %v6883_v59  ;;  %v6972_v10 = vshrl.u32 %v7830_v31, %v12983_v61 }
 0x663   :  { %v6975_v8 = vshrl.u32 %v7831_v33, %v12983_v61  ;;  %v6978_v62 = vshrl.u32 %v7832_v35, %v12983_v61  ;;  %v6981_v28 = vshrl.u32 %v7833_v37, %v12983_v61  ;;  %vm6781_vm15 = vcmp.lt.s32.totalorder %v12981_v22, 2 }
 0x664   :  { %v6765_v43 = vadd.f32 0.041655596, %v6764_v50  ;;  %v6772_v2 = vadd.f32 0.008332121, %v6771_v7  ;;  %v6889_v32 = vadd.s32 536870912, %v6888_v42  ;;  %v6962_v6 = vor.u32 8388608, %v6961_v4 }
 0x665   :  { %vm6778_vm0 = vweird.f32 %v12655_v54  ;;  %v13010_v36 = vor.u32 %v6972_v10, %v6971_v17  ;;  %v13012_v3 = vor.u32 %v6975_v8, %v6974_v21  ;;  %v6982_v40 = vor.u32 %v6981_v28, %v6980_v19 }
 0x666   :  { %v6766_v26 = vmul.f32 %v6765_v43, %v6763_v60  ;;  %v6773_v18 = vmul.f32 %v6772_v2, %v6763_v60  ;;  %v13007_v27 = vshrl.u32 %v6889_v32, 30  ;;  %v6984_v1 = vshrl.u32 %v7834_v46, %v12983_v61 }
 0x667   :  { %vm6986_vm1 = vcmp.lt.s32.totalorder %v12997_v41, 1  ;;  %v6979_v52 = vor.u32 %v6978_v62, %v6977_v51  ;;  %vm6989_vm2 = vcmp.lt.s32.totalorder %v12997_v41, 4  ;;  %v7113_v63 = vshrl.u32 %v7112_v16, 23 }
 0x668   :  { %v6767_v39 = vadd.f32 -0.4999988, %v6766_v26  ;;  %v6774_v45 = vadd.f32 -0.16666654, %v6773_v18  ;;  %v6891_v20 = vshll.u32 %v13007_v27, 30  ;;  %v6985_v49 = vor.u32 %v6984_v1, %v6983_v38 }
 0x669   :  { %vm6988_vm3 = vcmp.lt.s32.totalorder %v12997_v41, 3  ;;  %vm6987_vm4 = vcmp.lt.s32.totalorder %v12997_v41, 2  ;;  %v6994_v44 = vsel %vm6986_vm1, %v13010_v36, %v13012_v3  ;;  %v6995_v48 = vsel %vm6989_vm2, %v6982_v40, 920167782 }
 0x66a   :  { %v6768_v55 = vmul.f32 %v6767_v39, %v6763_v60  ;;  %v6775_v13 = vmul.f32 %v6774_v45, %v6763_v60  ;;  %v6892_v34 = vsub.s32 %v6888_v42, %v6891_v20  ;;  %v13027_v56 = vshll.u32 %v6962_v6, 8 }
 0x66b   :  { %vm6792_vm6 = vcmp.lt.s32.totalorder %v12769_v57, 0  ;;  %v6884_v14 = vadd.s32 %v12965_v15, %v12963_v24  ;;  %v6996_v50 = vsel %vm6988_vm3, %v6979_v52, %v6995_v48  ;;  %v6998_v7 = vsel %vm6986_vm1, %v13012_v3, %v6979_v52 }
 0x66c   :  { %v6769_v47 = vadd.f32 1.0, %v6768_v55  ;;  %v6776_v23 = vadd.f32 1.0, %v6775_v13  ;;  %vm6893_vm5 = vcmp.lt.s32.totalorder %v6892_v34, 0  ;;  %v6894_v5 = vsub.s32 0, %v6892_v34 }
 0x66d   :  { %v6999_v25 = vsel %vm6989_vm2, %v6985_v49, 1326507024  ;;  %v7733_v43 = vadd.s32 4294967169, %v7113_v63  ;;  %v6997_v24 = vsel %vm6987_vm4, %v6994_v44, %v6996_v50  ;;  %v7003_v42 = vand.u32 65535, %v13027_v56 }
 0x66e   :  { %v6777_v60 = vmul.f32 %v6776_v23, %v6761_v58  ;;  %v6786_v59 = vxor.u32 2147483648, %v6769_v47  ;;  %v6895_v16 = vsel %vm6893_vm5, %v6894_v5, %v6892_v34  ;;  %v7000_v15 = vsel %vm6988_vm3, %v6982_v40, %v6999_v25 }
 0x66f   :  { %v6896_v2 = vclz %v6895_v16  ;;  %v7001_v10 = vsel %vm6987_vm4, %v6998_v7, %v7000_v15  ;;  %v7004_v21 = vshrl.u32 %v13027_v56, 16  ;;  %v7028_v8 = vshrl.u32 %v6997_v24, 16 }
 0x670   :  { %v6783_v4 = vxor.u32 2147483648, %v6777_v60  ;;  %v6787_v58 = vsel %vm6785_vm13, %v6786_v59, %v6777_v60  ;;  %v7005_v18 = vand.u32 65535, %v7001_v10  ;;  %v7006_v32 = vshrl.u32 %v7001_v10, 16 }
 0x671   :  { %v7728_v26 = vadd.s32 4294967294, %v6896_v2  ;;  %vm13057_vm7 = vcmp.le.f32.partialorder %v6790_v11, 0.7853982  ;;  %v6914_v28 = vsub.s32 4, %v13007_v27  ;;  %v6970_v38 = vshrl.u32 %v7829_v29, %v12983_v61 }
 0x672   :  { %v6784_v17 = vsel %vm6782_vm14, %v6769_v47, %v6783_v4  ;;  %v7119_v39 = vadd.s32 1, %v7733_v43  ;;  %v6991_v22 = vsel %vm6989_vm2, %v6979_v52, 2102212464  ;;  %v7008_v45 = vmul.u32 %v7006_v32, %v7003_v42 }
 0x673   :  { %v6788_v19 = vsel %vm6781_vm15, %v6784_v17, %v6787_v58  ;;  %vm7729_vm8 = vcmp.lt.s32.totalorder %v7728_v26, 0  ;;  %v7027_v6 = vand.u32 65535, %v6997_v24  ;;  %v7007_v1 = vmul.u32 %v7005_v18, %v7003_v42 }
 0x674   :  { %v6789_v51 = vsel %vm6778_vm0, nan, %v6788_v19  ;;  %v6899_v40 = vsel %vm7729_vm8, 0, %v7728_v26  ;;  %v7009_v55 = vmul.u32 %v7005_v18, %v7004_v21  ;;  %v7030_v11 = vmul.u32 %v7028_v8, %v7003_v42 }
 0x675   :  { %6948 = vst [vmem:[#allocation5 + $0xd0] sm:$0xff] %v6789_v51  ;;  %v6900_v13 = vsub.s32 32, %v6899_v40  ;;  %v6901_v20 = vshll.u32 %v6892_v34, %v6899_v40  ;;  %v6904_v49 = vsub.s32 4294967266, %v6899_v40  ;;  %v7011_v63 = vshll.u32 %v7008_v45, 16 }
 0x676   :  { %v6915_v61 = vsel %vm6792_vm6, %v6914_v28, %v13007_v27  ;;  %v6990_v47 = vsel %vm6986_vm1, %v6970_v38, %v13010_v36  ;;  %v6992_v52 = vsel %vm6988_vm3, %v13012_v3, %v6991_v22  ;;  %v7010_v23 = vmul.u32 %v7006_v32, %v7004_v21 }
 0x677   :  { %v6902_v44 = vshrl.u32 %v6884_v14, %v6900_v13  ;;  %v6905_v48 = vadd.s32 127, %v6904_v49  ;;  %v7013_v60 = vshll.u32 %v7009_v55, 16  ;;  %v7029_v59 = vmul.u32 %v7027_v6, %v7003_v42 }
 0x678   :  { %v7012_v34 = vshrl.u32 %v7008_v45, 16  ;;  %vm7015_vm9 = vc.u32 %v7007_v1, %v7011_v63  ;;  %v7017_v5 = vadd.s32 %v7011_v63, %v7007_v1  ;;  %v7031_v50 = vmul.u32 %v7027_v6, %v7004_v21 }
 0x679   :  { %v6903_v7 = vor.u32 %v6902_v44, %v6901_v20  ;;  %v6906_v25 = vshll.u32 %v6905_v48, 23  ;;  %v7016_v27 = vsel %vm7015_vm9, 1, %v7835_v53  ;;  %v7033_v4 = vshll.u32 %v7030_v11, 16 }
 0x67a   :  { %v7018_v58 = vadd.s32 %v7016_v27, %v7010_v23  ;;  %vm7019_vm10 = vc.u32 %v7017_v5, %v7013_v60  ;;  %v7032_v36 = vmul.u32 %v7028_v8, %v7004_v21  ;;  %v7035_v16 = vshll.u32 %v7031_v50, 16 }
 0x67b   :  { %v6907_v43 = vor.u32 4788187, %v6906_v25  ;;  %v6910_v3 = vcvt.s32.f32 %v6903_v7  ;;  %v6917_v14 = vsel %vm13057_vm7, 0, %v6915_v61  ;;  %v7020_v2 = vsel %vm7019_vm10, 1, %v7835_v53 }
 0x67c   :  { %v7014_v24 = vshrl.u32 %v7009_v55, 16  ;;  %v7022_v15 = vadd.s32 %v7020_v2, %v7018_v58  ;;  %vm7037_vm11 = vc.u32 %v7029_v59, %v7033_v4  ;;  %v7039_v42 = vadd.s32 %v7033_v4, %v7029_v59 }
 0x67d   :  { %v6908_v17 = vand.u32 2147483647, %v6907_v43  ;;  %v6993_v10 = vsel %vm6987_vm4, %v6990_v47, %v6992_v52  ;;  %v7038_v19 = vsel %vm7037_vm11, 1, %v7835_v53  ;;  %vm7120_vm12 = vcmp.gt.s32.totalorder %v7119_v39, 0 }
 0x67e   :  { %v7023_v21 = vadd.s32 %v7022_v15, %v7012_v34  ;;  %v7034_v8 = vshrl.u32 %v7030_v11, 16  ;;  %v7040_v26 = vadd.s32 %v7038_v19, %v7032_v36  ;;  %vm7041_vm13 = vc.u32 %v7039_v42, %v7035_v16 }
 0x67f   :  { %v6911_v18 = vmul.f32 %v6910_v3, %v6908_v17  ;;  %v7042_v32 = vsel %vm7041_vm13, 1, %v7835_v53  ;;  %v13083_v51 = vadd.s32 %v7039_v42, %v7035_v16  ;;  %v7121_v28 = vsel %vm7120_vm12, %v7119_v39, 0 }
 0x680   :  { %v13085_v38 = vadd.s32 %v7023_v21, %v7014_v24  ;;  %v7036_v22 = vshrl.u32 %v7031_v50, 16  ;;  %v7044_v45 = vadd.s32 %v7042_v32, %v7040_v26  ;;  %v7123_v6 = vand.u32 31, %v7121_v28 }
 0x681   :  { %v6912_v41 = vxor.u32 2147483648, %v6911_v18  ;;  %v7116_v40 = vand.u32 8388607, %v7109_v9  ;;  %v6934_v1 = vadd.s32 3, %v6917_v14  ;;  %v7047_v11 = vmul.u32 %v13027_v56, %v6993_v10 }
 0x682   :  { %v7045_v55 = vadd.s32 %v7044_v45, %v7034_v8  ;;  %v7124_v13 = vsub.s32 32, %v7123_v6  ;;  %vm7049_vm14 = vc.u32 %v13085_v38, %v13083_v51  ;;  %v13094_v39 = vshrl.u32 %v7121_v28, 5 }
 0x683   :  { %v6913_v20 = vsel %vm6792_vm6, %v6912_v41, %v6911_v18  ;;  %v7126_v49 = vshll.u32 %v7829_v29, %v7123_v6  ;;  %v7129_v56 = vshll.u32 %v7830_v31, %v7123_v6  ;;  %v7132_v44 = vshll.u32 %v7831_v33, %v7123_v6 }
 0x684   :  { %v6916_v63 = vsel %vm13057_vm7, %v12769_v57, %v6913_v20  ;;  %v7046_v61 = vadd.s32 %v7045_v55, %v7036_v22  ;;  %v7127_v47 = vshrl.u32 %v7830_v31, %v7124_v13  ;;  %v7130_v23 = vshrl.u32 %v7831_v33, %v7124_v13 }
 0x685   :  { %v6918_v52 = vmul.f32 %v6916_v63, %v6916_v63  ;;  %v7135_v48 = vshll.u32 %v7832_v35, %v7123_v6  ;;  %v7133_v59 = vshrl.u32 %v7832_v35, %v7124_v13  ;;  %v7136_v34 = vshrl.u32 %v7833_v37, %v7124_v13 }
 0x686   :  { %v7050_v60 = vadd.s32 1, %v7046_v61  ;;  %v7138_v62 = vshll.u32 %v7833_v37, %v7123_v6  ;;  %v13108_v7 = vand.u32 3, %v6934_v1  ;;  %v7117_v25 = vor.u32 8388608, %v7116_v40 }
 0x687   :  { %v6919_v5 = vmul.f32 -0.001358992, %v6918_v52  ;;  %v6926_v50 = vmul.f32 -0.00019511016, %v6918_v52  ;;  %v13113_v4 = vor.u32 %v7127_v47, %v7126_v49  ;;  %v7137_v58 = vor.u32 %v7136_v34, %v7135_v48 }
 0x688   :  { %v7051_v27 = vsel %vm7049_vm14, %v7050_v60, %v7046_v61  ;;  %v7139_v36 = vshrl.u32 %v7834_v46, %v7124_v13  ;;  %v13116_v14 = vor.u32 %v7130_v23, %v7129_v56  ;;  %v7134_v2 = vor.u32 %v7133_v59, %v7132_v44 }
 0x689   :  { %v6920_v16 = vadd.f32 0.041655596, %v6919_v5  ;;  %v6927_v43 = vadd.f32 0.008332121, %v6926_v50  ;;  %v7052_v3 = vadd.s32 %v7051_v27, %v7047_v11  ;;  %vm7141_vm15 = vcmp.lt.s32.totalorder %v13094_v39, 1 }
 0x68a   :  { %v7140_v24 = vor.u32 %v7139_v36, %v7138_v62  ;;  %vm7143_vm0 = vcmp.lt.s32.totalorder %v13094_v39, 3  ;;  %vm7144_vm1 = vcmp.lt.s32.totalorder %v13094_v39, 4  ;;  %v13122_v10 = vadd.f32 1.5707964, %v12655_v54 }
 0x68b   :  { %v6921_v15 = vmul.f32 %v6920_v16, %v6918_v52  ;;  %v6928_v42 = vmul.f32 %v6927_v43, %v6918_v52  ;;  %v7053_v17 = vadd.s32 536870912, %v7052_v3  ;;  %vm7142_vm2 = vcmp.lt.s32.totalorder %v13094_v39, 2 }
 0x68c   :  { %v7150_v19 = vsel %vm7144_vm1, %v7137_v58, 920167782  ;;  %v13127_v21 = vshll.u32 %v7117_v25, 8  ;;  %v7149_v32 = vsel %vm7141_vm15, %v13113_v4, %v13116_v14  ;;  %vm6933_vm3 = vweird.f32 %v12769_v57 }
 0x68d   :  { %v6922_v8 = vadd.f32 -0.4999988, %v6921_v15  ;;  %v6929_v26 = vadd.f32 -0.16666654, %v6928_v42  ;;  %v13129_v18 = vshrl.u32 %v7053_v17, 30  ;;  %vm6936_vm4 = vcmp.lt.s32.totalorder %v13108_v7, 2 }
 0x68e   :  { %vm6937_vm5 = vcmp.eq.s32.totalorder %v13108_v7, 0  ;;  %v7151_v54 = vsel %vm7143_vm0, %v7134_v2, %v7150_v19  ;;  %v7154_v28 = vsel %vm7144_vm1, %v7140_v24, 1326507024  ;;  %v7153_v41 = vsel %vm7141_vm15, %v13116_v14, %v7134_v2 }
 0x68f   :  { %v6923_v22 = vmul.f32 %v6922_v8, %v6918_v52  ;;  %v6930_v45 = vmul.f32 %v6929_v26, %v6918_v52  ;;  %v7055_v6 = vshll.u32 %v13129_v18, 30  ;;  %vm6940_vm6 = vcmp.eq.s32.totalorder %v13108_v7, 2 }
 0x690   :  { %v7152_v40 = vsel %vm7142_vm2, %v7149_v32, %v7151_v54  ;;  %v7155_v1 = vsel %vm7143_vm0, %v7137_v58, %v7154_v28  ;;  %v7264_v55 = vand.u32 2147483647, %v13122_v10  ;;  %v7158_v61 = vand.u32 65535, %v13127_v21 }
 0x691   :  { %v6924_v11 = vadd.f32 1.0, %v6923_v22  ;;  %v6931_v20 = vadd.f32 1.0, %v6930_v45  ;;  %v7056_v49 = vsub.s32 %v7052_v3, %v7055_v6  ;;  %v7125_v47 = vshrl.u32 %v7829_v29, %v7124_v13 }
 0x692   :  { %v7156_v56 = vsel %vm7142_vm2, %v7153_v41, %v7155_v1  ;;  %v7159_v52 = vshrl.u32 %v13127_v21, 16  ;;  %v7183_v23 = vshrl.u32 %v7152_v40, 16  ;;  %vm6956_vm8 = vcmp.lt.s32.totalorder %v12922_v12, 0 }
 0x693   :  { %v6932_v44 = vmul.f32 %v6931_v20, %v6916_v63  ;;  %v6941_v48 = vxor.u32 2147483648, %v6924_v11  ;;  %vm7057_vm7 = vcmp.lt.s32.totalorder %v7056_v49, 0  ;;  %v7058_v60 = vsub.s32 0, %v7056_v49 }
 0x694   :  { %v7048_v59 = vadd.s32 %v13083_v51, %v13085_v38  ;;  %v7160_v34 = vand.u32 65535, %v7156_v56  ;;  %v7161_v62 = vshrl.u32 %v7156_v56, 16  ;;  %v7267_v5 = vand.u32 2139095040, %v13122_v10 }
 0x695   :  { %v6938_v13 = vxor.u32 2147483648, %v6932_v44  ;;  %v6942_v50 = vsel %vm6940_vm6, %v6941_v48, %v6932_v44  ;;  %v7059_v25 = vsel %vm7057_vm7, %v7058_v60, %v7056_v49  ;;  %v7182_v27 = vand.u32 65535, %v7152_v40 }
 0x696   :  { %v7060_v58 = vclz %v7059_v25  ;;  %v7162_v63 = vmul.u32 %v7160_v34, %v7158_v61  ;;  %v7163_v36 = vmul.u32 %v7161_v62, %v7158_v61  ;;  %v7164_v16 = vmul.u32 %v7160_v34, %v7159_v52 }
 0x697   :  { %v6939_v43 = vsel %vm6937_vm5, %v6924_v11, %v6938_v13  ;;  %v7145_v51 = vsel %vm7141_vm15, %v7125_v47, %v13113_v4  ;;  %v7146_v38 = vsel %vm7144_vm1, %v7134_v2, 2102212464  ;;  %v7185_v3 = vmul.u32 %v7183_v23, %v7158_v61 }
 0x698   :  { %v6943_v24 = vsel %vm6936_vm4, %v6939_v43, %v6942_v50  ;;  %v7731_v15 = vadd.s32 4294967294, %v7060_v58  ;;  %v7165_v42 = vmul.u32 %v7161_v62, %v7159_v52  ;;  %v7166_v17 = vshll.u32 %v7163_v36, 16 }
 0x699   :  { %v6944_v19 = vsel %vm6933_vm3, nan, %v6943_v24  ;;  %v7078_v8 = vsub.s32 4, %v13129_v18  ;;  %v7168_v26 = vshll.u32 %v7164_v16, 16  ;;  %v7268_v32 = vshrl.u32 %v7267_v5, 23 }
 0x69a   :  { %6949 = vst [vmem:[#allocation5 + $0xd8] sm:$0xff] %v6944_v19  ;;  %vm13177_vm9 = vcmp.le.f32.partialorder %v6954_v30, 0.7853982  ;;  %vm7732_vm10 = vcmp.lt.s32.totalorder %v7731_v15, 0  ;;  %vm7170_vm11 = vc.u32 %v7162_v63, %v7166_v17  ;;  %v7172_v7 = vadd.s32 %v7166_v17, %v7162_v63 }
 0x69b   :  { %v7186_v2 = vmul.u32 %v7182_v27, %v7159_v52  ;;  %v7063_v54 = vsel %vm7732_vm10, 0, %v7731_v15  ;;  %v7171_v28 = vsel %vm7170_vm11, 1, %v7835_v53  ;;  %v7184_v22 = vmul.u32 %v7182_v27, %v7158_v61 }
 0x69c   :  { %v7188_v45 = vshll.u32 %v7185_v3, 16  ;;  %v7064_v6 = vsub.s32 32, %v7063_v54  ;;  %v7065_v41 = vshll.u32 %v7056_v49, %v7063_v54  ;;  %v7068_v40 = vsub.s32 4294967266, %v7063_v54 }
 0x69d   :  { %v7173_v1 = vadd.s32 %v7171_v28, %v7165_v42  ;;  %v7079_v30 = vsel %vm6956_vm8, %v7078_v8, %v13129_v18  ;;  %v7167_v11 = vshrl.u32 %v7163_v36, 16  ;;  %vm7174_vm12 = vc.u32 %v7172_v7, %v7168_v26 }
 0x69e   :  { %v7187_v20 = vmul.u32 %v7183_v23, %v7159_v52  ;;  %v7066_v47 = vshrl.u32 %v7048_v59, %v7064_v6  ;;  %v7069_v56 = vadd.s32 127, %v7068_v40  ;;  %v7175_v44 = vsel %vm7174_vm12, 1, %v7835_v53 }
 0x69f   :  { %v7190_v48 = vshll.u32 %v7186_v2, 16  ;;  %v7169_v60 = vshrl.u32 %v7164_v16, 16  ;;  %v7177_v34 = vadd.s32 %v7175_v44, %v7173_v1  ;;  %vm7192_vm13 = vc.u32 %v7184_v22, %v7188_v45 }
 0x6a0   :  { %v7194_v61 = vadd.s32 %v7188_v45, %v7184_v22  ;;  %v7067_v62 = vor.u32 %v7066_v47, %v7065_v41  ;;  %v7070_v49 = vshll.u32 %v7069_v56, 23  ;;  %v7193_v5 = vsel %vm7192_vm13, 1, %v7835_v53 }
 0x6a1   :  { %v7736_v13 = vadd.s32 4294967169, %v7268_v32  ;;  %v7178_v50 = vadd.s32 %v7177_v34, %v7167_v11  ;;  %v7189_v25 = vshrl.u32 %v7185_v3, 16  ;;  %v7195_v18 = vadd.s32 %v7193_v5, %v7187_v20 }
 0x6a2   :  { %vm7196_vm14 = vc.u32 %v7194_v61, %v7190_v48  ;;  %v7071_v27 = vor.u32 4788187, %v7070_v49  ;;  %v7074_v52 = vcvt.s32.f32 %v7067_v62  ;;  %v7147_v23 = vsel %vm7143_vm0, %v13116_v14, %v7146_v38 }
 0x6a3   :  { %v7197_v59 = vsel %vm7196_vm14, 1, %v7835_v53  ;;  %v7081_v58 = vsel %vm13177_vm9, 0, %v7079_v30  ;;  %v7191_v63 = vshrl.u32 %v7186_v2, 16  ;;  %v7274_v16 = vadd.s32 1, %v7736_v13 }
 0x6a4   :  { %v7199_v36 = vadd.s32 %v7197_v59, %v7195_v18  ;;  %v7072_v43 = vand.u32 2147483647, %v7071_v27  ;;  %v13193_v24 = vadd.s32 %v7178_v50, %v7169_v60  ;;  %v13195_v3 = vadd.s32 %v7194_v61, %v7190_v48 }
 0x6a5   :  { %v7148_v15 = vsel %vm7142_vm2, %v7145_v51, %v7147_v23  ;;  %vm7275_vm15 = vcmp.gt.s32.totalorder %v7274_v16, 0  ;;  %v7098_v14 = vadd.s32 3, %v7081_v58  ;;  %v7271_v38 = vand.u32 8388607, %v7264_v55 }
 0x6a6   :  { %v7200_v42 = vadd.s32 %v7199_v36, %v7189_v25  ;;  %v7075_v17 = vmul.f32 %v7074_v52, %v7072_v43  ;;  %v7276_v19 = vsel %vm7275_vm15, %v7274_v16, 0  ;;  %v7202_v7 = vmul.u32 %v13127_v21, %v7148_v15 }
 0x6a7   :  { %v7278_v26 = vand.u32 31, %v7276_v19  ;;  %vm7204_vm0 = vc.u32 %v13193_v24, %v13195_v3  ;;  %v13207_v39 = vadd.f32 1.5707964, %v12769_v57  ;;  %v13211_v28 = vand.u32 3, %v7098_v14 }
 0x6a8   :  { %v7201_v8 = vadd.s32 %v7200_v42, %v7191_v63  ;;  %v7076_v32 = vxor.u32 2147483648, %v7075_v17  ;;  %v7272_v22 = vor.u32 8388608, %v7271_v38  ;;  %v13218_v6 = vshrl.u32 %v7276_v19, 5 }
 0x6a9   :  { %v13204_v54 = vsub.s32 32, %v7278_v26  ;;  %v7284_v41 = vshll.u32 %v7830_v31, %v7278_v26  ;;  %v7287_v1 = vshll.u32 %v7831_v33, %v7278_v26  ;;  %v7290_v30 = vshll.u32 %v7832_v35, %v7278_v26 }
 0x6aa   :  { %v7205_v2 = vadd.s32 1, %v7201_v8  ;;  %v7077_v51 = vsel %vm6956_vm8, %v7076_v32, %v7075_v17  ;;  %v7293_v47 = vshll.u32 %v7833_v37, %v7278_v26  ;;  %v7422_v60 = vand.u32 2139095040, %v13207_v39 }
 0x6ab   :  { %v13216_v45 = vsel %vm13177_vm9, %v12922_v12, %v7077_v51  ;;  %v7285_v11 = vshrl.u32 %v7831_v33, %v13204_v54  ;;  %v7288_v4 = vshrl.u32 %v7832_v35, %v13204_v54  ;;  %v7291_v20 = vshrl.u32 %v7833_v37, %v13204_v54 }
 0x6ac   :  { %v7206_v21 = vsel %vm7204_vm0, %v7205_v2, %v7201_v8  ;;  %v7082_v57 = vmul.f32 %v13216_v45, %v13216_v45  ;;  %v7281_v34 = vshll.u32 %v7829_v29, %v7278_v26  ;;  %v7282_v61 = vshrl.u32 %v7830_v31, %v13204_v54 }
 0x6ad   :  { %v7207_v40 = vadd.s32 %v7206_v21, %v7202_v7  ;;  %v7294_v62 = vshrl.u32 %v7834_v46, %v13204_v54  ;;  %v13238_v49 = vshll.u32 %v7272_v22, 8  ;;  %v7292_v25 = vor.u32 %v7291_v20, %v7290_v30 }
 0x6ae   :  { %v7083_v56 = vmul.f32 -0.001358992, %v7082_v57  ;;  %v7090_v44 = vmul.f32 -0.00019511016, %v7082_v57  ;;  %v13242_v18 = vor.u32 %v7285_v11, %v7284_v41  ;;  %v13244_v27 = vor.u32 %v7288_v4, %v7287_v1 }
 0x6af   :  { %v7208_v48 = vadd.s32 536870912, %v7207_v40  ;;  %v7295_v52 = vor.u32 %v7294_v62, %v7293_v47  ;;  %vm7299_vm1 = vcmp.lt.s32.totalorder %v13218_v6, 4  ;;  %vm7296_vm2 = vcmp.lt.s32.totalorder %v13218_v6, 1 }
 0x6b0   :  { %v7084_v5 = vadd.f32 0.041655596, %v7083_v56  ;;  %v7091_v13 = vadd.f32 0.008332121, %v7090_v44  ;;  %vm7101_vm3 = vcmp.eq.s32.totalorder %v13211_v28, 0  ;;  %vm7104_vm4 = vcmp.eq.s32.totalorder %v13211_v28, 2 }
 0x6b1   :  { %v13240_v50 = vshrl.u32 %v7208_v48, 30  ;;  %v7283_v63 = vor.u32 %v7282_v61, %v7281_v34  ;;  %vm7298_vm5 = vcmp.lt.s32.totalorder %v13218_v6, 3  ;;  %v7423_v36 = vshrl.u32 %v7422_v60, 23 }
 0x6b2   :  { %v7085_v23 = vmul.f32 %v7084_v5, %v7082_v57  ;;  %v7092_v59 = vmul.f32 %v7091_v13, %v7082_v57  ;;  %vm7100_vm6 = vcmp.lt.s32.totalorder %v13211_v28, 2  ;;  %v7305_v42 = vsel %vm7299_vm1, %v7292_v25, 920167782 }
 0x6b3   :  { %v7210_v58 = vshll.u32 %v13240_v50, 30  ;;  %vm7097_vm7 = vweird.f32 %v12922_v12  ;;  %vm7297_vm8 = vcmp.lt.s32.totalorder %v13218_v6, 2  ;;  %v7308_v17 = vsel %vm7296_vm2, %v13242_v18, %v13244_v27 }
 0x6b4   :  { %v7086_v16 = vadd.f32 -0.4999988, %v7085_v23  ;;  %v7093_v43 = vadd.f32 -0.16666654, %v7092_v59  ;;  %v7309_v14 = vsel %vm7299_vm1, %v7295_v52, 1326507024  ;;  %v7304_v32 = vsel %vm7296_vm2, %v7283_v63, %v13242_v18 }
 0x6b5   :  { %v13253_v15 = vsub.s32 %v7207_v40, %v7210_v58  ;;  %v7313_v38 = vand.u32 65535, %v13238_v49  ;;  %v7306_v7 = vsel %vm7298_vm5, %v13244_v27, %v7305_v42  ;;  %v7310_v2 = vsel %vm7298_vm5, %v7292_v25, %v7309_v14 }
 0x6b6   :  { %v7087_v19 = vmul.f32 %v7086_v16, %v7082_v57  ;;  %v7094_v8 = vmul.f32 %v7093_v43, %v7082_v57  ;;  %v7314_v51 = vshrl.u32 %v13238_v49, 16  ;;  %vm7111_vm10 = vcmp.lt.s32.totalorder %v12972_v0, 0 }
 0x6b7   :  { %vm7212_vm9 = vcmp.lt.s32.totalorder %v13253_v15, 0  ;;  %v7213_v26 = vsub.s32 0, %v13253_v15  ;;  %v7311_v57 = vsel %vm7297_vm8, %v7308_v17, %v7310_v2  ;;  %v7419_v11 = vand.u32 2147483647, %v13207_v39 }
 0x6b8   :  { %v7088_v22 = vadd.f32 1.0, %v7087_v19  ;;  %v7095_v21 = vadd.f32 1.0, %v7094_v8  ;;  %v7315_v1 = vand.u32 65535, %v7311_v57  ;;  %v7316_v30 = vshrl.u32 %v7311_v57, 16 }
 0x6b9   :  { %v7214_v41 = vsel %vm7212_vm9, %v7213_v26, %v13253_v15  ;;  %v7203_v47 = vadd.s32 %v13195_v3, %v13193_v24  ;;  %v7739_v56 = vadd.s32 4294967169, %v7423_v36  ;;  %v7280_v48 = vshrl.u32 %v7829_v29, %v13204_v54 }
 0x6ba   :  { %v7215_v40 = vclz %v7214_v41  ;;  %v7096_v4 = vmul.f32 %v7095_v21, %v13216_v45  ;;  %v7105_v20 = vxor.u32 2147483648, %v7088_v22  ;;  %v7307_v60 = vsel %vm7297_vm8, %v7304_v32, %v7306_v7 }
 0x6bb   :  { %v7318_v34 = vmul.u32 %v7316_v30, %v7313_v38  ;;  %v7233_v5 = vsub.s32 4, %v13240_v50  ;;  %v7319_v45 = vmul.u32 %v7315_v1, %v7314_v51  ;;  %v7317_v13 = vmul.u32 %v7315_v1, %v7313_v38 }
 0x6bc   :  { %v7734_v44 = vadd.s32 4294967294, %v7215_v40  ;;  %v7102_v61 = vxor.u32 2147483648, %v7096_v4  ;;  %v7106_v62 = vsel %vm7104_vm4, %v7105_v20, %v7096_v4  ;;  %v7337_v24 = vand.u32 65535, %v7307_v60 }
 0x6bd   :  { %v7321_v25 = vshll.u32 %v7318_v34, 16  ;;  %v7320_v54 = vmul.u32 %v7316_v30, %v7314_v51  ;;  %v7338_v23 = vshrl.u32 %v7307_v60, 16  ;;  %vm13301_vm12 = vcmp.le.f32.partialorder %v7109_v9, 0.7853982 }
 0x6be   :  { %vm7735_vm11 = vcmp.lt.s32.totalorder %v7734_v44, 0  ;;  %v7103_v3 = vsel %vm7101_vm3, %v7088_v22, %v7102_v61  ;;  %v7300_v17 = vsel %vm7296_vm2, %v7280_v48, %v7283_v63  ;;  %v7301_v28 = vsel %vm7299_vm1, %v13244_v27, 2102212464 }
 0x6bf   :  { %v7218_v52 = vsel %vm7735_vm11, 0, %v7734_v44  ;;  %v7107_v59 = vsel %vm7100_vm6, %v7103_v3, %v7106_v62  ;;  %v7323_v14 = vshll.u32 %v7319_v45, 16  ;;  %v7234_v12 = vsel %vm7111_vm10, %v7233_v5, %v13240_v50 }
 0x6c0   :  { %v7219_v58 = vsub.s32 32, %v7218_v52  ;;  %v7220_v36 = vshll.u32 %v13253_v15, %v7218_v52  ;;  %v7223_v16 = vsub.s32 4294967266, %v7218_v52  ;;  %v7108_v43 = vsel %vm7097_vm7, nan, %v7107_v59 }
 0x6c1   :  { %vm7325_vm13 = vc.u32 %v7317_v13, %v7321_v25  ;;  %7575 = vst [vmem:[#allocation5 + $0x180] sm:$0xff] %v7108_v43  ;;  %v7327_v8 = vadd.s32 %v7321_v25, %v7317_v13  ;;  %v7339_v26 = vmul.u32 %v7337_v24, %v7313_v38  ;;  %v7340_v32 = vmul.u32 %v7338_v23, %v7313_v38 }
 0x6c2   :  { %v7221_v19 = vshrl.u32 %v7203_v47, %v7219_v58  ;;  %v7224_v15 = vadd.s32 127, %v7223_v16  ;;  %v7326_v9 = vsel %vm7325_vm13, 1, %v7835_v53  ;;  %v7341_v22 = vmul.u32 %v7337_v24, %v7314_v51 }
 0x6c3   :  { %v7328_v2 = vadd.s32 %v7326_v9, %v7320_v54  ;;  %v7322_v21 = vshrl.u32 %v7318_v34, 16  ;;  %vm7329_vm14 = vc.u32 %v7327_v8, %v7323_v14  ;;  %v7342_v27 = vmul.u32 %v7338_v23, %v7314_v51 }
 0x6c4   :  { %v7222_v7 = vor.u32 %v7221_v19, %v7220_v36  ;;  %v7225_v63 = vshll.u32 %v7224_v15, 23  ;;  %v7343_v41 = vshll.u32 %v7340_v32, 16  ;;  %v7330_v1 = vsel %vm7329_vm14, 1, %v7835_v53 }
 0x6c5   :  { %v7345_v50 = vshll.u32 %v7341_v22, 16  ;;  %v7302_v30 = vsel %vm7298_vm5, %v13242_v18, %v7301_v28  ;;  %v7332_v4 = vadd.s32 %v7330_v1, %v7328_v2  ;;  %v7324_v47 = vshrl.u32 %v7319_v45, 16 }
 0x6c6   :  { %v7226_v57 = vor.u32 4788187, %v7225_v63  ;;  %v7229_v40 = vcvt.s32.f32 %v7222_v7  ;;  %vm7347_vm15 = vc.u32 %v7339_v26, %v7343_v41  ;;  %v7349_v38 = vadd.s32 %v7343_v41, %v7339_v26 }
 0x6c7   :  { %v7348_v44 = vsel %vm7347_vm15, 1, %v7835_v53  ;;  %v7429_v48 = vadd.s32 1, %v7739_v56  ;;  %v7333_v60 = vadd.s32 %v7332_v4, %v7322_v21  ;;  %v7344_v51 = vshrl.u32 %v7340_v32, 16 }
 0x6c8   :  { %v7227_v20 = vand.u32 2147483647, %v7226_v57  ;;  %v7350_v34 = vadd.s32 %v7348_v44, %v7342_v27  ;;  %vm7351_vm0 = vc.u32 %v7349_v38, %v7345_v50  ;;  %v7236_v62 = vsel %vm13301_vm12, 0, %v7234_v12 }
 0x6c9   :  { %v7352_v5 = vsel %vm7351_vm0, 1, %v7835_v53  ;;  %vm7430_vm1 = vcmp.gt.s32.totalorder %v7429_v48, 0  ;;  %v7303_v18 = vsel %vm7297_vm8, %v7300_v17, %v7302_v30  ;;  %v7346_v13 = vshrl.u32 %v7341_v22, 16 }
 0x6ca   :  { %v7230_v61 = vmul.f32 %v7229_v40, %v7227_v20  ;;  %v7354_v25 = vadd.s32 %v7352_v5, %v7350_v34  ;;  %v7431_v45 = vsel %vm7430_vm1, %v7429_v48, 0  ;;  %v13324_v3 = vadd.s32 %v7333_v60, %v7324_v47 }
 0x6cb   :  { %v13326_v56 = vadd.s32 %v7349_v38, %v7345_v50  ;;  %v7433_v52 = vand.u32 31, %v7431_v45  ;;  %v7357_v59 = vmul.u32 %v13238_v49, %v7303_v18  ;;  %v7426_v58 = vand.u32 8388607, %v7419_v11 }
 0x6cc   :  { %v7231_v24 = vxor.u32 2147483648, %v7230_v61  ;;  %v7355_v54 = vadd.s32 %v7354_v25, %v7344_v51  ;;  %v7253_v16 = vadd.s32 3, %v7236_v62  ;;  %v13338_v17 = vshrl.u32 %v7431_v45, 5 }
 0x6cd   :  { %v13333_v6 = vsub.s32 32, %v7433_v52  ;;  %vm7359_vm2 = vc.u32 %v13324_v3, %v13326_v56  ;;  %v7439_v14 = vshll.u32 %v7830_v31, %v7433_v52  ;;  %v7445_v49 = vshll.u32 %v7832_v35, %v7433_v52 }
 0x6ce   :  { %v7232_v23 = vsel %vm7111_vm10, %v7231_v24, %v7230_v61  ;;  %v7356_v43 = vadd.s32 %v7355_v54, %v7346_v13  ;;  %v7448_v12 = vshll.u32 %v7833_v37, %v7433_v52  ;;  %v7442_v26 = vshll.u32 %v7831_v33, %v7433_v52 }
 0x6cf   :  { %v7235_v36 = vsel %vm13301_vm12, %v12972_v0, %v7232_v23  ;;  %v7440_v15 = vshrl.u32 %v7831_v33, %v13333_v6  ;;  %v7446_v42 = vshrl.u32 %v7833_v37, %v13333_v6  ;;  %v7443_v32 = vshrl.u32 %v7832_v35, %v13333_v6 }
 0x6d0   :  { %v7237_v28 = vmul.f32 %v7235_v36, %v7235_v36  ;;  %v7360_v19 = vadd.s32 1, %v7356_v43  ;;  %v7436_v63 = vshll.u32 %v7829_v29, %v7433_v52  ;;  %v7437_v2 = vshrl.u32 %v7830_v31, %v13333_v6 }
 0x6d1   :  { %v7449_v22 = vshrl.u32 %v7834_v46, %v13333_v6  ;;  %v7427_v37 = vor.u32 8388608, %v7426_v58  ;;  %v13357_v57 = vor.u32 %v7440_v15, %v7439_v14  ;;  %v7447_v40 = vor.u32 %v7446_v42, %v7445_v49 }
 0x6d2   :  { %v7238_v9 = vmul.f32 -0.001358992, %v7237_v28  ;;  %v7245_v8 = vmul.f32 -0.00019511016, %v7237_v28  ;;  %v7361_v7 = vsel %vm7359_vm2, %v7360_v19, %v7356_v43  ;;  %v13359_v30 = vor.u32 %v7443_v32, %v7442_v26 }
 0x6d3   :  { %v7362_v41 = vadd.s32 %v7361_v7, %v7357_v59  ;;  %v7450_v33 = vor.u32 %v7449_v22, %v7448_v12  ;;  %v7254_v4 = vand.u32 3, %v7253_v16  ;;  %v13361_v38 = vor.u32 %v7437_v2, %v7436_v63 }
 0x6d4   :  { %v7239_v21 = vadd.f32 0.041655596, %v7238_v9  ;;  %v7246_v27 = vadd.f32 0.008332121, %v7245_v8  ;;  %vm7451_vm3 = vcmp.lt.s32.totalorder %v13338_v17, 1  ;;  %vm7454_vm4 = vcmp.lt.s32.totalorder %v13338_v17, 4 }
 0x6d5   :  { %v7363_v35 = vadd.s32 536870912, %v7362_v41  ;;  %vm7453_vm5 = vcmp.lt.s32.totalorder %v13338_v17, 3  ;;  %vm7452_vm6 = vcmp.lt.s32.totalorder %v13338_v17, 2  ;;  %v7460_v47 = vsel %vm7454_vm4, %v7447_v40, 920167782 }
 0x6d6   :  { %v7240_v1 = vmul.f32 %v7239_v21, %v7237_v28  ;;  %v7247_v50 = vmul.f32 %v7246_v27, %v7237_v28  ;;  %v7464_v44 = vsel %vm7454_vm4, %v7450_v33, 1326507024  ;;  %v13373_v48 = vshll.u32 %v7427_v37, 8 }
 0x6d7   :  { %v13365_v20 = vshrl.u32 %v7363_v35, 30  ;;  %v7463_v61 = vsel %vm7451_vm3, %v13357_v57, %v13359_v30  ;;  %vm7252_vm7 = vweird.f32 %v12972_v0  ;;  %v7459_v62 = vsel %vm7451_vm3, %v13361_v38, %v13357_v57 }
 0x6d8   :  { %v7241_v31 = vadd.f32 -0.4999988, %v7240_v1  ;;  %v7248_v46 = vadd.f32 -0.16666654, %v7247_v50  ;;  %v7465_v5 = vsel %vm7453_vm5, %v7447_v40, %v7464_v44  ;;  %v7461_v45 = vsel %vm7453_vm5, %v13359_v30, %v7460_v47 }
 0x6d9   :  { %v7365_v34 = vshll.u32 %v13365_v20, 30  ;;  %vm7259_vm8 = vcmp.eq.s32.totalorder %v7254_v4, 2  ;;  %v7466_v24 = vsel %vm7452_vm6, %v7463_v61, %v7465_v5  ;;  %v7468_v52 = vand.u32 65535, %v13373_v48 }
 0x6da   :  { %v7242_v60 = vmul.f32 %v7241_v31, %v7237_v28  ;;  %v7249_v51 = vmul.f32 %v7248_v46, %v7237_v28  ;;  %v7469_v54 = vshrl.u32 %v13373_v48, 16  ;;  %vm7256_vm10 = vcmp.eq.s32.totalorder %v7254_v4, 0 }
 0x6db   :  { %v7366_v25 = vsub.s32 %v7362_v41, %v7365_v34  ;;  %v7462_v16 = vsel %vm7452_vm6, %v7459_v62, %v7461_v45  ;;  %v7470_v43 = vand.u32 65535, %v7466_v24  ;;  %v7471_v28 = vshrl.u32 %v7466_v24, 16 }
 0x6dc   :  { %v7243_v18 = vadd.f32 1.0, %v7242_v60  ;;  %v7250_v13 = vadd.f32 1.0, %v7249_v51  ;;  %vm7255_vm11 = vcmp.lt.s32.totalorder %v7254_v4, 2  ;;  %v7492_v26 = vand.u32 65535, %v7462_v16 }
 0x6dd   :  { %vm7367_vm9 = vcmp.lt.s32.totalorder %v7366_v25, 0  ;;  %v7368_v58 = vsub.s32 0, %v7366_v25  ;;  %v7472_v42 = vmul.u32 %v7470_v43, %v7468_v52  ;;  %v7473_v12 = vmul.u32 %v7471_v28, %v7468_v52 }
 0x6de   :  { %v7251_v23 = vmul.f32 %v7250_v13, %v7235_v36  ;;  %v7260_v59 = vxor.u32 2147483648, %v7243_v18  ;;  %v7474_v9 = vmul.u32 %v7470_v43, %v7469_v54  ;;  %v7493_v36 = vshrl.u32 %v7462_v16, 16 }
 0x6df   :  { %v7369_v19 = vsel %vm7367_vm9, %v7368_v58, %v7366_v25  ;;  %v7475_v63 = vmul.u32 %v7471_v28, %v7469_v54  ;;  %v7476_v2 = vshll.u32 %v7473_v12, 16  ;;  %v7358_v27 = vadd.s32 %v13326_v56, %v13324_v3 }
 0x6e0   :  { %v7257_v14 = vxor.u32 2147483648, %v7251_v23  ;;  %v7261_v49 = vsel %vm7259_vm8, %v7260_v59, %v7251_v23  ;;  %v7370_v15 = vclz %v7369_v19  ;;  %v7478_v21 = vshll.u32 %v7474_v9, 16 }
 0x6e1   :  { %vm7480_vm13 = vc.u32 %v7472_v42, %v7476_v2  ;;  %v7482_v41 = vadd.s32 %v7476_v2, %v7472_v42  ;;  %v7495_v33 = vmul.u32 %v7493_v36, %v7468_v52  ;;  %v7496_v1 = vmul.u32 %v7492_v26, %v7469_v54 }
 0x6e2   :  { %v7258_v8 = vsel %vm7256_vm10, %v7243_v18, %v7257_v14  ;;  %v7737_v7 = vadd.s32 4294967294, %v7370_v15  ;;  %v7481_v40 = vsel %vm7480_vm13, 1, %v7835_v53  ;;  %v7494_v0 = vmul.u32 %v7492_v26, %v7468_v52 }
 0x6e3   :  { %v7262_v32 = vsel %vm7255_vm11, %v7258_v8, %v7261_v49  ;;  %v7483_v31 = vadd.s32 %v7481_v40, %v7475_v63  ;;  %vm7484_vm14 = vc.u32 %v7482_v41, %v7478_v21  ;;  %v7477_v44 = vshrl.u32 %v7473_v12, 16 }
 0x6e4   :  { %v7263_v22 = vsel %vm7252_vm7, nan, %v7262_v32  ;;  %vm7738_vm12 = vcmp.lt.s32.totalorder %v7737_v7, 0  ;;  %v7485_v3 = vsel %vm7484_vm14, 1, %v7835_v53  ;;  %v7497_v60 = vmul.u32 %v7493_v36, %v7469_v54 }
 0x6e5   :  { %7576 = vst [vmem:[#allocation5 + $0x188] sm:$0xff] %v7263_v22  ;;  %v7373_v37 = vsel %vm7738_vm12, 0, %v7737_v7  ;;  %v7487_v56 = vadd.s32 %v7485_v3, %v7483_v31  ;;  %v7498_v51 = vshll.u32 %v7495_v33, 16  ;;  %v7500_v34 = vshll.u32 %v7496_v1, 16 }
 0x6e6   :  { %v7374_v50 = vsub.s32 32, %v7373_v37  ;;  %v7375_v35 = vshll.u32 %v7366_v25, %v7373_v37  ;;  %v7378_v4 = vsub.s32 4294967266, %v7373_v37  ;;  %v7435_v5 = vshrl.u32 %v7829_v29, %v13333_v6 }
 0x6e7   :  { %v7456_v18 = vsel %vm7454_vm4, %v13359_v30, 2102212464  ;;  %v7479_v13 = vshrl.u32 %v7474_v9, 16  ;;  %vm7502_vm15 = vc.u32 %v7494_v0, %v7498_v51  ;;  %v7504_v25 = vadd.s32 %v7498_v51, %v7494_v0 }
 0x6e8   :  { %v7376_v46 = vshrl.u32 %v7358_v27, %v7374_v50  ;;  %v7379_v47 = vadd.s32 127, %v7378_v4  ;;  %v7488_v52 = vadd.s32 %v7487_v56, %v7477_v44  ;;  %v7503_v23 = vsel %vm7502_vm15, 1, %v7835_v53 }
 0x6e9   :  { %v7499_v54 = vshrl.u32 %v7495_v33, 16  ;;  %v7505_v59 = vadd.s32 %v7503_v23, %v7497_v60  ;;  %vm7506_vm0 = vc.u32 %v7504_v25, %v7500_v34  ;;  %v7455_v29 = vsel %vm7451_vm3, %v7435_v5, %v13361_v38 }
 0x6ea   :  { %v7377_v61 = vor.u32 %v7376_v46, %v7375_v35  ;;  %v7380_v62 = vshll.u32 %v7379_v47, 23  ;;  %v7457_v6 = vsel %vm7453_vm5, %v13357_v57, %v7456_v18  ;;  %v7507_v30 = vsel %vm7506_vm0, 1, %v7835_v53 }
 0x6eb   :  { %v7501_v16 = vshrl.u32 %v7496_v1, 16  ;;  %v7509_v43 = vadd.s32 %v7507_v30, %v7505_v59  ;;  %v7489_v14 = vadd.s32 %v7488_v52, %v7479_v13  ;;  %v7508_v49 = vadd.s32 %v7504_v25, %v7500_v34 }
 0x6ec   :  { %v7381_v45 = vor.u32 4788187, %v7380_v62  ;;  %v7384_v24 = vcvt.s32.f32 %v7377_v61  ;;  %vm7266_vm1 = vcmp.lt.s32.totalorder %v13122_v10, 0  ;;  %v7388_v19 = vsub.s32 4, %v13365_v20 }
 0x6ed   :  { %v7458_v15 = vsel %vm7452_vm6, %v7455_v29, %v7457_v6  ;;  %v7510_v42 = vadd.s32 %v7509_v43, %v7499_v54  ;;  %vm13421_vm2 = vcmp.le.f32.partialorder %v7264_v55, 0.7853982  ;;  %vm7514_vm3 = vc.u32 %v7489_v14, %v7508_v49 }
 0x6ee   :  { %v7382_v58 = vand.u32 2147483647, %v7381_v45  ;;  %v7512_v9 = vmul.u32 %v13373_v48, %v7458_v15  ;;  %v7389_v8 = vsel %vm7266_vm1, %v7388_v19, %v13365_v20  ;;  %vm7407_vm8 = vweird.f32 %v13122_v10 }
 0x6ef   :  { %v7511_v57 = vadd.s32 %v7510_v42, %v7501_v16  ;;  %v7391_v55 = vsel %vm13421_vm2, 0, %v7389_v8  ;;  %v7513_v18 = vadd.s32 %v7508_v49, %v7489_v14  ;;  %vm7421_vm10 = vcmp.lt.s32.totalorder %v13207_v39, 0 }
 0x6f0   :  { %v7385_v28 = vmul.f32 %v7384_v24, %v7382_v58  ;;  %v7408_v48 = vadd.s32 3, %v7391_v55  ;;  %vm7420_vm11 = vcmp.le.f32.partialorder %v7419_v11, 0.7853982  ;;  %vm7562_vm15 = vweird.f32 %v13207_v39 }
 0x6f1   :  { %v7515_v26 = vadd.s32 1, %v7511_v57 }
 0x6f2   :  { %v7386_v53 = vxor.u32 2147483648, %v7385_v28  ;;  %v7409_v50 = vand.u32 3, %v7408_v48 }
 0x6f3   :  { %v7516_v32 = vsel %vm7514_vm3, %v7515_v26, %v7511_v57 }
 0x6f4   :  { %v7387_v12 = vsel %vm7266_vm1, %v7386_v53, %v7385_v28  ;;  %v7517_v2 = vadd.s32 %v7516_v32, %v7512_v9  ;;  %vm7414_vm5 = vcmp.eq.s32.totalorder %v7409_v50, 2  ;;  %vm7411_vm6 = vcmp.eq.s32.totalorder %v7409_v50, 0 }
 0x6f5   :  { %v7390_v17 = vsel %vm13421_vm2, %v13122_v10, %v7387_v12  ;;  %vm7410_vm7 = vcmp.lt.s32.totalorder %v7409_v50, 2 }
 0x6f6   :  { %v7392_v36 = vmul.f32 %v7390_v17, %v7390_v17  ;;  %v7518_v27 = vadd.s32 536870912, %v7517_v2 }
 0x6f8   :  { %v7393_v7 = vmul.f32 -0.001358992, %v7392_v36  ;;  %v7400_v63 = vmul.f32 -0.00019511016, %v7392_v36  ;;  %v7519_v20 = vshrl.u32 %v7518_v27, 30 }
 0x6fa   :  { %v7394_v22 = vadd.f32 0.041655596, %v7393_v7  ;;  %v7401_v21 = vadd.f32 0.008332121, %v7400_v63  ;;  %v7520_v1 = vshll.u32 %v7519_v20, 30  ;;  %v7543_v10 = vsub.s32 4, %v7519_v20 }
 0x6fc   :  { %v7395_v41 = vmul.f32 %v7394_v22, %v7392_v36  ;;  %v7402_v37 = vmul.f32 %v7401_v21, %v7392_v36  ;;  %v7521_v31 = vsub.s32 %v7517_v2, %v7520_v1  ;;  %v7544_v14 = vsel %vm7421_vm10, %v7543_v10, %v7519_v20 }
 0x6fd   :  { %v7546_v15 = vsel %vm7420_vm11, 0, %v7544_v14 }
 0x6fe   :  { %v7396_v40 = vadd.f32 -0.4999988, %v7395_v41  ;;  %v7403_v33 = vadd.f32 -0.16666654, %v7402_v37  ;;  %vm7522_vm4 = vcmp.lt.s32.totalorder %v7521_v31, 0  ;;  %v7523_v47 = vsub.s32 0, %v7521_v31 }
 0x6ff   :  { %v7563_v12 = vadd.s32 3, %v7546_v15 }
 0x700   :  { %v7397_v35 = vmul.f32 %v7396_v40, %v7392_v36  ;;  %v7404_v4 = vmul.f32 %v7403_v33, %v7392_v36  ;;  %v7524_v56 = vsel %vm7522_vm4, %v7523_v47, %v7521_v31 }
 0x701   :  { %v7525_v60 = vclz %v7524_v56  ;;  %v7564_v36 = vand.u32 3, %v7563_v12 }
 0x702   :  { %v7398_v0 = vadd.f32 1.0, %v7397_v35  ;;  %v7405_v46 = vadd.f32 1.0, %v7404_v4 }
 0x703   :  { %v7740_v61 = vadd.s32 4294967294, %v7525_v60  ;;  %vm7569_vm12 = vcmp.eq.s32.totalorder %v7564_v36, 2  ;;  %vm7566_vm13 = vcmp.eq.s32.totalorder %v7564_v36, 0  ;;  %vm7565_vm14 = vcmp.lt.s32.totalorder %v7564_v36, 2 }
 0x704   :  { %v7406_v44 = vmul.f32 %v7405_v46, %v7390_v17  ;;  %v7415_v3 = vxor.u32 2147483648, %v7398_v0 }
 0x705   :  { %vm7741_vm9 = vcmp.lt.s32.totalorder %v7740_v61, 0 }
 0x706   :  { %v7412_v51 = vxor.u32 2147483648, %v7406_v44  ;;  %v7416_v34 = vsel %vm7414_vm5, %v7415_v3, %v7406_v44  ;;  %v7528_v25 = vsel %vm7741_vm9, 0, %v7740_v61 }
 0x707   :  { %v7529_v45 = vsub.s32 32, %v7528_v25  ;;  %v7530_v24 = vshll.u32 %v7521_v31, %v7528_v25  ;;  %v7533_v52 = vsub.s32 4294967266, %v7528_v25 }
 0x708   :  { %v7413_v62 = vsel %vm7411_vm6, %v7398_v0, %v7412_v51 }
 0x709   :  { %v7417_v5 = vsel %vm7410_vm7, %v7413_v62, %v7416_v34  ;;  %v7531_v23 = vshrl.u32 %v7513_v18, %v7529_v45  ;;  %v7534_v54 = vadd.s32 127, %v7533_v52 }
 0x70a   :  { %v7418_v13 = vsel %vm7407_vm8, nan, %v7417_v5 }
 0x70b   :  { %7577 = vst [vmem:[#allocation5 + $0x190] sm:$0xff] %v7418_v13  ;;  %v7532_v59 = vor.u32 %v7531_v23, %v7530_v24  ;;  %v7535_v58 = vshll.u32 %v7534_v54, 23 }
 0x70d   :  { %v7536_v29 = vor.u32 4788187, %v7535_v58  ;;  %v7539_v6 = vcvt.s32.f32 %v7532_v59 }
 0x70f   :  { %v7537_v30 = vand.u32 2147483647, %v7536_v29 }
 0x711   :  { %v7540_v16 = vmul.f32 %v7539_v6, %v7537_v30 }
 0x713   :  { %v7541_v43 = vxor.u32 2147483648, %v7540_v16 }
 0x715   :  { %v7542_v28 = vsel %vm7421_vm10, %v7541_v43, %v7540_v16 }
 0x716   :  { %v7545_v49 = vsel %vm7420_vm11, %v13207_v39, %v7542_v28 }
 0x717   :  { %v7547_v19 = vmul.f32 %v7545_v49, %v7545_v49 }
 0x719   :  { %v7548_v42 = vmul.f32 -0.001358992, %v7547_v19  ;;  %v7555_v38 = vmul.f32 -0.00019511016, %v7547_v19 }
 0x71b   :  { %v7549_v53 = vadd.f32 0.041655596, %v7548_v42  ;;  %v7556_v57 = vadd.f32 0.008332121, %v7555_v38 }
 0x71d   :  { %v7550_v9 = vmul.f32 %v7549_v53, %v7547_v19  ;;  %v7557_v8 = vmul.f32 %v7556_v57, %v7547_v19 }
 0x71f   :  { %v7551_v17 = vadd.f32 -0.4999988, %v7550_v9  ;;  %v7558_v26 = vadd.f32 -0.16666654, %v7557_v8 }
 0x721   :  { %v7552_v32 = vmul.f32 %v7551_v17, %v7547_v19  ;;  %v7559_v55 = vmul.f32 %v7558_v26, %v7547_v19 }
 0x723   :  { %v7553_v11 = vadd.f32 1.0, %v7552_v32  ;;  %v7560_v7 = vadd.f32 1.0, %v7559_v55 }
 0x725   :  { %v7561_v63 = vmul.f32 %v7560_v7, %v7545_v49  ;;  %v7570_v2 = vxor.u32 2147483648, %v7553_v11 }
 0x727   :  { %v7567_v22 = vxor.u32 2147483648, %v7561_v63  ;;  %v7571_v21 = vsel %vm7569_vm12, %v7570_v2, %v7561_v63 }
 0x729   :  { %v7568_v27 = vsel %vm7566_vm13, %v7553_v11, %v7567_v22 }
 0x72a   :  { %v7572_v48 = vsel %vm7565_vm14, %v7568_v27, %v7571_v21 }
 0x72b   :  { %v7573_v41 = vsel %vm7562_vm15, nan, %v7572_v48 }
 0x72c   :  { %7578 = vst [vmem:[#allocation5 + $0x198] sm:$0xff] %v7573_v41 }
 0x72d   :  { %7591 = dma.vmem_to_hbm [thread:$0]  %s7584_s11, 6656, %s7586_s14, [#allocation4], %s7837_s15, %s7837_s15, %s7838_s16  }
 0x72e   :  { %7826 = dma.done.wait [#allocation4], 6656  }
 0x72f   :  { %7827 = vsyncadd [#allocation4], 4294960640 }
 0x730   :  { %7596 = vsyncpa [#allocation3], 1 }
 0x731   :  { %7597 = vsyncpa [#allocation4], 1 }

</bundles_post_ra>
